<compile_context>
chip_gen: v7x
topology: tpu7x:2x2x1
jax: 0.10.0
libtpu: 0.0.40
codegen_flags: <defaults>
</compile_context>

<pallas_src>
import functools
import math

import jax
import jax.numpy as jnp
from jax.experimental import pallas as pl
from jax.experimental.pallas import tpu as pltpu

# ------------------------------ hyper params ---------------------------------
HIDDEN = 32          # hidden_channels
NUM_RBF = 16         # num_rbf
NUM_LAYERS = 2       # num_layers
MAX_Z = 128
CUTOFF_LOWER = 0.0
CUTOFF_UPPER = 4.5
N_ATOMS = 8

F32 = jnp.float32
ALPHA = 5.0 / (CUTOFF_UPPER - CUTOFF_LOWER)
RBF_START = math.exp(-CUTOFF_UPPER + CUTOFF_LOWER)
RBF_BETA = (2.0 / NUM_RBF * (1.0 - RBF_START)) ** -2


# -------------------- in-kernel helpers (values, not refs) --------------------
def _silu(x):
    # x * sigmoid(x); sigmoid via a single tanh EUP op (no exp + reciprocal)
    return x * (0.5 * jnp.tanh(0.5 * x) + 0.5)


def _layernorm(x, g, b, eps=1e-5):
    mu = jnp.mean(x, axis=-1, keepdims=True)
    var = jnp.mean((x - mu) ** 2, axis=-1, keepdims=True)
    return (x - mu) * jax.lax.rsqrt(var + eps) * g + b


def _tnorm9(t):
    # tensor_norm: sum of squares over the nine 3x3 components
    acc = t[0] * t[0]
    for c in range(1, 9):
        acc = acc + t[c] * t[c]
    return acc


def _mat33(p, q):
    # per-(atom, channel) 3x3 matmul on lists of nine (N, H) slabs
    out = []
    for i in range(3):
        for j in range(3):
            out.append(p[3 * i + 0] * q[j]
                       + p[3 * i + 1] * q[3 + j]
                       + p[3 * i + 2] * q[6 + j])
    return out


def _decompose_c(t):
    # -> (trace/3, antisym independent (a1,a2,a5), sym independent (s0,s1,s2,s4,s5,s8))
    trm = (t[0] + t[4] + t[8]) * (1.0 / 3.0)
    a = (0.5 * (t[1] - t[3]), 0.5 * (t[2] - t[6]), 0.5 * (t[5] - t[7]))
    s = (t[0] - trm, 0.5 * (t[1] + t[3]), 0.5 * (t[2] + t[6]),
         t[4] - trm, 0.5 * (t[5] + t[7]), t[8] - trm)
    return trm, a, s


def _assemble(diag, a, s):
    # full 9-component tensor diag*eye + A + S from the independent parts
    a1, a2, a5 = a
    s0, s1, s2, s4, s5, s8 = s
    return [diag + s0, a1 + s1, a2 + s2,
            s1 - a1, diag + s4, a5 + s5,
            s2 - a2, s5 - a5, diag + s8]


def _mixn(parts, w):
    # same (H, H) channel mix applied to each independent component
    return tuple(jnp.dot(x, w, preferred_element_type=F32) for x in parts)


# --------------------------------- kernel ------------------------------------
def tensornet_kernel(*refs, n, h, nlayers):
    (pos_ref, z_ref, means_ref, wdp_ref, bdp_ref, wz_ref, bz_ref,
     welt_ref, wls0_ref, wls1_ref, bls_ref, lng_ref, lnb_ref) = refs[:13]
    lrefs = refs[13:13 + 5 * nlayers]
    outg_ref, outb_ref, wlin_ref, blin_ref = refs[13 + 5 * nlayers:13 + 5 * nlayers + 4]
    out_ref = refs[13 + 5 * nlayers + 4]

    e = n * n

    # ----------------------- graph construction (in-kernel) -------------------
    # Edge ordering: flat index j*N + i, j = source, i = target.
    # edge_vec = pos[source] - pos[target], matching torchmd-net's Distance.
    p = pos_ref[...]                                                   # (N, 3)
    vec = (p[:, None, :] - p[None, :, :]).reshape(e, 3)                # (E, 3)
    vx, vy, vz = vec[:, 0:1], vec[:, 1:2], vec[:, 2:3]                 # (E, 1)
    d2 = vx * vx + vy * vy + vz * vz
    d = jnp.sqrt(d2)
    cut = 0.5 * (jnp.cos(d * (math.pi / CUTOFF_UPPER)) + 1.0)
    cut = cut * (d < CUTOFF_UPPER).astype(F32)                         # (E, 1)
    nonself = (d2 > 0.0).astype(F32)
    inv_d = nonself / jnp.where(d2 > 0.0, d, 1.0)                      # exact; 0 on self loops
    ux, uy, uz = vx * inv_d, vy * inv_d, vz * inv_d
    # expnorm RBF (cutoff folded in, as in torchmd-net ExpNormalSmearing)
    expd = jnp.exp(ALPHA * (CUTOFF_LOWER - d))
    rbf = cut * jnp.exp(-RBF_BETA * (expd - means_ref[...]) ** 2)      # (E, R)
    # per-edge skew / traceless-symmetric factors as (N, N, 1) [source, target, 1]
    tr3 = (ux * ux + uy * uy + uz * uz) * (1.0 / 3.0)
    sk1 = (-uz).reshape(n, n, 1)
    sk2 = uy.reshape(n, n, 1)
    sk5 = (-ux).reshape(n, n, 1)
    sy0 = (ux * ux - tr3).reshape(n, n, 1)
    sy4 = (uy * uy - tr3).reshape(n, n, 1)
    sy8 = (uz * uz - tr3).reshape(n, n, 1)
    sy1 = (ux * uy).reshape(n, n, 1)
    sy2 = (ux * uz).reshape(n, n, 1)
    sy5 = (uy * uz).reshape(n, n, 1)

    # ----------------------------- TensorEmbedding ----------------------------
    w123 = (jnp.dot(rbf, wdp_ref[...], preferred_element_type=F32)
            + bdp_ref[...]) * cut                                      # (E, 3H)
    zw = jnp.dot(z_ref[...], wz_ref[...], preferred_element_type=F32)  # (N, 2H)
    ziw, zjw = zw[:, 0:h], zw[:, h:2 * h]        # emb2 halves: target / source
    zedge = zjw[:, None, :] + ziw[None, :, :] + bz_ref[...]            # (N, N, H)
    # O(N^2 H) aggregation over the source axis (axis 0) -- replaces O(N^3) gather matmuls
    coef_i = zedge * w123[:, 0:h].reshape(n, n, h)
    i_node = jnp.sum(coef_i, axis=0)
    coef_a = zedge * w123[:, h:2 * h].reshape(n, n, h)
    a1 = jnp.sum(sk1 * coef_a, axis=0)
    a2 = jnp.sum(sk2 * coef_a, axis=0)
    a5 = jnp.sum(sk5 * coef_a, axis=0)
    coef_s = zedge * w123[:, 2 * h:3 * h].reshape(n, n, h)
    s0 = jnp.sum(sy0 * coef_s, axis=0)
    s1 = jnp.sum(sy1 * coef_s, axis=0)
    s2 = jnp.sum(sy2 * coef_s, axis=0)
    s4 = jnp.sum(sy4 * coef_s, axis=0)
    s5 = jnp.sum(sy5 * coef_s, axis=0)
    s8 = jnp.sum(sy8 * coef_s, axis=0)
    # LayerNorm(tensor_norm(I + A + S))
    norm = _layernorm(
        _tnorm9(_assemble(i_node, (a1, a2, a5), (s0, s1, s2, s4, s5, s8))),
        lng_ref[...], lnb_ref[...])
    # channel mixes (same (H,H) weight per tensor component)
    welt = welt_ref[...]
    i_mix = jnp.dot(i_node, welt[0:h, :], preferred_element_type=F32)
    am = _mixn((a1, a2, a5), welt[h:2 * h, :])
    sm = _mixn((s0, s1, s2, s4, s5, s8), welt[2 * h:3 * h, :])
    # radial factors (wls1 columns pre-permuted so [f_I | f_A | f_S] are lane slices)
    bls = bls_ref[...]
    sc = _silu(jnp.dot(norm, wls0_ref[...], preferred_element_type=F32) + bls[:, 0:2 * h])
    fac = _silu(jnp.dot(sc, wls1_ref[...], preferred_element_type=F32) + bls[:, 2 * h:5 * h])
    f_i, f_a, f_s = fac[:, 0:h], fac[:, h:2 * h], fac[:, 2 * h:3 * h]
    x_t = _assemble(f_i * i_mix,
                    tuple(f_a * v for v in am),
                    tuple(f_s * v for v in sm))

    # ------------------------------- Interaction ------------------------------
    def interaction(xc, ws0_ref, ws1_ref, ws2_ref, bscal_ref, lt_ref):
        bscal = bscal_ref[...]
        lt = lt_ref[...]
        # edge scalar MLP (ws2 columns pre-permuted to [f_I | f_A | f_S])
        e0 = _silu(jnp.dot(rbf, ws0_ref[...], preferred_element_type=F32) + bscal[:, 0:h])
        e1 = _silu(jnp.dot(e0, ws1_ref[...], preferred_element_type=F32) + bscal[:, h:3 * h])
        attr = _silu(jnp.dot(e1, ws2_ref[...], preferred_element_type=F32)
                     + bscal[:, 3 * h:6 * h]) * cut                    # (E, 3H)
        # X / (tensor_norm(X) + 1): exact reciprocal (compounds across layers)
        inv = 1.0 / (_tnorm9(xc) + 1.0)
        xn = [v * inv for v in xc]
        trm, a_p, s_p = _decompose_c(xn)
        # channel mix 1
        trm_m = jnp.dot(trm, lt[0:h, :], preferred_element_type=F32)
        am1 = _mixn(a_p, lt[h:2 * h, :])
        sm1 = _mixn(s_p, lt[2 * h:3 * h, :])
        y_t = _assemble(trm_m, am1, sm1)
        # message passing: msg[c][i] = sum_j f(d_ij) * mixed[c][j]
        f0 = attr[:, 0:h].reshape(n, n, h)
        im = jnp.sum(f0 * trm_m[:, None, :], axis=0)
        f1 = attr[:, h:2 * h].reshape(n, n, h)
        ma = tuple(jnp.sum(f1 * v[:, None, :], axis=0) for v in am1)
        f2 = attr[:, 2 * h:3 * h].reshape(n, n, h)
        ms = tuple(jnp.sum(f2 * v[:, None, :], axis=0) for v in sm1)
        msg = _assemble(im, ma, ms)
        # O(3): decompose(msg @ Y + Y @ msg), renormalize (exact reciprocal)
        prod = [u + v for u, v in zip(_mat33(msg, y_t), _mat33(y_t, msg))]
        inv2 = 1.0 / (_tnorm9(prod) + 1.0)
        prod = [v * inv2 for v in prod]
        trm2, a2_p, s2_p = _decompose_c(prod)
        # channel mix 2 and residual update
        trm2_m = jnp.dot(trm2, lt[3 * h:4 * h, :], preferred_element_type=F32)
        am2 = _mixn(a2_p, lt[4 * h:5 * h, :])
        sm2 = _mixn(s2_p, lt[5 * h:6 * h, :])
        dx = _assemble(trm2_m, am2, sm2)
        dx2 = _mat33(dx, dx)
        return [xn[c] + dx[c] + dx2[c] for c in range(9)]

    for li in range(nlayers):
        x_t = interaction(x_t, *lrefs[5 * li:5 * li + 5])

    # --------------------------------- readout --------------------------------
    trm, (a1, a2, a5), (s0, s1, s2, s4, s5, s8) = _decompose_c(x_t)
    n_i = 3.0 * trm * trm
    n_a = 2.0 * (a1 * a1 + a2 * a2 + a5 * a5)
    n_s = s0 * s0 + s4 * s4 + s8 * s8 + 2.0 * (s1 * s1 + s2 * s2 + s5 * s5)
    # LayerNorm over the virtual concat [n_i | n_a | n_s] (3H) without materializing it
    inv3h = 1.0 / (3.0 * h)
    mu = (jnp.sum(n_i, axis=-1, keepdims=True) + jnp.sum(n_a, axis=-1, keepdims=True)
          + jnp.sum(n_s, axis=-1, keepdims=True)) * inv3h
    di, da, ds = n_i - mu, n_a - mu, n_s - mu
    var = (jnp.sum(di * di, axis=-1, keepdims=True) + jnp.sum(da * da, axis=-1, keepdims=True)
           + jnp.sum(ds * ds, axis=-1, keepdims=True)) * inv3h
    rstd = jax.lax.rsqrt(var + 1e-5)
    outg, outb = outg_ref[...], outb_ref[...]
    yi = di * rstd * outg[:, 0:h] + outb[:, 0:h]
    ya = da * rstd * outg[:, h:2 * h] + outb[:, h:2 * h]
    ys = ds * rstd * outg[:, 2 * h:3 * h] + outb[:, 2 * h:3 * h]
    wlin = wlin_ref[...]
    pre = (jnp.dot(yi, wlin[0:h, :], preferred_element_type=F32)
           + jnp.dot(ya, wlin[h:2 * h, :], preferred_element_type=F32)
           + jnp.dot(ys, wlin[2 * h:3 * h, :], preferred_element_type=F32)
           + blin_ref[...])
    out_ref[...] = _silu(pre)


# ---------------------------- parameter init ----------------------------------
def _linear_init(key, fan_in, fan_out, bias=True):
    kw, kb = jax.random.split(key)
    bound = 1.0 / math.sqrt(fan_in)
    w = jax.random.uniform(kw, (fan_in, fan_out), F32, -bound, bound)
    b = (jax.random.uniform(kb, (fan_out,), F32, -bound, bound) if bias
         else jnp.zeros((fan_out,), F32))
    return w, b


def init_params(key, H=HIDDEN, num_rbf=NUM_RBF, num_layers=NUM_LAYERS, max_z=MAX_Z):
    keys = iter(jax.random.split(key, 64))
    p = {}
    p['emb'] = jax.random.normal(next(keys), (max_z, H), F32)
    p['dp1_w'], p['dp1_b'] = _linear_init(next(keys), num_rbf, H)
    p['dp2_w'], p['dp2_b'] = _linear_init(next(keys), num_rbf, H)
    p['dp3_w'], p['dp3_b'] = _linear_init(next(keys), num_rbf, H)
    p['emb2_w'], p['emb2_b'] = _linear_init(next(keys), 2 * H, H)
    p['emb_lt'] = [_linear_init(next(keys), H, H, bias=False)[0] for _ in range(3)]
    p['emb_ls0_w'], p['emb_ls0_b'] = _linear_init(next(keys), H, 2 * H)
    p['emb_ls1_w'], p['emb_ls1_b'] = _linear_init(next(keys), 2 * H, 3 * H)
    p['init_norm_g'] = jnp.ones((H,), F32)
    p['init_norm_b'] = jnp.zeros((H,), F32)
    layers = []
    for _ in range(num_layers):
        lp = {}
        lp['ls0_w'], lp['ls0_b'] = _linear_init(next(keys), num_rbf, H)
        lp['ls1_w'], lp['ls1_b'] = _linear_init(next(keys), H, 2 * H)
        lp['ls2_w'], lp['ls2_b'] = _linear_init(next(keys), 2 * H, 3 * H)
        lp['lt'] = [_linear_init(next(keys), H, H, bias=False)[0] for _ in range(6)]
        layers.append(lp)
    p['layers'] = layers
    p['out_norm_g'] = jnp.ones((3 * H,), F32)
    p['out_norm_b'] = jnp.zeros((3 * H,), F32)
    p['lin_w'], p['lin_b'] = _linear_init(next(keys), 3 * H, H)
    return p


def fuse_params(p, H=HIDDEN, num_rbf=NUM_RBF):
    # mathematically-equivalent weight fusion / column pre-permutation
    perm = jnp.array([3 * c + k for k in range(3) for c in range(H)], dtype=jnp.int32)
    f = {}
    f['emb'] = p['emb']
    f['means'] = jnp.linspace(RBF_START, 1.0, num_rbf, dtype=F32).reshape(1, num_rbf)
    f['wdp'] = jnp.concatenate([p['dp1_w'], p['dp2_w'], p['dp3_w']], axis=1)
    f['bdp'] = jnp.concatenate([p['dp1_b'], p['dp2_b'], p['dp3_b']]).reshape(1, 3 * H)
    f['wz'] = jnp.concatenate([p['emb2_w'][:H, :], p['emb2_w'][H:, :]], axis=1)  # [Z_i | Z_j]
    f['bz'] = p['emb2_b'].reshape(1, H)
    f['welt'] = jnp.concatenate(p['emb_lt'], axis=0)                              # (3H, H)
    f['wls0'] = p['emb_ls0_w']
    f['wls1'] = p['emb_ls1_w'][:, perm]
    f['bls'] = jnp.concatenate([p['emb_ls0_b'], p['emb_ls1_b'][perm]]).reshape(1, 5 * H)
    f['lng'] = p['init_norm_g'].reshape(1, H)
    f['lnb'] = p['init_norm_b'].reshape(1, H)
    layers = []
    for lp in p['layers']:
        layers.append({
            'ws0': lp['ls0_w'],
            'ws1': lp['ls1_w'],
            'ws2': lp['ls2_w'][:, perm],
            'bscal': jnp.concatenate([lp['ls0_b'], lp['ls1_b'],
                                      lp['ls2_b'][perm]]).reshape(1, 6 * H),
            'lt': jnp.concatenate(lp['lt'], axis=0),                              # (6H, H)
        })
    f['layers'] = layers
    f['outg'] = p['out_norm_g'].reshape(1, 3 * H)
    f['outb'] = p['out_norm_b'].reshape(1, 3 * H)
    f['wlin'] = p['lin_w']
    f['blin'] = p['lin_b'].reshape(1, H)
    return f


# ---------------------------------- forward -----------------------------------
@jax.jit
def tensornet_forward(fp, z, pos, batch):
    n = z.shape[0]
    zemb = fp['emb'][z]                         # atomic-number embedding lookup (XLA gather)
    nlayers = len(fp['layers'])
    args = [pos, zemb, fp['means'], fp['wdp'], fp['bdp'], fp['wz'], fp['bz'],
            fp['welt'], fp['wls0'], fp['wls1'], fp['bls'], fp['lng'], fp['lnb']]
    for lp in fp['layers']:
        args += [lp['ws0'], lp['ws1'], lp['ws2'], lp['bscal'], lp['lt']]
    args += [fp['outg'], fp['outb'], fp['wlin'], fp['blin']]
    x = pl.pallas_call(
        functools.partial(tensornet_kernel, n=n, h=HIDDEN, nlayers=nlayers),
        out_shape=jax.ShapeDtypeStruct((n, HIDDEN), F32),
        compiler_params=pltpu.CompilerParams(vmem_limit_bytes=32 * 1024 * 1024),
    )(*args)
    return x, None, z, pos, batch


# ------------------------------------ main -------------------------------------
if __name__ == "__main__":
    key = jax.random.PRNGKey(0)
    kp, kz, kpos = jax.random.split(key, 3)
    params = init_params(kp)
    fused = fuse_params(params)
    z = jax.random.randint(kz, (N_ATOMS,), 1, MAX_Z)
    pos = jax.random.uniform(kpos, (N_ATOMS, 3), F32, -2.0, 2.0)
    batch = jnp.zeros((N_ATOMS,), jnp.int32)

    out = tensornet_forward(fused, z, pos, batch)
    x = jax.block_until_ready(out[0])
    assert x.shape == (N_ATOMS, HIDDEN)
    assert bool(jnp.all(jnp.isfinite(x)))
    print("KERNEL_OK")
</pallas_src>

<mosaic_0001>
module attributes {stable_mosaic.version = 11 : i64} {
  func.func @tensornet_kernel(%arg0: memref<8x3xf32, #tpu.memory_space<vmem>>, %arg1: memref<8x32xf32, #tpu.memory_space<vmem>>, %arg2: memref<1x16xf32, #tpu.memory_space<vmem>>, %arg3: memref<16x96xf32, #tpu.memory_space<vmem>>, %arg4: memref<1x96xf32, #tpu.memory_space<vmem>>, %arg5: memref<32x64xf32, #tpu.memory_space<vmem>>, %arg6: memref<1x32xf32, #tpu.memory_space<vmem>>, %arg7: memref<96x32xf32, #tpu.memory_space<vmem>>, %arg8: memref<32x64xf32, #tpu.memory_space<vmem>>, %arg9: memref<64x96xf32, #tpu.memory_space<vmem>>, %arg10: memref<1x160xf32, #tpu.memory_space<vmem>>, %arg11: memref<1x32xf32, #tpu.memory_space<vmem>>, %arg12: memref<1x32xf32, #tpu.memory_space<vmem>>, %arg13: memref<16x32xf32, #tpu.memory_space<vmem>>, %arg14: memref<32x64xf32, #tpu.memory_space<vmem>>, %arg15: memref<64x96xf32, #tpu.memory_space<vmem>>, %arg16: memref<1x192xf32, #tpu.memory_space<vmem>>, %arg17: memref<192x32xf32, #tpu.memory_space<vmem>>, %arg18: memref<16x32xf32, #tpu.memory_space<vmem>>, %arg19: memref<32x64xf32, #tpu.memory_space<vmem>>, %arg20: memref<64x96xf32, #tpu.memory_space<vmem>>, %arg21: memref<1x192xf32, #tpu.memory_space<vmem>>, %arg22: memref<192x32xf32, #tpu.memory_space<vmem>>, %arg23: memref<1x96xf32, #tpu.memory_space<vmem>>, %arg24: memref<1x96xf32, #tpu.memory_space<vmem>>, %arg25: memref<96x32xf32, #tpu.memory_space<vmem>>, %arg26: memref<1x32xf32, #tpu.memory_space<vmem>>, %arg27: memref<8x32xf32, #tpu.memory_space<vmem>>) attributes {dimension_semantics = [], scalar_prefetch = 0 : i64, scratch_operands = 0 : i64, tpu.core_type = #tpu.core_type<tc>} {
    %c0 = arith.constant 0 : index
    %c0_0 = arith.constant 0 : index
    %0 = vector.load %arg0[%c0, %c0_0] : memref<8x3xf32, #tpu.memory_space<vmem>>, vector<8x3xf32>
    %1 = vector.shape_cast %0 : vector<8x3xf32> to vector<8x1x3xf32>
    %2 = vector.shape_cast %0 : vector<8x3xf32> to vector<1x8x3xf32>
    %3 = vector.broadcast %1 : vector<8x1x3xf32> to vector<8x8x3xf32>
    %4 = vector.broadcast %2 : vector<1x8x3xf32> to vector<8x8x3xf32>
    %5 = arith.subf %3, %4 : vector<8x8x3xf32>
    %6 = vector.shape_cast %5 : vector<8x8x3xf32> to vector<64x3xf32>
    %7 = vector.extract_strided_slice %6 {offsets = [0, 0], sizes = [64, 1], strides = [1, 1]} : vector<64x3xf32> to vector<64x1xf32>
    %8 = vector.extract_strided_slice %6 {offsets = [0, 1], sizes = [64, 1], strides = [1, 1]} : vector<64x3xf32> to vector<64x1xf32>
    %9 = vector.extract_strided_slice %6 {offsets = [0, 2], sizes = [64, 1], strides = [1, 1]} : vector<64x3xf32> to vector<64x1xf32>
    %10 = arith.mulf %7, %7 : vector<64x1xf32>
    %11 = arith.mulf %8, %8 : vector<64x1xf32>
    %12 = arith.addf %10, %11 : vector<64x1xf32>
    %13 = arith.mulf %9, %9 : vector<64x1xf32>
    %14 = arith.addf %12, %13 : vector<64x1xf32>
    %15 = math.sqrt %14 : vector<64x1xf32>
    %cst = arith.constant 0.69813168 : f32
    %16 = vector.broadcast %cst : f32 to vector<64x1xf32>
    %17 = arith.mulf %15, %16 : vector<64x1xf32>
    %18 = math.cos %17 : vector<64x1xf32>
    %cst_1 = arith.constant 1.000000e+00 : f32
    %19 = vector.broadcast %cst_1 : f32 to vector<64x1xf32>
    %20 = arith.addf %18, %19 : vector<64x1xf32>
    %cst_2 = arith.constant 5.000000e-01 : f32
    %21 = vector.broadcast %cst_2 : f32 to vector<64x1xf32>
    %22 = arith.mulf %21, %20 : vector<64x1xf32>
    %cst_3 = arith.constant 4.500000e+00 : f32
    %23 = vector.broadcast %cst_3 : f32 to vector<64x1xf32>
    %24 = arith.cmpf olt, %15, %23 : vector<64x1xf32>
    %25 = arith.extui %24 : vector<64x1xi1> to vector<64x1xi32>
    %26 = arith.sitofp %25 : vector<64x1xi32> to vector<64x1xf32>
    %27 = arith.mulf %22, %26 : vector<64x1xf32>
    %cst_4 = arith.constant 0.000000e+00 : f32
    %28 = vector.broadcast %cst_4 : f32 to vector<64x1xf32>
    %29 = arith.cmpf ogt, %14, %28 : vector<64x1xf32>
    %30 = arith.extui %29 : vector<64x1xi1> to vector<64x1xi32>
    %31 = arith.sitofp %30 : vector<64x1xi32> to vector<64x1xf32>
    %cst_5 = arith.constant 0.000000e+00 : f32
    %32 = vector.broadcast %cst_5 : f32 to vector<64x1xf32>
    %33 = arith.cmpf ogt, %14, %32 : vector<64x1xf32>
    %cst_6 = arith.constant 1.000000e+00 : f32
    %34 = vector.broadcast %cst_6 : f32 to vector<64x1xf32>
    %35 = arith.select %33, %15, %34 : vector<64x1xi1>, vector<64x1xf32>
    %36 = arith.divf %31, %35 : vector<64x1xf32>
    %37 = arith.mulf %7, %36 : vector<64x1xf32>
    %38 = arith.mulf %8, %36 : vector<64x1xf32>
    %39 = arith.mulf %9, %36 : vector<64x1xf32>
    %cst_7 = arith.constant 0.000000e+00 : f32
    %40 = vector.broadcast %cst_7 : f32 to vector<64x1xf32>
    %41 = arith.subf %40, %15 : vector<64x1xf32>
    %cst_8 = arith.constant 1.11111116 : f32
    %42 = vector.broadcast %cst_8 : f32 to vector<64x1xf32>
    %43 = arith.mulf %42, %41 : vector<64x1xf32>
    %44 = math.exp %43 : vector<64x1xf32>
    %c0_9 = arith.constant 0 : index
    %c0_10 = arith.constant 0 : index
    %45 = vector.load %arg2[%c0_9, %c0_10] : memref<1x16xf32, #tpu.memory_space<vmem>>, vector<1x16xf32>
    %46 = vector.broadcast %44 : vector<64x1xf32> to vector<64x16xf32>
    %47 = vector.broadcast %45 : vector<1x16xf32> to vector<64x16xf32>
    %48 = arith.subf %46, %47 : vector<64x16xf32>
    %49 = arith.mulf %48, %48 : vector<64x16xf32>
    %cst_11 = arith.constant -65.4459991 : f32
    %50 = vector.broadcast %cst_11 : f32 to vector<64x16xf32>
    %51 = arith.mulf %50, %49 : vector<64x16xf32>
    %52 = math.exp %51 : vector<64x16xf32>
    %53 = vector.broadcast %27 : vector<64x1xf32> to vector<64x16xf32>
    %54 = arith.mulf %53, %52 : vector<64x16xf32>
    %55 = arith.mulf %37, %37 : vector<64x1xf32>
    %56 = arith.mulf %38, %38 : vector<64x1xf32>
    %57 = arith.addf %55, %56 : vector<64x1xf32>
    %58 = arith.mulf %39, %39 : vector<64x1xf32>
    %59 = arith.addf %57, %58 : vector<64x1xf32>
    %cst_12 = arith.constant 0.333333343 : f32
    %60 = vector.broadcast %cst_12 : f32 to vector<64x1xf32>
    %61 = arith.mulf %59, %60 : vector<64x1xf32>
    %cst_13 = arith.constant 0.000000e+00 : f32
    %62 = vector.broadcast %cst_13 : f32 to vector<64x1xf32>
    %63 = arith.subf %62, %39 : vector<64x1xf32>
    %64 = vector.shape_cast %63 : vector<64x1xf32> to vector<8x8x1xf32>
    %65 = vector.shape_cast %38 : vector<64x1xf32> to vector<8x8x1xf32>
    %cst_14 = arith.constant 0.000000e+00 : f32
    %66 = vector.broadcast %cst_14 : f32 to vector<64x1xf32>
    %67 = arith.subf %66, %37 : vector<64x1xf32>
    %68 = vector.shape_cast %67 : vector<64x1xf32> to vector<8x8x1xf32>
    %69 = arith.mulf %37, %37 : vector<64x1xf32>
    %70 = arith.subf %69, %61 : vector<64x1xf32>
    %71 = vector.shape_cast %70 : vector<64x1xf32> to vector<8x8x1xf32>
    %72 = arith.mulf %38, %38 : vector<64x1xf32>
    %73 = arith.subf %72, %61 : vector<64x1xf32>
    %74 = vector.shape_cast %73 : vector<64x1xf32> to vector<8x8x1xf32>
    %75 = arith.mulf %39, %39 : vector<64x1xf32>
    %76 = arith.subf %75, %61 : vector<64x1xf32>
    %77 = vector.shape_cast %76 : vector<64x1xf32> to vector<8x8x1xf32>
    %78 = arith.mulf %37, %38 : vector<64x1xf32>
    %79 = vector.shape_cast %78 : vector<64x1xf32> to vector<8x8x1xf32>
    %80 = arith.mulf %37, %39 : vector<64x1xf32>
    %81 = vector.shape_cast %80 : vector<64x1xf32> to vector<8x8x1xf32>
    %82 = arith.mulf %38, %39 : vector<64x1xf32>
    %83 = vector.shape_cast %82 : vector<64x1xf32> to vector<8x8x1xf32>
    %c0_15 = arith.constant 0 : index
    %c0_16 = arith.constant 0 : index
    %84 = vector.load %arg3[%c0_15, %c0_16] : memref<16x96xf32, #tpu.memory_space<vmem>>, vector<16x96xf32>
    %cst_17 = arith.constant dense<0.000000e+00> : vector<64x96xf32>
    %85 = tpu.matmul %54, %84, %cst_17 {dimension_numbers = #tpu.dot_dimension_numbers<[1], [0], [0], [1], [0, 0, 1, 1], [], []>} : vector<64x16xf32>, vector<16x96xf32>, vector<64x96xf32> -> vector<64x96xf32>
    %c0_18 = arith.constant 0 : index
    %c0_19 = arith.constant 0 : index
    %86 = vector.load %arg4[%c0_18, %c0_19] : memref<1x96xf32, #tpu.memory_space<vmem>>, vector<1x96xf32>
    %87 = vector.broadcast %86 : vector<1x96xf32> to vector<64x96xf32>
    %88 = arith.addf %85, %87 : vector<64x96xf32>
    %89 = vector.broadcast %27 : vector<64x1xf32> to vector<64x96xf32>
    %90 = arith.mulf %88, %89 : vector<64x96xf32>
    %c0_20 = arith.constant 0 : index
    %c0_21 = arith.constant 0 : index
    %91 = vector.load %arg1[%c0_20, %c0_21] : memref<8x32xf32, #tpu.memory_space<vmem>>, vector<8x32xf32>
    %c0_22 = arith.constant 0 : index
    %c0_23 = arith.constant 0 : index
    %92 = vector.load %arg5[%c0_22, %c0_23] : memref<32x64xf32, #tpu.memory_space<vmem>>, vector<32x64xf32>
    %cst_24 = arith.constant dense<0.000000e+00> : vector<8x64xf32>
    %93 = tpu.matmul %91, %92, %cst_24 {dimension_numbers = #tpu.dot_dimension_numbers<[1], [0], [0], [1], [0, 0, 1, 1], [], []>} : vector<8x32xf32>, vector<32x64xf32>, vector<8x64xf32> -> vector<8x64xf32>
    %94 = vector.extract_strided_slice %93 {offsets = [0, 0], sizes = [8, 32], strides = [1, 1]} : vector<8x64xf32> to vector<8x32xf32>
    %95 = vector.extract_strided_slice %93 {offsets = [0, 32], sizes = [8, 32], strides = [1, 1]} : vector<8x64xf32> to vector<8x32xf32>
    %96 = vector.shape_cast %95 : vector<8x32xf32> to vector<8x1x32xf32>
    %97 = vector.shape_cast %94 : vector<8x32xf32> to vector<1x8x32xf32>
    %98 = vector.broadcast %96 : vector<8x1x32xf32> to vector<8x8x32xf32>
    %99 = vector.broadcast %97 : vector<1x8x32xf32> to vector<8x8x32xf32>
    %100 = arith.addf %98, %99 : vector<8x8x32xf32>
    %c0_25 = arith.constant 0 : index
    %c0_26 = arith.constant 0 : index
    %101 = vector.load %arg6[%c0_25, %c0_26] : memref<1x32xf32, #tpu.memory_space<vmem>>, vector<1x32xf32>
    %102 = vector.shape_cast %101 : vector<1x32xf32> to vector<1x1x32xf32>
    %103 = vector.broadcast %102 : vector<1x1x32xf32> to vector<8x8x32xf32>
    %104 = arith.addf %100, %103 : vector<8x8x32xf32>
    %105 = vector.extract_strided_slice %90 {offsets = [0, 0], sizes = [64, 32], strides = [1, 1]} : vector<64x96xf32> to vector<64x32xf32>
    %106 = vector.shape_cast %105 : vector<64x32xf32> to vector<8x8x32xf32>
    %107 = arith.mulf %104, %106 : vector<8x8x32xf32>
    %cst_27 = arith.constant dense<0.000000e+00> : vector<8x32xf32>
    %108 = vector.multi_reduction <add>, %107, %cst_27 [0] : vector<8x8x32xf32> to vector<8x32xf32>
    %109 = vector.extract_strided_slice %90 {offsets = [0, 32], sizes = [64, 32], strides = [1, 1]} : vector<64x96xf32> to vector<64x32xf32>
    %110 = vector.shape_cast %109 : vector<64x32xf32> to vector<8x8x32xf32>
    %111 = arith.mulf %104, %110 : vector<8x8x32xf32>
    %112 = vector.broadcast %64 : vector<8x8x1xf32> to vector<8x8x32xf32>
    %113 = arith.mulf %112, %111 : vector<8x8x32xf32>
    %cst_28 = arith.constant dense<0.000000e+00> : vector<8x32xf32>
    %114 = vector.multi_reduction <add>, %113, %cst_28 [0] : vector<8x8x32xf32> to vector<8x32xf32>
    %115 = vector.broadcast %65 : vector<8x8x1xf32> to vector<8x8x32xf32>
    %116 = arith.mulf %115, %111 : vector<8x8x32xf32>
    %cst_29 = arith.constant dense<0.000000e+00> : vector<8x32xf32>
    %117 = vector.multi_reduction <add>, %116, %cst_29 [0] : vector<8x8x32xf32> to vector<8x32xf32>
    %118 = vector.broadcast %68 : vector<8x8x1xf32> to vector<8x8x32xf32>
    %119 = arith.mulf %118, %111 : vector<8x8x32xf32>
    %cst_30 = arith.constant dense<0.000000e+00> : vector<8x32xf32>
    %120 = vector.multi_reduction <add>, %119, %cst_30 [0] : vector<8x8x32xf32> to vector<8x32xf32>
    %121 = vector.extract_strided_slice %90 {offsets = [0, 64], sizes = [64, 32], strides = [1, 1]} : vector<64x96xf32> to vector<64x32xf32>
    %122 = vector.shape_cast %121 : vector<64x32xf32> to vector<8x8x32xf32>
    %123 = arith.mulf %104, %122 : vector<8x8x32xf32>
    %124 = vector.broadcast %71 : vector<8x8x1xf32> to vector<8x8x32xf32>
    %125 = arith.mulf %124, %123 : vector<8x8x32xf32>
    %cst_31 = arith.constant dense<0.000000e+00> : vector<8x32xf32>
    %126 = vector.multi_reduction <add>, %125, %cst_31 [0] : vector<8x8x32xf32> to vector<8x32xf32>
    %127 = vector.broadcast %79 : vector<8x8x1xf32> to vector<8x8x32xf32>
    %128 = arith.mulf %127, %123 : vector<8x8x32xf32>
    %cst_32 = arith.constant dense<0.000000e+00> : vector<8x32xf32>
    %129 = vector.multi_reduction <add>, %128, %cst_32 [0] : vector<8x8x32xf32> to vector<8x32xf32>
    %130 = vector.broadcast %81 : vector<8x8x1xf32> to vector<8x8x32xf32>
    %131 = arith.mulf %130, %123 : vector<8x8x32xf32>
    %cst_33 = arith.constant dense<0.000000e+00> : vector<8x32xf32>
    %132 = vector.multi_reduction <add>, %131, %cst_33 [0] : vector<8x8x32xf32> to vector<8x32xf32>
    %133 = vector.broadcast %74 : vector<8x8x1xf32> to vector<8x8x32xf32>
    %134 = arith.mulf %133, %123 : vector<8x8x32xf32>
    %cst_34 = arith.constant dense<0.000000e+00> : vector<8x32xf32>
    %135 = vector.multi_reduction <add>, %134, %cst_34 [0] : vector<8x8x32xf32> to vector<8x32xf32>
    %136 = vector.broadcast %83 : vector<8x8x1xf32> to vector<8x8x32xf32>
    %137 = arith.mulf %136, %123 : vector<8x8x32xf32>
    %cst_35 = arith.constant dense<0.000000e+00> : vector<8x32xf32>
    %138 = vector.multi_reduction <add>, %137, %cst_35 [0] : vector<8x8x32xf32> to vector<8x32xf32>
    %139 = vector.broadcast %77 : vector<8x8x1xf32> to vector<8x8x32xf32>
    %140 = arith.mulf %139, %123 : vector<8x8x32xf32>
    %cst_36 = arith.constant dense<0.000000e+00> : vector<8x32xf32>
    %141 = vector.multi_reduction <add>, %140, %cst_36 [0] : vector<8x8x32xf32> to vector<8x32xf32>
    %142 = arith.addf %108, %126 : vector<8x32xf32>
    %143 = arith.addf %114, %129 : vector<8x32xf32>
    %144 = arith.addf %117, %132 : vector<8x32xf32>
    %145 = arith.subf %129, %114 : vector<8x32xf32>
    %146 = arith.addf %108, %135 : vector<8x32xf32>
    %147 = arith.addf %120, %138 : vector<8x32xf32>
    %148 = arith.subf %132, %117 : vector<8x32xf32>
    %149 = arith.subf %138, %120 : vector<8x32xf32>
    %150 = arith.addf %108, %141 : vector<8x32xf32>
    %151 = arith.mulf %142, %142 : vector<8x32xf32>
    %152 = arith.mulf %143, %143 : vector<8x32xf32>
    %153 = arith.addf %151, %152 : vector<8x32xf32>
    %154 = arith.mulf %144, %144 : vector<8x32xf32>
    %155 = arith.addf %153, %154 : vector<8x32xf32>
    %156 = arith.mulf %145, %145 : vector<8x32xf32>
    %157 = arith.addf %155, %156 : vector<8x32xf32>
    %158 = arith.mulf %146, %146 : vector<8x32xf32>
    %159 = arith.addf %157, %158 : vector<8x32xf32>
    %160 = arith.mulf %147, %147 : vector<8x32xf32>
    %161 = arith.addf %159, %160 : vector<8x32xf32>
    %162 = arith.mulf %148, %148 : vector<8x32xf32>
    %163 = arith.addf %161, %162 : vector<8x32xf32>
    %164 = arith.mulf %149, %149 : vector<8x32xf32>
    %165 = arith.addf %163, %164 : vector<8x32xf32>
    %166 = arith.mulf %150, %150 : vector<8x32xf32>
    %167 = arith.addf %165, %166 : vector<8x32xf32>
    %c0_37 = arith.constant 0 : index
    %c0_38 = arith.constant 0 : index
    %168 = vector.load %arg11[%c0_37, %c0_38] : memref<1x32xf32, #tpu.memory_space<vmem>>, vector<1x32xf32>
    %c0_39 = arith.constant 0 : index
    %c0_40 = arith.constant 0 : index
    %169 = vector.load %arg12[%c0_39, %c0_40] : memref<1x32xf32, #tpu.memory_space<vmem>>, vector<1x32xf32>
    %cst_41 = arith.constant dense<0.000000e+00> : vector<8xf32>
    %170 = vector.multi_reduction <add>, %167, %cst_41 [1] : vector<8x32xf32> to vector<8xf32>
    %171 = vector.shape_cast %170 : vector<8xf32> to vector<8x1xf32>
    %cst_42 = arith.constant 3.200000e+01 : f32
    %172 = vector.broadcast %cst_42 : f32 to vector<8x1xf32>
    %173 = arith.divf %171, %172 : vector<8x1xf32>
    %174 = vector.broadcast %173 : vector<8x1xf32> to vector<8x32xf32>
    %175 = arith.subf %167, %174 : vector<8x32xf32>
    %176 = arith.mulf %175, %175 : vector<8x32xf32>
    %cst_43 = arith.constant dense<0.000000e+00> : vector<8xf32>
    %177 = vector.multi_reduction <add>, %176, %cst_43 [1] : vector<8x32xf32> to vector<8xf32>
    %178 = vector.shape_cast %177 : vector<8xf32> to vector<8x1xf32>
    %cst_44 = arith.constant 3.200000e+01 : f32
    %179 = vector.broadcast %cst_44 : f32 to vector<8x1xf32>
    %180 = arith.divf %178, %179 : vector<8x1xf32>
    %181 = vector.broadcast %173 : vector<8x1xf32> to vector<8x32xf32>
    %182 = arith.subf %167, %181 : vector<8x32xf32>
    %cst_45 = arith.constant 9.99999974E-6 : f32
    %183 = vector.broadcast %cst_45 : f32 to vector<8x1xf32>
    %184 = arith.addf %180, %183 : vector<8x1xf32>
    %185 = math.rsqrt %184 : vector<8x1xf32>
    %186 = vector.broadcast %185 : vector<8x1xf32> to vector<8x32xf32>
    %187 = arith.mulf %182, %186 : vector<8x32xf32>
    %188 = vector.broadcast %168 : vector<1x32xf32> to vector<8x32xf32>
    %189 = arith.mulf %187, %188 : vector<8x32xf32>
    %190 = vector.broadcast %169 : vector<1x32xf32> to vector<8x32xf32>
    %191 = arith.addf %189, %190 : vector<8x32xf32>
    %c0_46 = arith.constant 0 : index
    %c0_47 = arith.constant 0 : index
    %192 = vector.load %arg7[%c0_46, %c0_47] : memref<96x32xf32, #tpu.memory_space<vmem>>, vector<96x32xf32>
    %193 = vector.extract_strided_slice %192 {offsets = [0, 0], sizes = [32, 32], strides = [1, 1]} : vector<96x32xf32> to vector<32x32xf32>
    %cst_48 = arith.constant dense<0.000000e+00> : vector<8x32xf32>
    %194 = tpu.matmul %108, %193, %cst_48 {dimension_numbers = #tpu.dot_dimension_numbers<[1], [0], [0], [1], [0, 0, 1, 1], [], []>} : vector<8x32xf32>, vector<32x32xf32>, vector<8x32xf32> -> vector<8x32xf32>
    %195 = vector.extract_strided_slice %192 {offsets = [32, 0], sizes = [32, 32], strides = [1, 1]} : vector<96x32xf32> to vector<32x32xf32>
    %cst_49 = arith.constant dense<0.000000e+00> : vector<8x32xf32>
    %196 = tpu.matmul %114, %195, %cst_49 {dimension_numbers = #tpu.dot_dimension_numbers<[1], [0], [0], [1], [0, 0, 1, 1], [], []>} : vector<8x32xf32>, vector<32x32xf32>, vector<8x32xf32> -> vector<8x32xf32>
    %cst_50 = arith.constant dense<0.000000e+00> : vector<8x32xf32>
    %197 = tpu.matmul %117, %195, %cst_50 {dimension_numbers = #tpu.dot_dimension_numbers<[1], [0], [0], [1], [0, 0, 1, 1], [], []>} : vector<8x32xf32>, vector<32x32xf32>, vector<8x32xf32> -> vector<8x32xf32>
    %cst_51 = arith.constant dense<0.000000e+00> : vector<8x32xf32>
    %198 = tpu.matmul %120, %195, %cst_51 {dimension_numbers = #tpu.dot_dimension_numbers<[1], [0], [0], [1], [0, 0, 1, 1], [], []>} : vector<8x32xf32>, vector<32x32xf32>, vector<8x32xf32> -> vector<8x32xf32>
    %199 = vector.extract_strided_slice %192 {offsets = [64, 0], sizes = [32, 32], strides = [1, 1]} : vector<96x32xf32> to vector<32x32xf32>
    %cst_52 = arith.constant dense<0.000000e+00> : vector<8x32xf32>
    %200 = tpu.matmul %126, %199, %cst_52 {dimension_numbers = #tpu.dot_dimension_numbers<[1], [0], [0], [1], [0, 0, 1, 1], [], []>} : vector<8x32xf32>, vector<32x32xf32>, vector<8x32xf32> -> vector<8x32xf32>
    %cst_53 = arith.constant dense<0.000000e+00> : vector<8x32xf32>
    %201 = tpu.matmul %129, %199, %cst_53 {dimension_numbers = #tpu.dot_dimension_numbers<[1], [0], [0], [1], [0, 0, 1, 1], [], []>} : vector<8x32xf32>, vector<32x32xf32>, vector<8x32xf32> -> vector<8x32xf32>
    %cst_54 = arith.constant dense<0.000000e+00> : vector<8x32xf32>
    %202 = tpu.matmul %132, %199, %cst_54 {dimension_numbers = #tpu.dot_dimension_numbers<[1], [0], [0], [1], [0, 0, 1, 1], [], []>} : vector<8x32xf32>, vector<32x32xf32>, vector<8x32xf32> -> vector<8x32xf32>
    %cst_55 = arith.constant dense<0.000000e+00> : vector<8x32xf32>
    %203 = tpu.matmul %135, %199, %cst_55 {dimension_numbers = #tpu.dot_dimension_numbers<[1], [0], [0], [1], [0, 0, 1, 1], [], []>} : vector<8x32xf32>, vector<32x32xf32>, vector<8x32xf32> -> vector<8x32xf32>
    %cst_56 = arith.constant dense<0.000000e+00> : vector<8x32xf32>
    %204 = tpu.matmul %138, %199, %cst_56 {dimension_numbers = #tpu.dot_dimension_numbers<[1], [0], [0], [1], [0, 0, 1, 1], [], []>} : vector<8x32xf32>, vector<32x32xf32>, vector<8x32xf32> -> vector<8x32xf32>
    %cst_57 = arith.constant dense<0.000000e+00> : vector<8x32xf32>
    %205 = tpu.matmul %141, %199, %cst_57 {dimension_numbers = #tpu.dot_dimension_numbers<[1], [0], [0], [1], [0, 0, 1, 1], [], []>} : vector<8x32xf32>, vector<32x32xf32>, vector<8x32xf32> -> vector<8x32xf32>
    %c0_58 = arith.constant 0 : index
    %c0_59 = arith.constant 0 : index
    %206 = vector.load %arg10[%c0_58, %c0_59] : memref<1x160xf32, #tpu.memory_space<vmem>>, vector<1x160xf32>
    %c0_60 = arith.constant 0 : index
    %c0_61 = arith.constant 0 : index
    %207 = vector.load %arg8[%c0_60, %c0_61] : memref<32x64xf32, #tpu.memory_space<vmem>>, vector<32x64xf32>
    %cst_62 = arith.constant dense<0.000000e+00> : vector<8x64xf32>
    %208 = tpu.matmul %191, %207, %cst_62 {dimension_numbers = #tpu.dot_dimension_numbers<[1], [0], [0], [1], [0, 0, 1, 1], [], []>} : vector<8x32xf32>, vector<32x64xf32>, vector<8x64xf32> -> vector<8x64xf32>
    %209 = vector.extract_strided_slice %206 {offsets = [0, 0], sizes = [1, 64], strides = [1, 1]} : vector<1x160xf32> to vector<1x64xf32>
    %210 = vector.broadcast %209 : vector<1x64xf32> to vector<8x64xf32>
    %211 = arith.addf %208, %210 : vector<8x64xf32>
    %cst_63 = arith.constant 5.000000e-01 : f32
    %212 = vector.broadcast %cst_63 : f32 to vector<8x64xf32>
    %213 = arith.mulf %212, %211 : vector<8x64xf32>
    %214 = math.tanh %213 : vector<8x64xf32>
    %cst_64 = arith.constant 5.000000e-01 : f32
    %215 = vector.broadcast %cst_64 : f32 to vector<8x64xf32>
    %216 = arith.mulf %215, %214 : vector<8x64xf32>
    %cst_65 = arith.constant 5.000000e-01 : f32
    %217 = vector.broadcast %cst_65 : f32 to vector<8x64xf32>
    %218 = arith.addf %216, %217 : vector<8x64xf32>
    %219 = arith.mulf %211, %218 : vector<8x64xf32>
    %c0_66 = arith.constant 0 : index
    %c0_67 = arith.constant 0 : index
    %220 = vector.load %arg9[%c0_66, %c0_67] : memref<64x96xf32, #tpu.memory_space<vmem>>, vector<64x96xf32>
    %cst_68 = arith.constant dense<0.000000e+00> : vector<8x96xf32>
    %221 = tpu.matmul %219, %220, %cst_68 {dimension_numbers = #tpu.dot_dimension_numbers<[1], [0], [0], [1], [0, 0, 1, 1], [], []>} : vector<8x64xf32>, vector<64x96xf32>, vector<8x96xf32> -> vector<8x96xf32>
    %222 = vector.extract_strided_slice %206 {offsets = [0, 64], sizes = [1, 96], strides = [1, 1]} : vector<1x160xf32> to vector<1x96xf32>
    %223 = vector.broadcast %222 : vector<1x96xf32> to vector<8x96xf32>
    %224 = arith.addf %221, %223 : vector<8x96xf32>
    %cst_69 = arith.constant 5.000000e-01 : f32
    %225 = vector.broadcast %cst_69 : f32 to vector<8x96xf32>
    %226 = arith.mulf %225, %224 : vector<8x96xf32>
    %227 = math.tanh %226 : vector<8x96xf32>
    %cst_70 = arith.constant 5.000000e-01 : f32
    %228 = vector.broadcast %cst_70 : f32 to vector<8x96xf32>
    %229 = arith.mulf %228, %227 : vector<8x96xf32>
    %cst_71 = arith.constant 5.000000e-01 : f32
    %230 = vector.broadcast %cst_71 : f32 to vector<8x96xf32>
    %231 = arith.addf %229, %230 : vector<8x96xf32>
    %232 = arith.mulf %224, %231 : vector<8x96xf32>
    %233 = vector.extract_strided_slice %232 {offsets = [0, 0], sizes = [8, 32], strides = [1, 1]} : vector<8x96xf32> to vector<8x32xf32>
    %234 = vector.extract_strided_slice %232 {offsets = [0, 32], sizes = [8, 32], strides = [1, 1]} : vector<8x96xf32> to vector<8x32xf32>
    %235 = vector.extract_strided_slice %232 {offsets = [0, 64], sizes = [8, 32], strides = [1, 1]} : vector<8x96xf32> to vector<8x32xf32>
    %236 = arith.mulf %233, %194 : vector<8x32xf32>
    %237 = arith.mulf %234, %196 : vector<8x32xf32>
    %238 = arith.mulf %234, %197 : vector<8x32xf32>
    %239 = arith.mulf %234, %198 : vector<8x32xf32>
    %240 = arith.mulf %235, %200 : vector<8x32xf32>
    %241 = arith.mulf %235, %201 : vector<8x32xf32>
    %242 = arith.mulf %235, %202 : vector<8x32xf32>
    %243 = arith.mulf %235, %203 : vector<8x32xf32>
    %244 = arith.mulf %235, %204 : vector<8x32xf32>
    %245 = arith.mulf %235, %205 : vector<8x32xf32>
    %246 = arith.addf %236, %240 : vector<8x32xf32>
    %247 = arith.addf %237, %241 : vector<8x32xf32>
    %248 = arith.addf %238, %242 : vector<8x32xf32>
    %249 = arith.subf %241, %237 : vector<8x32xf32>
    %250 = arith.addf %236, %243 : vector<8x32xf32>
    %251 = arith.addf %239, %244 : vector<8x32xf32>
    %252 = arith.subf %242, %238 : vector<8x32xf32>
    %253 = arith.subf %244, %239 : vector<8x32xf32>
    %254 = arith.addf %236, %245 : vector<8x32xf32>
    %c0_72 = arith.constant 0 : index
    %c0_73 = arith.constant 0 : index
    %255 = vector.load %arg16[%c0_72, %c0_73] : memref<1x192xf32, #tpu.memory_space<vmem>>, vector<1x192xf32>
    %c0_74 = arith.constant 0 : index
    %c0_75 = arith.constant 0 : index
    %256 = vector.load %arg17[%c0_74, %c0_75] : memref<192x32xf32, #tpu.memory_space<vmem>>, vector<192x32xf32>
    %c0_76 = arith.constant 0 : index
    %c0_77 = arith.constant 0 : index
    %257 = vector.load %arg13[%c0_76, %c0_77] : memref<16x32xf32, #tpu.memory_space<vmem>>, vector<16x32xf32>
    %cst_78 = arith.constant dense<0.000000e+00> : vector<64x32xf32>
    %258 = tpu.matmul %54, %257, %cst_78 {dimension_numbers = #tpu.dot_dimension_numbers<[1], [0], [0], [1], [0, 0, 1, 1], [], []>} : vector<64x16xf32>, vector<16x32xf32>, vector<64x32xf32> -> vector<64x32xf32>
    %259 = vector.extract_strided_slice %255 {offsets = [0, 0], sizes = [1, 32], strides = [1, 1]} : vector<1x192xf32> to vector<1x32xf32>
    %260 = vector.broadcast %259 : vector<1x32xf32> to vector<64x32xf32>
    %261 = arith.addf %258, %260 : vector<64x32xf32>
    %cst_79 = arith.constant 5.000000e-01 : f32
    %262 = vector.broadcast %cst_79 : f32 to vector<64x32xf32>
    %263 = arith.mulf %262, %261 : vector<64x32xf32>
    %264 = math.tanh %263 : vector<64x32xf32>
    %cst_80 = arith.constant 5.000000e-01 : f32
    %265 = vector.broadcast %cst_80 : f32 to vector<64x32xf32>
    %266 = arith.mulf %265, %264 : vector<64x32xf32>
    %cst_81 = arith.constant 5.000000e-01 : f32
    %267 = vector.broadcast %cst_81 : f32 to vector<64x32xf32>
    %268 = arith.addf %266, %267 : vector<64x32xf32>
    %269 = arith.mulf %261, %268 : vector<64x32xf32>
    %c0_82 = arith.constant 0 : index
    %c0_83 = arith.constant 0 : index
    %270 = vector.load %arg14[%c0_82, %c0_83] : memref<32x64xf32, #tpu.memory_space<vmem>>, vector<32x64xf32>
    %cst_84 = arith.constant dense<0.000000e+00> : vector<64x64xf32>
    %271 = tpu.matmul %269, %270, %cst_84 {dimension_numbers = #tpu.dot_dimension_numbers<[1], [0], [0], [1], [0, 0, 1, 1], [], []>} : vector<64x32xf32>, vector<32x64xf32>, vector<64x64xf32> -> vector<64x64xf32>
    %272 = vector.extract_strided_slice %255 {offsets = [0, 32], sizes = [1, 64], strides = [1, 1]} : vector<1x192xf32> to vector<1x64xf32>
    %273 = vector.broadcast %272 : vector<1x64xf32> to vector<64x64xf32>
    %274 = arith.addf %271, %273 : vector<64x64xf32>
    %cst_85 = arith.constant 5.000000e-01 : f32
    %275 = vector.broadcast %cst_85 : f32 to vector<64x64xf32>
    %276 = arith.mulf %275, %274 : vector<64x64xf32>
    %277 = math.tanh %276 : vector<64x64xf32>
    %cst_86 = arith.constant 5.000000e-01 : f32
    %278 = vector.broadcast %cst_86 : f32 to vector<64x64xf32>
    %279 = arith.mulf %278, %277 : vector<64x64xf32>
    %cst_87 = arith.constant 5.000000e-01 : f32
    %280 = vector.broadcast %cst_87 : f32 to vector<64x64xf32>
    %281 = arith.addf %279, %280 : vector<64x64xf32>
    %282 = arith.mulf %274, %281 : vector<64x64xf32>
    %c0_88 = arith.constant 0 : index
    %c0_89 = arith.constant 0 : index
    %283 = vector.load %arg15[%c0_88, %c0_89] : memref<64x96xf32, #tpu.memory_space<vmem>>, vector<64x96xf32>
    %cst_90 = arith.constant dense<0.000000e+00> : vector<64x96xf32>
    %284 = tpu.matmul %282, %283, %cst_90 {dimension_numbers = #tpu.dot_dimension_numbers<[1], [0], [0], [1], [0, 0, 1, 1], [], []>} : vector<64x64xf32>, vector<64x96xf32>, vector<64x96xf32> -> vector<64x96xf32>
    %285 = vector.extract_strided_slice %255 {offsets = [0, 96], sizes = [1, 96], strides = [1, 1]} : vector<1x192xf32> to vector<1x96xf32>
    %286 = vector.broadcast %285 : vector<1x96xf32> to vector<64x96xf32>
    %287 = arith.addf %284, %286 : vector<64x96xf32>
    %cst_91 = arith.constant 5.000000e-01 : f32
    %288 = vector.broadcast %cst_91 : f32 to vector<64x96xf32>
    %289 = arith.mulf %288, %287 : vector<64x96xf32>
    %290 = math.tanh %289 : vector<64x96xf32>
    %cst_92 = arith.constant 5.000000e-01 : f32
    %291 = vector.broadcast %cst_92 : f32 to vector<64x96xf32>
    %292 = arith.mulf %291, %290 : vector<64x96xf32>
    %cst_93 = arith.constant 5.000000e-01 : f32
    %293 = vector.broadcast %cst_93 : f32 to vector<64x96xf32>
    %294 = arith.addf %292, %293 : vector<64x96xf32>
    %295 = arith.mulf %287, %294 : vector<64x96xf32>
    %296 = vector.broadcast %27 : vector<64x1xf32> to vector<64x96xf32>
    %297 = arith.mulf %295, %296 : vector<64x96xf32>
    %298 = arith.mulf %246, %246 : vector<8x32xf32>
    %299 = arith.mulf %247, %247 : vector<8x32xf32>
    %300 = arith.addf %298, %299 : vector<8x32xf32>
    %301 = arith.mulf %248, %248 : vector<8x32xf32>
    %302 = arith.addf %300, %301 : vector<8x32xf32>
    %303 = arith.mulf %249, %249 : vector<8x32xf32>
    %304 = arith.addf %302, %303 : vector<8x32xf32>
    %305 = arith.mulf %250, %250 : vector<8x32xf32>
    %306 = arith.addf %304, %305 : vector<8x32xf32>
    %307 = arith.mulf %251, %251 : vector<8x32xf32>
    %308 = arith.addf %306, %307 : vector<8x32xf32>
    %309 = arith.mulf %252, %252 : vector<8x32xf32>
    %310 = arith.addf %308, %309 : vector<8x32xf32>
    %311 = arith.mulf %253, %253 : vector<8x32xf32>
    %312 = arith.addf %310, %311 : vector<8x32xf32>
    %313 = arith.mulf %254, %254 : vector<8x32xf32>
    %314 = arith.addf %312, %313 : vector<8x32xf32>
    %cst_94 = arith.constant 1.000000e+00 : f32
    %315 = vector.broadcast %cst_94 : f32 to vector<8x32xf32>
    %316 = arith.addf %314, %315 : vector<8x32xf32>
    %cst_95 = arith.constant 1.000000e+00 : f32
    %317 = vector.broadcast %cst_95 : f32 to vector<8x32xf32>
    %318 = arith.divf %317, %316 : vector<8x32xf32>
    %319 = arith.mulf %246, %318 : vector<8x32xf32>
    %320 = arith.mulf %247, %318 : vector<8x32xf32>
    %321 = arith.mulf %248, %318 : vector<8x32xf32>
    %322 = arith.mulf %249, %318 : vector<8x32xf32>
    %323 = arith.mulf %250, %318 : vector<8x32xf32>
    %324 = arith.mulf %251, %318 : vector<8x32xf32>
    %325 = arith.mulf %252, %318 : vector<8x32xf32>
    %326 = arith.mulf %253, %318 : vector<8x32xf32>
    %327 = arith.mulf %254, %318 : vector<8x32xf32>
    %328 = arith.addf %319, %323 : vector<8x32xf32>
    %329 = arith.addf %328, %327 : vector<8x32xf32>
    %cst_96 = arith.constant 0.333333343 : f32
    %330 = vector.broadcast %cst_96 : f32 to vector<8x32xf32>
    %331 = arith.mulf %329, %330 : vector<8x32xf32>
    %332 = arith.subf %320, %322 : vector<8x32xf32>
    %cst_97 = arith.constant 5.000000e-01 : f32
    %333 = vector.broadcast %cst_97 : f32 to vector<8x32xf32>
    %334 = arith.mulf %333, %332 : vector<8x32xf32>
    %335 = arith.subf %321, %325 : vector<8x32xf32>
    %cst_98 = arith.constant 5.000000e-01 : f32
    %336 = vector.broadcast %cst_98 : f32 to vector<8x32xf32>
    %337 = arith.mulf %336, %335 : vector<8x32xf32>
    %338 = arith.subf %324, %326 : vector<8x32xf32>
    %cst_99 = arith.constant 5.000000e-01 : f32
    %339 = vector.broadcast %cst_99 : f32 to vector<8x32xf32>
    %340 = arith.mulf %339, %338 : vector<8x32xf32>
    %341 = arith.subf %319, %331 : vector<8x32xf32>
    %342 = arith.addf %320, %322 : vector<8x32xf32>
    %cst_100 = arith.constant 5.000000e-01 : f32
    %343 = vector.broadcast %cst_100 : f32 to vector<8x32xf32>
    %344 = arith.mulf %343, %342 : vector<8x32xf32>
    %345 = arith.addf %321, %325 : vector<8x32xf32>
    %cst_101 = arith.constant 5.000000e-01 : f32
    %346 = vector.broadcast %cst_101 : f32 to vector<8x32xf32>
    %347 = arith.mulf %346, %345 : vector<8x32xf32>
    %348 = arith.subf %323, %331 : vector<8x32xf32>
    %349 = arith.addf %324, %326 : vector<8x32xf32>
    %cst_102 = arith.constant 5.000000e-01 : f32
    %350 = vector.broadcast %cst_102 : f32 to vector<8x32xf32>
    %351 = arith.mulf %350, %349 : vector<8x32xf32>
    %352 = arith.subf %327, %331 : vector<8x32xf32>
    %353 = vector.extract_strided_slice %256 {offsets = [0, 0], sizes = [32, 32], strides = [1, 1]} : vector<192x32xf32> to vector<32x32xf32>
    %cst_103 = arith.constant dense<0.000000e+00> : vector<8x32xf32>
    %354 = tpu.matmul %331, %353, %cst_103 {dimension_numbers = #tpu.dot_dimension_numbers<[1], [0], [0], [1], [0, 0, 1, 1], [], []>} : vector<8x32xf32>, vector<32x32xf32>, vector<8x32xf32> -> vector<8x32xf32>
    %355 = vector.extract_strided_slice %256 {offsets = [32, 0], sizes = [32, 32], strides = [1, 1]} : vector<192x32xf32> to vector<32x32xf32>
    %cst_104 = arith.constant dense<0.000000e+00> : vector<8x32xf32>
    %356 = tpu.matmul %334, %355, %cst_104 {dimension_numbers = #tpu.dot_dimension_numbers<[1], [0], [0], [1], [0, 0, 1, 1], [], []>} : vector<8x32xf32>, vector<32x32xf32>, vector<8x32xf32> -> vector<8x32xf32>
    %cst_105 = arith.constant dense<0.000000e+00> : vector<8x32xf32>
    %357 = tpu.matmul %337, %355, %cst_105 {dimension_numbers = #tpu.dot_dimension_numbers<[1], [0], [0], [1], [0, 0, 1, 1], [], []>} : vector<8x32xf32>, vector<32x32xf32>, vector<8x32xf32> -> vector<8x32xf32>
    %cst_106 = arith.constant dense<0.000000e+00> : vector<8x32xf32>
    %358 = tpu.matmul %340, %355, %cst_106 {dimension_numbers = #tpu.dot_dimension_numbers<[1], [0], [0], [1], [0, 0, 1, 1], [], []>} : vector<8x32xf32>, vector<32x32xf32>, vector<8x32xf32> -> vector<8x32xf32>
    %359 = vector.extract_strided_slice %256 {offsets = [64, 0], sizes = [32, 32], strides = [1, 1]} : vector<192x32xf32> to vector<32x32xf32>
    %cst_107 = arith.constant dense<0.000000e+00> : vector<8x32xf32>
    %360 = tpu.matmul %341, %359, %cst_107 {dimension_numbers = #tpu.dot_dimension_numbers<[1], [0], [0], [1], [0, 0, 1, 1], [], []>} : vector<8x32xf32>, vector<32x32xf32>, vector<8x32xf32> -> vector<8x32xf32>
    %cst_108 = arith.constant dense<0.000000e+00> : vector<8x32xf32>
    %361 = tpu.matmul %344, %359, %cst_108 {dimension_numbers = #tpu.dot_dimension_numbers<[1], [0], [0], [1], [0, 0, 1, 1], [], []>} : vector<8x32xf32>, vector<32x32xf32>, vector<8x32xf32> -> vector<8x32xf32>
    %cst_109 = arith.constant dense<0.000000e+00> : vector<8x32xf32>
    %362 = tpu.matmul %347, %359, %cst_109 {dimension_numbers = #tpu.dot_dimension_numbers<[1], [0], [0], [1], [0, 0, 1, 1], [], []>} : vector<8x32xf32>, vector<32x32xf32>, vector<8x32xf32> -> vector<8x32xf32>
    %cst_110 = arith.constant dense<0.000000e+00> : vector<8x32xf32>
    %363 = tpu.matmul %348, %359, %cst_110 {dimension_numbers = #tpu.dot_dimension_numbers<[1], [0], [0], [1], [0, 0, 1, 1], [], []>} : vector<8x32xf32>, vector<32x32xf32>, vector<8x32xf32> -> vector<8x32xf32>
    %cst_111 = arith.constant dense<0.000000e+00> : vector<8x32xf32>
    %364 = tpu.matmul %351, %359, %cst_111 {dimension_numbers = #tpu.dot_dimension_numbers<[1], [0], [0], [1], [0, 0, 1, 1], [], []>} : vector<8x32xf32>, vector<32x32xf32>, vector<8x32xf32> -> vector<8x32xf32>
    %cst_112 = arith.constant dense<0.000000e+00> : vector<8x32xf32>
    %365 = tpu.matmul %352, %359, %cst_112 {dimension_numbers = #tpu.dot_dimension_numbers<[1], [0], [0], [1], [0, 0, 1, 1], [], []>} : vector<8x32xf32>, vector<32x32xf32>, vector<8x32xf32> -> vector<8x32xf32>
    %366 = arith.addf %354, %360 : vector<8x32xf32>
    %367 = arith.addf %356, %361 : vector<8x32xf32>
    %368 = arith.addf %357, %362 : vector<8x32xf32>
    %369 = arith.subf %361, %356 : vector<8x32xf32>
    %370 = arith.addf %354, %363 : vector<8x32xf32>
    %371 = arith.addf %358, %364 : vector<8x32xf32>
    %372 = arith.subf %362, %357 : vector<8x32xf32>
    %373 = arith.subf %364, %358 : vector<8x32xf32>
    %374 = arith.addf %354, %365 : vector<8x32xf32>
    %375 = vector.extract_strided_slice %297 {offsets = [0, 0], sizes = [64, 32], strides = [1, 1]} : vector<64x96xf32> to vector<64x32xf32>
    %376 = vector.shape_cast %375 : vector<64x32xf32> to vector<8x8x32xf32>
    %377 = vector.shape_cast %354 : vector<8x32xf32> to vector<8x1x32xf32>
    %378 = vector.broadcast %377 : vector<8x1x32xf32> to vector<8x8x32xf32>
    %379 = arith.mulf %376, %378 : vector<8x8x32xf32>
    %cst_113 = arith.constant dense<0.000000e+00> : vector<8x32xf32>
    %380 = vector.multi_reduction <add>, %379, %cst_113 [0] : vector<8x8x32xf32> to vector<8x32xf32>
    %381 = vector.extract_strided_slice %297 {offsets = [0, 32], sizes = [64, 32], strides = [1, 1]} : vector<64x96xf32> to vector<64x32xf32>
    %382 = vector.shape_cast %381 : vector<64x32xf32> to vector<8x8x32xf32>
    %383 = vector.shape_cast %356 : vector<8x32xf32> to vector<8x1x32xf32>
    %384 = vector.broadcast %383 : vector<8x1x32xf32> to vector<8x8x32xf32>
    %385 = arith.mulf %382, %384 : vector<8x8x32xf32>
    %cst_114 = arith.constant dense<0.000000e+00> : vector<8x32xf32>
    %386 = vector.multi_reduction <add>, %385, %cst_114 [0] : vector<8x8x32xf32> to vector<8x32xf32>
    %387 = vector.shape_cast %357 : vector<8x32xf32> to vector<8x1x32xf32>
    %388 = vector.broadcast %387 : vector<8x1x32xf32> to vector<8x8x32xf32>
    %389 = arith.mulf %382, %388 : vector<8x8x32xf32>
    %cst_115 = arith.constant dense<0.000000e+00> : vector<8x32xf32>
    %390 = vector.multi_reduction <add>, %389, %cst_115 [0] : vector<8x8x32xf32> to vector<8x32xf32>
    %391 = vector.shape_cast %358 : vector<8x32xf32> to vector<8x1x32xf32>
    %392 = vector.broadcast %391 : vector<8x1x32xf32> to vector<8x8x32xf32>
    %393 = arith.mulf %382, %392 : vector<8x8x32xf32>
    %cst_116 = arith.constant dense<0.000000e+00> : vector<8x32xf32>
    %394 = vector.multi_reduction <add>, %393, %cst_116 [0] : vector<8x8x32xf32> to vector<8x32xf32>
    %395 = vector.extract_strided_slice %297 {offsets = [0, 64], sizes = [64, 32], strides = [1, 1]} : vector<64x96xf32> to vector<64x32xf32>
    %396 = vector.shape_cast %395 : vector<64x32xf32> to vector<8x8x32xf32>
    %397 = vector.shape_cast %360 : vector<8x32xf32> to vector<8x1x32xf32>
    %398 = vector.broadcast %397 : vector<8x1x32xf32> to vector<8x8x32xf32>
    %399 = arith.mulf %396, %398 : vector<8x8x32xf32>
    %cst_117 = arith.constant dense<0.000000e+00> : vector<8x32xf32>
    %400 = vector.multi_reduction <add>, %399, %cst_117 [0] : vector<8x8x32xf32> to vector<8x32xf32>
    %401 = vector.shape_cast %361 : vector<8x32xf32> to vector<8x1x32xf32>
    %402 = vector.broadcast %401 : vector<8x1x32xf32> to vector<8x8x32xf32>
    %403 = arith.mulf %396, %402 : vector<8x8x32xf32>
    %cst_118 = arith.constant dense<0.000000e+00> : vector<8x32xf32>
    %404 = vector.multi_reduction <add>, %403, %cst_118 [0] : vector<8x8x32xf32> to vector<8x32xf32>
    %405 = vector.shape_cast %362 : vector<8x32xf32> to vector<8x1x32xf32>
    %406 = vector.broadcast %405 : vector<8x1x32xf32> to vector<8x8x32xf32>
    %407 = arith.mulf %396, %406 : vector<8x8x32xf32>
    %cst_119 = arith.constant dense<0.000000e+00> : vector<8x32xf32>
    %408 = vector.multi_reduction <add>, %407, %cst_119 [0] : vector<8x8x32xf32> to vector<8x32xf32>
    %409 = vector.shape_cast %363 : vector<8x32xf32> to vector<8x1x32xf32>
    %410 = vector.broadcast %409 : vector<8x1x32xf32> to vector<8x8x32xf32>
    %411 = arith.mulf %396, %410 : vector<8x8x32xf32>
    %cst_120 = arith.constant dense<0.000000e+00> : vector<8x32xf32>
    %412 = vector.multi_reduction <add>, %411, %cst_120 [0] : vector<8x8x32xf32> to vector<8x32xf32>
    %413 = vector.shape_cast %364 : vector<8x32xf32> to vector<8x1x32xf32>
    %414 = vector.broadcast %413 : vector<8x1x32xf32> to vector<8x8x32xf32>
    %415 = arith.mulf %396, %414 : vector<8x8x32xf32>
    %cst_121 = arith.constant dense<0.000000e+00> : vector<8x32xf32>
    %416 = vector.multi_reduction <add>, %415, %cst_121 [0] : vector<8x8x32xf32> to vector<8x32xf32>
    %417 = vector.shape_cast %365 : vector<8x32xf32> to vector<8x1x32xf32>
    %418 = vector.broadcast %417 : vector<8x1x32xf32> to vector<8x8x32xf32>
    %419 = arith.mulf %396, %418 : vector<8x8x32xf32>
    %cst_122 = arith.constant dense<0.000000e+00> : vector<8x32xf32>
    %420 = vector.multi_reduction <add>, %419, %cst_122 [0] : vector<8x8x32xf32> to vector<8x32xf32>
    %421 = arith.addf %380, %400 : vector<8x32xf32>
    %422 = arith.addf %386, %404 : vector<8x32xf32>
    %423 = arith.addf %390, %408 : vector<8x32xf32>
    %424 = arith.subf %404, %386 : vector<8x32xf32>
    %425 = arith.addf %380, %412 : vector<8x32xf32>
    %426 = arith.addf %394, %416 : vector<8x32xf32>
    %427 = arith.subf %408, %390 : vector<8x32xf32>
    %428 = arith.subf %416, %394 : vector<8x32xf32>
    %429 = arith.addf %380, %420 : vector<8x32xf32>
    %430 = arith.mulf %421, %366 : vector<8x32xf32>
    %431 = arith.mulf %422, %369 : vector<8x32xf32>
    %432 = arith.addf %430, %431 : vector<8x32xf32>
    %433 = arith.mulf %423, %372 : vector<8x32xf32>
    %434 = arith.addf %432, %433 : vector<8x32xf32>
    %435 = arith.mulf %421, %367 : vector<8x32xf32>
    %436 = arith.mulf %422, %370 : vector<8x32xf32>
    %437 = arith.addf %435, %436 : vector<8x32xf32>
    %438 = arith.mulf %423, %373 : vector<8x32xf32>
    %439 = arith.addf %437, %438 : vector<8x32xf32>
    %440 = arith.mulf %421, %368 : vector<8x32xf32>
    %441 = arith.mulf %422, %371 : vector<8x32xf32>
    %442 = arith.addf %440, %441 : vector<8x32xf32>
    %443 = arith.mulf %423, %374 : vector<8x32xf32>
    %444 = arith.addf %442, %443 : vector<8x32xf32>
    %445 = arith.mulf %424, %366 : vector<8x32xf32>
    %446 = arith.mulf %425, %369 : vector<8x32xf32>
    %447 = arith.addf %445, %446 : vector<8x32xf32>
    %448 = arith.mulf %426, %372 : vector<8x32xf32>
    %449 = arith.addf %447, %448 : vector<8x32xf32>
    %450 = arith.mulf %424, %367 : vector<8x32xf32>
    %451 = arith.mulf %425, %370 : vector<8x32xf32>
    %452 = arith.addf %450, %451 : vector<8x32xf32>
    %453 = arith.mulf %426, %373 : vector<8x32xf32>
    %454 = arith.addf %452, %453 : vector<8x32xf32>
    %455 = arith.mulf %424, %368 : vector<8x32xf32>
    %456 = arith.mulf %425, %371 : vector<8x32xf32>
    %457 = arith.addf %455, %456 : vector<8x32xf32>
    %458 = arith.mulf %426, %374 : vector<8x32xf32>
    %459 = arith.addf %457, %458 : vector<8x32xf32>
    %460 = arith.mulf %427, %366 : vector<8x32xf32>
    %461 = arith.mulf %428, %369 : vector<8x32xf32>
    %462 = arith.addf %460, %461 : vector<8x32xf32>
    %463 = arith.mulf %429, %372 : vector<8x32xf32>
    %464 = arith.addf %462, %463 : vector<8x32xf32>
    %465 = arith.mulf %427, %367 : vector<8x32xf32>
    %466 = arith.mulf %428, %370 : vector<8x32xf32>
    %467 = arith.addf %465, %466 : vector<8x32xf32>
    %468 = arith.mulf %429, %373 : vector<8x32xf32>
    %469 = arith.addf %467, %468 : vector<8x32xf32>
    %470 = arith.mulf %427, %368 : vector<8x32xf32>
    %471 = arith.mulf %428, %371 : vector<8x32xf32>
    %472 = arith.addf %470, %471 : vector<8x32xf32>
    %473 = arith.mulf %429, %374 : vector<8x32xf32>
    %474 = arith.addf %472, %473 : vector<8x32xf32>
    %475 = arith.mulf %366, %421 : vector<8x32xf32>
    %476 = arith.mulf %367, %424 : vector<8x32xf32>
    %477 = arith.addf %475, %476 : vector<8x32xf32>
    %478 = arith.mulf %368, %427 : vector<8x32xf32>
    %479 = arith.addf %477, %478 : vector<8x32xf32>
    %480 = arith.mulf %366, %422 : vector<8x32xf32>
    %481 = arith.mulf %367, %425 : vector<8x32xf32>
    %482 = arith.addf %480, %481 : vector<8x32xf32>
    %483 = arith.mulf %368, %428 : vector<8x32xf32>
    %484 = arith.addf %482, %483 : vector<8x32xf32>
    %485 = arith.mulf %366, %423 : vector<8x32xf32>
    %486 = arith.mulf %367, %426 : vector<8x32xf32>
    %487 = arith.addf %485, %486 : vector<8x32xf32>
    %488 = arith.mulf %368, %429 : vector<8x32xf32>
    %489 = arith.addf %487, %488 : vector<8x32xf32>
    %490 = arith.mulf %369, %421 : vector<8x32xf32>
    %491 = arith.mulf %370, %424 : vector<8x32xf32>
    %492 = arith.addf %490, %491 : vector<8x32xf32>
    %493 = arith.mulf %371, %427 : vector<8x32xf32>
    %494 = arith.addf %492, %493 : vector<8x32xf32>
    %495 = arith.mulf %369, %422 : vector<8x32xf32>
    %496 = arith.mulf %370, %425 : vector<8x32xf32>
    %497 = arith.addf %495, %496 : vector<8x32xf32>
    %498 = arith.mulf %371, %428 : vector<8x32xf32>
    %499 = arith.addf %497, %498 : vector<8x32xf32>
    %500 = arith.mulf %369, %423 : vector<8x32xf32>
    %501 = arith.mulf %370, %426 : vector<8x32xf32>
    %502 = arith.addf %500, %501 : vector<8x32xf32>
    %503 = arith.mulf %371, %429 : vector<8x32xf32>
    %504 = arith.addf %502, %503 : vector<8x32xf32>
    %505 = arith.mulf %372, %421 : vector<8x32xf32>
    %506 = arith.mulf %373, %424 : vector<8x32xf32>
    %507 = arith.addf %505, %506 : vector<8x32xf32>
    %508 = arith.mulf %374, %427 : vector<8x32xf32>
    %509 = arith.addf %507, %508 : vector<8x32xf32>
    %510 = arith.mulf %372, %422 : vector<8x32xf32>
    %511 = arith.mulf %373, %425 : vector<8x32xf32>
    %512 = arith.addf %510, %511 : vector<8x32xf32>
    %513 = arith.mulf %374, %428 : vector<8x32xf32>
    %514 = arith.addf %512, %513 : vector<8x32xf32>
    %515 = arith.mulf %372, %423 : vector<8x32xf32>
    %516 = arith.mulf %373, %426 : vector<8x32xf32>
    %517 = arith.addf %515, %516 : vector<8x32xf32>
    %518 = arith.mulf %374, %429 : vector<8x32xf32>
    %519 = arith.addf %517, %518 : vector<8x32xf32>
    %520 = arith.addf %434, %479 : vector<8x32xf32>
    %521 = arith.addf %439, %484 : vector<8x32xf32>
    %522 = arith.addf %444, %489 : vector<8x32xf32>
    %523 = arith.addf %449, %494 : vector<8x32xf32>
    %524 = arith.addf %454, %499 : vector<8x32xf32>
    %525 = arith.addf %459, %504 : vector<8x32xf32>
    %526 = arith.addf %464, %509 : vector<8x32xf32>
    %527 = arith.addf %469, %514 : vector<8x32xf32>
    %528 = arith.addf %474, %519 : vector<8x32xf32>
    %529 = arith.mulf %520, %520 : vector<8x32xf32>
    %530 = arith.mulf %521, %521 : vector<8x32xf32>
    %531 = arith.addf %529, %530 : vector<8x32xf32>
    %532 = arith.mulf %522, %522 : vector<8x32xf32>
    %533 = arith.addf %531, %532 : vector<8x32xf32>
    %534 = arith.mulf %523, %523 : vector<8x32xf32>
    %535 = arith.addf %533, %534 : vector<8x32xf32>
    %536 = arith.mulf %524, %524 : vector<8x32xf32>
    %537 = arith.addf %535, %536 : vector<8x32xf32>
    %538 = arith.mulf %525, %525 : vector<8x32xf32>
    %539 = arith.addf %537, %538 : vector<8x32xf32>
    %540 = arith.mulf %526, %526 : vector<8x32xf32>
    %541 = arith.addf %539, %540 : vector<8x32xf32>
    %542 = arith.mulf %527, %527 : vector<8x32xf32>
    %543 = arith.addf %541, %542 : vector<8x32xf32>
    %544 = arith.mulf %528, %528 : vector<8x32xf32>
    %545 = arith.addf %543, %544 : vector<8x32xf32>
    %cst_123 = arith.constant 1.000000e+00 : f32
    %546 = vector.broadcast %cst_123 : f32 to vector<8x32xf32>
    %547 = arith.addf %545, %546 : vector<8x32xf32>
    %cst_124 = arith.constant 1.000000e+00 : f32
    %548 = vector.broadcast %cst_124 : f32 to vector<8x32xf32>
    %549 = arith.divf %548, %547 : vector<8x32xf32>
    %550 = arith.mulf %520, %549 : vector<8x32xf32>
    %551 = arith.mulf %521, %549 : vector<8x32xf32>
    %552 = arith.mulf %522, %549 : vector<8x32xf32>
    %553 = arith.mulf %523, %549 : vector<8x32xf32>
    %554 = arith.mulf %524, %549 : vector<8x32xf32>
    %555 = arith.mulf %525, %549 : vector<8x32xf32>
    %556 = arith.mulf %526, %549 : vector<8x32xf32>
    %557 = arith.mulf %527, %549 : vector<8x32xf32>
    %558 = arith.mulf %528, %549 : vector<8x32xf32>
    %559 = arith.addf %550, %554 : vector<8x32xf32>
    %560 = arith.addf %559, %558 : vector<8x32xf32>
    %cst_125 = arith.constant 0.333333343 : f32
    %561 = vector.broadcast %cst_125 : f32 to vector<8x32xf32>
    %562 = arith.mulf %560, %561 : vector<8x32xf32>
    %563 = arith.subf %551, %553 : vector<8x32xf32>
    %cst_126 = arith.constant 5.000000e-01 : f32
    %564 = vector.broadcast %cst_126 : f32 to vector<8x32xf32>
    %565 = arith.mulf %564, %563 : vector<8x32xf32>
    %566 = arith.subf %552, %556 : vector<8x32xf32>
    %cst_127 = arith.constant 5.000000e-01 : f32
    %567 = vector.broadcast %cst_127 : f32 to vector<8x32xf32>
    %568 = arith.mulf %567, %566 : vector<8x32xf32>
    %569 = arith.subf %555, %557 : vector<8x32xf32>
    %cst_128 = arith.constant 5.000000e-01 : f32
    %570 = vector.broadcast %cst_128 : f32 to vector<8x32xf32>
    %571 = arith.mulf %570, %569 : vector<8x32xf32>
    %572 = arith.subf %550, %562 : vector<8x32xf32>
    %573 = arith.addf %551, %553 : vector<8x32xf32>
    %cst_129 = arith.constant 5.000000e-01 : f32
    %574 = vector.broadcast %cst_129 : f32 to vector<8x32xf32>
    %575 = arith.mulf %574, %573 : vector<8x32xf32>
    %576 = arith.addf %552, %556 : vector<8x32xf32>
    %cst_130 = arith.constant 5.000000e-01 : f32
    %577 = vector.broadcast %cst_130 : f32 to vector<8x32xf32>
    %578 = arith.mulf %577, %576 : vector<8x32xf32>
    %579 = arith.subf %554, %562 : vector<8x32xf32>
    %580 = arith.addf %555, %557 : vector<8x32xf32>
    %cst_131 = arith.constant 5.000000e-01 : f32
    %581 = vector.broadcast %cst_131 : f32 to vector<8x32xf32>
    %582 = arith.mulf %581, %580 : vector<8x32xf32>
    %583 = arith.subf %558, %562 : vector<8x32xf32>
    %584 = vector.extract_strided_slice %256 {offsets = [96, 0], sizes = [32, 32], strides = [1, 1]} : vector<192x32xf32> to vector<32x32xf32>
    %cst_132 = arith.constant dense<0.000000e+00> : vector<8x32xf32>
    %585 = tpu.matmul %562, %584, %cst_132 {dimension_numbers = #tpu.dot_dimension_numbers<[1], [0], [0], [1], [0, 0, 1, 1], [], []>} : vector<8x32xf32>, vector<32x32xf32>, vector<8x32xf32> -> vector<8x32xf32>
    %586 = vector.extract_strided_slice %256 {offsets = [128, 0], sizes = [32, 32], strides = [1, 1]} : vector<192x32xf32> to vector<32x32xf32>
    %cst_133 = arith.constant dense<0.000000e+00> : vector<8x32xf32>
    %587 = tpu.matmul %565, %586, %cst_133 {dimension_numbers = #tpu.dot_dimension_numbers<[1], [0], [0], [1], [0, 0, 1, 1], [], []>} : vector<8x32xf32>, vector<32x32xf32>, vector<8x32xf32> -> vector<8x32xf32>
    %cst_134 = arith.constant dense<0.000000e+00> : vector<8x32xf32>
    %588 = tpu.matmul %568, %586, %cst_134 {dimension_numbers = #tpu.dot_dimension_numbers<[1], [0], [0], [1], [0, 0, 1, 1], [], []>} : vector<8x32xf32>, vector<32x32xf32>, vector<8x32xf32> -> vector<8x32xf32>
    %cst_135 = arith.constant dense<0.000000e+00> : vector<8x32xf32>
    %589 = tpu.matmul %571, %586, %cst_135 {dimension_numbers = #tpu.dot_dimension_numbers<[1], [0], [0], [1], [0, 0, 1, 1], [], []>} : vector<8x32xf32>, vector<32x32xf32>, vector<8x32xf32> -> vector<8x32xf32>
    %590 = vector.extract_strided_slice %256 {offsets = [160, 0], sizes = [32, 32], strides = [1, 1]} : vector<192x32xf32> to vector<32x32xf32>
    %cst_136 = arith.constant dense<0.000000e+00> : vector<8x32xf32>
    %591 = tpu.matmul %572, %590, %cst_136 {dimension_numbers = #tpu.dot_dimension_numbers<[1], [0], [0], [1], [0, 0, 1, 1], [], []>} : vector<8x32xf32>, vector<32x32xf32>, vector<8x32xf32> -> vector<8x32xf32>
    %cst_137 = arith.constant dense<0.000000e+00> : vector<8x32xf32>
    %592 = tpu.matmul %575, %590, %cst_137 {dimension_numbers = #tpu.dot_dimension_numbers<[1], [0], [0], [1], [0, 0, 1, 1], [], []>} : vector<8x32xf32>, vector<32x32xf32>, vector<8x32xf32> -> vector<8x32xf32>
    %cst_138 = arith.constant dense<0.000000e+00> : vector<8x32xf32>
    %593 = tpu.matmul %578, %590, %cst_138 {dimension_numbers = #tpu.dot_dimension_numbers<[1], [0], [0], [1], [0, 0, 1, 1], [], []>} : vector<8x32xf32>, vector<32x32xf32>, vector<8x32xf32> -> vector<8x32xf32>
    %cst_139 = arith.constant dense<0.000000e+00> : vector<8x32xf32>
    %594 = tpu.matmul %579, %590, %cst_139 {dimension_numbers = #tpu.dot_dimension_numbers<[1], [0], [0], [1], [0, 0, 1, 1], [], []>} : vector<8x32xf32>, vector<32x32xf32>, vector<8x32xf32> -> vector<8x32xf32>
    %cst_140 = arith.constant dense<0.000000e+00> : vector<8x32xf32>
    %595 = tpu.matmul %582, %590, %cst_140 {dimension_numbers = #tpu.dot_dimension_numbers<[1], [0], [0], [1], [0, 0, 1, 1], [], []>} : vector<8x32xf32>, vector<32x32xf32>, vector<8x32xf32> -> vector<8x32xf32>
    %cst_141 = arith.constant dense<0.000000e+00> : vector<8x32xf32>
    %596 = tpu.matmul %583, %590, %cst_141 {dimension_numbers = #tpu.dot_dimension_numbers<[1], [0], [0], [1], [0, 0, 1, 1], [], []>} : vector<8x32xf32>, vector<32x32xf32>, vector<8x32xf32> -> vector<8x32xf32>
    %597 = arith.addf %585, %591 : vector<8x32xf32>
    %598 = arith.addf %587, %592 : vector<8x32xf32>
    %599 = arith.addf %588, %593 : vector<8x32xf32>
    %600 = arith.subf %592, %587 : vector<8x32xf32>
    %601 = arith.addf %585, %594 : vector<8x32xf32>
    %602 = arith.addf %589, %595 : vector<8x32xf32>
    %603 = arith.subf %593, %588 : vector<8x32xf32>
    %604 = arith.subf %595, %589 : vector<8x32xf32>
    %605 = arith.addf %585, %596 : vector<8x32xf32>
    %606 = arith.mulf %597, %597 : vector<8x32xf32>
    %607 = arith.mulf %598, %600 : vector<8x32xf32>
    %608 = arith.addf %606, %607 : vector<8x32xf32>
    %609 = arith.mulf %599, %603 : vector<8x32xf32>
    %610 = arith.addf %608, %609 : vector<8x32xf32>
    %611 = arith.mulf %597, %598 : vector<8x32xf32>
    %612 = arith.mulf %598, %601 : vector<8x32xf32>
    %613 = arith.addf %611, %612 : vector<8x32xf32>
    %614 = arith.mulf %599, %604 : vector<8x32xf32>
    %615 = arith.addf %613, %614 : vector<8x32xf32>
    %616 = arith.mulf %597, %599 : vector<8x32xf32>
    %617 = arith.mulf %598, %602 : vector<8x32xf32>
    %618 = arith.addf %616, %617 : vector<8x32xf32>
    %619 = arith.mulf %599, %605 : vector<8x32xf32>
    %620 = arith.addf %618, %619 : vector<8x32xf32>
    %621 = arith.mulf %600, %597 : vector<8x32xf32>
    %622 = arith.mulf %601, %600 : vector<8x32xf32>
    %623 = arith.addf %621, %622 : vector<8x32xf32>
    %624 = arith.mulf %602, %603 : vector<8x32xf32>
    %625 = arith.addf %623, %624 : vector<8x32xf32>
    %626 = arith.mulf %600, %598 : vector<8x32xf32>
    %627 = arith.mulf %601, %601 : vector<8x32xf32>
    %628 = arith.addf %626, %627 : vector<8x32xf32>
    %629 = arith.mulf %602, %604 : vector<8x32xf32>
    %630 = arith.addf %628, %629 : vector<8x32xf32>
    %631 = arith.mulf %600, %599 : vector<8x32xf32>
    %632 = arith.mulf %601, %602 : vector<8x32xf32>
    %633 = arith.addf %631, %632 : vector<8x32xf32>
    %634 = arith.mulf %602, %605 : vector<8x32xf32>
    %635 = arith.addf %633, %634 : vector<8x32xf32>
    %636 = arith.mulf %603, %597 : vector<8x32xf32>
    %637 = arith.mulf %604, %600 : vector<8x32xf32>
    %638 = arith.addf %636, %637 : vector<8x32xf32>
    %639 = arith.mulf %605, %603 : vector<8x32xf32>
    %640 = arith.addf %638, %639 : vector<8x32xf32>
    %641 = arith.mulf %603, %598 : vector<8x32xf32>
    %642 = arith.mulf %604, %601 : vector<8x32xf32>
    %643 = arith.addf %641, %642 : vector<8x32xf32>
    %644 = arith.mulf %605, %604 : vector<8x32xf32>
    %645 = arith.addf %643, %644 : vector<8x32xf32>
    %646 = arith.mulf %603, %599 : vector<8x32xf32>
    %647 = arith.mulf %604, %602 : vector<8x32xf32>
    %648 = arith.addf %646, %647 : vector<8x32xf32>
    %649 = arith.mulf %605, %605 : vector<8x32xf32>
    %650 = arith.addf %648, %649 : vector<8x32xf32>
    %651 = arith.addf %319, %597 : vector<8x32xf32>
    %652 = arith.addf %651, %610 : vector<8x32xf32>
    %653 = arith.addf %320, %598 : vector<8x32xf32>
    %654 = arith.addf %653, %615 : vector<8x32xf32>
    %655 = arith.addf %321, %599 : vector<8x32xf32>
    %656 = arith.addf %655, %620 : vector<8x32xf32>
    %657 = arith.addf %322, %600 : vector<8x32xf32>
    %658 = arith.addf %657, %625 : vector<8x32xf32>
    %659 = arith.addf %323, %601 : vector<8x32xf32>
    %660 = arith.addf %659, %630 : vector<8x32xf32>
    %661 = arith.addf %324, %602 : vector<8x32xf32>
    %662 = arith.addf %661, %635 : vector<8x32xf32>
    %663 = arith.addf %325, %603 : vector<8x32xf32>
    %664 = arith.addf %663, %640 : vector<8x32xf32>
    %665 = arith.addf %326, %604 : vector<8x32xf32>
    %666 = arith.addf %665, %645 : vector<8x32xf32>
    %667 = arith.addf %327, %605 : vector<8x32xf32>
    %668 = arith.addf %667, %650 : vector<8x32xf32>
    %c0_142 = arith.constant 0 : index
    %c0_143 = arith.constant 0 : index
    %669 = vector.load %arg21[%c0_142, %c0_143] : memref<1x192xf32, #tpu.memory_space<vmem>>, vector<1x192xf32>
    %c0_144 = arith.constant 0 : index
    %c0_145 = arith.constant 0 : index
    %670 = vector.load %arg22[%c0_144, %c0_145] : memref<192x32xf32, #tpu.memory_space<vmem>>, vector<192x32xf32>
    %c0_146 = arith.constant 0 : index
    %c0_147 = arith.constant 0 : index
    %671 = vector.load %arg18[%c0_146, %c0_147] : memref<16x32xf32, #tpu.memory_space<vmem>>, vector<16x32xf32>
    %cst_148 = arith.constant dense<0.000000e+00> : vector<64x32xf32>
    %672 = tpu.matmul %54, %671, %cst_148 {dimension_numbers = #tpu.dot_dimension_numbers<[1], [0], [0], [1], [0, 0, 1, 1], [], []>} : vector<64x16xf32>, vector<16x32xf32>, vector<64x32xf32> -> vector<64x32xf32>
    %673 = vector.extract_strided_slice %669 {offsets = [0, 0], sizes = [1, 32], strides = [1, 1]} : vector<1x192xf32> to vector<1x32xf32>
    %674 = vector.broadcast %673 : vector<1x32xf32> to vector<64x32xf32>
    %675 = arith.addf %672, %674 : vector<64x32xf32>
    %cst_149 = arith.constant 5.000000e-01 : f32
    %676 = vector.broadcast %cst_149 : f32 to vector<64x32xf32>
    %677 = arith.mulf %676, %675 : vector<64x32xf32>
    %678 = math.tanh %677 : vector<64x32xf32>
    %cst_150 = arith.constant 5.000000e-01 : f32
    %679 = vector.broadcast %cst_150 : f32 to vector<64x32xf32>
    %680 = arith.mulf %679, %678 : vector<64x32xf32>
    %cst_151 = arith.constant 5.000000e-01 : f32
    %681 = vector.broadcast %cst_151 : f32 to vector<64x32xf32>
    %682 = arith.addf %680, %681 : vector<64x32xf32>
    %683 = arith.mulf %675, %682 : vector<64x32xf32>
    %c0_152 = arith.constant 0 : index
    %c0_153 = arith.constant 0 : index
    %684 = vector.load %arg19[%c0_152, %c0_153] : memref<32x64xf32, #tpu.memory_space<vmem>>, vector<32x64xf32>
    %cst_154 = arith.constant dense<0.000000e+00> : vector<64x64xf32>
    %685 = tpu.matmul %683, %684, %cst_154 {dimension_numbers = #tpu.dot_dimension_numbers<[1], [0], [0], [1], [0, 0, 1, 1], [], []>} : vector<64x32xf32>, vector<32x64xf32>, vector<64x64xf32> -> vector<64x64xf32>
    %686 = vector.extract_strided_slice %669 {offsets = [0, 32], sizes = [1, 64], strides = [1, 1]} : vector<1x192xf32> to vector<1x64xf32>
    %687 = vector.broadcast %686 : vector<1x64xf32> to vector<64x64xf32>
    %688 = arith.addf %685, %687 : vector<64x64xf32>
    %cst_155 = arith.constant 5.000000e-01 : f32
    %689 = vector.broadcast %cst_155 : f32 to vector<64x64xf32>
    %690 = arith.mulf %689, %688 : vector<64x64xf32>
    %691 = math.tanh %690 : vector<64x64xf32>
    %cst_156 = arith.constant 5.000000e-01 : f32
    %692 = vector.broadcast %cst_156 : f32 to vector<64x64xf32>
    %693 = arith.mulf %692, %691 : vector<64x64xf32>
    %cst_157 = arith.constant 5.000000e-01 : f32
    %694 = vector.broadcast %cst_157 : f32 to vector<64x64xf32>
    %695 = arith.addf %693, %694 : vector<64x64xf32>
    %696 = arith.mulf %688, %695 : vector<64x64xf32>
    %c0_158 = arith.constant 0 : index
    %c0_159 = arith.constant 0 : index
    %697 = vector.load %arg20[%c0_158, %c0_159] : memref<64x96xf32, #tpu.memory_space<vmem>>, vector<64x96xf32>
    %cst_160 = arith.constant dense<0.000000e+00> : vector<64x96xf32>
    %698 = tpu.matmul %696, %697, %cst_160 {dimension_numbers = #tpu.dot_dimension_numbers<[1], [0], [0], [1], [0, 0, 1, 1], [], []>} : vector<64x64xf32>, vector<64x96xf32>, vector<64x96xf32> -> vector<64x96xf32>
    %699 = vector.extract_strided_slice %669 {offsets = [0, 96], sizes = [1, 96], strides = [1, 1]} : vector<1x192xf32> to vector<1x96xf32>
    %700 = vector.broadcast %699 : vector<1x96xf32> to vector<64x96xf32>
    %701 = arith.addf %698, %700 : vector<64x96xf32>
    %cst_161 = arith.constant 5.000000e-01 : f32
    %702 = vector.broadcast %cst_161 : f32 to vector<64x96xf32>
    %703 = arith.mulf %702, %701 : vector<64x96xf32>
    %704 = math.tanh %703 : vector<64x96xf32>
    %cst_162 = arith.constant 5.000000e-01 : f32
    %705 = vector.broadcast %cst_162 : f32 to vector<64x96xf32>
    %706 = arith.mulf %705, %704 : vector<64x96xf32>
    %cst_163 = arith.constant 5.000000e-01 : f32
    %707 = vector.broadcast %cst_163 : f32 to vector<64x96xf32>
    %708 = arith.addf %706, %707 : vector<64x96xf32>
    %709 = arith.mulf %701, %708 : vector<64x96xf32>
    %710 = vector.broadcast %27 : vector<64x1xf32> to vector<64x96xf32>
    %711 = arith.mulf %709, %710 : vector<64x96xf32>
    %712 = arith.mulf %652, %652 : vector<8x32xf32>
    %713 = arith.mulf %654, %654 : vector<8x32xf32>
    %714 = arith.addf %712, %713 : vector<8x32xf32>
    %715 = arith.mulf %656, %656 : vector<8x32xf32>
    %716 = arith.addf %714, %715 : vector<8x32xf32>
    %717 = arith.mulf %658, %658 : vector<8x32xf32>
    %718 = arith.addf %716, %717 : vector<8x32xf32>
    %719 = arith.mulf %660, %660 : vector<8x32xf32>
    %720 = arith.addf %718, %719 : vector<8x32xf32>
    %721 = arith.mulf %662, %662 : vector<8x32xf32>
    %722 = arith.addf %720, %721 : vector<8x32xf32>
    %723 = arith.mulf %664, %664 : vector<8x32xf32>
    %724 = arith.addf %722, %723 : vector<8x32xf32>
    %725 = arith.mulf %666, %666 : vector<8x32xf32>
    %726 = arith.addf %724, %725 : vector<8x32xf32>
    %727 = arith.mulf %668, %668 : vector<8x32xf32>
    %728 = arith.addf %726, %727 : vector<8x32xf32>
    %cst_164 = arith.constant 1.000000e+00 : f32
    %729 = vector.broadcast %cst_164 : f32 to vector<8x32xf32>
    %730 = arith.addf %728, %729 : vector<8x32xf32>
    %cst_165 = arith.constant 1.000000e+00 : f32
    %731 = vector.broadcast %cst_165 : f32 to vector<8x32xf32>
    %732 = arith.divf %731, %730 : vector<8x32xf32>
    %733 = arith.mulf %652, %732 : vector<8x32xf32>
    %734 = arith.mulf %654, %732 : vector<8x32xf32>
    %735 = arith.mulf %656, %732 : vector<8x32xf32>
    %736 = arith.mulf %658, %732 : vector<8x32xf32>
    %737 = arith.mulf %660, %732 : vector<8x32xf32>
    %738 = arith.mulf %662, %732 : vector<8x32xf32>
    %739 = arith.mulf %664, %732 : vector<8x32xf32>
    %740 = arith.mulf %666, %732 : vector<8x32xf32>
    %741 = arith.mulf %668, %732 : vector<8x32xf32>
    %742 = arith.addf %733, %737 : vector<8x32xf32>
    %743 = arith.addf %742, %741 : vector<8x32xf32>
    %cst_166 = arith.constant 0.333333343 : f32
    %744 = vector.broadcast %cst_166 : f32 to vector<8x32xf32>
    %745 = arith.mulf %743, %744 : vector<8x32xf32>
    %746 = arith.subf %734, %736 : vector<8x32xf32>
    %cst_167 = arith.constant 5.000000e-01 : f32
    %747 = vector.broadcast %cst_167 : f32 to vector<8x32xf32>
    %748 = arith.mulf %747, %746 : vector<8x32xf32>
    %749 = arith.subf %735, %739 : vector<8x32xf32>
    %cst_168 = arith.constant 5.000000e-01 : f32
    %750 = vector.broadcast %cst_168 : f32 to vector<8x32xf32>
    %751 = arith.mulf %750, %749 : vector<8x32xf32>
    %752 = arith.subf %738, %740 : vector<8x32xf32>
    %cst_169 = arith.constant 5.000000e-01 : f32
    %753 = vector.broadcast %cst_169 : f32 to vector<8x32xf32>
    %754 = arith.mulf %753, %752 : vector<8x32xf32>
    %755 = arith.subf %733, %745 : vector<8x32xf32>
    %756 = arith.addf %734, %736 : vector<8x32xf32>
    %cst_170 = arith.constant 5.000000e-01 : f32
    %757 = vector.broadcast %cst_170 : f32 to vector<8x32xf32>
    %758 = arith.mulf %757, %756 : vector<8x32xf32>
    %759 = arith.addf %735, %739 : vector<8x32xf32>
    %cst_171 = arith.constant 5.000000e-01 : f32
    %760 = vector.broadcast %cst_171 : f32 to vector<8x32xf32>
    %761 = arith.mulf %760, %759 : vector<8x32xf32>
    %762 = arith.subf %737, %745 : vector<8x32xf32>
    %763 = arith.addf %738, %740 : vector<8x32xf32>
    %cst_172 = arith.constant 5.000000e-01 : f32
    %764 = vector.broadcast %cst_172 : f32 to vector<8x32xf32>
    %765 = arith.mulf %764, %763 : vector<8x32xf32>
    %766 = arith.subf %741, %745 : vector<8x32xf32>
    %767 = vector.extract_strided_slice %670 {offsets = [0, 0], sizes = [32, 32], strides = [1, 1]} : vector<192x32xf32> to vector<32x32xf32>
    %cst_173 = arith.constant dense<0.000000e+00> : vector<8x32xf32>
    %768 = tpu.matmul %745, %767, %cst_173 {dimension_numbers = #tpu.dot_dimension_numbers<[1], [0], [0], [1], [0, 0, 1, 1], [], []>} : vector<8x32xf32>, vector<32x32xf32>, vector<8x32xf32> -> vector<8x32xf32>
    %769 = vector.extract_strided_slice %670 {offsets = [32, 0], sizes = [32, 32], strides = [1, 1]} : vector<192x32xf32> to vector<32x32xf32>
    %cst_174 = arith.constant dense<0.000000e+00> : vector<8x32xf32>
    %770 = tpu.matmul %748, %769, %cst_174 {dimension_numbers = #tpu.dot_dimension_numbers<[1], [0], [0], [1], [0, 0, 1, 1], [], []>} : vector<8x32xf32>, vector<32x32xf32>, vector<8x32xf32> -> vector<8x32xf32>
    %cst_175 = arith.constant dense<0.000000e+00> : vector<8x32xf32>
    %771 = tpu.matmul %751, %769, %cst_175 {dimension_numbers = #tpu.dot_dimension_numbers<[1], [0], [0], [1], [0, 0, 1, 1], [], []>} : vector<8x32xf32>, vector<32x32xf32>, vector<8x32xf32> -> vector<8x32xf32>
    %cst_176 = arith.constant dense<0.000000e+00> : vector<8x32xf32>
    %772 = tpu.matmul %754, %769, %cst_176 {dimension_numbers = #tpu.dot_dimension_numbers<[1], [0], [0], [1], [0, 0, 1, 1], [], []>} : vector<8x32xf32>, vector<32x32xf32>, vector<8x32xf32> -> vector<8x32xf32>
    %773 = vector.extract_strided_slice %670 {offsets = [64, 0], sizes = [32, 32], strides = [1, 1]} : vector<192x32xf32> to vector<32x32xf32>
    %cst_177 = arith.constant dense<0.000000e+00> : vector<8x32xf32>
    %774 = tpu.matmul %755, %773, %cst_177 {dimension_numbers = #tpu.dot_dimension_numbers<[1], [0], [0], [1], [0, 0, 1, 1], [], []>} : vector<8x32xf32>, vector<32x32xf32>, vector<8x32xf32> -> vector<8x32xf32>
    %cst_178 = arith.constant dense<0.000000e+00> : vector<8x32xf32>
    %775 = tpu.matmul %758, %773, %cst_178 {dimension_numbers = #tpu.dot_dimension_numbers<[1], [0], [0], [1], [0, 0, 1, 1], [], []>} : vector<8x32xf32>, vector<32x32xf32>, vector<8x32xf32> -> vector<8x32xf32>
    %cst_179 = arith.constant dense<0.000000e+00> : vector<8x32xf32>
    %776 = tpu.matmul %761, %773, %cst_179 {dimension_numbers = #tpu.dot_dimension_numbers<[1], [0], [0], [1], [0, 0, 1, 1], [], []>} : vector<8x32xf32>, vector<32x32xf32>, vector<8x32xf32> -> vector<8x32xf32>
    %cst_180 = arith.constant dense<0.000000e+00> : vector<8x32xf32>
    %777 = tpu.matmul %762, %773, %cst_180 {dimension_numbers = #tpu.dot_dimension_numbers<[1], [0], [0], [1], [0, 0, 1, 1], [], []>} : vector<8x32xf32>, vector<32x32xf32>, vector<8x32xf32> -> vector<8x32xf32>
    %cst_181 = arith.constant dense<0.000000e+00> : vector<8x32xf32>
    %778 = tpu.matmul %765, %773, %cst_181 {dimension_numbers = #tpu.dot_dimension_numbers<[1], [0], [0], [1], [0, 0, 1, 1], [], []>} : vector<8x32xf32>, vector<32x32xf32>, vector<8x32xf32> -> vector<8x32xf32>
    %cst_182 = arith.constant dense<0.000000e+00> : vector<8x32xf32>
    %779 = tpu.matmul %766, %773, %cst_182 {dimension_numbers = #tpu.dot_dimension_numbers<[1], [0], [0], [1], [0, 0, 1, 1], [], []>} : vector<8x32xf32>, vector<32x32xf32>, vector<8x32xf32> -> vector<8x32xf32>
    %780 = arith.addf %768, %774 : vector<8x32xf32>
    %781 = arith.addf %770, %775 : vector<8x32xf32>
    %782 = arith.addf %771, %776 : vector<8x32xf32>
    %783 = arith.subf %775, %770 : vector<8x32xf32>
    %784 = arith.addf %768, %777 : vector<8x32xf32>
    %785 = arith.addf %772, %778 : vector<8x32xf32>
    %786 = arith.subf %776, %771 : vector<8x32xf32>
    %787 = arith.subf %778, %772 : vector<8x32xf32>
    %788 = arith.addf %768, %779 : vector<8x32xf32>
    %789 = vector.extract_strided_slice %711 {offsets = [0, 0], sizes = [64, 32], strides = [1, 1]} : vector<64x96xf32> to vector<64x32xf32>
    %790 = vector.shape_cast %789 : vector<64x32xf32> to vector<8x8x32xf32>
    %791 = vector.shape_cast %768 : vector<8x32xf32> to vector<8x1x32xf32>
    %792 = vector.broadcast %791 : vector<8x1x32xf32> to vector<8x8x32xf32>
    %793 = arith.mulf %790, %792 : vector<8x8x32xf32>
    %cst_183 = arith.constant dense<0.000000e+00> : vector<8x32xf32>
    %794 = vector.multi_reduction <add>, %793, %cst_183 [0] : vector<8x8x32xf32> to vector<8x32xf32>
    %795 = vector.extract_strided_slice %711 {offsets = [0, 32], sizes = [64, 32], strides = [1, 1]} : vector<64x96xf32> to vector<64x32xf32>
    %796 = vector.shape_cast %795 : vector<64x32xf32> to vector<8x8x32xf32>
    %797 = vector.shape_cast %770 : vector<8x32xf32> to vector<8x1x32xf32>
    %798 = vector.broadcast %797 : vector<8x1x32xf32> to vector<8x8x32xf32>
    %799 = arith.mulf %796, %798 : vector<8x8x32xf32>
    %cst_184 = arith.constant dense<0.000000e+00> : vector<8x32xf32>
    %800 = vector.multi_reduction <add>, %799, %cst_184 [0] : vector<8x8x32xf32> to vector<8x32xf32>
    %801 = vector.shape_cast %771 : vector<8x32xf32> to vector<8x1x32xf32>
    %802 = vector.broadcast %801 : vector<8x1x32xf32> to vector<8x8x32xf32>
    %803 = arith.mulf %796, %802 : vector<8x8x32xf32>
    %cst_185 = arith.constant dense<0.000000e+00> : vector<8x32xf32>
    %804 = vector.multi_reduction <add>, %803, %cst_185 [0] : vector<8x8x32xf32> to vector<8x32xf32>
    %805 = vector.shape_cast %772 : vector<8x32xf32> to vector<8x1x32xf32>
    %806 = vector.broadcast %805 : vector<8x1x32xf32> to vector<8x8x32xf32>
    %807 = arith.mulf %796, %806 : vector<8x8x32xf32>
    %cst_186 = arith.constant dense<0.000000e+00> : vector<8x32xf32>
    %808 = vector.multi_reduction <add>, %807, %cst_186 [0] : vector<8x8x32xf32> to vector<8x32xf32>
    %809 = vector.extract_strided_slice %711 {offsets = [0, 64], sizes = [64, 32], strides = [1, 1]} : vector<64x96xf32> to vector<64x32xf32>
    %810 = vector.shape_cast %809 : vector<64x32xf32> to vector<8x8x32xf32>
    %811 = vector.shape_cast %774 : vector<8x32xf32> to vector<8x1x32xf32>
    %812 = vector.broadcast %811 : vector<8x1x32xf32> to vector<8x8x32xf32>
    %813 = arith.mulf %810, %812 : vector<8x8x32xf32>
    %cst_187 = arith.constant dense<0.000000e+00> : vector<8x32xf32>
    %814 = vector.multi_reduction <add>, %813, %cst_187 [0] : vector<8x8x32xf32> to vector<8x32xf32>
    %815 = vector.shape_cast %775 : vector<8x32xf32> to vector<8x1x32xf32>
    %816 = vector.broadcast %815 : vector<8x1x32xf32> to vector<8x8x32xf32>
    %817 = arith.mulf %810, %816 : vector<8x8x32xf32>
    %cst_188 = arith.constant dense<0.000000e+00> : vector<8x32xf32>
    %818 = vector.multi_reduction <add>, %817, %cst_188 [0] : vector<8x8x32xf32> to vector<8x32xf32>
    %819 = vector.shape_cast %776 : vector<8x32xf32> to vector<8x1x32xf32>
    %820 = vector.broadcast %819 : vector<8x1x32xf32> to vector<8x8x32xf32>
    %821 = arith.mulf %810, %820 : vector<8x8x32xf32>
    %cst_189 = arith.constant dense<0.000000e+00> : vector<8x32xf32>
    %822 = vector.multi_reduction <add>, %821, %cst_189 [0] : vector<8x8x32xf32> to vector<8x32xf32>
    %823 = vector.shape_cast %777 : vector<8x32xf32> to vector<8x1x32xf32>
    %824 = vector.broadcast %823 : vector<8x1x32xf32> to vector<8x8x32xf32>
    %825 = arith.mulf %810, %824 : vector<8x8x32xf32>
    %cst_190 = arith.constant dense<0.000000e+00> : vector<8x32xf32>
    %826 = vector.multi_reduction <add>, %825, %cst_190 [0] : vector<8x8x32xf32> to vector<8x32xf32>
    %827 = vector.shape_cast %778 : vector<8x32xf32> to vector<8x1x32xf32>
    %828 = vector.broadcast %827 : vector<8x1x32xf32> to vector<8x8x32xf32>
    %829 = arith.mulf %810, %828 : vector<8x8x32xf32>
    %cst_191 = arith.constant dense<0.000000e+00> : vector<8x32xf32>
    %830 = vector.multi_reduction <add>, %829, %cst_191 [0] : vector<8x8x32xf32> to vector<8x32xf32>
    %831 = vector.shape_cast %779 : vector<8x32xf32> to vector<8x1x32xf32>
    %832 = vector.broadcast %831 : vector<8x1x32xf32> to vector<8x8x32xf32>
    %833 = arith.mulf %810, %832 : vector<8x8x32xf32>
    %cst_192 = arith.constant dense<0.000000e+00> : vector<8x32xf32>
    %834 = vector.multi_reduction <add>, %833, %cst_192 [0] : vector<8x8x32xf32> to vector<8x32xf32>
    %835 = arith.addf %794, %814 : vector<8x32xf32>
    %836 = arith.addf %800, %818 : vector<8x32xf32>
    %837 = arith.addf %804, %822 : vector<8x32xf32>
    %838 = arith.subf %818, %800 : vector<8x32xf32>
    %839 = arith.addf %794, %826 : vector<8x32xf32>
    %840 = arith.addf %808, %830 : vector<8x32xf32>
    %841 = arith.subf %822, %804 : vector<8x32xf32>
    %842 = arith.subf %830, %808 : vector<8x32xf32>
    %843 = arith.addf %794, %834 : vector<8x32xf32>
    %844 = arith.mulf %835, %780 : vector<8x32xf32>
    %845 = arith.mulf %836, %783 : vector<8x32xf32>
    %846 = arith.addf %844, %845 : vector<8x32xf32>
    %847 = arith.mulf %837, %786 : vector<8x32xf32>
    %848 = arith.addf %846, %847 : vector<8x32xf32>
    %849 = arith.mulf %835, %781 : vector<8x32xf32>
    %850 = arith.mulf %836, %784 : vector<8x32xf32>
    %851 = arith.addf %849, %850 : vector<8x32xf32>
    %852 = arith.mulf %837, %787 : vector<8x32xf32>
    %853 = arith.addf %851, %852 : vector<8x32xf32>
    %854 = arith.mulf %835, %782 : vector<8x32xf32>
    %855 = arith.mulf %836, %785 : vector<8x32xf32>
    %856 = arith.addf %854, %855 : vector<8x32xf32>
    %857 = arith.mulf %837, %788 : vector<8x32xf32>
    %858 = arith.addf %856, %857 : vector<8x32xf32>
    %859 = arith.mulf %838, %780 : vector<8x32xf32>
    %860 = arith.mulf %839, %783 : vector<8x32xf32>
    %861 = arith.addf %859, %860 : vector<8x32xf32>
    %862 = arith.mulf %840, %786 : vector<8x32xf32>
    %863 = arith.addf %861, %862 : vector<8x32xf32>
    %864 = arith.mulf %838, %781 : vector<8x32xf32>
    %865 = arith.mulf %839, %784 : vector<8x32xf32>
    %866 = arith.addf %864, %865 : vector<8x32xf32>
    %867 = arith.mulf %840, %787 : vector<8x32xf32>
    %868 = arith.addf %866, %867 : vector<8x32xf32>
    %869 = arith.mulf %838, %782 : vector<8x32xf32>
    %870 = arith.mulf %839, %785 : vector<8x32xf32>
    %871 = arith.addf %869, %870 : vector<8x32xf32>
    %872 = arith.mulf %840, %788 : vector<8x32xf32>
    %873 = arith.addf %871, %872 : vector<8x32xf32>
    %874 = arith.mulf %841, %780 : vector<8x32xf32>
    %875 = arith.mulf %842, %783 : vector<8x32xf32>
    %876 = arith.addf %874, %875 : vector<8x32xf32>
    %877 = arith.mulf %843, %786 : vector<8x32xf32>
    %878 = arith.addf %876, %877 : vector<8x32xf32>
    %879 = arith.mulf %841, %781 : vector<8x32xf32>
    %880 = arith.mulf %842, %784 : vector<8x32xf32>
    %881 = arith.addf %879, %880 : vector<8x32xf32>
    %882 = arith.mulf %843, %787 : vector<8x32xf32>
    %883 = arith.addf %881, %882 : vector<8x32xf32>
    %884 = arith.mulf %841, %782 : vector<8x32xf32>
    %885 = arith.mulf %842, %785 : vector<8x32xf32>
    %886 = arith.addf %884, %885 : vector<8x32xf32>
    %887 = arith.mulf %843, %788 : vector<8x32xf32>
    %888 = arith.addf %886, %887 : vector<8x32xf32>
    %889 = arith.mulf %780, %835 : vector<8x32xf32>
    %890 = arith.mulf %781, %838 : vector<8x32xf32>
    %891 = arith.addf %889, %890 : vector<8x32xf32>
    %892 = arith.mulf %782, %841 : vector<8x32xf32>
    %893 = arith.addf %891, %892 : vector<8x32xf32>
    %894 = arith.mulf %780, %836 : vector<8x32xf32>
    %895 = arith.mulf %781, %839 : vector<8x32xf32>
    %896 = arith.addf %894, %895 : vector<8x32xf32>
    %897 = arith.mulf %782, %842 : vector<8x32xf32>
    %898 = arith.addf %896, %897 : vector<8x32xf32>
    %899 = arith.mulf %780, %837 : vector<8x32xf32>
    %900 = arith.mulf %781, %840 : vector<8x32xf32>
    %901 = arith.addf %899, %900 : vector<8x32xf32>
    %902 = arith.mulf %782, %843 : vector<8x32xf32>
    %903 = arith.addf %901, %902 : vector<8x32xf32>
    %904 = arith.mulf %783, %835 : vector<8x32xf32>
    %905 = arith.mulf %784, %838 : vector<8x32xf32>
    %906 = arith.addf %904, %905 : vector<8x32xf32>
    %907 = arith.mulf %785, %841 : vector<8x32xf32>
    %908 = arith.addf %906, %907 : vector<8x32xf32>
    %909 = arith.mulf %783, %836 : vector<8x32xf32>
    %910 = arith.mulf %784, %839 : vector<8x32xf32>
    %911 = arith.addf %909, %910 : vector<8x32xf32>
    %912 = arith.mulf %785, %842 : vector<8x32xf32>
    %913 = arith.addf %911, %912 : vector<8x32xf32>
    %914 = arith.mulf %783, %837 : vector<8x32xf32>
    %915 = arith.mulf %784, %840 : vector<8x32xf32>
    %916 = arith.addf %914, %915 : vector<8x32xf32>
    %917 = arith.mulf %785, %843 : vector<8x32xf32>
    %918 = arith.addf %916, %917 : vector<8x32xf32>
    %919 = arith.mulf %786, %835 : vector<8x32xf32>
    %920 = arith.mulf %787, %838 : vector<8x32xf32>
    %921 = arith.addf %919, %920 : vector<8x32xf32>
    %922 = arith.mulf %788, %841 : vector<8x32xf32>
    %923 = arith.addf %921, %922 : vector<8x32xf32>
    %924 = arith.mulf %786, %836 : vector<8x32xf32>
    %925 = arith.mulf %787, %839 : vector<8x32xf32>
    %926 = arith.addf %924, %925 : vector<8x32xf32>
    %927 = arith.mulf %788, %842 : vector<8x32xf32>
    %928 = arith.addf %926, %927 : vector<8x32xf32>
    %929 = arith.mulf %786, %837 : vector<8x32xf32>
    %930 = arith.mulf %787, %840 : vector<8x32xf32>
    %931 = arith.addf %929, %930 : vector<8x32xf32>
    %932 = arith.mulf %788, %843 : vector<8x32xf32>
    %933 = arith.addf %931, %932 : vector<8x32xf32>
    %934 = arith.addf %848, %893 : vector<8x32xf32>
    %935 = arith.addf %853, %898 : vector<8x32xf32>
    %936 = arith.addf %858, %903 : vector<8x32xf32>
    %937 = arith.addf %863, %908 : vector<8x32xf32>
    %938 = arith.addf %868, %913 : vector<8x32xf32>
    %939 = arith.addf %873, %918 : vector<8x32xf32>
    %940 = arith.addf %878, %923 : vector<8x32xf32>
    %941 = arith.addf %883, %928 : vector<8x32xf32>
    %942 = arith.addf %888, %933 : vector<8x32xf32>
    %943 = arith.mulf %934, %934 : vector<8x32xf32>
    %944 = arith.mulf %935, %935 : vector<8x32xf32>
    %945 = arith.addf %943, %944 : vector<8x32xf32>
    %946 = arith.mulf %936, %936 : vector<8x32xf32>
    %947 = arith.addf %945, %946 : vector<8x32xf32>
    %948 = arith.mulf %937, %937 : vector<8x32xf32>
    %949 = arith.addf %947, %948 : vector<8x32xf32>
    %950 = arith.mulf %938, %938 : vector<8x32xf32>
    %951 = arith.addf %949, %950 : vector<8x32xf32>
    %952 = arith.mulf %939, %939 : vector<8x32xf32>
    %953 = arith.addf %951, %952 : vector<8x32xf32>
    %954 = arith.mulf %940, %940 : vector<8x32xf32>
    %955 = arith.addf %953, %954 : vector<8x32xf32>
    %956 = arith.mulf %941, %941 : vector<8x32xf32>
    %957 = arith.addf %955, %956 : vector<8x32xf32>
    %958 = arith.mulf %942, %942 : vector<8x32xf32>
    %959 = arith.addf %957, %958 : vector<8x32xf32>
    %cst_193 = arith.constant 1.000000e+00 : f32
    %960 = vector.broadcast %cst_193 : f32 to vector<8x32xf32>
    %961 = arith.addf %959, %960 : vector<8x32xf32>
    %cst_194 = arith.constant 1.000000e+00 : f32
    %962 = vector.broadcast %cst_194 : f32 to vector<8x32xf32>
    %963 = arith.divf %962, %961 : vector<8x32xf32>
    %964 = arith.mulf %934, %963 : vector<8x32xf32>
    %965 = arith.mulf %935, %963 : vector<8x32xf32>
    %966 = arith.mulf %936, %963 : vector<8x32xf32>
    %967 = arith.mulf %937, %963 : vector<8x32xf32>
    %968 = arith.mulf %938, %963 : vector<8x32xf32>
    %969 = arith.mulf %939, %963 : vector<8x32xf32>
    %970 = arith.mulf %940, %963 : vector<8x32xf32>
    %971 = arith.mulf %941, %963 : vector<8x32xf32>
    %972 = arith.mulf %942, %963 : vector<8x32xf32>
    %973 = arith.addf %964, %968 : vector<8x32xf32>
    %974 = arith.addf %973, %972 : vector<8x32xf32>
    %cst_195 = arith.constant 0.333333343 : f32
    %975 = vector.broadcast %cst_195 : f32 to vector<8x32xf32>
    %976 = arith.mulf %974, %975 : vector<8x32xf32>
    %977 = arith.subf %965, %967 : vector<8x32xf32>
    %cst_196 = arith.constant 5.000000e-01 : f32
    %978 = vector.broadcast %cst_196 : f32 to vector<8x32xf32>
    %979 = arith.mulf %978, %977 : vector<8x32xf32>
    %980 = arith.subf %966, %970 : vector<8x32xf32>
    %cst_197 = arith.constant 5.000000e-01 : f32
    %981 = vector.broadcast %cst_197 : f32 to vector<8x32xf32>
    %982 = arith.mulf %981, %980 : vector<8x32xf32>
    %983 = arith.subf %969, %971 : vector<8x32xf32>
    %cst_198 = arith.constant 5.000000e-01 : f32
    %984 = vector.broadcast %cst_198 : f32 to vector<8x32xf32>
    %985 = arith.mulf %984, %983 : vector<8x32xf32>
    %986 = arith.subf %964, %976 : vector<8x32xf32>
    %987 = arith.addf %965, %967 : vector<8x32xf32>
    %cst_199 = arith.constant 5.000000e-01 : f32
    %988 = vector.broadcast %cst_199 : f32 to vector<8x32xf32>
    %989 = arith.mulf %988, %987 : vector<8x32xf32>
    %990 = arith.addf %966, %970 : vector<8x32xf32>
    %cst_200 = arith.constant 5.000000e-01 : f32
    %991 = vector.broadcast %cst_200 : f32 to vector<8x32xf32>
    %992 = arith.mulf %991, %990 : vector<8x32xf32>
    %993 = arith.subf %968, %976 : vector<8x32xf32>
    %994 = arith.addf %969, %971 : vector<8x32xf32>
    %cst_201 = arith.constant 5.000000e-01 : f32
    %995 = vector.broadcast %cst_201 : f32 to vector<8x32xf32>
    %996 = arith.mulf %995, %994 : vector<8x32xf32>
    %997 = arith.subf %972, %976 : vector<8x32xf32>
    %998 = vector.extract_strided_slice %670 {offsets = [96, 0], sizes = [32, 32], strides = [1, 1]} : vector<192x32xf32> to vector<32x32xf32>
    %cst_202 = arith.constant dense<0.000000e+00> : vector<8x32xf32>
    %999 = tpu.matmul %976, %998, %cst_202 {dimension_numbers = #tpu.dot_dimension_numbers<[1], [0], [0], [1], [0, 0, 1, 1], [], []>} : vector<8x32xf32>, vector<32x32xf32>, vector<8x32xf32> -> vector<8x32xf32>
    %1000 = vector.extract_strided_slice %670 {offsets = [128, 0], sizes = [32, 32], strides = [1, 1]} : vector<192x32xf32> to vector<32x32xf32>
    %cst_203 = arith.constant dense<0.000000e+00> : vector<8x32xf32>
    %1001 = tpu.matmul %979, %1000, %cst_203 {dimension_numbers = #tpu.dot_dimension_numbers<[1], [0], [0], [1], [0, 0, 1, 1], [], []>} : vector<8x32xf32>, vector<32x32xf32>, vector<8x32xf32> -> vector<8x32xf32>
    %cst_204 = arith.constant dense<0.000000e+00> : vector<8x32xf32>
    %1002 = tpu.matmul %982, %1000, %cst_204 {dimension_numbers = #tpu.dot_dimension_numbers<[1], [0], [0], [1], [0, 0, 1, 1], [], []>} : vector<8x32xf32>, vector<32x32xf32>, vector<8x32xf32> -> vector<8x32xf32>
    %cst_205 = arith.constant dense<0.000000e+00> : vector<8x32xf32>
    %1003 = tpu.matmul %985, %1000, %cst_205 {dimension_numbers = #tpu.dot_dimension_numbers<[1], [0], [0], [1], [0, 0, 1, 1], [], []>} : vector<8x32xf32>, vector<32x32xf32>, vector<8x32xf32> -> vector<8x32xf32>
    %1004 = vector.extract_strided_slice %670 {offsets = [160, 0], sizes = [32, 32], strides = [1, 1]} : vector<192x32xf32> to vector<32x32xf32>
    %cst_206 = arith.constant dense<0.000000e+00> : vector<8x32xf32>
    %1005 = tpu.matmul %986, %1004, %cst_206 {dimension_numbers = #tpu.dot_dimension_numbers<[1], [0], [0], [1], [0, 0, 1, 1], [], []>} : vector<8x32xf32>, vector<32x32xf32>, vector<8x32xf32> -> vector<8x32xf32>
    %cst_207 = arith.constant dense<0.000000e+00> : vector<8x32xf32>
    %1006 = tpu.matmul %989, %1004, %cst_207 {dimension_numbers = #tpu.dot_dimension_numbers<[1], [0], [0], [1], [0, 0, 1, 1], [], []>} : vector<8x32xf32>, vector<32x32xf32>, vector<8x32xf32> -> vector<8x32xf32>
    %cst_208 = arith.constant dense<0.000000e+00> : vector<8x32xf32>
    %1007 = tpu.matmul %992, %1004, %cst_208 {dimension_numbers = #tpu.dot_dimension_numbers<[1], [0], [0], [1], [0, 0, 1, 1], [], []>} : vector<8x32xf32>, vector<32x32xf32>, vector<8x32xf32> -> vector<8x32xf32>
    %cst_209 = arith.constant dense<0.000000e+00> : vector<8x32xf32>
    %1008 = tpu.matmul %993, %1004, %cst_209 {dimension_numbers = #tpu.dot_dimension_numbers<[1], [0], [0], [1], [0, 0, 1, 1], [], []>} : vector<8x32xf32>, vector<32x32xf32>, vector<8x32xf32> -> vector<8x32xf32>
    %cst_210 = arith.constant dense<0.000000e+00> : vector<8x32xf32>
    %1009 = tpu.matmul %996, %1004, %cst_210 {dimension_numbers = #tpu.dot_dimension_numbers<[1], [0], [0], [1], [0, 0, 1, 1], [], []>} : vector<8x32xf32>, vector<32x32xf32>, vector<8x32xf32> -> vector<8x32xf32>
    %cst_211 = arith.constant dense<0.000000e+00> : vector<8x32xf32>
    %1010 = tpu.matmul %997, %1004, %cst_211 {dimension_numbers = #tpu.dot_dimension_numbers<[1], [0], [0], [1], [0, 0, 1, 1], [], []>} : vector<8x32xf32>, vector<32x32xf32>, vector<8x32xf32> -> vector<8x32xf32>
    %1011 = arith.addf %999, %1005 : vector<8x32xf32>
    %1012 = arith.addf %1001, %1006 : vector<8x32xf32>
    %1013 = arith.addf %1002, %1007 : vector<8x32xf32>
    %1014 = arith.subf %1006, %1001 : vector<8x32xf32>
    %1015 = arith.addf %999, %1008 : vector<8x32xf32>
    %1016 = arith.addf %1003, %1009 : vector<8x32xf32>
    %1017 = arith.subf %1007, %1002 : vector<8x32xf32>
    %1018 = arith.subf %1009, %1003 : vector<8x32xf32>
    %1019 = arith.addf %999, %1010 : vector<8x32xf32>
    %1020 = arith.mulf %1011, %1011 : vector<8x32xf32>
    %1021 = arith.mulf %1012, %1014 : vector<8x32xf32>
    %1022 = arith.addf %1020, %1021 : vector<8x32xf32>
    %1023 = arith.mulf %1013, %1017 : vector<8x32xf32>
    %1024 = arith.addf %1022, %1023 : vector<8x32xf32>
    %1025 = arith.mulf %1011, %1012 : vector<8x32xf32>
    %1026 = arith.mulf %1012, %1015 : vector<8x32xf32>
    %1027 = arith.addf %1025, %1026 : vector<8x32xf32>
    %1028 = arith.mulf %1013, %1018 : vector<8x32xf32>
    %1029 = arith.addf %1027, %1028 : vector<8x32xf32>
    %1030 = arith.mulf %1011, %1013 : vector<8x32xf32>
    %1031 = arith.mulf %1012, %1016 : vector<8x32xf32>
    %1032 = arith.addf %1030, %1031 : vector<8x32xf32>
    %1033 = arith.mulf %1013, %1019 : vector<8x32xf32>
    %1034 = arith.addf %1032, %1033 : vector<8x32xf32>
    %1035 = arith.mulf %1014, %1011 : vector<8x32xf32>
    %1036 = arith.mulf %1015, %1014 : vector<8x32xf32>
    %1037 = arith.addf %1035, %1036 : vector<8x32xf32>
    %1038 = arith.mulf %1016, %1017 : vector<8x32xf32>
    %1039 = arith.addf %1037, %1038 : vector<8x32xf32>
    %1040 = arith.mulf %1014, %1012 : vector<8x32xf32>
    %1041 = arith.mulf %1015, %1015 : vector<8x32xf32>
    %1042 = arith.addf %1040, %1041 : vector<8x32xf32>
    %1043 = arith.mulf %1016, %1018 : vector<8x32xf32>
    %1044 = arith.addf %1042, %1043 : vector<8x32xf32>
    %1045 = arith.mulf %1014, %1013 : vector<8x32xf32>
    %1046 = arith.mulf %1015, %1016 : vector<8x32xf32>
    %1047 = arith.addf %1045, %1046 : vector<8x32xf32>
    %1048 = arith.mulf %1016, %1019 : vector<8x32xf32>
    %1049 = arith.addf %1047, %1048 : vector<8x32xf32>
    %1050 = arith.mulf %1017, %1011 : vector<8x32xf32>
    %1051 = arith.mulf %1018, %1014 : vector<8x32xf32>
    %1052 = arith.addf %1050, %1051 : vector<8x32xf32>
    %1053 = arith.mulf %1019, %1017 : vector<8x32xf32>
    %1054 = arith.addf %1052, %1053 : vector<8x32xf32>
    %1055 = arith.mulf %1017, %1012 : vector<8x32xf32>
    %1056 = arith.mulf %1018, %1015 : vector<8x32xf32>
    %1057 = arith.addf %1055, %1056 : vector<8x32xf32>
    %1058 = arith.mulf %1019, %1018 : vector<8x32xf32>
    %1059 = arith.addf %1057, %1058 : vector<8x32xf32>
    %1060 = arith.mulf %1017, %1013 : vector<8x32xf32>
    %1061 = arith.mulf %1018, %1016 : vector<8x32xf32>
    %1062 = arith.addf %1060, %1061 : vector<8x32xf32>
    %1063 = arith.mulf %1019, %1019 : vector<8x32xf32>
    %1064 = arith.addf %1062, %1063 : vector<8x32xf32>
    %1065 = arith.addf %733, %1011 : vector<8x32xf32>
    %1066 = arith.addf %1065, %1024 : vector<8x32xf32>
    %1067 = arith.addf %734, %1012 : vector<8x32xf32>
    %1068 = arith.addf %1067, %1029 : vector<8x32xf32>
    %1069 = arith.addf %735, %1013 : vector<8x32xf32>
    %1070 = arith.addf %1069, %1034 : vector<8x32xf32>
    %1071 = arith.addf %736, %1014 : vector<8x32xf32>
    %1072 = arith.addf %1071, %1039 : vector<8x32xf32>
    %1073 = arith.addf %737, %1015 : vector<8x32xf32>
    %1074 = arith.addf %1073, %1044 : vector<8x32xf32>
    %1075 = arith.addf %738, %1016 : vector<8x32xf32>
    %1076 = arith.addf %1075, %1049 : vector<8x32xf32>
    %1077 = arith.addf %739, %1017 : vector<8x32xf32>
    %1078 = arith.addf %1077, %1054 : vector<8x32xf32>
    %1079 = arith.addf %740, %1018 : vector<8x32xf32>
    %1080 = arith.addf %1079, %1059 : vector<8x32xf32>
    %1081 = arith.addf %741, %1019 : vector<8x32xf32>
    %1082 = arith.addf %1081, %1064 : vector<8x32xf32>
    %1083 = arith.addf %1066, %1074 : vector<8x32xf32>
    %1084 = arith.addf %1083, %1082 : vector<8x32xf32>
    %cst_212 = arith.constant 0.333333343 : f32
    %1085 = vector.broadcast %cst_212 : f32 to vector<8x32xf32>
    %1086 = arith.mulf %1084, %1085 : vector<8x32xf32>
    %1087 = arith.subf %1068, %1072 : vector<8x32xf32>
    %cst_213 = arith.constant 5.000000e-01 : f32
    %1088 = vector.broadcast %cst_213 : f32 to vector<8x32xf32>
    %1089 = arith.mulf %1088, %1087 : vector<8x32xf32>
    %1090 = arith.subf %1070, %1078 : vector<8x32xf32>
    %cst_214 = arith.constant 5.000000e-01 : f32
    %1091 = vector.broadcast %cst_214 : f32 to vector<8x32xf32>
    %1092 = arith.mulf %1091, %1090 : vector<8x32xf32>
    %1093 = arith.subf %1076, %1080 : vector<8x32xf32>
    %cst_215 = arith.constant 5.000000e-01 : f32
    %1094 = vector.broadcast %cst_215 : f32 to vector<8x32xf32>
    %1095 = arith.mulf %1094, %1093 : vector<8x32xf32>
    %1096 = arith.subf %1066, %1086 : vector<8x32xf32>
    %1097 = arith.addf %1068, %1072 : vector<8x32xf32>
    %cst_216 = arith.constant 5.000000e-01 : f32
    %1098 = vector.broadcast %cst_216 : f32 to vector<8x32xf32>
    %1099 = arith.mulf %1098, %1097 : vector<8x32xf32>
    %1100 = arith.addf %1070, %1078 : vector<8x32xf32>
    %cst_217 = arith.constant 5.000000e-01 : f32
    %1101 = vector.broadcast %cst_217 : f32 to vector<8x32xf32>
    %1102 = arith.mulf %1101, %1100 : vector<8x32xf32>
    %1103 = arith.subf %1074, %1086 : vector<8x32xf32>
    %1104 = arith.addf %1076, %1080 : vector<8x32xf32>
    %cst_218 = arith.constant 5.000000e-01 : f32
    %1105 = vector.broadcast %cst_218 : f32 to vector<8x32xf32>
    %1106 = arith.mulf %1105, %1104 : vector<8x32xf32>
    %1107 = arith.subf %1082, %1086 : vector<8x32xf32>
    %cst_219 = arith.constant 3.000000e+00 : f32
    %1108 = vector.broadcast %cst_219 : f32 to vector<8x32xf32>
    %1109 = arith.mulf %1108, %1086 : vector<8x32xf32>
    %1110 = arith.mulf %1109, %1086 : vector<8x32xf32>
    %1111 = arith.mulf %1089, %1089 : vector<8x32xf32>
    %1112 = arith.mulf %1092, %1092 : vector<8x32xf32>
    %1113 = arith.addf %1111, %1112 : vector<8x32xf32>
    %1114 = arith.mulf %1095, %1095 : vector<8x32xf32>
    %1115 = arith.addf %1113, %1114 : vector<8x32xf32>
    %cst_220 = arith.constant 2.000000e+00 : f32
    %1116 = vector.broadcast %cst_220 : f32 to vector<8x32xf32>
    %1117 = arith.mulf %1116, %1115 : vector<8x32xf32>
    %1118 = arith.mulf %1096, %1096 : vector<8x32xf32>
    %1119 = arith.mulf %1103, %1103 : vector<8x32xf32>
    %1120 = arith.addf %1118, %1119 : vector<8x32xf32>
    %1121 = arith.mulf %1107, %1107 : vector<8x32xf32>
    %1122 = arith.addf %1120, %1121 : vector<8x32xf32>
    %1123 = arith.mulf %1099, %1099 : vector<8x32xf32>
    %1124 = arith.mulf %1102, %1102 : vector<8x32xf32>
    %1125 = arith.addf %1123, %1124 : vector<8x32xf32>
    %1126 = arith.mulf %1106, %1106 : vector<8x32xf32>
    %1127 = arith.addf %1125, %1126 : vector<8x32xf32>
    %cst_221 = arith.constant 2.000000e+00 : f32
    %1128 = vector.broadcast %cst_221 : f32 to vector<8x32xf32>
    %1129 = arith.mulf %1128, %1127 : vector<8x32xf32>
    %1130 = arith.addf %1122, %1129 : vector<8x32xf32>
    %cst_222 = arith.constant dense<0.000000e+00> : vector<8xf32>
    %1131 = vector.multi_reduction <add>, %1110, %cst_222 [1] : vector<8x32xf32> to vector<8xf32>
    %1132 = vector.shape_cast %1131 : vector<8xf32> to vector<8x1xf32>
    %cst_223 = arith.constant dense<0.000000e+00> : vector<8xf32>
    %1133 = vector.multi_reduction <add>, %1117, %cst_223 [1] : vector<8x32xf32> to vector<8xf32>
    %1134 = vector.shape_cast %1133 : vector<8xf32> to vector<8x1xf32>
    %1135 = arith.addf %1132, %1134 : vector<8x1xf32>
    %cst_224 = arith.constant dense<0.000000e+00> : vector<8xf32>
    %1136 = vector.multi_reduction <add>, %1130, %cst_224 [1] : vector<8x32xf32> to vector<8xf32>
    %1137 = vector.shape_cast %1136 : vector<8xf32> to vector<8x1xf32>
    %1138 = arith.addf %1135, %1137 : vector<8x1xf32>
    %cst_225 = arith.constant 0.010416667 : f32
    %1139 = vector.broadcast %cst_225 : f32 to vector<8x1xf32>
    %1140 = arith.mulf %1138, %1139 : vector<8x1xf32>
    %1141 = vector.broadcast %1140 : vector<8x1xf32> to vector<8x32xf32>
    %1142 = arith.subf %1110, %1141 : vector<8x32xf32>
    %1143 = vector.broadcast %1140 : vector<8x1xf32> to vector<8x32xf32>
    %1144 = arith.subf %1117, %1143 : vector<8x32xf32>
    %1145 = vector.broadcast %1140 : vector<8x1xf32> to vector<8x32xf32>
    %1146 = arith.subf %1130, %1145 : vector<8x32xf32>
    %1147 = arith.mulf %1142, %1142 : vector<8x32xf32>
    %cst_226 = arith.constant dense<0.000000e+00> : vector<8xf32>
    %1148 = vector.multi_reduction <add>, %1147, %cst_226 [1] : vector<8x32xf32> to vector<8xf32>
    %1149 = vector.shape_cast %1148 : vector<8xf32> to vector<8x1xf32>
    %1150 = arith.mulf %1144, %1144 : vector<8x32xf32>
    %cst_227 = arith.constant dense<0.000000e+00> : vector<8xf32>
    %1151 = vector.multi_reduction <add>, %1150, %cst_227 [1] : vector<8x32xf32> to vector<8xf32>
    %1152 = vector.shape_cast %1151 : vector<8xf32> to vector<8x1xf32>
    %1153 = arith.addf %1149, %1152 : vector<8x1xf32>
    %1154 = arith.mulf %1146, %1146 : vector<8x32xf32>
    %cst_228 = arith.constant dense<0.000000e+00> : vector<8xf32>
    %1155 = vector.multi_reduction <add>, %1154, %cst_228 [1] : vector<8x32xf32> to vector<8xf32>
    %1156 = vector.shape_cast %1155 : vector<8xf32> to vector<8x1xf32>
    %1157 = arith.addf %1153, %1156 : vector<8x1xf32>
    %cst_229 = arith.constant 0.010416667 : f32
    %1158 = vector.broadcast %cst_229 : f32 to vector<8x1xf32>
    %1159 = arith.mulf %1157, %1158 : vector<8x1xf32>
    %cst_230 = arith.constant 9.99999974E-6 : f32
    %1160 = vector.broadcast %cst_230 : f32 to vector<8x1xf32>
    %1161 = arith.addf %1159, %1160 : vector<8x1xf32>
    %1162 = math.rsqrt %1161 : vector<8x1xf32>
    %c0_231 = arith.constant 0 : index
    %c0_232 = arith.constant 0 : index
    %1163 = vector.load %arg23[%c0_231, %c0_232] : memref<1x96xf32, #tpu.memory_space<vmem>>, vector<1x96xf32>
    %c0_233 = arith.constant 0 : index
    %c0_234 = arith.constant 0 : index
    %1164 = vector.load %arg24[%c0_233, %c0_234] : memref<1x96xf32, #tpu.memory_space<vmem>>, vector<1x96xf32>
    %1165 = vector.broadcast %1162 : vector<8x1xf32> to vector<8x32xf32>
    %1166 = arith.mulf %1142, %1165 : vector<8x32xf32>
    %1167 = vector.extract_strided_slice %1163 {offsets = [0, 0], sizes = [1, 32], strides = [1, 1]} : vector<1x96xf32> to vector<1x32xf32>
    %1168 = vector.broadcast %1167 : vector<1x32xf32> to vector<8x32xf32>
    %1169 = arith.mulf %1166, %1168 : vector<8x32xf32>
    %1170 = vector.extract_strided_slice %1164 {offsets = [0, 0], sizes = [1, 32], strides = [1, 1]} : vector<1x96xf32> to vector<1x32xf32>
    %1171 = vector.broadcast %1170 : vector<1x32xf32> to vector<8x32xf32>
    %1172 = arith.addf %1169, %1171 : vector<8x32xf32>
    %1173 = vector.broadcast %1162 : vector<8x1xf32> to vector<8x32xf32>
    %1174 = arith.mulf %1144, %1173 : vector<8x32xf32>
    %1175 = vector.extract_strided_slice %1163 {offsets = [0, 32], sizes = [1, 32], strides = [1, 1]} : vector<1x96xf32> to vector<1x32xf32>
    %1176 = vector.broadcast %1175 : vector<1x32xf32> to vector<8x32xf32>
    %1177 = arith.mulf %1174, %1176 : vector<8x32xf32>
    %1178 = vector.extract_strided_slice %1164 {offsets = [0, 32], sizes = [1, 32], strides = [1, 1]} : vector<1x96xf32> to vector<1x32xf32>
    %1179 = vector.broadcast %1178 : vector<1x32xf32> to vector<8x32xf32>
    %1180 = arith.addf %1177, %1179 : vector<8x32xf32>
    %1181 = vector.broadcast %1162 : vector<8x1xf32> to vector<8x32xf32>
    %1182 = arith.mulf %1146, %1181 : vector<8x32xf32>
    %1183 = vector.extract_strided_slice %1163 {offsets = [0, 64], sizes = [1, 32], strides = [1, 1]} : vector<1x96xf32> to vector<1x32xf32>
    %1184 = vector.broadcast %1183 : vector<1x32xf32> to vector<8x32xf32>
    %1185 = arith.mulf %1182, %1184 : vector<8x32xf32>
    %1186 = vector.extract_strided_slice %1164 {offsets = [0, 64], sizes = [1, 32], strides = [1, 1]} : vector<1x96xf32> to vector<1x32xf32>
    %1187 = vector.broadcast %1186 : vector<1x32xf32> to vector<8x32xf32>
    %1188 = arith.addf %1185, %1187 : vector<8x32xf32>
    %c0_235 = arith.constant 0 : index
    %c0_236 = arith.constant 0 : index
    %1189 = vector.load %arg25[%c0_235, %c0_236] : memref<96x32xf32, #tpu.memory_space<vmem>>, vector<96x32xf32>
    %1190 = vector.extract_strided_slice %1189 {offsets = [0, 0], sizes = [32, 32], strides = [1, 1]} : vector<96x32xf32> to vector<32x32xf32>
    %cst_237 = arith.constant dense<0.000000e+00> : vector<8x32xf32>
    %1191 = tpu.matmul %1172, %1190, %cst_237 {dimension_numbers = #tpu.dot_dimension_numbers<[1], [0], [0], [1], [0, 0, 1, 1], [], []>} : vector<8x32xf32>, vector<32x32xf32>, vector<8x32xf32> -> vector<8x32xf32>
    %1192 = vector.extract_strided_slice %1189 {offsets = [32, 0], sizes = [32, 32], strides = [1, 1]} : vector<96x32xf32> to vector<32x32xf32>
    %cst_238 = arith.constant dense<0.000000e+00> : vector<8x32xf32>
    %1193 = tpu.matmul %1180, %1192, %cst_238 {dimension_numbers = #tpu.dot_dimension_numbers<[1], [0], [0], [1], [0, 0, 1, 1], [], []>} : vector<8x32xf32>, vector<32x32xf32>, vector<8x32xf32> -> vector<8x32xf32>
    %1194 = arith.addf %1191, %1193 : vector<8x32xf32>
    %1195 = vector.extract_strided_slice %1189 {offsets = [64, 0], sizes = [32, 32], strides = [1, 1]} : vector<96x32xf32> to vector<32x32xf32>
    %cst_239 = arith.constant dense<0.000000e+00> : vector<8x32xf32>
    %1196 = tpu.matmul %1188, %1195, %cst_239 {dimension_numbers = #tpu.dot_dimension_numbers<[1], [0], [0], [1], [0, 0, 1, 1], [], []>} : vector<8x32xf32>, vector<32x32xf32>, vector<8x32xf32> -> vector<8x32xf32>
    %1197 = arith.addf %1194, %1196 : vector<8x32xf32>
    %c0_240 = arith.constant 0 : index
    %c0_241 = arith.constant 0 : index
    %1198 = vector.load %arg26[%c0_240, %c0_241] : memref<1x32xf32, #tpu.memory_space<vmem>>, vector<1x32xf32>
    %1199 = vector.broadcast %1198 : vector<1x32xf32> to vector<8x32xf32>
    %1200 = arith.addf %1197, %1199 : vector<8x32xf32>
    %cst_242 = arith.constant 5.000000e-01 : f32
    %1201 = vector.broadcast %cst_242 : f32 to vector<8x32xf32>
    %1202 = arith.mulf %1201, %1200 : vector<8x32xf32>
    %1203 = math.tanh %1202 : vector<8x32xf32>
    %cst_243 = arith.constant 5.000000e-01 : f32
    %1204 = vector.broadcast %cst_243 : f32 to vector<8x32xf32>
    %1205 = arith.mulf %1204, %1203 : vector<8x32xf32>
    %cst_244 = arith.constant 5.000000e-01 : f32
    %1206 = vector.broadcast %cst_244 : f32 to vector<8x32xf32>
    %1207 = arith.addf %1205, %1206 : vector<8x32xf32>
    %1208 = arith.mulf %1200, %1207 : vector<8x32xf32>
    %c0_245 = arith.constant 0 : index
    %c0_246 = arith.constant 0 : index
    %1209 = vector.load %arg27[%c0_245, %c0_246] : memref<8x32xf32, #tpu.memory_space<vmem>>, vector<8x32xf32>
    tpu.vector_store %arg27[%c0_245, %c0_246], %1208 {strides = array<i32>} : memref<8x32xf32, #tpu.memory_space<vmem>>, vector<8x32xf32>,
    return
  }
}

</mosaic_0001>

<bundles_post_ra>
// kernel: tensornet_forward.1
= control target key start
LH: loop header
LB: loop body
LE: loop exit
PB: predicated region body
PF: predicated region fallthrough
CT: control target
= control target key end

     0   :  { %s19555_s0 = inlined_call_operand.vmem [shape: f32[8,3], index: 0, kind: input, shape index: {}]   ;;  %s19556_s1 = inlined_call_operand.vmem [shape: f32[8,32], index: 1, kind: input, shape index: {}]   ;;  %s19557_s2 = inlined_call_operand.vmem [shape: f32[1,16], index: 2, kind: input, shape index: {}]   ;;  %s19558_s3 = inlined_call_operand.vmem [shape: f32[16,96], index: 3, kind: input, shape index: {}]   ;;  %s19559_s4 = inlined_call_operand.vmem [shape: f32[1,96], index: 4, kind: input, shape index: {}]   ;;  %s19560_s5 = inlined_call_operand.vmem [shape: f32[32,64], index: 5, kind: input, shape index: {}]   ;;  %s19561_s6 = inlined_call_operand.vmem [shape: f32[1,32], index: 6, kind: input, shape index: {}]   ;;  %s19562_s7 = inlined_call_operand.vmem [shape: f32[96,32], index: 7, kind: input, shape index: {}]   ;;  %s19563_s8 = inlined_call_operand.vmem [shape: f32[32,64], index: 8, kind: input, shape index: {}]   ;;  %s19564_s9 = inlined_call_operand.vmem [shape: f32[64,96], index: 9, kind: input, shape index: {}]   ;;  %s19565_s10 = inlined_call_operand.vmem [shape: f32[1,160], index: 10, kind: input, shape index: {}]   ;;  %s19566_s11 = inlined_call_operand.vmem [shape: f32[1,32], index: 11, kind: input, shape index: {}]   ;;  %s19567_s12 = inlined_call_operand.vmem [shape: f32[1,32], index: 12, kind: input, shape index: {}]   ;;  %s19568_s13 = inlined_call_operand.vmem [shape: f32[16,32], index: 13, kind: input, shape index: {}]   ;;  %s19569_s14 = inlined_call_operand.vmem [shape: f32[32,64], index: 14, kind: input, shape index: {}]   ;;  %s19570_s15 = inlined_call_operand.vmem [shape: f32[64,96], index: 15, kind: input, shape index: {}]   ;;  %s19571_s16 = inlined_call_operand.vmem [shape: f32[1,192], index: 16, kind: input, shape index: {}]   ;;  %s19572_s17 = inlined_call_operand.vmem [shape: f32[192,32], index: 17, kind: input, shape index: {}]   ;;  %s19573_s18 = inlined_call_operand.vmem [shape: f32[16,32], index: 18, kind: input, shape index: {}]   ;;  %s19574_s19 = inlined_call_operand.vmem [shape: f32[32,64], index: 19, kind: input, shape index: {}]   ;;  %s19575_s20 = inlined_call_operand.vmem [shape: f32[64,96], index: 20, kind: input, shape index: {}]   ;;  %s19576_s21 = inlined_call_operand.vmem [shape: f32[1,192], index: 21, kind: input, shape index: {}]   ;;  %s19577_s22 = inlined_call_operand.vmem [shape: f32[192,32], index: 22, kind: input, shape index: {}]   ;;  %s19578_s23 = inlined_call_operand.vmem [shape: f32[1,96], index: 23, kind: input, shape index: {}]   ;;  %s19579_s24 = inlined_call_operand.vmem [shape: f32[1,96], index: 24, kind: input, shape index: {}]   ;;  %s19580_s25 = inlined_call_operand.vmem [shape: f32[96,32], index: 25, kind: input, shape index: {}]   ;;  %s19581_s26 = inlined_call_operand.vmem [shape: f32[1,32], index: 26, kind: input, shape index: {}]   ;;  %s19582_s27 = inlined_call_operand.hbm [shape: f32[8,32], index: 27, kind: output, shape index: {}]  }
   0x1   :  { %19685 = sst [smem:[#allocation60_spill]] %s19555_s0 }
   0x2   :  { %19686 = sst [smem:[#allocation61_spill]] %s19556_s1 }
   0x3   :  { %19687 = sst [smem:[#allocation62_spill]] %s19557_s2 }
   0x4   :  { %19688 = sst [smem:[#allocation63_spill]] %s19558_s3 }
   0x5   :  { %19689 = sst [smem:[#allocation64_spill]] %s19559_s4 }
   0x6   :  { %19690 = sst [smem:[#allocation65_spill]] %s19560_s5 }
   0x7   :  { %19691 = sst [smem:[#allocation66_spill]] %s19561_s6 }
   0x8   :  { %19692 = sst [smem:[#allocation67_spill]] %s19562_s7 }
   0x9   :  { %19693 = sst [smem:[#allocation68_spill]] %s19563_s8 }
   0xa   :  { %19694 = sst [smem:[#allocation69_spill]] %s19564_s9 }
   0xb   :  { %19695 = sst [smem:[#allocation70_spill]] %s19565_s10 }
   0xc   :  { %19696 = sst [smem:[#allocation71_spill]] %s19566_s11 }
   0xd   :  { %v93_v0 = vlaneseq  ;;  %v14184_v1 = vmov 1966171168   ;;  %v19590_v3 = vmov 0.0|0.0   ;;  %s19697_s8 = sld [smem:[#allocation65_spill]]  ;;  %s19698_s29 = sld [smem:[#allocation60_spill]]  ;;  %vm14186_vm0 = vmmov 0  }
   0xe   :  { %v91_v2 = vunpack.c.l.s4 %v14184_v1  ;;  %13459 = vmatprep.subr.bf16.mxu1 %v19590_v3  ;;  %v19592_v11 = vmov 0.0  }
   0xf   :  { %v14360_v8 = vshrl.u32 %v93_v0, 7  ;;  %12711 = vmatprep.mubr.msk.f32.mxu1 %vm14186_vm0, %v19592_v11 }
  0x11   :  { %19699 = vst [vmem:[#allocation5_spill] sm:$0xff] %v14360_v8 }
  0x13   :  { %v1965_v4 = vld [vmem:[%s19697_s8] sm:$0xff]  ;;  %v1966_v5 = vld [vmem:[%s19697_s8 + $0x8] sm:$0xff]  ;;  %v1967_v6 = vld [vmem:[%s19697_s8 + $0x10] sm:$0xff] }
  0x14   :  { %v14358_v7 = vld [vmem:[%s19698_s29] sm:$0xff]  ;;  %v13460_v9 = vpack.c.bf16 %v1966_v5, %v1965_v4  ;;  %v1968_v10 = vld [vmem:[%s19697_s8 + $0x18] sm:$0xff] }
  0x15   :  { %32 = vsyncpa [#allocation3], 0  ;;  %v92_v12 = vunpack.c.0.s8 %v91_v2  ;;  %v89_v13 = vcombine.high %v14358_v7, %v14358_v7  ;;  %v13463_v14 = vpack.c.bf16 %v1968_v10, %v1967_v6  ;;  %v14376_v17 = vsub.s32 0, %v14360_v8  ;;  %s19702_s3 = sld [smem:[#allocation61_spill]]  ;;  %s14188_s7 = smov 126  }
  0x16   :  { %13461 = vmatpush3.bf16.msra.mxu1 %v13460_v9  ;;  %vm1969_vm1 = vcmask 261120   ;;  %s14189_s4 = smov 127   ;;  %v19588_v54 = vmov 0   ;;  %s14191_s8 = smov 2  }
  0x17   :  { %v14370_v15 = vsub.s32 %v92_v12, %v14360_v8  ;;  %13462 = vmatprep.subr.bf16.mxu1 %v19590_v3  ;;  %19701 = vst [vmem:[#allocation7_spill] sm:$0xff] %v14376_v17  ;;  %13910 = vset.pattern.permute.xlu0 %v19588_v54  ;;  %s14192_s30 = smov 1   ;;  %s19737_s28 = sld [smem:[#allocation62_spill]] }
  0x18   :  { %13911 = vset.pattern.permute.xlu1 %v19588_v54  ;;  %s19738_s29 = sld [smem:[#allocation63_spill]]  ;;  %s14199_s11 = smov 32  }
  0x19   :  { %19700 = vst [vmem:[#allocation6_spill] sm:$0xff] %v14370_v15  ;;  %v96_v16 = vrot.slane %v14358_v7, %v14370_v15  ;;  %v103_v18 = vrot.slane %v89_v13, %v14370_v15  ;;  %s19744_s9 = sld [smem:[#allocation66_spill]]  ;;  %s19845_s0 = sld [smem:[#allocation67_spill]] }
  0x1a   :  { %13464 = vmatpush3.bf16.msra.mxu1 %v13463_v14  ;;  %s19849_s6 = sld [smem:[#allocation68_spill]]  ;;  %s14203_s1 = smov 64  }
  0x1b   :  { %v1964_v19 = vld [vmem:[%s19702_s3] sm:$0xff]  ;;  %v112_v20 = vrot.slane %v96_v16, %v14370_v15  ;;  %v104_v21 = vcombine.high %v96_v16, %v96_v16  ;;  %v119_v22 = vrot.slane %v103_v18, %v14370_v15  ;;  %v105_v23 = vcombine.high %v103_v18, %v103_v18  ;;  %13465 = vmatprep.subr.bf16.mxu1 %v19590_v3  ;;  %s19861_s3 = sld [smem:[#allocation69_spill]] }
  0x1c   :  { %v19604_v3 = vmov 920167782  }
  0x1d   :  { %v141_v24 = vrot.slane %v112_v20, %v14376_v17  ;;  %v126_v25 = vrot.slane %v104_v21, %v14370_v15  ;;  %v157_v26 = vrot.slane %v119_v22, %v14376_v17  ;;  %v133_v27 = vrot.slane %v105_v23, %v14370_v15  ;;  %12712 = vmatmul.mubr.msk.f32.vlgmr.msra.gmra.mrb[0].mxu1 %vm1969_vm1, %v1964_v19 }
  0x1e   :  { %v134_v28 = vcombine.high %v112_v20, %v112_v20  ;;  %12722 = vmatprep.mubr.msk.f32.mxu1 %vm14186_vm0, %v19592_v11  ;;  %v135_v43 = vcombine.high %v119_v22, %v119_v22  ;;  %v19717_v15 = vmov 920167782  }
  0x1f   :  { %v14393_v29 = vsub.f32 %v141_v24, %v14358_v7  ;;  %v145_v30 = vrot.slane %v126_v25, %v14376_v17  ;;  %v14397_v31 = vsub.f32 %v157_v26, %v14358_v7  ;;  %v161_v32 = vrot.slane %v133_v27, %v14376_v17 }
  0x20   :  { %v149_v35 = vrot.slane %v134_v28, %v14376_v17  ;;  %v136_v36 = vcombine.high %v126_v25, %v126_v25  ;;  %v137_v46 = vcombine.high %v133_v27, %v133_v27  ;;  %v165_v48 = vrot.slane %v135_v43, %v14376_v17 }
  0x21   :  { %19703 = vst [vmem:[#allocation8_spill] sm:$0xff] %v14397_v31  ;;  %v186_v33 = vmul.f32 %v14393_v29, %v14393_v29  ;;  %v14403_v34 = vsub.f32 %v145_v30, %v14358_v7  ;;  %v190_v38 = vmul.f32 %v14397_v31, %v14397_v31  ;;  %v14413_v39 = vsub.f32 %v161_v32, %v14358_v7 }
  0x22   :  { %v14420_v41 = vsub.f32 %v149_v35, %v14358_v7  ;;  %v153_v42 = vrot.slane %v136_v36, %v14376_v17  ;;  %v169_v49 = vrot.slane %v137_v46, %v14376_v17  ;;  %v14442_v50 = vsub.f32 %v165_v48, %v14358_v7 }
  0x23   :  { %234 = vrot.lane.b32.xlu1 %v186_v33, %s14188_s7  ;;  %202 = vrot.lane.b32.xlu0 %v186_v33, %s14189_s4  ;;  %v187_v37 = vmul.f32 %v14403_v34, %v14403_v34  ;;  %19704 = vst [vmem:[#allocation9_spill] sm:$0xff] %v14413_v39  ;;  %v191_v40 = vmul.f32 %v14413_v39, %v14413_v39 }
  0x24   :  { %19705 = vst [vmem:[#allocation10_spill] sm:$0xff] %v14420_v41  ;;  %v188_v44 = vmul.f32 %v14420_v41, %v14420_v41  ;;  %v14428_v45 = vsub.f32 %v153_v42, %v14358_v7  ;;  %19707 = vst [vmem:[#allocation12_spill] sm:$0xff] %v14442_v50  ;;  %v14445_v51 = vsub.f32 %v169_v49, %v14358_v7 }
  0x25   :  { %v192_v52 = vmul.f32 %v14442_v50, %v14442_v50 }
  0x26   :  { %19706 = vst [vmem:[#allocation11_spill] sm:$0xff] %v14428_v45  ;;  %v14434_v47 = vmul.f32 %v14428_v45, %v14428_v45  ;;  %19708 = vst [vmem:[#allocation13_spill] sm:$0xff] %v14445_v51  ;;  %v193_v53 = vmul.f32 %v14445_v51, %v14445_v51 }
  0x27   :  { %236 = vrot.lane.b32.xlu1 %v187_v37, %s14188_s7  ;;  %210 = vrot.lane.b32.xlu0 %v190_v38, %s14189_s4 }
  0x2b   :  { %204 = vrot.lane.b32.xlu0 %v187_v37, %s14189_s4  ;;  %212 = vrot.lane.b32.xlu1 %v191_v40, %s14189_s4 }
  0x2f   :  { %206 = vrot.lane.b32.xlu0 %v188_v44, %s14189_s4  ;;  %244 = vrot.lane.b32.xlu1 %v191_v40, %s14188_s7 }
  0x33   :  { %238 = vrot.lane.b32.xlu0 %v188_v44, %s14188_s7  ;;  %208 = vrot.lane.b32.xlu1 %v14434_v47, %s14189_s4 }
  0x37   :  { %242 = vrot.lane.b32.xlu0 %v190_v38, %s14188_s7  ;;  %240 = vrot.lane.b32.xlu1 %v14434_v47, %s14188_s7 }
  0x3b   :  { %214 = vrot.lane.b32.xlu0 %v192_v52, %s14189_s4  ;;  %216 = vrot.lane.b32.xlu1 %v193_v53, %s14189_s4 }
  0x3f   :  { %246 = vrot.lane.b32.xlu0 %v192_v52, %s14188_s7  ;;  %248 = vrot.lane.b32.xlu1 %v193_v53, %s14188_s7 }
  0x95   :  { %v235_v55 = vpop.permute.xlu1 %234  ;;  %v203_v56 = vpop.permute.xlu0 %202 }
  0x96   :  { %v226_v57 = vadd.f32 %v203_v56, %v186_v33 }
  0x98   :  { %v258_v58 = vadd.f32 %v235_v55, %v226_v57 }
  0x99   :  { %v237_v59 = vpop.permute.xlu1 %236  ;;  %v211_v60 = vpop.permute.xlu0 %210 }
  0x9a   :  { %13950 = vrsqrt.f32 %v258_v58  ;;  %vm268_vm2 = vcmp.eq.f32.partialorder %v258_v58, inf  ;;  %v271_v14 = vand.u32 2147483648, %v258_v58  ;;  %vm270_vm3 = vcmp.eq.f32.partialorder %v258_v58, 0.0 }
  0x9b   :  { %v230_v18 = vadd.f32 %v211_v60, %v190_v38  ;;  %vm1202_vm4 = vcmp.gt.f32.partialorder %v258_v58, 0.0 }
  0x9d   :  { %v205_v61 = vpop.permute.xlu0 %204  ;;  %v213_v62 = vpop.permute.xlu1 %212 }
  0x9e   :  { %v227_v63 = vadd.f32 %v205_v61, %v187_v37  ;;  %v231_v1 = vadd.f32 %v213_v62, %v191_v40 }
  0xa0   :  { %v14460_v0 = vadd.f32 %v237_v59, %v227_v63 }
  0xa1   :  { %v207_v2 = vpop.permute.xlu0 %206  ;;  %v245_v4 = vpop.permute.xlu1 %244 }
  0xa2   :  { %13952 = vrsqrt.f32 %v14460_v0  ;;  %v228_v6 = vadd.f32 %v207_v2, %v188_v44  ;;  %v14463_v7 = vadd.f32 %v245_v4, %v231_v1  ;;  %vm275_vm5 = vcmp.eq.f32.partialorder %v14460_v0, inf }
  0xa3   :  { %vm277_vm6 = vcmp.eq.f32.partialorder %v14460_v0, 0.0  ;;  %v278_v32 = vand.u32 2147483648, %v14460_v0  ;;  %vm1203_vm7 = vcmp.gt.f32.partialorder %v14460_v0, 0.0 }
  0xa4   :  { %v13951_v5 = vpop.eup %13950  ;;  %vm303_vm8 = vcmp.eq.f32.partialorder %v14463_v7, inf  ;;  %v306_v59 = vand.u32 2147483648, %v14463_v7  ;;  %vm1207_vm13 = vcmp.gt.f32.partialorder %v14463_v7, 0.0 }
  0xa5   :  { %v239_v9 = vpop.permute.xlu0 %238  ;;  %v209_v10 = vpop.permute.xlu1 %208  ;;  %v267_v12 = vmul.f32 %v13951_v5, %v258_v58 }
  0xa6   :  { %v14465_v13 = vadd.f32 %v239_v9, %v228_v6  ;;  %v229_v33 = vadd.f32 %v209_v10, %v14434_v47 }
  0xa7   :  { %v269_v16 = vsel %vm268_vm2, %v258_v58, %v267_v12  ;;  %vm305_vm2 = vcmp.eq.f32.partialorder %v14463_v7, 0.0 }
  0xa8   :  { %13954 = vrsqrt.f32 %v14465_v13  ;;  %v14468_v19 = vsel %vm270_vm3, %v271_v14, %v269_v16  ;;  %vm282_vm9 = vcmp.eq.f32.partialorder %v14465_v13, inf  ;;  %vm284_vm10 = vcmp.eq.f32.partialorder %v14465_v13, 0.0 }
  0xa9   :  { %13956 = vrsqrt.f32 %v14463_v7  ;;  %v243_v20 = vpop.permute.xlu0 %242  ;;  %v241_v21 = vpop.permute.xlu1 %240  ;;  %v1226_v22 = vsel %vm1202_vm4, %v14468_v19, 1.0  ;;  %v14477_v25 = vmul.f32 0.6981317, %v14468_v19  ;;  %v1330_v42 = vsub.f32 0.0, %v14468_v19 }
  0xaa   :  { %v14473_v23 = vadd.f32 %v243_v20, %v230_v18  ;;  %13958 = vrcp.f32 %v1226_v22  ;;  %v14501_v56 = vadd.f32 %v241_v21, %v229_v33  ;;  %v285_v58 = vand.u32 2147483648, %v14465_v13 }
  0xab   :  { %v333_v36 = vand.u32 2139095040, %v14477_v25  ;;  %v1338_v60 = vmul.f32 1.1111112, %v1330_v42  ;;  %vm1204_vm15 = vcmp.gt.f32.partialorder %v14465_v13, 0.0  ;;  %v14553_v33 = vsel %vm1207_vm13, 1.0, %v19592_v11 }
  0xac   :  { %v13953_v24 = vpop.eup %13952  ;;  %13960 = vrsqrt.f32 %v14473_v23  ;;  %vm296_vm11 = vcmp.eq.f32.partialorder %v14473_v23, inf  ;;  %v299_v4 = vand.u32 2147483648, %v14473_v23  ;;  %vm298_vm12 = vcmp.eq.f32.partialorder %v14473_v23, 0.0 }
  0xad   :  { %v215_v26 = vpop.permute.xlu0 %214  ;;  %v217_v27 = vpop.permute.xlu1 %216  ;;  %v274_v30 = vmul.f32 %v13953_v24, %v14460_v0  ;;  %v334_v57 = vshrl.u32 %v333_v36, 23  ;;  %vm1206_vm14 = vcmp.gt.f32.partialorder %v14473_v23, 0.0  ;;  %v1346_v20 = vmul.f32 1.442695, %v1338_v60 }
  0xae   :  { %v233_v28 = vadd.f32 %v217_v27, %v193_v53  ;;  %v232_v35 = vadd.f32 %v215_v26, %v192_v52  ;;  %v12189_v52 = vsel %vm1202_vm4, 1.0, %v19592_v11  ;;  %vm289_vm3 = vcmp.eq.f32.partialorder %v14501_v56, inf }
  0xaf   :  { %v276_v37 = vsel %vm275_vm5, %v14460_v0, %v274_v30  ;;  %v12149_v6 = vadd.s32 4294967169, %v334_v57  ;;  %v12193_v30 = vsel %vm1206_vm14, 1.0, %v19592_v11  ;;  %v292_v0 = vand.u32 2147483648, %v14501_v56 }
  0xb0   :  { %v14487_v43 = vsel %vm277_vm6, %v278_v32, %v276_v37  ;;  %v12191_v32 = vsel %vm1204_vm15, 1.0, %v19592_v11 }
  0xb1   :  { %v247_v38 = vpop.permute.xlu0 %246  ;;  %v249_v40 = vpop.permute.xlu1 %248  ;;  %v14494_v49 = vmul.f32 0.6981317, %v14487_v43  ;;  %v1227_v9 = vsel %vm1203_vm7, %v14487_v43, 1.0  ;;  %v340_v24 = vadd.s32 1, %v12149_v6  ;;  %v1331_v26 = vsub.f32 0.0, %v14487_v43 }
  0xb2   :  { %v13955_v44 = vpop.eup %13954  ;;  %v14489_v46 = vadd.f32 %v247_v38, %v232_v35  ;;  %v14491_v48 = vadd.f32 %v249_v40, %v233_v28 }
  0xb3   :  { %v13957_v47 = vpop.eup %13956  ;;  %v281_v53 = vmul.f32 %v13955_v44, %v14465_v13  ;;  %v436_v63 = vand.u32 2139095040, %v14494_v49  ;;  %vm341_vm5 = vcmp.gt.s32.totalorder %v340_v24, 0  ;;  %v1339_v37 = vmul.f32 1.1111112, %v1331_v26 }
  0xb4   :  { %v13959_v55 = vpop.eup %13958  ;;  %13962 = vrsqrt.f32 %v14489_v46  ;;  %v302_v1 = vmul.f32 %v13957_v47, %v14463_v7  ;;  %vm310_vm4 = vcmp.eq.f32.partialorder %v14489_v46, inf  ;;  %vm312_vm6 = vcmp.eq.f32.partialorder %v14489_v46, 0.0 }
  0xb5   :  { %13964 = vrsqrt.f32 %v14491_v48  ;;  %v14509_v62 = vmul.f32 %v13959_v55, %v12189_v52  ;;  %v283_v5 = vsel %vm282_vm9, %v14465_v13, %v281_v53  ;;  %v437_v14 = vshrl.u32 %v436_v63, 23 }
  0xb6   :  { %v13961_v61 = vpop.eup %13960  ;;  %13966 = vrsqrt.f32 %v14501_v56  ;;  %v14527_v10 = vsel %vm284_vm10, %v285_v58, %v283_v5  ;;  %v304_v18 = vsel %vm303_vm8, %v14463_v7, %v302_v1  ;;  %v12190_v13 = vsel %vm1203_vm7, 1.0, %v19592_v11 }
  0xb7   :  { %v295_v2 = vmul.f32 %v13961_v61, %v14473_v23  ;;  %1298 = vrot.lane.b32.xlu0 %v14509_v62, %s14191_s8  ;;  %1266 = vrot.lane.b32.xlu1 %v14509_v62, %s14192_s30  ;;  %13968 = vrcp.f32 %v1227_v9  ;;  %v1228_v22 = vsel %vm1204_vm15, %v14527_v10, 1.0  ;;  %v12153_v27 = vadd.s32 4294967169, %v437_v14 }
  0xb8   :  { %v313_v40 = vand.u32 2147483648, %v14489_v46  ;;  %v14565_v44 = vmul.f32 0.6981317, %v14527_v10  ;;  %v1332_v57 = vsub.f32 0.0, %v14527_v10  ;;  %vm291_vm7 = vcmp.eq.f32.partialorder %v14501_v56, 0.0 }
  0xb9   :  { %v297_v12 = vsel %vm296_vm11, %v14473_v23, %v295_v2  ;;  %v14546_v23 = vsel %vm305_vm2, %v306_v59, %v304_v18  ;;  %v443_v42 = vadd.s32 1, %v12153_v27  ;;  %vm317_vm8 = vcmp.eq.f32.partialorder %v14491_v48, inf }
  0xba   :  { %v14532_v16 = vsel %vm298_vm12, %v299_v4, %v297_v12  ;;  %v1231_v38 = vsel %vm1207_vm13, %v14546_v23, 1.0  ;;  %v320_v59 = vand.u32 2147483648, %v14491_v48  ;;  %vm1205_vm9 = vcmp.gt.f32.partialorder %v14501_v56, 0.0 }
  0xbb   :  { %v1230_v21 = vsel %vm1206_vm14, %v14532_v16, 1.0  ;;  %v14569_v53 = vmul.f32 0.6981317, %v14532_v16  ;;  %v1334_v55 = vsub.f32 0.0, %v14532_v16  ;;  %v342_v60 = vsel %vm341_vm5, %v340_v24, 0 }
  0xbc   :  { %13970 = vrcp.f32 %v1230_v21  ;;  %v1348_v58 = vmul.f32 1.442695, %v1339_v37  ;;  %v1335_v61 = vsub.f32 0.0, %v14546_v23  ;;  %v14581_v63 = vmul.f32 0.6981317, %v14546_v23 }
  0xbd   :  { %13972 = vrcp.f32 %v1228_v22  ;;  %vm444_vm10 = vcmp.gt.s32.totalorder %v443_v42, 0  ;;  %v539_v4 = vand.u32 2139095040, %v14565_v44  ;;  %v745_v9 = vand.u32 2139095040, %v14569_v53 }
  0xbe   :  { %v13963_v28 = vpop.eup %13962  ;;  %13974 = vpow2.f32 %v1346_v20  ;;  %v1342_v12 = vmul.f32 1.1111112, %v1334_v55  ;;  %v1340_v14 = vmul.f32 1.1111112, %v1332_v57  ;;  %v848_v18 = vand.u32 2139095040, %v14581_v63 }
  0xbf   :  { %v309_v35 = vmul.f32 %v13963_v28, %v14489_v46  ;;  %v13965_v36 = vpop.eup %13964  ;;  %13976 = vrcp.f32 %v1231_v38  ;;  %vm319_vm11 = vcmp.eq.f32.partialorder %v14491_v48, 0.0  ;;  %v14595_v21 = vand.u32 31, %v342_v60 }
  0xc0   :  { %v13967_v47 = vpop.eup %13966  ;;  %v316_v7 = vmul.f32 %v13965_v36, %v14491_v48  ;;  %v14599_v26 = vsel %vm444_vm10, %v443_v42, 0  ;;  %13978 = vpow2.f32 %v1348_v58  ;;  %v1343_v27 = vmul.f32 1.1111112, %v1335_v61 }
  0xc1   :  { %v311_v52 = vsel %vm310_vm4, %v14489_v46, %v309_v35  ;;  %v13969_v1 = vpop.eup %13968  ;;  %v288_v5 = vmul.f32 %v13967_v47, %v14501_v56  ;;  %v540_v37 = vshrl.u32 %v539_v4, 23  ;;  %v746_v42 = vshrl.u32 %v745_v9, 23 }
  0xc2   :  { %v14585_v2 = vsel %vm312_vm6, %v313_v40, %v311_v52  ;;  %v318_v20 = vsel %vm317_vm8, %v14491_v48, %v316_v7  ;;  %v14608_v36 = vmul.f32 %v13969_v1, %v12190_v13  ;;  %v1354_v47 = vmul.f32 1.442695, %v1342_v12 }
  0xc3   :  { %v1336_v28 = vsub.f32 0.0, %v14585_v2  ;;  %v290_v38 = vsel %vm289_vm3, %v14501_v56, %v288_v5  ;;  %v14613_v40 = vsel %vm319_vm11, %v320_v59, %v318_v20  ;;  %v1350_v52 = vmul.f32 1.442695, %v1340_v14 }
  0xc4   :  { %19710 = vst [vmem:[#allocation15_spill] sm:$0xff] %v14608_v36  ;;  %v14616_v55 = vand.u32 31, %v14599_v26  ;;  %v14622_v13 = vsel %vm291_vm7, %v292_v0, %v290_v38  ;;  %v1337_v7 = vsub.f32 0.0, %v14613_v40  ;;  %v1356_v58 = vmul.f32 1.442695, %v1343_v27 }
  0xc5   :  { %v1229_v59 = vsel %vm1205_vm9, %v14622_v13, 1.0  ;;  %v1333_v61 = vsub.f32 0.0, %v14622_v13  ;;  %v1344_v1 = vmul.f32 1.1111112, %v1336_v28  ;;  %v345_v5 = vsub.s32 32, %v14595_v21 }
  0xc6   :  { %v13971_v6 = vpop.eup %13970  ;;  %13980 = vrcp.f32 %v1229_v59  ;;  %v19594_v0 = vand.u32 2147483647, %v14477_v25  ;;  %v12192_v9 = vsel %vm1205_vm9, 1.0, %v19592_v11  ;;  %v14640_v14 = vadd.s32 4294967169, %v746_v42 }
  0xc7   :  { %v14597_v22 = vmul.f32 %v13971_v6, %v12193_v30  ;;  %v13973_v24 = vpop.eup %13972  ;;  %v849_v30 = vshrl.u32 %v848_v18, 23  ;;  %v14635_v6 = vshrl.u32 %v342_v60, 5  ;;  %13982 = vpow2.f32 %v1354_v47 }
  0xc8   :  { %v14602_v35 = vpop.eup %13974  ;;  %v14618_v57 = vmul.f32 %v13973_v24, %v12191_v32  ;;  %v1341_v12 = vmul.f32 1.1111112, %v1333_v61  ;;  %v14642_v18 = vadd.s32 4294967169, %v540_v37  ;;  %13984 = vpow2.f32 %v1350_v52 }
  0xc9   :  { %19709 = vst [vmem:[#allocation14_spill] sm:$0xff] %v14597_v22  ;;  %1274 = vrot.lane.b32.xlu0 %v14597_v22, %s14192_s30  ;;  %1306 = vrot.lane.b32.xlu1 %v14597_v22, %s14191_s8  ;;  %v13977_v4 = vpop.eup %13976  ;;  %v12169_v32 = vadd.s32 4294967169, %v849_v30  ;;  %v14648_v24 = vsub.s32 32, %v14616_v55  ;;  %13986 = vpow2.f32 %v1356_v58  ;;  %v14650_v60 = vmul.f32 1.442695, %v1344_v1 }
  0xca   :  { %19711 = vst [vmem:[#allocation16_spill] sm:$0xff] %v14618_v57  ;;  %v14645_v20 = vmul.f32 %v13977_v4, %v14553_v33  ;;  %v1345_v27 = vmul.f32 1.1111112, %v1337_v7  ;;  %v14657_v28 = vmul.f32 0.6981317, %v14622_v13  ;;  %v14662_v42 = vpop.eup %13978  ;;  %v357_v11 = vshrl.u32 %v19604_v3, %v345_v5 }
  0xcb   :  { %v855_v56 = vadd.s32 1, %v12169_v32  ;;  %v19597_v37 = vmov 683565275   ;;  %v19595_v30 = vmov 2475754826   ;;  %vm362_vm13 = vcmp.lt.s32.totalorder %v14635_v6, 1 }
  0xcc   :  { %v347_v33 = vshll.u32 %v19597_v37, %v14595_v21  ;;  %v348_v38 = vshrl.u32 %v19595_v30, %v345_v5  ;;  %v1352_v47 = vmul.f32 1.442695, %v1341_v12  ;;  %v337_v52 = vand.u32 8388607, %v19594_v0 }
  0xcd   :  { %1268 = vrot.lane.b32.xlu0 %v14608_v36, %s14192_s30  ;;  %1270 = vrot.lane.b32.xlu1 %v14618_v57, %s14192_s30  ;;  %v350_v7 = vshll.u32 %v19595_v30, %v14595_v21  ;;  %v19599_v58 = vmov 2131351028   ;;  %v19601_v4 = vmov 2102212464   ;;  %v359_v0 = vshll.u32 %v19604_v3, %v14595_v21 }
  0xce   :  { %v351_v59 = vshrl.u32 %v19599_v58, %v345_v5  ;;  %v349_v61 = vor.u32 %v348_v38, %v347_v33  ;;  %v353_v1 = vshll.u32 %v19599_v58, %v14595_v21  ;;  %v354_v32 = vshrl.u32 %v19601_v4, %v345_v5 }
  0xcf   :  { %v356_v54 = vshll.u32 %v19601_v4, %v14595_v21  ;;  %v19606_v30 = vmov 1326507024   ;;  %vm856_vm12 = vcmp.gt.s32.totalorder %v855_v56, 0  ;;  %v1360_v33 = vmul.f32 1.442695, %v1345_v27 }
  0xd0   :  { %v352_v12 = vor.u32 %v351_v59, %v350_v7  ;;  %v360_v37 = vshrl.u32 %v19606_v30, %v345_v5  ;;  %v19712_v38 = vmov 683565275   ;;  %v355_v4 = vor.u32 %v354_v32, %v353_v1  ;;  %v13981_v21 = vpop.eup %13980 }
  0xd1   :  { %1276 = vrot.lane.b32.xlu0 %v14645_v20, %s14192_s30  ;;  %1300 = vrot.lane.b32.xlu1 %v14608_v36, %s14191_s8  ;;  %v346_v58 = vshrl.u32 %v19712_v38, %v345_v5  ;;  %v642_v7 = vand.u32 2139095040, %v14657_v28  ;;  %v358_v59 = vor.u32 %v357_v11, %v356_v54  ;;  %13988 = vpow2.f32 %v1352_v47  ;;  %v13983_v30 = vpop.eup %13982 }
  0xd2   :  { %v361_v8 = vor.u32 %v360_v37, %v359_v0  ;;  %v338_v3 = vor.u32 8388608, %v337_v52  ;;  %vm365_vm14 = vcmp.lt.s32.totalorder %v14635_v6, 4  ;;  %v14687_v17 = vmul.f32 %v13981_v21, %v12192_v9  ;;  %v13985_v54 = vpop.eup %13984 }
  0xd3   :  { %vm364_vm15 = vcmp.lt.s32.totalorder %v14635_v6, 3  ;;  %v367_v5 = vsel %vm365_vm14, %v355_v4, 2102212464  ;;  %v371_v11 = vsel %vm365_vm14, %v358_v59, 920167782  ;;  %v14695_v0 = vsel %vm856_vm12, %v855_v56, 0  ;;  %v13987_v27 = vpop.eup %13986 }
  0xd4   :  { %19713 = vst [vmem:[#allocation17_spill] sm:$0xff] %v14687_v17  ;;  %13990 = vpow2.f32 %v1360_v33  ;;  %vm363_vm2 = vcmp.lt.s32.totalorder %v14635_v6, 2  ;;  %v372_v9 = vsel %vm364_vm15, %v355_v4, %v371_v11  ;;  %v643_v37 = vshrl.u32 %v642_v7, 23 }
  0xd5   :  { %1365 = vperm.xlu0 %13910, %v14602_v35   ;;  %1302 = vrot.lane.b32.xlu1 %v14618_v57, %s14191_s8  ;;  %v370_v35 = vsel %vm362_vm13, %v349_v61, %v352_v12  ;;  %v374_v52 = vsel %vm362_vm13, %v352_v12, %v355_v4  ;;  %v375_v56 = vsel %vm365_vm14, %v361_v8, 1326507024  ;;  %v368_v1 = vsel %vm364_vm15, %v352_v12, %v367_v5 }
  0xd6   :  { %v373_v47 = vsel %vm363_vm2, %v370_v35, %v372_v9  ;;  %v376_v32 = vsel %vm364_vm15, %v358_v59, %v375_v56  ;;  %v378_v33 = vshll.u32 %v338_v3, 8  ;;  %v14715_v7 = vadd.s32 1, %v14640_v14 }
  0xd7   :  { %v14718_v21 = vshrl.u32 %v14599_v26, 5  ;;  %v377_v4 = vsel %vm363_vm2, %v374_v52, %v376_v32  ;;  %v19610_v8 = vand.u32 2147483647, %v14494_v49  ;;  %v14733_v3 = vadd.s32 1, %v14642_v18 }
  0xd8   :  { %v14728_v12 = vmul.u32.u64.low %v378_v33, %v373_v47  ;;  %v14729_v59 = vmul.u32.u64.high %v378_v33, %v373_v47, %v14728_v12  ;;  %v14736_v26 = vand.u32 31, %v14695_v0  ;;  %13992 = vpow2.f32 %v14650_v60 }
  0xd9   :  { %1385 = vperm.xlu1 %13911, %v13983_v30   ;;  %1272 = vrot.lane.b32.xlu0 %v14687_v17, %s14192_s30  ;;  %v366_v30 = vsel %vm362_vm13, %v346_v58, %v349_v61  ;;  %v14725_v58 = vmul.u32.u64.low %v378_v33, %v377_v4  ;;  %v14726_v61 = vmul.u32.u64.high %v378_v33, %v377_v4, %v14725_v58  ;;  %v12161_v35 = vadd.s32 4294967169, %v643_v37 }
  0xda   :  { %v369_v14 = vsel %vm363_vm2, %v366_v30, %v368_v1  ;;  %v440_v5 = vand.u32 8388607, %v19610_v8  ;;  %v450_v11 = vshll.u32 %v19712_v38, %v14616_v55  ;;  %v19714_v9 = vmov 2475754826  }
  0xdb   :  { %v451_v18 = vshrl.u32 %v19714_v9, %v14648_v24  ;;  %v453_v47 = vshll.u32 %v19714_v9, %v14616_v55  ;;  %v19716_v60 = vmov 2102212464   ;;  %v13989_v56 = vpop.eup %13988  ;;  %v385_v30 = vmul.u32 %v378_v33, %v369_v14 }
  0xdc   :  { %v457_v37 = vshrl.u32 %v19716_v60, %v14648_v24  ;;  %vm387_vm3 = vc.u32 %v14726_v61, %v14728_v12  ;;  %v388_v1 = vadd.s32 1, %v14729_v59  ;;  %vm753_vm4 = vcmp.gt.s32.totalorder %v14715_v7, 0 }
  0xdd   :  { %1304 = vrot.lane.b32.xlu1 %v14687_v17, %s14191_s8  ;;  %1390 = vperm.xlu0 %13910, %v13987_v27   ;;  %v19715_v27 = vmov 2131351028   ;;  %v452_v32 = vor.u32 %v451_v18, %v450_v11  ;;  %v459_v8 = vshll.u32 %v19716_v60, %v14616_v55  ;;  %v460_v51 = vshrl.u32 %v19717_v15, %v14648_v24 }
  0xde   :  { %v454_v52 = vshrl.u32 %v19715_v27, %v14648_v24  ;;  %v456_v6 = vshll.u32 %v19715_v27, %v14616_v55  ;;  %v13991_v50 = vpop.eup %13990  ;;  %v441_v33 = vor.u32 8388608, %v440_v5  ;;  %v462_v14 = vshll.u32 %v19717_v15, %v14616_v55 }
  0xdf   :  { %v19718_v11 = vmov 1326507024   ;;  %vm465_vm5 = vcmp.lt.s32.totalorder %v14718_v21, 1  ;;  %vm467_vm6 = vcmp.lt.s32.totalorder %v14718_v21, 3  ;;  %vm468_vm7 = vcmp.lt.s32.totalorder %v14718_v21, 4 }
  0xe0   :  { %v455_v4 = vor.u32 %v454_v52, %v453_v47  ;;  %v458_v58 = vor.u32 %v457_v37, %v456_v6  ;;  %v463_v18 = vshrl.u32 %v19718_v11, %v14648_v24  ;;  %v449_v47 = vshrl.u32 %v19712_v38, %v14648_v24 }
  0xe1   :  { %1370 = vperm.xlu1 %13911, %v14662_v42   ;;  %1380 = vperm.xlu0 %13910, %v13989_v56   ;;  %v389_v42 = vsel %vm387_vm3, %v388_v1, %v14729_v59  ;;  %v461_v52 = vor.u32 %v460_v51, %v459_v8  ;;  %vm466_vm8 = vcmp.lt.s32.totalorder %v14718_v21, 2  ;;  %vm547_vm9 = vcmp.gt.s32.totalorder %v14733_v3, 0 }
  0xe2   :  { %v390_v39 = vadd.s32 %v389_v42, %v385_v30  ;;  %v464_v6 = vor.u32 %v463_v18, %v462_v14  ;;  %v473_v59 = vsel %vm465_vm5, %v452_v32, %v455_v4  ;;  %v470_v5 = vsel %vm468_vm7, %v458_v58, 2102212464  ;;  %v13993_v8 = vpop.eup %13992 }
  0xe3   :  { %v474_v37 = vsel %vm468_vm7, %v461_v52, 920167782  ;;  %v477_v56 = vsel %vm465_vm5, %v455_v4, %v458_v58  ;;  %v469_v1 = vsel %vm465_vm5, %v449_v47, %v452_v32  ;;  %v471_v14 = vsel %vm467_vm6, %v455_v4, %v470_v5 }
  0xe4   :  { %v391_v55 = vadd.s32 536870912, %v390_v39  ;;  %v475_v51 = vsel %vm467_vm6, %v458_v58, %v474_v37  ;;  %v478_v24 = vsel %vm468_vm7, %v464_v6, 1326507024  ;;  %v649_v6 = vadd.s32 1, %v12161_v35 }
  0xe5   :  { %1375 = vperm.xlu1 %13911, %v13985_v54   ;;  %1400 = vperm.xlu0 %13910, %v13991_v50   ;;  %v481_v54 = vshll.u32 %v441_v33, 8  ;;  %v476_v50 = vsel %vm466_vm8, %v473_v59, %v475_v51  ;;  %v479_v42 = vsel %vm467_vm6, %v461_v52, %v478_v24  ;;  %v472_v52 = vsel %vm466_vm8, %v469_v1, %v471_v14 }
  0xe6   :  { %v392_v30 = vshrl.u32 %v391_v55, 30  ;;  %v480_v58 = vsel %vm466_vm8, %v477_v56, %v479_v42  ;;  %v14805_v4 = vsel %vm753_vm4, %v14715_v7, 0  ;;  %v14809_v5 = vsub.s32 32, %v14736_v26 }
  0xe7   :  { %v14791_v18 = vmul.u32.u64.low %v481_v54, %v476_v50  ;;  %v14792_v33 = vmul.u32.u64.high %v481_v54, %v476_v50, %v14791_v18  ;;  %v14795_v32 = vmul.u32.u64.low %v481_v54, %v480_v58  ;;  %v14796_v47 = vmul.u32.u64.high %v481_v54, %v480_v58, %v14795_v32 }
  0xe8   :  { %v393_v55 = vshll.u32 %v392_v30, 30  ;;  %vm650_vm10 = vcmp.gt.s32.totalorder %v649_v6, 0  ;;  %v488_v21 = vmul.u32 %v481_v54, %v472_v52  ;;  %v14818_v7 = vand.u32 31, %v14805_v4 }
  0xe9   :  { %1395 = vperm.xlu1 %13911, %v13993_v8   ;;  %v491_v35 = vadd.s32 1, %v14792_v33  ;;  %vm490_vm11 = vc.u32 %v14796_v47, %v14791_v18  ;;  %v14821_v51 = vsel %vm547_vm9, %v14733_v3, 0  ;;  %vm332_vm12 = vcmp.lt.s32.totalorder %v14477_v25, 0 }
  0xea   :  { %v14798_v59 = vsub.s32 %v390_v39, %v393_v55  ;;  %v19619_v39 = vand.u32 2147483647, %v14581_v63  ;;  %v14826_v8 = vshrl.u32 %v14695_v0, 5  ;;  %v14828_v1 = vsel %vm650_vm10, %v649_v6, 0 }
  0xeb   :  { %v492_v56 = vsel %vm490_vm11, %v491_v35, %v14792_v33  ;;  %v416_v50 = vsub.s32 4, %v392_v30  ;;  %v386_v54 = vadd.s32 %v14728_v12, %v14726_v61  ;;  %v863_v3 = vshrl.u32 %v19714_v9, %v14809_v5 }
  0xec   :  { %v396_v37 = vsub.s32 0, %v14798_v59  ;;  %v493_v42 = vadd.s32 %v492_v56, %v488_v21  ;;  %v852_v58 = vand.u32 8388607, %v19619_v39  ;;  %v866_v55 = vshrl.u32 %v19715_v27, %v14809_v5 }
  0xed   :  { %v869_v0 = vshrl.u32 %v19716_v60, %v14809_v5  ;;  %v872_v6 = vshrl.u32 %v19717_v15, %v14809_v5  ;;  %v19719_v32 = vand.u32 2147483647, %v14477_v25  ;;  %v862_v52 = vshll.u32 %v19712_v38, %v14736_v26 }
  0xee   :  { %v12150_v24 = vmin.u32 %v396_v37, %v14798_v59  ;;  %v494_v33 = vadd.s32 536870912, %v493_v42  ;;  %v871_v35 = vshll.u32 %v19716_v60, %v14736_v26  ;;  %v875_v37 = vshrl.u32 %v19718_v11, %v14809_v5 }
  0xef   :  { %vm14844_vm13 = vcmp.le.f32.partialorder %v19719_v32, 0.7853982  ;;  %v417_v21 = vsel %vm332_vm12, %v416_v50, %v392_v30  ;;  %v864_v32 = vor.u32 %v863_v3, %v862_v52  ;;  %v874_v22 = vshll.u32 %v19717_v15, %v14736_v26 }
  0xf0   :  { %v398_v14 = vclz %v12150_v24  ;;  %v14856_v56 = vshrl.u32 %v494_v33, 30  ;;  %v865_v24 = vshll.u32 %v19714_v9, %v14736_v26  ;;  %v873_v39 = vor.u32 %v872_v6, %v871_v35 }
  0xf1   :  { %v853_v33 = vor.u32 8388608, %v852_v58  ;;  %v876_v41 = vor.u32 %v875_v37, %v874_v22  ;;  %vm877_vm15 = vcmp.lt.s32.totalorder %v14826_v8, 1  ;;  %vm879_vm2 = vcmp.lt.s32.totalorder %v14826_v8, 3 }
  0xf2   :  { %v12151_v12 = vadd.s32 4294967294, %v398_v14  ;;  %v868_v14 = vshll.u32 %v19715_v27, %v14736_v26  ;;  %v496_v17 = vshll.u32 %v14856_v56, 30  ;;  %v867_v45 = vor.u32 %v866_v55, %v865_v24 }
  0xf3   :  { %vm880_vm3 = vcmp.lt.s32.totalorder %v14826_v8, 4  ;;  %vm878_vm4 = vcmp.lt.s32.totalorder %v14826_v8, 2  ;;  %vm435_vm7 = vcmp.lt.s32.totalorder %v14494_v49, 0 }
  0xf4   :  { %vm12152_vm14 = vcmp.lt.s32.totalorder %v12151_v12, 0  ;;  %v870_v57 = vor.u32 %v869_v0, %v868_v14  ;;  %v14865_v36 = vsub.s32 %v493_v42, %v496_v17  ;;  %v885_v58 = vsel %vm877_vm15, %v864_v32, %v867_v45 }
  0xf5   :  { %v401_v31 = vsel %vm12152_vm14, 0, %v12151_v12  ;;  %v886_v12 = vsel %vm880_vm3, %v873_v39, 920167782  ;;  %v890_v35 = vsel %vm880_vm3, %v876_v41, 1326507024 }
  0xf6   :  { %v402_v30 = vsub.s32 32, %v401_v31  ;;  %v406_v50 = vsub.s32 4294967266, %v401_v31  ;;  %v403_v3 = vshll.u32 %v14798_v59, %v401_v31  ;;  %v499_v55 = vsub.s32 0, %v14865_v36 }
  0xf7   :  { %v882_v0 = vsel %vm880_vm3, %v870_v57, 2102212464  ;;  %v887_v17 = vsel %vm879_vm2, %v870_v57, %v886_v12  ;;  %v889_v52 = vsel %vm877_vm15, %v867_v45, %v870_v57  ;;  %v419_v31 = vsel %vm14844_vm13, 0, %v417_v21 }
  0xf8   :  { %v404_v26 = vshrl.u32 %v386_v54, %v402_v30  ;;  %v407_v6 = vadd.s32 127, %v406_v50  ;;  %v12154_v59 = vmin.u32 %v499_v55, %v14865_v36  ;;  %v861_v54 = vshrl.u32 %v19712_v38, %v14809_v5 }
  0xf9   :  { %v888_v24 = vsel %vm878_vm4, %v885_v58, %v887_v17  ;;  %v891_v14 = vsel %vm879_vm2, %v873_v39, %v890_v35  ;;  %v893_v30 = vshll.u32 %v853_v33, 8  ;;  %v883_v21 = vsel %vm879_vm2, %v867_v45, %v882_v0 }
  0xfa   :  { %v405_v22 = vor.u32 %v404_v26, %v403_v3  ;;  %v408_v42 = vshll.u32 %v407_v6, 23  ;;  %v501_v57 = vclz %v12154_v59  ;;  %v881_v41 = vsel %vm877_vm15, %v861_v54, %v864_v32 }
  0xfb   :  { %v892_v5 = vsel %vm878_vm4, %v889_v52, %v891_v14  ;;  %v14898_v12 = vshrl.u32 %v14805_v4, 5  ;;  %v14900_v33 = vmul.u32.u64.low %v893_v30, %v888_v24  ;;  %v14901_v55 = vmul.u32.u64.high %v893_v30, %v888_v24, %v14900_v33 }
  0xfc   :  { %v409_v37 = vor.u32 4788187, %v408_v42  ;;  %v412_v3 = vcvt.s32.f32 %v405_v22  ;;  %v14894_v26 = vmul.u32.u64.low %v893_v30, %v892_v5  ;;  %v14895_v6 = vmul.u32.u64.high %v893_v30, %v892_v5, %v14894_v26 }
  0xfd   :  { %v12155_v39 = vadd.s32 4294967294, %v501_v57  ;;  %v757_v32 = vsub.s32 32, %v14818_v7  ;;  %v14906_v45 = vand.u32 31, %v14821_v51  ;;  %v884_v58 = vsel %vm878_vm4, %v881_v41, %v883_v21 }
  0xfe   :  { %v410_v50 = vand.u32 2147483647, %v409_v37  ;;  %v14911_v17 = vand.u32 31, %v14828_v1  ;;  %v14913_v22 = vand.u32 3, %v419_v31  ;;  %v489_v4 = vadd.s32 %v14791_v18, %v14796_v47 }
  0xff   :  { %vm12156_vm5 = vcmp.lt.s32.totalorder %v12155_v39, 0  ;;  %v519_v35 = vsub.s32 4, %v14856_v56  ;;  %vm902_vm6 = vc.u32 %v14895_v6, %v14900_v33  ;;  %v900_v54 = vmul.u32 %v893_v30, %v884_v58 }
 0x100   :  { %v413_v0 = vmul.f32 %v412_v3, %v410_v50  ;;  %v504_v52 = vsel %vm12156_vm5, 0, %v12155_v39  ;;  %v903_v37 = vadd.s32 1, %v14901_v55  ;;  %v742_v47 = vand.u32 2147483647, %v14569_v53 }
 0x101   :  { %v505_v8 = vsub.s32 32, %v504_v52  ;;  %v509_v59 = vsub.s32 4294967266, %v504_v52  ;;  %v506_v18 = vshll.u32 %v14865_v36, %v504_v52  ;;  %v760_v24 = vshrl.u32 %v19714_v9, %v757_v32 }
 0x102   :  { %v414_v42 = vxor.u32 2147483648, %v413_v0  ;;  %v904_v21 = vsel %vm902_vm6, %v903_v37, %v14901_v55  ;;  %v19722_v30 = vand.u32 2147483647, %v14494_v49  ;;  %v759_v50 = vshll.u32 %v19712_v38, %v14818_v7 }
 0x103   :  { %v507_v57 = vshrl.u32 %v489_v4, %v505_v8  ;;  %v510_v41 = vadd.s32 127, %v509_v59  ;;  %v905_v36 = vadd.s32 %v904_v21, %v900_v54  ;;  %v763_v3 = vshrl.u32 %v19715_v27, %v757_v32 }
 0x104   :  { %v415_v31 = vsel %vm332_vm12, %v414_v42, %v413_v0  ;;  %vm14933_vm8 = vcmp.le.f32.partialorder %v19722_v30, 0.7853982  ;;  %v762_v39 = vshll.u32 %v19714_v9, %v14818_v7  ;;  %v749_v0 = vand.u32 8388607, %v742_v47 }
 0x105   :  { %v418_v14 = vsel %vm14844_vm13, %v14477_v25, %v415_v31  ;;  %v508_v61 = vor.u32 %v507_v57, %v506_v18  ;;  %v511_v26 = vshll.u32 %v510_v41, 23  ;;  %v906_v55 = vadd.s32 536870912, %v905_v36 }
 0x106   :  { %13994 = vcosq.f32 %v418_v14  ;;  %v761_v58 = vor.u32 %v760_v24, %v759_v50  ;;  %v766_v4 = vshrl.u32 %v19716_v60, %v757_v32  ;;  %v765_v52 = vshll.u32 %v19715_v27, %v14818_v7 }
 0x107   :  { %13996 = vsinq.f32 %v418_v14  ;;  %v512_v42 = vor.u32 4788187, %v511_v26  ;;  %v768_v8 = vshll.u32 %v19716_v60, %v14818_v7  ;;  %v769_v59 = vshrl.u32 %v19717_v15, %v757_v32 }
 0x108   :  { %v515_v54 = vcvt.s32.f32 %v508_v61  ;;  %v14950_v37 = vshrl.u32 %v906_v55, 30  ;;  %v764_v31 = vor.u32 %v763_v3, %v762_v39  ;;  %v772_v18 = vshrl.u32 %v19718_v11, %v757_v32 }
 0x109   :  { %vm425_vm9 = vcmp.eq.s32.totalorder %v14913_v22, 0  ;;  %v513_v24 = vand.u32 2147483647, %v512_v42  ;;  %v767_v14 = vor.u32 %v766_v4, %v765_v52  ;;  %v770_v57 = vor.u32 %v769_v59, %v768_v8 }
 0x10a   :  { %v771_v41 = vshll.u32 %v19717_v15, %v14818_v7  ;;  %vm424_vm10 = vcmp.lt.s32.totalorder %v14913_v22, 2  ;;  %vm428_vm11 = vcmp.eq.s32.totalorder %v14913_v22, 2  ;;  %vm1170_vm12 = vcmp.lt.f32.partialorder %v14468_v19, 4.5 }
 0x10b   :  { %v520_v21 = vsel %vm435_vm7, %v519_v35, %v14856_v56  ;;  %v908_v30 = vshll.u32 %v14950_v37, 30  ;;  %v758_v50 = vshrl.u32 %v19712_v38, %v757_v32  ;;  %vm422_vm13 = vweird.f32 %v14477_v25 }
 0x10c   :  { %v516_v3 = vmul.f32 %v515_v54, %v513_v24  ;;  %v773_v61 = vor.u32 %v772_v18, %v771_v41  ;;  %vm774_vm14 = vcmp.lt.s32.totalorder %v14898_v12, 1  ;;  %vm777_vm15 = vcmp.lt.s32.totalorder %v14898_v12, 4 }
 0x10d   :  { %v14967_v7 = vsub.s32 %v905_v36, %v908_v30  ;;  %vm776_vm2 = vcmp.lt.s32.totalorder %v14898_v12, 3  ;;  %v782_v26 = vsel %vm774_vm14, %v761_v58, %v764_v31  ;;  %v783_v56 = vsel %vm777_vm15, %v770_v57, 920167782 }
 0x10e   :  { %v517_v35 = vxor.u32 2147483648, %v516_v3  ;;  %v522_v32 = vsel %vm14933_vm8, 0, %v520_v21  ;;  %v750_v39 = vor.u32 8388608, %v749_v0  ;;  %v784_v55 = vsel %vm776_vm2, %v767_v14, %v783_v56 }
 0x10f   :  { %v911_v36 = vsub.s32 0, %v14967_v7  ;;  %vm775_vm3 = vcmp.lt.s32.totalorder %v14898_v12, 2  ;;  %v778_v42 = vsel %vm774_vm14, %v758_v50, %v761_v58  ;;  %v779_v52 = vsel %vm777_vm15, %v767_v14, 2102212464 }
 0x110   :  { %v13995_v4 = vpop.eup %13994  ;;  %v518_v54 = vsel %vm435_vm7, %v517_v35, %v516_v3  ;;  %v785_v0 = vsel %vm775_vm3, %v782_v26, %v784_v55  ;;  %v787_v18 = vsel %vm777_vm15, %v773_v61, 1326507024  ;;  %v786_v21 = vsel %vm774_vm14, %v764_v31, %v767_v14 }
 0x111   :  { %v13997_v8 = vpop.eup %13996  ;;  %v429_v59 = vxor.u32 2147483648, %v13995_v4  ;;  %v521_v41 = vsel %vm14933_vm8, %v14494_v49, %v518_v54  ;;  %v12170_v58 = vmin.u32 %v911_v36, %v14967_v7  ;;  %v780_v50 = vsel %vm776_vm2, %v764_v31, %v779_v52 }
 0x112   :  { %v426_v24 = vxor.u32 2147483648, %v13997_v8  ;;  %13998 = vcosq.f32 %v521_v41  ;;  %v790_v3 = vshll.u32 %v750_v39, 8  ;;  %v788_v5 = vsel %vm776_vm2, %v770_v57, %v787_v18 }
 0x113   :  { %v430_v30 = vsel %vm428_vm11, %v429_v59, %v13997_v8  ;;  %14000 = vsinq.f32 %v521_v41  ;;  %v913_v26 = vclz %v12170_v58  ;;  %v789_v14 = vsel %vm775_vm3, %v786_v21, %v788_v5 }
 0x114   :  { %v427_v61 = vsel %vm425_vm9, %v13995_v4, %v426_v24  ;;  %v15008_v35 = vmul.u32.u64.low %v790_v3, %v785_v0  ;;  %v15009_v55 = vmul.u32.u64.high %v790_v3, %v785_v0, %v15008_v35  ;;  %v15018_v52 = vshrl.u32 %v14828_v1, 5 }
 0x115   :  { %v431_v56 = vsel %vm424_vm10, %v427_v61, %v430_v30  ;;  %v12171_v39 = vadd.s32 4294967294, %v913_v26  ;;  %v15014_v4 = vmul.u32.u64.low %v790_v3, %v789_v14  ;;  %v15015_v36 = vmul.u32.u64.high %v790_v3, %v789_v14, %v15014_v4 }
 0x116   :  { %v432_v31 = vsel %vm422_vm13, nan, %v431_v56  ;;  %v15021_v22 = vsub.s32 32, %v14911_v17  ;;  %v19725_v8 = vmov 0.0   ;;  %vm1171_vm4 = vcmp.lt.f32.partialorder %v14487_v43, 4.5 }
 0x117   :  { %v1154_v57 = vadd.f32 1.0, %v432_v31  ;;  %v12181_v59 = vsel %vm1170_vm12, 1.0, %v19725_v8  ;;  %vm847_vm5 = vcmp.lt.s32.totalorder %v14581_v63, 0  ;;  %vm12172_vm6 = vcmp.lt.s32.totalorder %v12171_v39, 0 }
 0x118   :  { %v781_v25 = vsel %vm775_vm3, %v778_v42, %v780_v50  ;;  %v526_v0 = vand.u32 3, %v522_v32  ;;  %v916_v1 = vsel %vm12172_vm6, 0, %v12171_v39  ;;  %v800_v18 = vadd.s32 1, %v15009_v55 }
 0x119   :  { %v1162_v54 = vmul.f32 0.5, %v1154_v57  ;;  %vm525_vm7 = vweird.f32 %v14494_v49  ;;  %v901_v24 = vadd.s32 %v14900_v33, %v14895_v6  ;;  %v917_v19 = vsub.s32 32, %v916_v1 }
 0x11a   :  { %v921_v41 = vsub.s32 4294967266, %v916_v1  ;;  %v931_v58 = vsub.s32 4, %v14950_v37  ;;  %v797_v30 = vmul.u32 %v790_v3, %v781_v25  ;;  %vm799_vm8 = vc.u32 %v15015_v36, %v15008_v35 }
 0x11b   :  { %v1194_v21 = vmul.f32 %v12181_v59, %v1162_v54  ;;  %v639_v12 = vand.u32 2147483647, %v14657_v28  ;;  %v918_v32 = vshll.u32 %v14967_v7, %v916_v1  ;;  %v919_v42 = vshrl.u32 %v901_v24, %v917_v19 }
 0x11c   :  { %v922_v50 = vadd.s32 127, %v921_v41  ;;  %v801_v61 = vsel %vm799_vm8, %v800_v18, %v15009_v55  ;;  %v13999_v26 = vpop.eup %13998  ;;  %vm527_vm9 = vcmp.lt.s32.totalorder %v526_v0, 2  ;;  %vm528_vm10 = vcmp.eq.s32.totalorder %v526_v0, 0 }
 0x11d   :  { %1451 = vperm.xlu1 %13911, %v1194_v21   ;;  %v12182_v6 = vsel %vm1171_vm4, 1.0, %v19725_v8  ;;  %v802_v33 = vadd.s32 %v801_v61, %v797_v30  ;;  %v14001_v3 = vpop.eup %14000  ;;  %vm531_vm11 = vcmp.eq.s32.totalorder %v526_v0, 2  ;;  %v532_v5 = vxor.u32 2147483648, %v13999_v26 }
 0x11e   :  { %v920_v56 = vor.u32 %v919_v42, %v918_v32  ;;  %v923_v14 = vshll.u32 %v922_v50, 23  ;;  %v529_v31 = vxor.u32 2147483648, %v14001_v3  ;;  %v15046_v7 = vsel %vm847_vm5, %v931_v58, %v14950_v37 }
 0x11f   :  { %v803_v55 = vadd.s32 536870912, %v802_v33  ;;  %v646_v39 = vand.u32 8388607, %v639_v12  ;;  %v533_v4 = vsel %vm531_vm11, %v532_v5, %v14001_v3  ;;  %v19726_v43 = vand.u32 2147483647, %v14581_v63 }
 0x120   :  { %v924_v59 = vor.u32 4788187, %v923_v14  ;;  %v656_v25 = vshll.u32 %v19712_v38, %v14911_v17  ;;  %v657_v54 = vshrl.u32 %v19714_v9, %v15021_v22  ;;  %v530_v37 = vsel %vm528_vm10, %v13999_v26, %v529_v31 }
 0x121   :  { %vm15052_vm12 = vcmp.le.f32.partialorder %v19726_v43, 0.7853982  ;;  %v15061_v1 = vshrl.u32 %v803_v55, 30  ;;  %v660_v18 = vshrl.u32 %v19715_v27, %v15021_v22  ;;  %v663_v24 = vshrl.u32 %v19716_v60, %v15021_v22 }
 0x122   :  { %v534_v19 = vsel %vm527_vm9, %v530_v37, %v533_v4  ;;  %v925_v41 = vand.u32 2147483647, %v924_v59  ;;  %v927_v58 = vcvt.s32.f32 %v920_v56  ;;  %v662_v21 = vshll.u32 %v19715_v27, %v14911_v17 }
 0x123   :  { %v535_v30 = vsel %vm525_vm7, nan, %v534_v19  ;;  %v805_v32 = vshll.u32 %v15061_v1, 30  ;;  %v659_v42 = vshll.u32 %v19714_v9, %v14911_v17  ;;  %v666_v50 = vshrl.u32 %v19717_v15, %v15021_v22 }
 0x124   :  { %v1155_v61 = vadd.f32 1.0, %v535_v30  ;;  %v928_v26 = vmul.f32 %v927_v58, %v925_v41  ;;  %v664_v0 = vor.u32 %v663_v24, %v662_v21  ;;  %v669_v3 = vshrl.u32 %v19718_v11, %v15021_v22 }
 0x125   :  { %v15079_v5 = vsub.s32 %v802_v33, %v805_v32  ;;  %v655_v49 = vshrl.u32 %v19712_v38, %v15021_v22  ;;  %v658_v56 = vor.u32 %v657_v54, %v656_v25  ;;  %v665_v14 = vshll.u32 %v19716_v60, %v14911_v17 }
 0x126   :  { %v1163_v31 = vmul.f32 0.5, %v1155_v61  ;;  %v929_v55 = vxor.u32 2147483648, %v928_v26  ;;  %v661_v4 = vor.u32 %v660_v18, %v659_v42  ;;  %v668_v43 = vshll.u32 %v19717_v15, %v14911_v17 }
 0x127   :  { %v808_v59 = vsub.s32 0, %v15079_v5  ;;  %v647_v37 = vor.u32 8388608, %v646_v39  ;;  %v667_v24 = vor.u32 %v666_v50, %v665_v14  ;;  %vm674_vm13 = vcmp.lt.s32.totalorder %v15018_v52, 4 }
 0x128   :  { %v1195_v33 = vmul.f32 %v12182_v6, %v1163_v31  ;;  %v930_v22 = vsel %vm847_vm5, %v929_v55, %v928_v26  ;;  %v670_v25 = vor.u32 %v669_v3, %v668_v43  ;;  %v676_v54 = vsel %vm674_vm13, %v664_v0, 2102212464 }
 0x129   :  { %v933_v18 = vsel %vm15052_vm12, %v14581_v63, %v930_v22  ;;  %v12166_v17 = vmin.u32 %v808_v59, %v15079_v5  ;;  %vm671_vm14 = vcmp.lt.s32.totalorder %v15018_v52, 1  ;;  %vm672_vm15 = vcmp.lt.s32.totalorder %v15018_v52, 2 }
 0x12a   :  { %1456 = vperm.xlu0 %13910, %v1195_v33   ;;  %14002 = vcosq.f32 %v933_v18  ;;  %vm673_vm2 = vcmp.lt.s32.totalorder %v15018_v52, 3  ;;  %v675_v6 = vsel %vm671_vm14, %v655_v49, %v658_v56  ;;  %v679_v39 = vsel %vm671_vm14, %v658_v56, %v661_v4 }
 0x12b   :  { %14004 = vsinq.f32 %v933_v18  ;;  %v810_v19 = vclz %v12166_v17  ;;  %v677_v41 = vsel %vm673_vm2, %v661_v4, %v676_v54  ;;  %v680_v58 = vsel %vm674_vm13, %v667_v24, 920167782 }
 0x12c   :  { %v681_v21 = vsel %vm673_vm2, %v664_v0, %v680_v58  ;;  %v683_v30 = vsel %vm671_vm14, %v661_v4, %v664_v0  ;;  %v684_v32 = vsel %vm674_vm13, %v670_v25, 1326507024  ;;  %v687_v42 = vshll.u32 %v647_v37, 8 }
 0x12d   :  { %v934_v50 = vsel %vm15052_vm12, 0, %v15046_v7  ;;  %v12167_v61 = vadd.s32 4294967294, %v810_v19  ;;  %v682_v26 = vsel %vm672_vm15, %v679_v39, %v681_v21  ;;  %v685_v3 = vsel %vm673_vm2, %v667_v24, %v684_v32 }
 0x12e   :  { %v686_v49 = vsel %vm672_vm15, %v683_v30, %v685_v3  ;;  %v15111_v56 = vmul.u32.u64.low %v687_v42, %v682_v26  ;;  %v15112_v14 = vmul.u32.u64.high %v687_v42, %v682_v26, %v15111_v56  ;;  %v678_v0 = vsel %vm672_vm15, %v675_v6, %v677_v41 }
 0x12f   :  { %vm12168_vm3 = vcmp.lt.s32.totalorder %v12167_v61, 0  ;;  %v15117_v31 = vmul.u32.u64.low %v687_v42, %v686_v49  ;;  %v15118_v55 = vmul.u32.u64.high %v687_v42, %v686_v49, %v15117_v31  ;;  %v15121_v7 = vshrl.u32 %v14821_v51, 5 }
 0x130   :  { %v15124_v57 = vsub.s32 32, %v14906_v45  ;;  %v938_v4 = vand.u32 3, %v934_v50  ;;  %v813_v43 = vsel %vm12168_vm3, 0, %v12167_v61  ;;  %vm1175_vm4 = vcmp.lt.f32.partialorder %v14546_v23, 4.5 }
 0x131   :  { %v798_v59 = vadd.s32 %v15008_v35, %v15015_v36  ;;  %v814_v37 = vsub.s32 32, %v813_v43  ;;  %v818_v24 = vsub.s32 4294967266, %v813_v43  ;;  %vm937_vm5 = vweird.f32 %v14581_v63 }
 0x132   :  { %v694_v52 = vmul.u32 %v687_v42, %v678_v0  ;;  %v697_v33 = vadd.s32 1, %v15112_v14  ;;  %v536_v51 = vand.u32 2147483647, %v14565_v44  ;;  %v815_v22 = vshll.u32 %v15079_v5, %v813_v43 }
 0x133   :  { %v816_v25 = vshrl.u32 %v798_v59, %v814_v37  ;;  %v819_v54 = vadd.s32 127, %v818_v24  ;;  %vm696_vm6 = vc.u32 %v15118_v55, %v15111_v56  ;;  %vm939_vm7 = vcmp.lt.s32.totalorder %v938_v4, 2 }
 0x134   :  { %v14003_v18 = vpop.eup %14002  ;;  %vm940_vm8 = vcmp.eq.s32.totalorder %v938_v4, 0  ;;  %v12186_v35 = vsel %vm1175_vm4, 1.0, %v19725_v8  ;;  %v698_v36 = vsel %vm696_vm6, %v697_v33, %v15112_v14  ;;  %vm744_vm9 = vcmp.lt.s32.totalorder %v14569_v53, 0 }
 0x135   :  { %v14005_v17 = vpop.eup %14004  ;;  %v944_v6 = vxor.u32 2147483648, %v14003_v18  ;;  %v817_v39 = vor.u32 %v816_v25, %v815_v22  ;;  %v820_v5 = vshll.u32 %v819_v54, 23  ;;  %v699_v19 = vadd.s32 %v698_v36, %v694_v52 }
 0x136   :  { %v941_v41 = vxor.u32 2147483648, %v14005_v17  ;;  %vm943_vm10 = vcmp.eq.s32.totalorder %v938_v4, 2  ;;  %v828_v58 = vsub.s32 4, %v15061_v1  ;;  %v543_v21 = vand.u32 8388607, %v536_v51 }
 0x137   :  { %v945_v30 = vsel %vm943_vm10, %v944_v6, %v14005_v17  ;;  %vm15145_vm11 = vcmp.le.f32.partialorder %v742_v47, 0.7853982  ;;  %v821_v32 = vor.u32 4788187, %v820_v5  ;;  %v700_v42 = vadd.s32 536870912, %v699_v19 }
 0x138   :  { %v554_v50 = vshrl.u32 %v19714_v9, %v15124_v57  ;;  %v942_v61 = vsel %vm940_vm8, %v14003_v18, %v941_v41  ;;  %v824_v26 = vcvt.s32.f32 %v817_v39  ;;  %v557_v3 = vshrl.u32 %v19715_v27, %v15124_v57 }
 0x139   :  { %v560_v49 = vshrl.u32 %v19716_v60, %v15124_v57  ;;  %v946_v14 = vsel %vm939_vm7, %v942_v61, %v945_v30  ;;  %v822_v47 = vand.u32 2147483647, %v821_v32  ;;  %v15157_v0 = vshrl.u32 %v700_v42, 30 }
 0x13a   :  { %v563_v31 = vshrl.u32 %v19717_v15, %v15124_v57  ;;  %v947_v43 = vsel %vm937_vm5, nan, %v946_v14  ;;  %v553_v59 = vshll.u32 %v19712_v38, %v14906_v45  ;;  %v556_v37 = vshll.u32 %v19714_v9, %v14906_v45 }
 0x13b   :  { %v562_v24 = vshll.u32 %v19716_v60, %v14906_v45  ;;  %v1159_v4 = vadd.f32 1.0, %v947_v43  ;;  %v825_v52 = vmul.f32 %v824_v26, %v822_v47  ;;  %v702_v33 = vshll.u32 %v15157_v0, 30 }
 0x13c   :  { %v559_v22 = vshll.u32 %v19715_v27, %v14906_v45  ;;  %v555_v25 = vor.u32 %v554_v50, %v553_v59  ;;  %v558_v54 = vor.u32 %v557_v3, %v556_v37  ;;  %v566_v18 = vshrl.u32 %v19718_v11, %v15124_v57 }
 0x13d   :  { %v564_v63 = vor.u32 %v563_v31, %v562_v24  ;;  %v1167_v36 = vmul.f32 0.5, %v1159_v4  ;;  %v826_v17 = vxor.u32 2147483648, %v825_v52  ;;  %v15174_v6 = vsub.s32 %v699_v19, %v702_v33 }
 0x13e   :  { %v561_v39 = vor.u32 %v560_v49, %v559_v22  ;;  %v829_v5 = vsel %vm744_vm9, %v828_v58, %v15061_v1  ;;  %v544_v41 = vor.u32 8388608, %v543_v21  ;;  %v565_v30 = vshll.u32 %v19717_v15, %v14906_v45 }
 0x13f   :  { %vm568_vm12 = vcmp.lt.s32.totalorder %v15121_v7, 1  ;;  %v1199_v32 = vmul.f32 %v12186_v35, %v1167_v36  ;;  %v827_v42 = vsel %vm744_vm9, %v826_v17, %v825_v52  ;;  %v705_v50 = vsub.s32 0, %v15174_v6 }
 0x140   :  { %vm571_vm13 = vcmp.lt.s32.totalorder %v15121_v7, 4  ;;  %v830_v19 = vsel %vm15145_vm11, %v14569_v53, %v827_v42  ;;  %v567_v61 = vor.u32 %v566_v18, %v565_v30  ;;  %v576_v1 = vsel %vm568_vm12, %v555_v25, %v558_v54 }
 0x141   :  { %v577_v45 = vsel %vm571_vm13, %v564_v63, 920167782  ;;  %1476 = vperm.xlu0 %13910, %v1199_v32   ;;  %14006 = vcosq.f32 %v830_v19  ;;  %v12162_v35 = vmin.u32 %v705_v50, %v15174_v6  ;;  %vm570_vm14 = vcmp.lt.s32.totalorder %v15121_v7, 3 }
 0x142   :  { %v573_v58 = vsel %vm571_vm13, %v561_v39, 2102212464  ;;  %14008 = vsinq.f32 %v830_v19  ;;  %v552_v21 = vshrl.u32 %v19712_v38, %v15124_v57  ;;  %vm569_vm15 = vcmp.lt.s32.totalorder %v15121_v7, 2  ;;  %v15232_v19 = vpop.f32.mrb[0].mxu1 }
 0x143   :  { %v578_v26 = vsel %vm570_vm14, %v561_v39, %v577_v45  ;;  %v831_v3 = vsel %vm15145_vm11, 0, %v829_v5  ;;  %v707_v49 = vclz %v12162_v35  ;;  %v580_v47 = vsel %vm568_vm12, %v558_v54, %v561_v39  ;;  %v12713_v35 = vpop.f32.mrb[1].mxu1 }
 0x144   :  { %v579_v14 = vsel %vm569_vm15, %v576_v1, %v578_v26  ;;  %v572_v31 = vsel %vm568_vm12, %v552_v21, %v555_v25  ;;  %v574_v43 = vsel %vm570_vm14, %v558_v54, %v573_v58  ;;  %v581_v57 = vsel %vm571_vm13, %v567_v61, 1326507024 }
 0x145   :  { %v584_v59 = vshll.u32 %v544_v41, 8  ;;  %v12163_v37 = vadd.s32 4294967294, %v707_v49  ;;  %v582_v24 = vsel %vm570_vm14, %v564_v63, %v581_v57  ;;  %v835_v4 = vand.u32 3, %v831_v3 }
 0x146   :  { %v583_v23 = vsel %vm569_vm15, %v580_v47, %v582_v24  ;;  %v575_v22 = vsel %vm569_vm15, %v572_v31, %v574_v43  ;;  %v15222_v36 = vmul.f32 0.6981317, %v14585_v2  ;;  %vm834_vm3 = vweird.f32 %v14569_v53 }
 0x147   :  { %v15212_v52 = vmul.u32.u64.low %v584_v59, %v579_v14  ;;  %v15213_v33 = vmul.u32.u64.high %v584_v59, %v579_v14, %v15212_v52  ;;  %vm12164_vm2 = vcmp.lt.s32.totalorder %v12163_v37, 0  ;;  %v695_v63 = vadd.s32 %v15111_v56, %v15118_v55 }
 0x148   :  { %v15218_v25 = vmul.u32.u64.low %v584_v59, %v583_v23  ;;  %v15219_v54 = vmul.u32.u64.high %v584_v59, %v583_v23, %v15218_v25  ;;  %v710_v18 = vsel %vm12164_vm2, 0, %v12163_v37  ;;  %vm840_vm4 = vcmp.eq.s32.totalorder %v835_v4, 2 }
 0x149   :  { %v711_v17 = vsub.s32 32, %v710_v18  ;;  %v715_v39 = vsub.s32 4294967266, %v710_v18  ;;  %v591_v5 = vmul.u32 %v584_v59, %v575_v22  ;;  %v594_v41 = vadd.s32 1, %v15213_v33 }
 0x14a   :  { %v951_v7 = vand.u32 2139095040, %v15222_v36  ;;  %v712_v32 = vshll.u32 %v15174_v6, %v710_v18  ;;  %vm593_vm5 = vc.u32 %v15219_v54, %v15212_v52  ;;  %v725_v55 = vsub.s32 4, %v15157_v0 }
 0x14b   :  { %v14007_v30 = vpop.eup %14006  ;;  %v713_v42 = vshrl.u32 %v695_v63, %v711_v17  ;;  %v716_v50 = vadd.s32 127, %v715_v39  ;;  %v595_v1 = vsel %vm593_vm5, %v594_v41, %v15213_v33  ;;  %vm837_vm6 = vcmp.eq.s32.totalorder %v835_v4, 0 }
 0x14c   :  { %v14009_v61 = vpop.eup %14008  ;;  %v841_v56 = vxor.u32 2147483648, %v14007_v30  ;;  %v952_v45 = vshrl.u32 %v951_v7, 23  ;;  %v596_v3 = vadd.s32 %v595_v1, %v591_v5  ;;  %vm641_vm7 = vcmp.lt.s32.totalorder %v14657_v28, 0 }
 0x14d   :  { %v838_v58 = vxor.u32 2147483648, %v14009_v61  ;;  %v714_v21 = vor.u32 %v713_v42, %v712_v32  ;;  %v717_v26 = vshll.u32 %v716_v50, 23  ;;  %vm836_vm8 = vcmp.lt.s32.totalorder %v835_v4, 2 }
 0x14e   :  { %v842_v6 = vsel %vm840_vm4, %v841_v56, %v14009_v61  ;;  %v12173_v49 = vadd.s32 4294967169, %v952_v45  ;;  %v597_v31 = vadd.s32 536870912, %v596_v3  ;;  %v726_v57 = vsel %vm641_vm7, %v725_v55, %v15157_v0 }
 0x14f   :  { %v839_v14 = vsel %vm837_vm6, %v14007_v30, %v838_v58  ;;  %v718_v47 = vor.u32 4788187, %v717_v26  ;;  %v948_v59 = vand.u32 2147483647, %v15222_v36  ;;  %v721_v33 = vcvt.s32.f32 %v714_v21 }
 0x150   :  { %v843_v43 = vsel %vm836_vm8, %v839_v14, %v842_v6  ;;  %v958_v37 = vadd.s32 1, %v12173_v49  ;;  %v15244_v22 = vshrl.u32 %v597_v31, 30  ;;  %vm1174_vm9 = vcmp.lt.f32.partialorder %v14532_v16, 4.5 }
 0x151   :  { %v844_v24 = vsel %vm834_vm3, nan, %v843_v43  ;;  %v719_v23 = vand.u32 2147483647, %v718_v47  ;;  %vm15249_vm10 = vcmp.le.f32.partialorder %v639_v12, 0.7853982  ;;  %vm1208_vm12 = vcmp.gt.f32.partialorder %v14489_v46, 0.0 }
 0x152   :  { %v1158_v25 = vadd.f32 1.0, %v844_v24  ;;  %vm959_vm11 = vcmp.gt.s32.totalorder %v958_v37, 0  ;;  %v599_v18 = vshll.u32 %v15244_v22, 30  ;;  %v728_v17 = vsel %vm15249_vm10, 0, %v726_v57 }
 0x153   :  { %v722_v0 = vmul.f32 %v721_v33, %v719_v23  ;;  %v960_v53 = vsel %vm959_vm11, %v958_v37, 0  ;;  %v1232_v16 = vsel %vm1208_vm12, %v14585_v2, 1.0  ;;  %v12185_v12 = vsel %vm1174_vm9, 1.0, %v19725_v8 }
 0x154   :  { %v1166_v63 = vmul.f32 0.5, %v1158_v25  ;;  %v962_v39 = vand.u32 31, %v960_v53  ;;  %v15261_v41 = vsub.s32 %v596_v3, %v599_v18  ;;  %v955_v7 = vand.u32 8388607, %v948_v59 }
 0x155   :  { %v723_v5 = vxor.u32 2147483648, %v722_v0  ;;  %v15267_v50 = vand.u32 3, %v728_v17  ;;  %14010 = vrcp.f32 %v1232_v16  ;;  %v592_v55 = vadd.s32 %v15212_v52, %v15219_v54 }
 0x156   :  { %v1198_v30 = vmul.f32 %v12185_v12, %v1166_v63  ;;  %v963_v32 = vsub.s32 32, %v962_v39  ;;  %v602_v61 = vsub.s32 0, %v15261_v41  ;;  %v965_v1 = vshll.u32 %v19712_v38, %v962_v39 }
 0x157   :  { %v724_v42 = vsel %vm641_vm7, %v723_v5, %v722_v0  ;;  %v956_v58 = vor.u32 8388608, %v955_v7  ;;  %v15278_v21 = vshrl.u32 %v960_v53, 5  ;;  %v968_v3 = vshll.u32 %v19714_v9, %v962_v39 }
 0x158   :  { %1471 = vperm.xlu1 %13911, %v1198_v30   ;;  %v727_v56 = vsel %vm15249_vm10, %v14657_v28, %v724_v42  ;;  %v966_v45 = vshrl.u32 %v19714_v9, %v963_v32  ;;  %v12158_v35 = vmin.u32 %v602_v61, %v15261_v41  ;;  %v969_v6 = vshrl.u32 %v19715_v27, %v963_v32 }
 0x159   :  { %14012 = vcosq.f32 %v727_v56  ;;  %v971_v14 = vshll.u32 %v19715_v27, %v962_v39  ;;  %v972_v52 = vshrl.u32 %v19716_v60, %v963_v32  ;;  %v974_v54 = vshll.u32 %v19716_v60, %v962_v39 }
 0x15a   :  { %14014 = vsinq.f32 %v727_v56  ;;  %v967_v26 = vor.u32 %v966_v45, %v965_v1  ;;  %v604_v49 = vclz %v12158_v35  ;;  %v970_v47 = vor.u32 %v969_v6, %v968_v3 }
 0x15b   :  { %v975_v31 = vshrl.u32 %v19717_v15, %v963_v32  ;;  %v977_v43 = vshll.u32 %v19717_v15, %v962_v39  ;;  %v978_v57 = vshrl.u32 %v19718_v11, %v963_v32  ;;  %v973_v24 = vor.u32 %v972_v52, %v971_v14 }
 0x15c   :  { %v12159_v37 = vadd.s32 4294967294, %v604_v49  ;;  %v15288_v23 = vshll.u32 %v956_v58, 8  ;;  %v15291_v33 = vmul.f32 0.6981317, %v14613_v40  ;;  %vm734_vm13 = vcmp.eq.s32.totalorder %v15267_v50, 0 }
 0x15d   :  { %v964_v25 = vshrl.u32 %v19712_v38, %v963_v32  ;;  %v976_v4 = vor.u32 %v975_v31, %v974_v54  ;;  %v979_v0 = vor.u32 %v978_v57, %v977_v43  ;;  %vm983_vm14 = vcmp.lt.s32.totalorder %v15278_v21, 4 }
 0x15e   :  { %vm733_vm15 = vcmp.lt.s32.totalorder %v15267_v50, 2  ;;  %vm12160_vm2 = vcmp.lt.s32.totalorder %v12159_v37, 0  ;;  %vm980_vm3 = vcmp.lt.s32.totalorder %v15278_v21, 1  ;;  %vm981_vm4 = vcmp.lt.s32.totalorder %v15278_v21, 2 }
 0x15f   :  { %v985_v18 = vsel %vm983_vm14, %v973_v24, 2102212464  ;;  %vm731_vm5 = vweird.f32 %v14657_v28  ;;  %v607_v53 = vsel %vm12160_vm2, 0, %v12159_v37  ;;  %vm982_vm6 = vcmp.lt.s32.totalorder %v15278_v21, 3  ;;  %v15305_v16 = vpop.eup %14010  ;;  %v15346_v21 = vpop.permute.xlu1 %1266 }
 0x160   :  { %v988_v63 = vsel %vm980_vm3, %v967_v26, %v970_v47  ;;  %v989_v17 = vsel %vm983_vm14, %v976_v4, 920167782  ;;  %v608_v39 = vsub.s32 32, %v607_v53  ;;  %v612_v12 = vsub.s32 4294967266, %v607_v53 }
 0x161   :  { %v984_v5 = vsel %vm980_vm3, %v964_v25, %v967_v26  ;;  %v992_v7 = vsel %vm980_vm3, %v970_v47, %v973_v24  ;;  %v609_v30 = vshll.u32 %v15261_v41, %v607_v53  ;;  %v986_v32 = vsel %vm982_vm6, %v970_v47, %v985_v18 }
 0x162   :  { %v990_v42 = vsel %vm982_vm6, %v973_v24, %v989_v17  ;;  %v993_v61 = vsel %vm983_vm14, %v979_v0, 1326507024  ;;  %v610_v1 = vshrl.u32 %v592_v55, %v608_v39  ;;  %v613_v45 = vadd.s32 127, %v612_v12 }
 0x163   :  { %v14013_v56 = vpop.eup %14012  ;;  %v991_v35 = vsel %vm981_vm4, %v988_v63, %v990_v42  ;;  %v994_v58 = vsel %vm982_vm6, %v976_v4, %v993_v61  ;;  %vm737_vm7 = vcmp.eq.s32.totalorder %v15267_v50, 2  ;;  %v1054_v43 = vand.u32 2139095040, %v15291_v33 }
 0x164   :  { %v14015_v26 = vpop.eup %14014  ;;  %v738_v41 = vxor.u32 2147483648, %v14013_v56  ;;  %v995_v3 = vsel %vm981_vm4, %v992_v7, %v994_v58  ;;  %v15321_v6 = vmul.u32.u64.low %v15288_v23, %v991_v35  ;;  %v15322_v49 = vmul.u32.u64.high %v15288_v23, %v991_v35, %v15321_v6  ;;  %v15362_v35 = vpop.permute.xlu1 %1306 }
 0x165   :  { %v735_v14 = vxor.u32 2147483648, %v14015_v26  ;;  %v611_v55 = vor.u32 %v610_v1, %v609_v30  ;;  %v614_v52 = vshll.u32 %v613_v45, 23  ;;  %v622_v24 = vsub.s32 4, %v15244_v22 }
 0x166   :  { %v739_v54 = vsel %vm737_vm7, %v738_v41, %v14015_v26  ;;  %v15327_v47 = vmul.u32.u64.low %v15288_v23, %v995_v3  ;;  %v15328_v31 = vmul.u32.u64.high %v15288_v23, %v995_v3, %v15327_v47  ;;  %v987_v25 = vsel %vm981_vm4, %v984_v5, %v986_v32 }
 0x167   :  { %v736_v57 = vsel %vm734_vm13, %v14013_v56, %v735_v14  ;;  %v615_v37 = vor.u32 4788187, %v614_v52  ;;  %vm1173_vm8 = vcmp.lt.f32.partialorder %v14622_v13, 4.5  ;;  %v1006_v0 = vadd.s32 1, %v15322_v49 }
 0x168   :  { %v740_v4 = vsel %vm733_vm15, %v736_v57, %v739_v54  ;;  %v1055_v18 = vshrl.u32 %v1054_v43, 23  ;;  %vm538_vm9 = vcmp.lt.s32.totalorder %v14565_v44, 0  ;;  %v618_v17 = vcvt.s32.f32 %v611_v55 }
 0x169   :  { %v741_v53 = vsel %vm731_vm5, nan, %v740_v4  ;;  %v616_v63 = vand.u32 2147483647, %v615_v37  ;;  %v1003_v12 = vmul.u32 %v15288_v23, %v987_v25  ;;  %vm1005_vm10 = vc.u32 %v15328_v31, %v15321_v6  ;;  %v15393_v4 = vpop.permute.xlu1 %1270 }
 0x16a   :  { %v1157_v39 = vadd.f32 1.0, %v741_v53  ;;  %v12177_v50 = vadd.s32 4294967169, %v1055_v18  ;;  %v623_v7 = vsel %vm538_vm9, %v622_v24, %v15244_v22  ;;  %v1007_v28 = vsel %vm1005_vm10, %v1006_v0, %v15322_v49 }
 0x16b   :  { %v619_v5 = vmul.f32 %v618_v17, %v616_v63  ;;  %v1008_v32 = vadd.s32 %v1007_v28, %v1003_v12  ;;  %v1051_v42 = vand.u32 2147483647, %v15291_v33  ;;  %v12184_v23 = vsel %vm1173_vm8, 1.0, %v19725_v8 }
 0x16c   :  { %v1165_v30 = vmul.f32 0.5, %v1157_v39  ;;  %v1061_v61 = vadd.s32 1, %v12177_v50  ;;  %vm15358_vm11 = vcmp.le.f32.partialorder %v536_v51, 0.7853982  ;;  %v12195_v13 = vsel %vm1208_vm12, 1.0, %v19725_v8 }
 0x16d   :  { %v620_v56 = vxor.u32 2147483648, %v619_v5  ;;  %v1009_v22 = vadd.s32 536870912, %v1008_v32  ;;  %v625_v26 = vsel %vm15358_vm11, 0, %v623_v7  ;;  %v1058_v49 = vand.u32 8388607, %v1051_v42 }
 0x16e   :  { %v1197_v1 = vmul.f32 %v12184_v23, %v1165_v30  ;;  %vm1062_vm13 = vcmp.gt.s32.totalorder %v1061_v61, 0  ;;  %v15379_v55 = vmul.f32 %v15305_v16, %v12195_v13  ;;  %v15381_v52 = vand.u32 3, %v625_v26 }
 0x16f   :  { %v621_v58 = vsel %vm538_vm9, %v620_v56, %v619_v5  ;;  %v1063_v41 = vsel %vm1062_vm13, %v1061_v61, 0  ;;  %v15374_v3 = vshrl.u32 %v1009_v22, 30  ;;  %v1059_v16 = vor.u32 8388608, %v1058_v49  ;;  %v15412_v61 = vpop.permute.xlu1 %1300 }
 0x170   :  { %1466 = vperm.xlu0 %13910, %v1197_v1   ;;  %v624_v51 = vsel %vm15358_vm11, %v14565_v44, %v621_v58  ;;  %v1065_v14 = vand.u32 31, %v1063_v41  ;;  %v1064_v0 = vshrl.u32 %v1063_v41, 5  ;;  %vm630_vm12 = vcmp.lt.s32.totalorder %v15381_v52, 2 }
 0x171   :  { %14016 = vcosq.f32 %v624_v51  ;;  %v1011_v46 = vshll.u32 %v15374_v3, 30  ;;  %vm628_vm14 = vweird.f32 %v14565_v44  ;;  %vm631_vm15 = vcmp.eq.s32.totalorder %v15381_v52, 0 }
 0x172   :  { %14018 = vsinq.f32 %v624_v51  ;;  %v1066_v54 = vsub.s32 32, %v1065_v14  ;;  %v1068_v47 = vshll.u32 %v19712_v38, %v1065_v14  ;;  %v1071_v43 = vshll.u32 %v19714_v9, %v1065_v14 }
 0x173   :  { %v1074_v57 = vshll.u32 %v19715_v27, %v1065_v14  ;;  %v1077_v37 = vshll.u32 %v19716_v60, %v1065_v14  ;;  %v15390_v24 = vsub.s32 %v1008_v32, %v1011_v46  ;;  %v1080_v12 = vshll.u32 %v19717_v15, %v1065_v14  ;;  %v15410_v32 = vpop.permute.xlu0 %1298 }
 0x174   :  { %1278 = vrot.lane.b32.xlu0 %v15379_v55, %s14192_s30  ;;  %v1069_v25 = vshrl.u32 %v19714_v9, %v1066_v54  ;;  %v1072_v18 = vshrl.u32 %v19715_v27, %v1066_v54  ;;  %v1075_v53 = vshrl.u32 %v19716_v60, %v1066_v54  ;;  %v1078_v63 = vshrl.u32 %v19717_v15, %v1066_v54 }
 0x175   :  { %v1014_v17 = vsub.s32 0, %v15390_v24  ;;  %v1081_v9 = vshrl.u32 %v19718_v11, %v1066_v54  ;;  %vm634_vm2 = vcmp.eq.s32.totalorder %v15381_v52, 2  ;;  %v15406_v60 = vshll.u32 %v1059_v16, 8 }
 0x176   :  { %v1070_v39 = vor.u32 %v1069_v25, %v1068_v47  ;;  %v1073_v50 = vor.u32 %v1072_v18, %v1071_v43  ;;  %v1076_v5 = vor.u32 %v1075_v53, %v1074_v57  ;;  %v1079_v7 = vor.u32 %v1078_v63, %v1077_v37 }
 0x177   :  { %v12174_v27 = vmin.u32 %v1014_v17, %v15390_v24  ;;  %v1067_v28 = vshrl.u32 %v19712_v38, %v1066_v54  ;;  %v1082_v15 = vor.u32 %v1081_v9, %v1080_v12  ;;  %vm1083_vm3 = vcmp.lt.s32.totalorder %v1064_v0, 1  ;;  %v15425_v57 = vpop.permute.xlu0 %1274  ;;  %v15436_v17 = vpop.permute.xlu1 %1302 }
 0x178   :  { %vm1085_vm4 = vcmp.lt.s32.totalorder %v1064_v0, 3  ;;  %vm1084_vm5 = vcmp.lt.s32.totalorder %v1064_v0, 2  ;;  %vm1086_vm6 = vcmp.lt.s32.totalorder %v1064_v0, 4  ;;  %v1091_v11 = vsel %vm1083_vm3, %v1070_v39, %v1073_v50 }
 0x179   :  { %v1016_v30 = vclz %v12174_v27  ;;  %v1088_v56 = vsel %vm1086_vm6, %v1076_v5, 2102212464  ;;  %v1092_v1 = vsel %vm1086_vm6, %v1079_v7, 920167782  ;;  %v1095_v45 = vsel %vm1083_vm3, %v1073_v50, %v1076_v5 }
 0x17a   :  { %v1096_v22 = vsel %vm1086_vm6, %v1082_v15, 1326507024  ;;  %v1004_v26 = vadd.s32 %v15321_v6, %v15328_v31  ;;  %v1093_v41 = vsel %vm1085_vm4, %v1076_v5, %v1092_v1  ;;  %v1087_v49 = vsel %vm1083_vm3, %v1067_v28, %v1070_v39 }
 0x17b   :  { %v14017_v23 = vpop.eup %14016  ;;  %v12175_v13 = vadd.s32 4294967294, %v1016_v30  ;;  %v1089_v14 = vsel %vm1085_vm4, %v1073_v50, %v1088_v56  ;;  %v1097_v46 = vsel %vm1085_vm4, %v1079_v7, %v1096_v22  ;;  %v1094_v47 = vsel %vm1084_vm5, %v1091_v11, %v1093_v41  ;;  %v15448_v44 = vpop.permute.xlu0 %1268 }
 0x17c   :  { %v14019_v58 = vpop.eup %14018  ;;  %v635_v38 = vxor.u32 2147483648, %v14017_v23  ;;  %v1098_v43 = vsel %vm1084_vm5, %v1095_v45, %v1097_v46  ;;  %v1090_v63 = vsel %vm1084_vm5, %v1087_v49, %v1089_v14  ;;  %vm1172_vm8 = vcmp.lt.f32.partialorder %v14527_v10, 4.5  ;;  %v15450_v30 = vpop.permute.xlu1 %1385 }
 0x17d   :  { %v632_v51 = vxor.u32 2147483648, %v14019_v58  ;;  %vm12176_vm7 = vcmp.lt.s32.totalorder %v12175_v13, 0  ;;  %v15430_v37 = vmul.u32.u64.low %v15406_v60, %v1098_v43  ;;  %v15431_v16 = vmul.u32.u64.high %v15406_v60, %v1098_v43, %v15430_v37 }
 0x17e   :  { %v636_v54 = vsel %vm634_vm2, %v635_v38, %v14019_v58  ;;  %v1019_v31 = vsel %vm12176_vm7, 0, %v12175_v13  ;;  %v15442_v12 = vmul.u32.u64.low %v15406_v60, %v1094_v47  ;;  %v15443_v50 = vmul.u32.u64.high %v15406_v60, %v1094_v47, %v15442_v12 }
 0x17f   :  { %v633_v6 = vsel %vm631_vm15, %v14017_v23, %v632_v51  ;;  %v1020_v18 = vsub.s32 32, %v1019_v31  ;;  %v1024_v53 = vsub.s32 4294967266, %v1019_v31  ;;  %v1021_v7 = vshll.u32 %v15390_v24, %v1019_v31  ;;  %v15455_v38 = vpop.permute.xlu0 %1276 }
 0x180   :  { %v637_v25 = vsel %vm630_vm12, %v633_v6, %v636_v54  ;;  %v1106_v27 = vmul.u32 %v15406_v60, %v1090_v63  ;;  %vm1108_vm9 = vc.u32 %v15431_v16, %v15442_v12  ;;  %v12183_v10 = vsel %vm1172_vm8, 1.0, %v19725_v8  ;;  %v15473_v54 = vld [vmem:[%s19737_s28] ss:$0 sm:$0xff] }
 0x181   :  { %v638_v39 = vsel %vm628_vm14, nan, %v637_v25  ;;  %v1022_v52 = vshrl.u32 %v1004_v26, %v1020_v18  ;;  %v1025_v9 = vadd.s32 127, %v1024_v53  ;;  %v1109_v11 = vadd.s32 1, %v15443_v50  ;;  %v15457_v26 = vpop.permute.xlu1 %1304 }
 0x182   :  { %v1156_v5 = vadd.f32 1.0, %v638_v39  ;;  %v1034_v41 = vsub.s32 4, %v15374_v3  ;;  %vm950_vm10 = vcmp.lt.s32.totalorder %v15222_v36, 0  ;;  %vm15465_vm11 = vcmp.le.f32.partialorder %v948_v59, 0.7853982 }
 0x183   :  { %v1023_v28 = vor.u32 %v1022_v52, %v1021_v7  ;;  %v1026_v15 = vshll.u32 %v1025_v9, 23  ;;  %v1110_v24 = vsel %vm1108_vm9, %v1109_v11, %v15443_v50  ;;  %v1366_v47 = vpop.permute.xlu0 %1365  ;;  %vm1040_vm2 = vweird.f32 %v15222_v36 }
 0x184   :  { %v1164_v0 = vmul.f32 0.5, %v1156_v5  ;;  %v1111_v45 = vadd.s32 %v1110_v24, %v1106_v27  ;;  %v1035_v6 = vsel %vm950_vm10, %v1034_v41, %v15374_v3  ;;  %v1409_v37 = vsub.f32 %v1366_v47, %v15473_v54 }
 0x185   :  { %v1027_v56 = vor.u32 4788187, %v1026_v15  ;;  %v1030_v60 = vcvt.s32.f32 %v1023_v28  ;;  %v1371_v31 = vpop.permute.xlu1 %1370  ;;  %v1037_v18 = vsel %vm15465_vm11, 0, %v1035_v6  ;;  %vm1176_vm3 = vcmp.lt.f32.partialorder %v14585_v2, 4.5 }
 0x186   :  { %v1196_v23 = vmul.f32 %v12183_v10, %v1164_v0  ;;  %v1112_v58 = vadd.s32 536870912, %v1111_v45  ;;  %v1417_v53 = vmul.f32 %v1409_v37, %v1409_v37  ;;  %v1410_v63 = vsub.f32 %v1371_v31, %v15473_v54 }
 0x187   :  { %v1028_v1 = vand.u32 2147483647, %v1027_v56  ;;  %v15483_v5 = vpop.permute.xlu0 %1272  ;;  %v1041_v7 = vand.u32 3, %v1037_v18  ;;  %vm1826_vm4 = vcmask 130048   ;;  %vm1053_vm5 = vcmp.lt.s32.totalorder %v15291_v33, 0 }
 0x188   :  { %1461 = vperm.xlu1 %13911, %v1196_v23   ;;  %v15460_v51 = vshrl.u32 %v1112_v58, 30  ;;  %v1425_v50 = vmul.f32 -65.446, %v1417_v53  ;;  %v1418_v3 = vmul.f32 %v1410_v63, %v1410_v63  ;;  %v1107_v23 = vadd.s32 %v15442_v12, %v15431_v16  ;;  %v1817_v16 = vld [vmem:[%s19738_s29] sm:$0xff]  ;;  %v1818_v12 = vld [vmem:[%s19738_s29 + $0x8] sm:$0xff] }
 0x189   :  { %v1031_v22 = vmul.f32 %v1030_v60, %v1028_v1  ;;  %v15485_v27 = vpop.permute.xlu1 %1375  ;;  %vm1046_vm13 = vcmp.eq.s32.totalorder %v1041_v7, 2  ;;  %vm1043_vm14 = vcmp.eq.s32.totalorder %v1041_v7, 0  ;;  %vm1042_vm15 = vcmp.lt.s32.totalorder %v1041_v7, 2 }
 0x18a   :  { %v1114_v46 = vshll.u32 %v15460_v51, 30  ;;  %v1433_v9 = vmul.f32 1.442695, %v1425_v50  ;;  %v1426_v28 = vmul.f32 -65.446, %v1418_v3  ;;  %v13455_v18 = vpack.c.bf16 %v1818_v12, %v1817_v16 }
 0x18b   :  { %v1032_v13 = vxor.u32 2147483648, %v1031_v22  ;;  %v15488_v24 = vpop.permute.xlu0 %1390  ;;  %vm1052_vm6 = vcmp.le.f32.partialorder %v1051_v42, 0.7853982  ;;  %vm1209_vm7 = vcmp.gt.f32.partialorder %v14491_v48, 0.0  ;;  %v19632_v48 = vmov 1  }
 0x18c   :  { %v1115_v59 = vsub.s32 %v1111_v45, %v1114_v46  ;;  %v1435_v1 = vmul.f32 1.442695, %v1426_v28  ;;  %13456 = vmatprep.subr.bf16.mxu0 %v13455_v18  ;;  %v19741_v28 = vmov 0.0|0.0  }
 0x18d   :  { %v1033_v14 = vsel %vm950_vm10, %v1032_v13, %v1031_v22  ;;  %v15490_v41 = vpop.permute.xlu1 %1395  ;;  %13458 = vmatpush3.bf16.msra.mxu0 %v13455_v18 }
 0x18e   :  { %v1036_v43 = vsel %vm15465_vm11, %v15222_v36, %v1033_v14  ;;  %v1117_v25 = vsub.s32 0, %v1115_v59  ;;  %13471 = vmatprep.subr.bf16.mxu0 %v19741_v28  ;;  %vm1143_vm11 = vweird.f32 %v15291_v33 }
 0x18f   :  { %14020 = vcosq.f32 %v1036_v43  ;;  %v15500_v37 = vpop.permute.xlu0 %1380 }
 0x190   :  { %14022 = vsinq.f32 %v1036_v43  ;;  %v12178_v39 = vmin.u32 %v1117_v25, %v1115_v59 }
 0x191   :  { %14024 = vpow2.f32 %v1433_v9 }
 0x192   :  { %v1119_v52 = vclz %v12178_v39  ;;  %14026 = vpow2.f32 %v1435_v1  ;;  %v12187_v39 = vsel %vm1176_vm3, 1.0, %v19725_v8 }
 0x193   :  { %v15508_v9 = vpop.permute.xlu0 %1400 }
 0x194   :  { %v12179_v0 = vadd.s32 4294967294, %v1119_v52 }
 0x196   :  { %vm12180_vm12 = vcmp.lt.s32.totalorder %v12179_v0, 0 }
 0x197   :  { %v1122_v56 = vsel %vm12180_vm12, 0, %v12179_v0  ;;  %vm2201_vm12 = vcmask 523520  }
 0x198   :  { %v1123_v45 = vsub.s32 32, %v1122_v56  ;;  %v1124_v22 = vshll.u32 %v1115_v59, %v1122_v56  ;;  %v1127_v58 = vsub.s32 4294967266, %v1122_v56 }
 0x199   :  { %v14021_v15 = vpop.eup %14020 }
 0x19a   :  { %v14023_v10 = vpop.eup %14022  ;;  %v1047_v11 = vxor.u32 2147483648, %v14021_v15  ;;  %v1125_v14 = vshrl.u32 %v1107_v23, %v1123_v45  ;;  %v1128_v46 = vadd.s32 127, %v1127_v58  ;;  %v1137_v23 = vsub.s32 4, %v15460_v51 }
 0x19b   :  { %v1044_v60 = vxor.u32 2147483648, %v14023_v10  ;;  %v14025_v53 = vpop.eup %14024  ;;  %v15538_v58 = vmul.f32 %v14509_v62, %v14393_v29 }
 0x19c   :  { %v1048_v13 = vsel %vm1046_vm13, %v1047_v11, %v14023_v10  ;;  %v1126_v6 = vor.u32 %v1125_v14, %v1124_v22  ;;  %v1129_v59 = vshll.u32 %v1128_v46, 23  ;;  %v15502_v25 = vpop.permute.xlu1 %1451  ;;  %v12208_v22 = vld [vmem:[%s19744_s9] ss:$0 sm:$0xff]  ;;  %vm1177_vm13 = vcmp.lt.f32.partialorder %v14613_v40, 4.5  ;;  %s19846_s9 = sld [smem:[#allocation71_spill]] }
 0x19d   :  { %v1045_v49 = vsel %vm1043_vm14, %v14021_v15, %v1044_v60  ;;  %19739 = vst [vmem:[#allocation18_spill] sm:$0xff] %v15502_v25  ;;  %v15506_v52 = vmul.f32 %v14025_v53, %v15502_v25  ;;  %v14027_v15 = vpop.eup %14026  ;;  %v1138_v60 = vsel %vm1053_vm5, %v1137_v23, %v15460_v51  ;;  %v1233_v51 = vsel %vm1209_vm7, %v14613_v40, 1.0 }
 0x19e   :  { %v1049_v47 = vsel %vm1042_vm15, %v1045_v49, %v1048_v13  ;;  %v1130_v36 = vor.u32 4788187, %v1129_v59  ;;  %v1133_v7 = vcvt.s32.f32 %v1126_v6  ;;  %v1140_v42 = vsel %vm1052_vm6, 0, %v1138_v60  ;;  %v19751_v60 = vld [vmem:[#allocation14_spill] sm:$0xff] }
 0x19f   :  { %v1050_v43 = vsel %vm1040_vm2, nan, %v1049_v47  ;;  %19740 = vst [vmem:[#allocation19_spill] sm:$0xff] %v15506_v52  ;;  %12691 = vmatprep.mubr.msk.f32.mxu0 %vm1826_vm4, %v15506_v52  ;;  %v1144_v45 = vand.u32 3, %v1140_v42  ;;  %v19745_v47 = vld [vmem:[#allocation15_spill] sm:$0xff]  ;;  %v1617_v62 = vsub.f32 0.0, %v15538_v58  ;;  %vm3753_vm14 = vcmask 523264  }
 0x1a0   :  { %v1160_v31 = vadd.f32 1.0, %v1050_v43  ;;  %v1131_v50 = vand.u32 2147483647, %v1130_v36  ;;  %v15546_v16 = vmul.f32 %v19745_v47, %v14403_v34  ;;  %v19747_v36 = vld [vmem:[#allocation16_spill] sm:$0xff]  ;;  %vm5929_vm15 = vcmask 785920  }
 0x1a1   :  { %vm1149_vm8 = vcmp.eq.s32.totalorder %v1144_v45, 2  ;;  %vm1146_vm9 = vcmp.eq.s32.totalorder %v1144_v45, 0  ;;  %vm1145_vm10 = vcmp.lt.s32.totalorder %v1144_v45, 2  ;;  %v15576_v45 = vmul.f32 %v15346_v21, %v14393_v29  ;;  %v19753_v21 = vld [vmem:[#allocation12_spill] sm:$0xff] }
 0x1a2   :  { %v1168_v63 = vmul.f32 0.5, %v1160_v31  ;;  %v1134_v2 = vmul.f32 %v1133_v7, %v1131_v50  ;;  %v19746_v31 = vld [vmem:[#allocation10_spill] sm:$0xff]  ;;  %v12188_v50 = vsel %vm1177_vm13, 1.0, %v19725_v8  ;;  %v19748_v7 = vld [vmem:[#allocation11_spill] sm:$0xff] }
 0x1a3   :  { %v15552_v18 = vmul.f32 %v19747_v36, %v19746_v31  ;;  %v15680_v36 = vmul.f32 %v15448_v44, %v14403_v34 }
 0x1a4   :  { %v1200_v3 = vmul.f32 %v12187_v39, %v1168_v63  ;;  %v1135_v0 = vxor.u32 2147483648, %v1134_v2  ;;  %v1618_v63 = vsub.f32 0.0, %v15546_v16 }
 0x1a6   :  { %1481 = vperm.xlu1 %13911, %v1200_v3   ;;  %v1136_v11 = vsel %vm1053_vm5, %v1135_v0, %v1134_v2  ;;  %v19749_v3 = vld [vmem:[#allocation17_spill] sm:$0xff]  ;;  %v1619_v0 = vsub.f32 0.0, %v15552_v18 }
 0x1a7   :  { %v1139_v1 = vsel %vm1052_vm6, %v15291_v33, %v1136_v11  ;;  %v15559_v2 = vmul.f32 %v19749_v3, %v19748_v7  ;;  %v12196_v11 = vsel %vm1209_vm7, 1.0, %v19725_v8 }
 0x1a8   :  { %14028 = vcosq.f32 %v1139_v1 }
 0x1a9   :  { %v15514_v10 = vpop.permute.xlu0 %1456  ;;  %14030 = vsinq.f32 %v1139_v1  ;;  %v1620_v23 = vsub.f32 0.0, %v15559_v2  ;;  %v19750_v1 = vld [vmem:[#allocation8_spill] sm:$0xff] }
 0x1aa   :  { %19742 = vst [vmem:[#allocation20_spill] sm:$0xff] %v15514_v10  ;;  %v15520_v56 = vmul.f32 %v14027_v15, %v15514_v10  ;;  %1308 = vrot.lane.b32.xlu1 %v14645_v20, %s14191_s8  ;;  %14032 = vrcp.f32 %v1233_v51  ;;  %v15572_v42 = vmul.f32 %v19751_v60, %v19750_v1 }
 0x1ac   :  { %19743 = vst [vmem:[#allocation21_spill] sm:$0xff] %v15520_v56  ;;  %12692 = vmatmul.mubr.msk.f32.vlgmr.msra.gmra.mrb[0].mxu0 %vm1826_vm4, %v15520_v56 }
 0x1ae   :  { %1310 = vrot.lane.b32.xlu1 %v15379_v55, %s14191_s8 }
 0x1b2   :  { %2133 = vrot.lane.b32.xlu1 %v15232_v19, %s14199_s11  ;;  %v14029_v13 = vpop.eup %14028 }
 0x1b3   :  { %v14031_v49 = vpop.eup %14030  ;;  %v1150_v14 = vxor.u32 2147483648, %v14029_v13 }
 0x1b4   :  { %v1147_v46 = vxor.u32 2147483648, %v14031_v49  ;;  %v14033_v15 = vpop.eup %14032 }
 0x1b5   :  { %v1151_v12 = vsel %vm1149_vm8, %v1150_v14, %v14031_v49  ;;  %v15565_v40 = vmul.f32 %v14033_v15, %v12196_v11  ;;  %v15590_v49 = vmul.f32 %v15410_v32, %v14393_v29  ;;  %v15596_v14 = vmul.f32 %v15379_v55, %v19753_v21 }
 0x1b6   :  { %2150 = vrot.lane.b32.xlu1 %v12208_v22, %s14199_s11  ;;  %v1148_v43 = vsel %vm1146_vm9, %v14029_v13, %v1147_v46  ;;  %v19752_v22 = vld [vmem:[#allocation9_spill] sm:$0xff]  ;;  %v1621_v13 = vsub.f32 0.0, %v15572_v42  ;;  %v15609_v32 = vmul.f32 %v15576_v45, %v15576_v45  ;;  %v19630_v55 = vmov 2  }
 0x1b7   :  { %v1152_v6 = vsel %vm1145_vm10, %v1148_v43, %v1151_v12  ;;  %v15585_v51 = vmul.f32 %v14645_v20, %v19752_v22  ;;  %v15601_v20 = vmul.f32 %v15362_v35, %v19750_v1  ;;  %v1623_v29 = vsub.f32 0.0, %v15596_v14 }
 0x1b8   :  { %v1153_v59 = vsel %vm1143_vm11, nan, %v1152_v6  ;;  %v15615_v35 = vmul.f32 %v15425_v57, %v19750_v1  ;;  %v15631_v57 = vmul.f32 %v15393_v4, %v19746_v31  ;;  %v15639_v12 = vmul.f32 %v15412_v61, %v14403_v34 }
 0x1b9   :  { %v1161_v53 = vadd.f32 1.0, %v1153_v59  ;;  %v1622_v46 = vsub.f32 0.0, %v15585_v51  ;;  %v15623_v47 = vmul.f32 %v15601_v20, %v15601_v20  ;;  %v15650_v4 = vmul.f32 %v15590_v49, %v15590_v49 }
 0x1ba   :  { %2345 = vperm.xlu1 %13911, %v1617_v62   ;;  %v15646_v62 = vmul.f32 %v15436_v17, %v19746_v31  ;;  %v15660_v43 = vmul.f32 %v15455_v38, %v19752_v22  ;;  %v15664_v17 = vmul.f32 %v15615_v35, %v15615_v35  ;;  %v1411_v6 = vsub.f32 %v15485_v27, %v15473_v54 }
 0x1bb   :  { %v1169_v39 = vmul.f32 0.5, %v1161_v53  ;;  %v1412_v59 = vsub.f32 %v15500_v37, %v15473_v54  ;;  %v1413_v31 = vsub.f32 %v15450_v30, %v15473_v54  ;;  %v1414_v27 = vsub.f32 %v15488_v24, %v15473_v54 }
 0x1bc   :  { %v1419_v53 = vmul.f32 %v1411_v6, %v1411_v6 }
 0x1bd   :  { %v1201_v33 = vmul.f32 %v12188_v50, %v1169_v39  ;;  %v1420_v37 = vmul.f32 %v1412_v59, %v1412_v59  ;;  %v1422_v50 = vmul.f32 %v1414_v27, %v1414_v27 }
 0x1be   :  { %2350 = vperm.xlu1 %13911, %v1618_v63   ;;  %v1421_v63 = vmul.f32 %v1413_v31, %v1413_v31  ;;  %v1427_v30 = vmul.f32 -65.446, %v1419_v53  ;;  %v1415_v53 = vsub.f32 %v15490_v41, %v15473_v54  ;;  %v1416_v41 = vsub.f32 %v15508_v9, %v15473_v54 }
 0x1bf   :  { %1486 = vperm.xlu0 %13910, %v1201_v33   ;;  %v1428_v3 = vmul.f32 -65.446, %v1420_v37  ;;  %v15747_v9 = vmul.f32 %v15680_v36, %v15680_v36 }
 0x1c0   :  { %v15656_v61 = vpop.permute.xlu0 %1476  ;;  %v1429_v33 = vmul.f32 -65.446, %v1421_v63  ;;  %v1437_v44 = vmul.f32 1.442695, %v1427_v30  ;;  %v1423_v37 = vmul.f32 %v1415_v53, %v1415_v53 }
 0x1c1   :  { %19754 = vst [vmem:[#allocation15_spill] sm:$0xff] %v15656_v61  ;;  %v1439_v15 = vmul.f32 1.442695, %v1428_v3 }
 0x1c2   :  { %2355 = vperm.xlu1 %13911, %v1619_v0   ;;  %v1430_v0 = vmul.f32 -65.446, %v1422_v50  ;;  %v1441_v24 = vmul.f32 1.442695, %v1429_v33  ;;  %14034 = vpow2.f32 %v1437_v44  ;;  %v1431_v63 = vmul.f32 -65.446, %v1423_v37 }
 0x1c3   :  { %1280 = vrot.lane.b32.xlu0 %v15565_v40, %s14192_s30  ;;  %14036 = vpow2.f32 %v1439_v15 }
 0x1c4   :  { %v1443_v11 = vmul.f32 1.442695, %v1430_v0  ;;  %14038 = vpow2.f32 %v1441_v24  ;;  %v1424_v0 = vmul.f32 %v1416_v41, %v1416_v41  ;;  %v1613_v41 = vsub.f32 0.0, %v15601_v20 }
 0x1c6   :  { %2360 = vperm.xlu1 %13911, %v1620_v23   ;;  %14040 = vpow2.f32 %v1443_v11  ;;  %v1432_v11 = vmul.f32 -65.446, %v1424_v0 }
 0x1c7   :  { %1312 = vrot.lane.b32.xlu0 %v15565_v40, %s14191_s8 }
 0x1ca   :  { %1713 = vrot.lane.b32.xlu1 %v15576_v45, %s14189_s4 }
 0x1cb   :  { %13912 = vset.pattern.permute.xlu1 %v19632_v48  ;;  %2365 = vperm.xlu0 %13910, %v1621_v13  }
 0x1cc   :  { %v14035_v1 = vpop.eup %14034 }
 0x1cd   :  { %v14037_v13 = vpop.eup %14036 }
 0x1ce   :  { %1785 = vrot.lane.b32.xlu1 %v15590_v49, %s14189_s4 }
 0x1cf   :  { %2370 = vperm.xlu0 %13910, %v1622_v46  }
 0x1d2   :  { %1793 = vrot.lane.b32.xlu1 %v15601_v20, %s14189_s4 }
 0x1d3   :  { %2375 = vperm.xlu0 %13910, %v1623_v29   ;;  %v14039_v29 = vpop.eup %14038 }
 0x1d4   :  { %v14041_v31 = vpop.eup %14040 }
 0x1d5   :  { %v15717_v27 = vmul.f32 %v14041_v31, %v15656_v61 }
 0x1d6   :  { %2289 = vperm.xlu1 %13912, %v15576_v45  }
 0x1d7   :  { %1753 = vrot.lane.b32.xlu0 %v15590_v49, %s14188_s7  ;;  %v15695_v23 = vpop.permute.xlu1 %1471  ;;  %19761 = vst [vmem:[#allocation9_spill] sm:$0xff] %v15717_v27 }
 0x1d8   :  { %13913 = vset.pattern.permute.xlu0 %v19632_v48  ;;  %19756 = vst [vmem:[#allocation16_spill] sm:$0xff] %v15695_v23  ;;  %v15708_v59 = vmul.f32 %v14039_v29, %v15695_v23 }
 0x1da   :  { %1521 = vrot.lane.b32.xlu1 %v15609_v32, %s14189_s4  ;;  %19760 = vst [vmem:[#allocation14_spill] sm:$0xff] %v15708_v59 }
 0x1db   :  { %13914 = vset.pattern.permute.xlu1 %v19630_v55  ;;  %1721 = vrot.lane.b32.xlu0 %v15615_v35, %s14189_s4 }
 0x1de   :  { %1577 = vrot.lane.b32.xlu1 %v15623_v47, %s14188_s7 }
 0x1df   :  { %1761 = vrot.lane.b32.xlu0 %v15601_v20, %s14188_s7 }
 0x1e2   :  { %1717 = vrot.lane.b32.xlu1 %v15631_v57, %s14189_s4 }
 0x1e3   :  { %2305 = vperm.xlu0 %13913, %v15615_v35  }
 0x1e6   :  { %1755 = vrot.lane.b32.xlu1 %v15639_v12, %s14188_s7 }
 0x1e7   :  { %1569 = vrot.lane.b32.xlu0 %v15650_v4, %s14188_s7 }
 0x1ea   :  { %1757 = vrot.lane.b32.xlu1 %v15646_v62, %s14188_s7 }
 0x1eb   :  { %1529 = vrot.lane.b32.xlu0 %v15664_v17, %s14189_s4 }
 0x1ee   :  { %1723 = vrot.lane.b32.xlu1 %v15660_v43, %s14189_s4 }
 0x1ef   :  { %v15676_v38 = vpop.permute.xlu0 %1466  ;;  %1715 = vrot.lane.b32.xlu0 %v15680_v36, %s14189_s4 }
 0x1f0   :  { %19755 = vst [vmem:[#allocation10_spill] sm:$0xff] %v15676_v38  ;;  %v15703_v6 = vmul.f32 %v14037_v13, %v15676_v38  ;;  %v1609_v13 = vsub.f32 0.0, %v15590_v49  ;;  %v15777_v49 = vmul.f32 %v15483_v5, %v19748_v7 }
 0x1f2   :  { %19759 = vst [vmem:[#allocation8_spill] sm:$0xff] %v15703_v6 }
 0x1f3   :  { %v1279_v39 = vpop.permute.xlu0 %1278  ;;  %1787 = vrot.lane.b32.xlu0 %v15639_v12, %s14189_s4 }
 0x1f4   :  { %v15689_v34 = vmul.f32 %v1279_v39, %v19753_v21  ;;  %v1445_v39 = vmul.f32 1.442695, %v1431_v63 }
 0x1f6   :  { %14042 = vpow2.f32 %v1445_v39  ;;  %v15767_v31 = vmul.f32 %v15689_v34, %v15689_v34 }
 0x1f7   :  { %1725 = vrot.lane.b32.xlu0 %v15689_v34, %s14189_s4 }
 0x1fb   :  { %1789 = vrot.lane.b32.xlu0 %v15646_v62, %s14189_s4 }
 0x200   :  { %v14043_v30 = vpop.eup %14042 }
 0x207   :  { %v15697_v60 = vpop.permute.xlu1 %1461 }
 0x208   :  { %19757 = vst [vmem:[#allocation11_spill] sm:$0xff] %v15697_v60  ;;  %v15700_v46 = vmul.f32 %v14035_v1, %v15697_v60  ;;  %v15758_v1 = vmul.f32 %v15660_v43, %v15660_v43 }
 0x20a   :  { %19758 = vst [vmem:[#allocation17_spill] sm:$0xff] %v15700_v46  ;;  %12694 = vmatprep.mubr.msk.f32.mxu0 %vm1826_vm4, %v15700_v46  ;;  %v15863_v46 = vmul.f32 %v15777_v49, %v15777_v49 }
 0x20b   :  { %12695 = vmatmul.mubr.msk.f32.gmra.mrb[2].mxu0 %vm1826_vm4, %v15703_v6 }
 0x20c   :  { %12697 = vmatprep.mubr.msk.f32.mxu0 %vm1826_vm4, %v15708_v59 }
 0x20f   :  { %12698 = vmatmul.mubr.msk.f32.gmra.mrb[4].mxu0 %vm1826_vm4, %v15717_v27  ;;  %v19777_v27 = vmov 2  }
 0x225   :  { %v15721_v50 = vpop.permute.xlu1 %1481 }
 0x226   :  { %19762 = vst [vmem:[#allocation12_spill] sm:$0xff] %v15721_v50  ;;  %v15724_v3 = vmul.f32 %v14043_v30, %v15721_v50 }
 0x228   :  { %19763 = vst [vmem:[#allocation22_spill] sm:$0xff] %v15724_v3  ;;  %12700 = vmatprep.mubr.msk.f32.mxu0 %vm1826_vm4, %v15724_v3 }
 0x229   :  { %v1309_v33 = vpop.permute.xlu1 %1308 }
 0x22a   :  { %v15731_v44 = vmul.f32 %v1309_v33, %v19752_v22  ;;  %v1447_v22 = vmul.f32 1.442695, %v1432_v11  ;;  %v19771_v33 = vld [vmem:[#allocation13_spill] sm:$0xff]  ;;  %v1325_v11 = vmul.f32 %v15457_v26, %v19748_v7  ;;  %v15818_v26 = vmul.f32 %v15639_v12, %v15639_v12 }
 0x22c   :  { %1795 = vrot.lane.b32.xlu0 %v15731_v44, %s14189_s4  ;;  %1763 = vrot.lane.b32.xlu1 %v15731_v44, %s14188_s7  ;;  %14044 = vpow2.f32 %v1447_v22 }
 0x22d   :  { %v1311_v15 = vpop.permute.xlu1 %1310 }
 0x22e   :  { %v15738_v24 = vmul.f32 %v1311_v15, %v19753_v21 }
 0x230   :  { %2313 = vperm.xlu0 %13913, %v15689_v34   ;;  %1765 = vrot.lane.b32.xlu1 %v15738_v24, %s14188_s7 }
 0x231   :  { %v15743_v54 = vpop.permute.xlu1 %2133 }
 0x232   :  { %19764 = vst [vmem:[#allocation23_spill] sm:$0xff] %v15743_v54 }
 0x234   :  { %1523 = vrot.lane.b32.xlu0 %v15747_v9, %s14189_s4  ;;  %1797 = vrot.lane.b32.xlu1 %v15738_v24, %s14189_s4 }
 0x235   :  { %v15753_v21 = vpop.permute.xlu1 %2150  ;;  %13918 = vset.pattern.permute.xlu0 %v19630_v55 }
 0x236   :  { %19765 = vst [vmem:[#allocation24_spill] sm:$0xff] %v15753_v21  ;;  %v14045_v37 = vpop.eup %14044 }
 0x238   :  { %1531 = vrot.lane.b32.xlu0 %v15758_v1, %s14189_s4  ;;  %2227 = vperm.xlu1 %13914, %v1609_v13   ;;  %v15809_v13 = vmul.f32 %v15631_v57, %v15631_v57 }
 0x239   :  { %v15763_v29 = vpop.permute.xlu1 %2345 }
 0x23a   :  { %19766 = vst [vmem:[#allocation25_spill] sm:$0xff] %v15763_v29 }
 0x23c   :  { %1533 = vrot.lane.b32.xlu0 %v15767_v31, %s14189_s4  ;;  %13915 = vset.pattern.permute.xlu1 %v19632_v48 }
 0x23d   :  { %2293 = vperm.xlu1 %13915, %v15680_v36   ;;  %v15773_v53 = vpop.permute.xlu1 %2350 }
 0x23e   :  { %19767 = vst [vmem:[#allocation26_spill] sm:$0xff] %v15773_v53  ;;  %v15781_v63 = vpop.permute.xlu0 %1486 }
 0x23f   :  { %19768 = vst [vmem:[#allocation27_spill] sm:$0xff] %v15781_v63  ;;  %v15787_v30 = vmul.f32 %v14045_v37, %v15781_v63 }
 0x240   :  { %1719 = vrot.lane.b32.xlu0 %v15777_v49, %s14189_s4 }
 0x241   :  { %2297 = vperm.xlu1 %13915, %v15631_v57   ;;  %v15784_v39 = vpop.permute.xlu1 %2355  ;;  %19770 = vst [vmem:[#allocation29_spill] sm:$0xff] %v15787_v30  ;;  %12701 = vmatmul.mubr.msk.f32.gmra.mrb[6].mxu0 %vm1826_vm4, %v15787_v30  ;;  %v19775_v30 = vmov 1  }
 0x242   :  { %19769 = vst [vmem:[#allocation28_spill] sm:$0xff] %v15784_v39  ;;  %v1281_v5 = vpop.permute.xlu0 %1280  ;;  %12733 = vmatprep.mubr.msk.f32.mxu0 %vm14186_vm0, %v19725_v8  ;;  %v19779_v39 = vmov 0  }
 0x243   :  { %v15796_v0 = vmul.f32 %v1281_v5, %v19771_v33  ;;  %v15827_v5 = vmul.f32 %v15646_v62, %v15646_v62 }
 0x245   :  { %13916 = vset.pattern.permute.xlu1 %v19630_v55  ;;  %v15798_v15 = vpop.permute.xlu1 %2360  ;;  %1727 = vrot.lane.b32.xlu0 %v15796_v0, %s14189_s4 }
 0x246   :  { %19772 = vst [vmem:[#allocation13_spill] sm:$0xff] %v15798_v15  ;;  %2247 = vperm.xlu1 %13916, %v1613_v41   ;;  %v1313_v20 = vpop.permute.xlu0 %1312  ;;  %v1610_v41 = vsub.f32 0.0, %v15639_v12  ;;  %v15838_v12 = vmul.f32 %v15731_v44, %v15731_v44 }
 0x247   :  { %v1329_v37 = vmul.f32 %v1313_v20, %v19771_v33 }
 0x249   :  { %1791 = vrot.lane.b32.xlu0 %v1325_v11, %s14189_s4  ;;  %v1714_v22 = vpop.permute.xlu1 %1713  ;;  %v15877_v8 = vmul.f32 %v1329_v37, %v1329_v37  ;;  %v1616_v29 = vsub.f32 0.0, %v1329_v37 }
 0x24a   :  { %13917 = vset.pattern.permute.xlu1 %v19632_v48  ;;  %v15829_v20 = vpop.permute.xlu0 %2365 }
 0x24b   :  { %2309 = vperm.xlu1 %13917, %v15660_v43   ;;  %19773 = vst [vmem:[#allocation30_spill] sm:$0xff] %v15829_v20 }
 0x24d   :  { %1767 = vrot.lane.b32.xlu0 %v1329_v37, %s14188_s7  ;;  %v15820_v7 = vpop.permute.xlu1 %1785 }
 0x24f   :  { %1525 = vrot.lane.b32.xlu1 %v15809_v13, %s14189_s4 }
 0x250   :  { %13920 = vset.pattern.permute.xlu1 %v19630_v55  ;;  %v1611_v55 = vsub.f32 0.0, %v15646_v62  ;;  %v15848_v62 = vmul.f32 %v15738_v24, %v15738_v24 }
 0x251   :  { %2232 = vperm.xlu0 %13918, %v1610_v41   ;;  %v15834_v48 = vpop.permute.xlu1 %1793  ;;  %v15842_v41 = vpop.permute.xlu0 %2370 }
 0x252   :  { %19774 = vst [vmem:[#allocation31_spill] sm:$0xff] %v15842_v41  ;;  %v1612_v41 = vsub.f32 0.0, %v1325_v11 }
 0x253   :  { %1571 = vrot.lane.b32.xlu1 %v15818_v26, %s14188_s7 }
 0x255   :  { %2237 = vperm.xlu0 %13918, %v1611_v55   ;;  %v15850_v3 = vpop.permute.xlu1 %2289  ;;  %v1615_v55 = vsub.f32 0.0, %v15738_v24  ;;  %v15856_v59 = vpop.permute.xlu0 %2375  ;;  %v15870_v24 = vmul.f32 %v15796_v0, %v15796_v0 }
 0x256   :  { %19776 = vst [vmem:[#allocation32_spill] sm:$0xff] %v15850_v3  ;;  %19778 = vst [vmem:[#allocation33_spill] sm:$0xff] %v15856_v59 }
 0x257   :  { %1573 = vrot.lane.b32.xlu1 %v15827_v5, %s14188_s7 }
 0x259   :  { %13919 = vset.pattern.permute.xlu0 %v19775_v30  ;;  %v15859_v6 = vpop.permute.xlu1 %1521  ;;  %v1754_v56 = vpop.permute.xlu0 %1753 }
 0x25a   :  { %2301 = vperm.xlu0 %13919, %v15777_v49  }
 0x25b   :  { %1579 = vrot.lane.b32.xlu1 %v15838_v12, %s14188_s7 }
 0x25d   :  { %v15873_v52 = vpop.permute.xlu1 %1577  ;;  %v1722_v28 = vpop.permute.xlu0 %1721 }
 0x25e   :  { %13921 = vset.pattern.permute.xlu0 %v19777_v27  ;;  %v1741_v21 = vmul.f32 %v1722_v28, %v15572_v42 }
 0x25f   :  { %1581 = vrot.lane.b32.xlu1 %v15848_v62, %s14188_s7  ;;  %2257 = vperm.xlu0 %13921, %v1615_v55   ;;  %v1614_v55 = vsub.f32 0.0, %v15731_v44  ;;  %v15883_v44 = vmul.f32 %v1325_v11, %v1325_v11 }
 0x261   :  { %v1718_v59 = vpop.permute.xlu1 %1717  ;;  %v1762_v20 = vpop.permute.xlu0 %1761 }
 0x263   :  { %1759 = vrot.lane.b32.xlu1 %v1325_v11, %s14188_s7  ;;  %1527 = vrot.lane.b32.xlu0 %v15863_v46, %s14189_s4  ;;  %v1777_v11 = vmul.f32 %v1754_v56, %v15538_v58  ;;  %v1809_v56 = vmul.f32 %v15820_v7, %v15576_v45 }
 0x265   :  { %v1756_v15 = vpop.permute.xlu1 %1755  ;;  %v15890_v3 = vpop.permute.xlu0 %2305 }
 0x266   :  { %19780 = vst [vmem:[#allocation34_spill] sm:$0xff] %v15890_v3 }
 0x267   :  { %1799 = vrot.lane.b32.xlu1 %v1329_v37, %s14189_s4  ;;  %1535 = vrot.lane.b32.xlu0 %v15870_v24, %s14189_s4  ;;  %v1781_v37 = vmul.f32 %v1762_v20, %v15572_v42 }
 0x269   :  { %v15895_v53 = vpop.permute.xlu0 %1569  ;;  %v1758_v28 = vpop.permute.xlu1 %1757 }
 0x26a   :  { %v1779_v20 = vmul.f32 %v1758_v28, %v15552_v18 }
 0x26b   :  { %2252 = vperm.xlu1 %13920, %v1614_v55   ;;  %1583 = vrot.lane.b32.xlu0 %v15877_v8, %s14188_s7  ;;  %v1737_v55 = vmul.f32 %v1714_v22, %v15538_v58 }
 0x26f   :  { %13922 = vset.pattern.permute.xlu1 %v19775_v30  ;;  %2242 = vperm.xlu0 %13921, %v1612_v41   ;;  %v1778_v41 = vmul.f32 %v1756_v15, %v15546_v16 }
 0x270   :  { %2317 = vperm.xlu1 %13922, %v15796_v0  }
 0x273   :  { %13924 = vset.pattern.permute.xlu0 %v19779_v39 }
 0x274   :  { %1575 = vrot.lane.b32.xlu1 %v15883_v44, %s14188_s7  ;;  %2503 = vperm.xlu0 %13924, %v1737_v55  }
 0x275   :  { %13923 = vset.pattern.permute.xlu1 %v19777_v27 }
 0x278   :  { %2262 = vperm.xlu1 %13923, %v1616_v29   ;;  %2571 = vperm.xlu0 %13924, %v1778_v41   ;;  %v15903_v29 = vpop.permute.xlu0 %1529  ;;  %v1724_v41 = vpop.permute.xlu1 %1723 }
 0x27c   :  { %13925 = vset.pattern.permute.xlu1 %v19779_v39  ;;  %v1716_v15 = vpop.permute.xlu0 %1715 }
 0x27d   :  { %2566 = vperm.xlu1 %13925, %v1777_v11   ;;  %v1738_v55 = vmul.f32 %v1716_v15, %v15546_v16  ;;  %v1742_v11 = vmul.f32 %v1724_v41, %v15585_v51 }
 0x27f   :  { %v15897_v22 = vpop.f32.mrb[0].mxu0 }
 0x280   :  { %v15900_v54 = vpop.f32.mrb[1].mxu0  ;;  %v1788_v45 = vpop.permute.xlu0 %1787 }
 0x281   :  { %2523 = vperm.xlu1 %13925, %v1741_v21   ;;  %v1739_v21 = vmul.f32 %v1718_v59, %v15552_v18  ;;  %v1810_v7 = vmul.f32 %v1788_v45, %v15680_v36 }
 0x285   :  { %2586 = vperm.xlu1 %13925, %v1781_v37   ;;  %v1726_v37 = vpop.permute.xlu0 %1725 }
 0x289   :  { %13926 = vset.pattern.permute.xlu1 %v19775_v30  ;;  %v1790_v59 = vpop.permute.xlu0 %1789 }
 0x28a   :  { %2692 = vperm.xlu1 %13926, %v1809_v56   ;;  %v1743_v56 = vmul.f32 %v1726_v37, %v15596_v14 }
 0x28e   :  { %13927 = vset.pattern.permute.xlu1 %v19779_v39 }
 0x28f   :  { %2508 = vperm.xlu1 %13927, %v1738_v55  }
 0x293   :  { %2513 = vperm.xlu1 %13927, %v1739_v21   ;;  %v1811_v21 = vmul.f32 %v1790_v59, %v15631_v57 }
 0x297   :  { %2576 = vperm.xlu1 %13927, %v1779_v20  }
 0x29b   :  { %2528 = vperm.xlu1 %13927, %v1742_v11  }
 0x29e   :  { %v1764_v15 = vpop.permute.xlu1 %1763  ;;  %v1796_v28 = vpop.permute.xlu0 %1795 }
 0x29f   :  { %13928 = vset.pattern.permute.xlu1 %v19775_v30  ;;  %v1782_v55 = vmul.f32 %v1764_v15, %v15585_v51 }
 0x2a0   :  { %2697 = vperm.xlu1 %13928, %v1810_v7   ;;  %v1814_v7 = vmul.f32 %v1796_v28, %v15660_v43  ;;  %v15937_v43 = vmul.f32 %v15565_v40, %v19771_v33 }
 0x2a2   :  { %v1766_v20 = vpop.permute.xlu1 %1765 }
 0x2a3   :  { %v1783_v41 = vmul.f32 %v1766_v20, %v15596_v14 }
 0x2a4   :  { %13929 = vset.pattern.permute.xlu1 %v19779_v39 }
 0x2a5   :  { %2533 = vperm.xlu1 %13929, %v1743_v56  }
 0x2a6   :  { %v1798_v11 = vpop.permute.xlu1 %1797 }
 0x2a7   :  { %v1815_v57 = vmul.f32 %v1798_v11, %v15689_v34 }
 0x2a9   :  { %2591 = vperm.xlu1 %13929, %v1782_v55  }
 0x2ad   :  { %13930 = vset.pattern.permute.xlu1 %v19775_v30 }
 0x2ae   :  { %2702 = vperm.xlu1 %13930, %v1811_v21  }
 0x2af   :  { %v15920_v36 = vpop.permute.xlu0 %2313 }
 0x2b0   :  { %19781 = vst [vmem:[#allocation35_spill] sm:$0xff] %v15920_v36 }
 0x2b2   :  { %13931 = vset.pattern.permute.xlu1 %v19779_v39 }
 0x2b3   :  { %v1524_v45 = vpop.permute.xlu0 %1523  ;;  %2596 = vperm.xlu1 %13931, %v1783_v41  }
 0x2b7   :  { %v1532_v37 = vpop.permute.xlu0 %1531  ;;  %13932 = vset.pattern.permute.xlu1 %v19775_v30  ;;  %v15926_v56 = vpop.permute.xlu1 %2227 }
 0x2b8   :  { %19782 = vst [vmem:[#allocation36_spill] sm:$0xff] %v15926_v56  ;;  %2717 = vperm.xlu1 %13932, %v1814_v7  }
 0x2bb   :  { %v1534_v15 = vpop.permute.xlu0 %1533 }
 0x2bc   :  { %2722 = vperm.xlu1 %13932, %v1815_v57   ;;  %v15929_v59 = vpop.permute.xlu1 %2293  ;;  %v15945_v57 = vmul.f32 %v15572_v42, %v15572_v42 }
 0x2bd   :  { %19783 = vst [vmem:[#allocation37_spill] sm:$0xff] %v15929_v59 }
 0x2be   :  { %v1549_v33 = vadd.f32 %v15903_v29, %v15945_v57 }
 0x2bf   :  { %v1720_v55 = vpop.permute.xlu0 %1719 }
 0x2c0   :  { %v1740_v21 = vmul.f32 %v1720_v55, %v15559_v2  ;;  %v15932_v20 = vpop.permute.xlu1 %2297  ;;  %13933 = vset.pattern.permute.xlu1 %v19779_v39 }
 0x2c1   :  { %19784 = vst [vmem:[#allocation38_spill] sm:$0xff] %v15932_v20 }
 0x2c2   :  { %2518 = vperm.xlu0 %13924, %v1740_v21   ;;  %v1597_v21 = vadd.f32 %v15873_v52, %v1549_v33 }
 0x2c3   :  { %v1728_v28 = vpop.permute.xlu0 %1727 }
 0x2c4   :  { %v1744_v41 = vmul.f32 %v1728_v28, %v15937_v43 }
 0x2c5   :  { %v15940_v34 = vpop.permute.xlu1 %2247 }
 0x2c6   :  { %19785 = vst [vmem:[#allocation39_spill] sm:$0xff] %v15940_v34  ;;  %2538 = vperm.xlu1 %13933, %v1744_v41  }
 0x2c7   :  { %v1792_v11 = vpop.permute.xlu0 %1791 }
 0x2c8   :  { %v1812_v7 = vmul.f32 %v1792_v11, %v15777_v49  ;;  %v15956_v49 = vmul.f32 %v15546_v16, %v15546_v16  ;;  %v1605_v11 = vmul.f32 0.33333334, %v1597_v21 }
 0x2ca   :  { %13934 = vset.pattern.permute.xlu1 %v19775_v30  ;;  %v15948_v55 = vpop.permute.xlu1 %2309  ;;  %v1546_v42 = vadd.f32 %v1524_v45, %v15956_v49 }
 0x2cb   :  { %19786 = vst [vmem:[#allocation40_spill] sm:$0xff] %v15948_v55  ;;  %v1768_v40 = vpop.permute.xlu0 %1767  ;;  %2707 = vperm.xlu1 %13934, %v1812_v7  }
 0x2cc   :  { %v1784_v28 = vmul.f32 %v1768_v40, %v15937_v43  ;;  %v15967_v40 = vmul.f32 %v15585_v51, %v15585_v51 }
 0x2ce   :  { %v1526_v41 = vpop.permute.xlu1 %1525  ;;  %v1550_v45 = vadd.f32 %v1532_v37, %v15967_v40 }
 0x2cf   :  { %13935 = vset.pattern.permute.xlu1 %v19779_v39 }
 0x2d0   :  { %2601 = vperm.xlu1 %13935, %v1784_v28   ;;  %v15960_v7 = vpop.permute.xlu0 %2232 }
 0x2d1   :  { %19787 = vst [vmem:[#allocation41_spill] sm:$0xff] %v15960_v7 }
 0x2d2   :  { %v1572_v36 = vpop.permute.xlu1 %1571 }
 0x2d3   :  { %v1594_v55 = vadd.f32 %v1572_v36, %v1546_v42  ;;  %v1497_v36 = vmul.f32 %v15538_v58, %v15538_v58  ;;  %v1503_v58 = vmul.f32 %v15596_v14, %v15596_v14 }
 0x2d4   :  { %1649 = vrot.lane.b32.xlu1 %v1605_v11, %s14192_s30  ;;  %v15969_v16 = vpop.permute.xlu0 %2237 }
 0x2d5   :  { %v15963_v52 = vmul.f32 0.33333334, %v1594_v55  ;;  %19788 = vst [vmem:[#allocation42_spill] sm:$0xff] %v15969_v16  ;;  %v15980_v55 = vmul.f32 %v15552_v18, %v15552_v18  ;;  %v1545_v37 = vadd.f32 %v15859_v6, %v1497_v36  ;;  %v1551_v59 = vadd.f32 %v1534_v15, %v1503_v58 }
 0x2d6   :  { %v1574_v29 = vpop.permute.xlu1 %1573 }
 0x2d7   :  { %v1593_v16 = vadd.f32 %v15895_v53, %v1545_v37 }
 0x2d8   :  { %1643 = vrot.lane.b32.xlu1 %v15963_v52, %s14192_s30 }
 0x2d9   :  { %v15974_v28 = vpop.permute.xlu0 %2301 }
 0x2da   :  { %v1580_v33 = vpop.permute.xlu1 %1579  ;;  %19789 = vst [vmem:[#allocation43_spill] sm:$0xff] %v15974_v28 }
 0x2db   :  { %v1598_v21 = vadd.f32 %v1580_v33, %v1550_v45  ;;  %v1547_v45 = vadd.f32 %v1526_v41, %v15980_v55 }
 0x2dd   :  { %v15982_v51 = vmul.f32 0.33333334, %v1598_v21  ;;  %v1595_v33 = vadd.f32 %v1574_v29, %v1547_v45  ;;  %v1601_v29 = vmul.f32 0.33333334, %v1593_v16  ;;  %v1629_v16 = vsub.f32 %v15945_v57, %v1605_v11 }
 0x2de   :  { %v15984_v42 = vpop.f32.mrb[2].mxu0  ;;  %v1582_v3 = vpop.permute.xlu1 %1581 }
 0x2df   :  { %v15986_v34 = vpop.f32.mrb[3].mxu0  ;;  %1651 = vrot.lane.b32.xlu1 %v15982_v51, %s14192_s30  ;;  %v15994_v18 = vpop.permute.xlu0 %2257  ;;  %v1603_v41 = vmul.f32 0.33333334, %v1595_v33  ;;  %v1599_v56 = vadd.f32 %v1582_v3, %v1551_v59  ;;  %v1625_v53 = vsub.f32 %v1497_v36, %v1601_v29  ;;  %v1500_v59 = vmul.f32 %v15559_v2, %v15559_v2 }
 0x2e0   :  { %19790 = vst [vmem:[#allocation44_spill] sm:$0xff] %v15994_v18 }
 0x2e1   :  { %v1607_v18 = vmul.f32 0.33333334, %v1599_v56 }
 0x2e2   :  { %v15996_v21 = vpop.f32.mrb[4].mxu0  ;;  %v1760_v28 = vpop.permute.xlu1 %1759 }
 0x2e3   :  { %v15998_v20 = vpop.f32.mrb[5].mxu0  ;;  %v1780_v6 = vmul.f32 %v1760_v28, %v15559_v2  ;;  %1675 = vrot.lane.b32.xlu1 %v15963_v52, %s14191_s8  ;;  %v1528_v45 = vpop.permute.xlu0 %1527  ;;  %v1504_v28 = vmul.f32 %v15937_v43, %v15937_v43 }
 0x2e4   :  { %v1548_v56 = vadd.f32 %v1528_v45, %v1500_v59 }
 0x2e5   :  { %2581 = vperm.xlu0 %13924, %v1780_v6  }
 0x2e6   :  { %v16004_v14 = vpop.permute.xlu1 %1799 }
 0x2e7   :  { %1677 = vrot.lane.b32.xlu1 %v1603_v41, %s14191_s8  ;;  %v1536_v15 = vpop.permute.xlu0 %1535 }
 0x2e8   :  { %v1552_v33 = vadd.f32 %v1536_v15, %v1504_v28 }
 0x2e9   :  { %1641 = vrot.lane.b32.xlu0 %v1601_v29, %s14192_s30 }
 0x2ea   :  { %v16008_v7 = vpop.permute.xlu1 %2252 }
 0x2eb   :  { %1685 = vrot.lane.b32.xlu1 %v1607_v18, %s14191_s8  ;;  %v1584_v37 = vpop.permute.xlu0 %1583 }
 0x2ed   :  { %1673 = vrot.lane.b32.xlu0 %v1601_v29, %s14191_s8  ;;  %v1600_v29 = vadd.f32 %v1584_v37, %v1552_v33 }
 0x2ef   :  { %2440 = vperm.xlu1 %13935, %v1625_v53   ;;  %v16012_v3 = vpop.permute.xlu1 %2317  ;;  %v1608_v2 = vmul.f32 0.33333334, %v1600_v29 }
 0x2f0   :  { %19791 = vst [vmem:[#allocation45_spill] sm:$0xff] %v16012_v3 }
 0x2f1   :  { %1681 = vrot.lane.b32.xlu0 %v1605_v11, %s14191_s8  ;;  %v1626_v11 = vsub.f32 %v15956_v49, %v15963_v52  ;;  %v1630_v49 = vsub.f32 %v15967_v40, %v15982_v51  ;;  %v1632_v33 = vsub.f32 %v1504_v28, %v1608_v2 }
 0x2f3   :  { %2460 = vperm.xlu1 %13935, %v1629_v16   ;;  %v1576_v36 = vpop.permute.xlu1 %1575 }
 0x2f4   :  { %v1596_v6 = vadd.f32 %v1576_v36, %v1548_v56  ;;  %v1627_v56 = vsub.f32 %v15980_v55, %v1603_v41  ;;  %v1631_v36 = vsub.f32 %v1503_v58, %v1607_v18 }
 0x2f5   :  { %1645 = vrot.lane.b32.xlu0 %v1603_v41, %s14192_s30 }
 0x2f6   :  { %v1604_v53 = vmul.f32 0.33333334, %v1596_v6 }
 0x2f7   :  { %v16021_v3 = vpop.permute.xlu1 %2262 }
 0x2f8   :  { %1647 = vrot.lane.b32.xlu1 %v1604_v53, %s14192_s30  ;;  %v1628_v15 = vsub.f32 %v1500_v59, %v1604_v53 }
 0x2f9   :  { %1653 = vrot.lane.b32.xlu0 %v1607_v18, %s14192_s30 }
 0x2fc   :  { %1655 = vrot.lane.b32.xlu1 %v1608_v2, %s14192_s30  ;;  %v16026_v57 = vpop.permute.xlu1 %2566  ;;  %s14202_s30 = smov 96  }
 0x2fd   :  { %1683 = vrot.lane.b32.xlu0 %v15982_v51, %s14191_s8 }
 0x300   :  { %2445 = vperm.xlu1 %13935, %v1626_v11   ;;  %v16032_v45 = vpop.permute.xlu1 %2523 }
 0x301   :  { %19792 = vst [vmem:[#allocation46_spill] sm:$0xff] %v16032_v45  ;;  %1679 = vrot.lane.b32.xlu0 %v1604_v53, %s14191_s8 }
 0x304   :  { %2455 = vperm.xlu1 %13935, %v1628_v15   ;;  %v16035_v16 = vpop.permute.xlu1 %2586 }
 0x305   :  { %19793 = vst [vmem:[#allocation47_spill] sm:$0xff] %v16035_v16  ;;  %1687 = vrot.lane.b32.xlu0 %v1608_v2, %s14191_s8  ;;  %s19806_s8 = sld [smem:[#allocation64_spill]] }
 0x308   :  { %13936 = vset.pattern.permute.xlu1 %v19775_v30 }
 0x309   :  { %2450 = vperm.xlu0 %13924, %v1627_v56   ;;  %v16040_v37 = vpop.permute.xlu1 %2692 }
 0x30a   :  { %19794 = vst [vmem:[#allocation48_spill] sm:$0xff] %v16040_v37 }
 0x30d   :  { %2465 = vperm.xlu0 %13924, %v1630_v49   ;;  %v16077_v49 = vpop.permute.xlu0 %2242 }
 0x30e   :  { %v16044_v52 = vpop.permute.xlu1 %2508 }
 0x311   :  { %2470 = vperm.xlu0 %13924, %v1631_v36  }
 0x312   :  { %v16046_v59 = vpop.permute.xlu1 %2513 }
 0x314   :  { %v16050_v55 = vpop.f32.mrb[6].mxu0 }
 0x315   :  { %2475 = vperm.xlu0 %13924, %v1632_v33   ;;  %v16052_v41 = vpop.f32.mrb[7].mxu0 }
 0x316   :  { %v16048_v6 = vpop.permute.xlu1 %2576 }
 0x319   :  { %13937 = vset.pattern.permute.xlu0 %v19775_v30 }
 0x31a   :  { %v16055_v29 = vpop.permute.xlu1 %2528 }
 0x31b   :  { %19795 = vst [vmem:[#allocation49_spill] sm:$0xff] %v16055_v29 }
 0x31f   :  { %v16057_v40 = vpop.permute.xlu1 %2697 }
 0x324   :  { %v16059_v51 = vpop.permute.xlu1 %2533 }
 0x325   :  { %19796 = vst [vmem:[#allocation50_spill] sm:$0xff] %v16059_v51  ;;  %v16080_v51 = vpop.permute.xlu0 %2503 }
 0x328   :  { %v16061_v58 = vpop.permute.xlu1 %2591 }
 0x329   :  { %19797 = vst [vmem:[#allocation51_spill] sm:$0xff] %v16061_v58  ;;  %v16082_v45 = vpop.permute.xlu0 %2571 }
 0x32d   :  { %v16063_v18 = vpop.permute.xlu1 %2702 }
 0x32e   :  { %19798 = vst [vmem:[#allocation52_spill] sm:$0xff] %v16063_v18 }
 0x332   :  { %v16065_v28 = vpop.permute.xlu1 %2596 }
 0x333   :  { %19799 = vst [vmem:[#allocation53_spill] sm:$0xff] %v16065_v28 }
 0x337   :  { %v16067_v53 = vpop.permute.xlu1 %2717 }
 0x338   :  { %19800 = vst [vmem:[#allocation54_spill] sm:$0xff] %v16067_v53 }
 0x33b   :  { %v16069_v2 = vpop.permute.xlu1 %2722 }
 0x33c   :  { %19801 = vst [vmem:[#allocation55_spill] sm:$0xff] %v16069_v2 }
 0x341   :  { %v16084_v53 = vpop.permute.xlu0 %2518 }
 0x345   :  { %v16071_v11 = vpop.permute.xlu1 %2538 }
 0x346   :  { %19802 = vst [vmem:[#allocation56_spill] sm:$0xff] %v16071_v11 }
 0x34a   :  { %v16073_v15 = vpop.permute.xlu1 %2707 }
 0x34b   :  { %19803 = vst [vmem:[#allocation57_spill] sm:$0xff] %v16073_v15 }
 0x34f   :  { %v16075_v56 = vpop.permute.xlu1 %2601 }
 0x350   :  { %19804 = vst [vmem:[#allocation58_spill] sm:$0xff] %v16075_v56 }
 0x353   :  { %v1650_v36 = vpop.permute.xlu1 %1649 }
 0x354   :  { %v1669_v33 = vsub.f32 %v15664_v17, %v1650_v36 }
 0x356   :  { %2649 = vperm.xlu0 %13937, %v1669_v33  }
 0x357   :  { %v1644_v16 = vpop.permute.xlu1 %1643 }
 0x358   :  { %v1666_v37 = vsub.f32 %v15747_v9, %v1644_v16 }
 0x35b   :  { %v1652_v28 = vpop.permute.xlu1 %1651 }
 0x35f   :  { %v1676_v2 = vpop.permute.xlu1 %1675 }
 0x363   :  { %v1678_v15 = vpop.permute.xlu1 %1677 }
 0x364   :  { %v16086_v11 = vpop.permute.xlu0 %2581 }
 0x365   :  { %19805 = vst [vmem:[#allocation59_spill] sm:$0xff] %v16086_v11 }
 0x367   :  { %v16089_v18 = vpop.permute.xlu1 %1685 }
 0x368   :  { %v1642_v58 = vpop.permute.xlu0 %1641 }
 0x369   :  { %v1665_v56 = vsub.f32 %v15609_v32, %v1642_v58 }
 0x36b   :  { %2629 = vperm.xlu1 %13936, %v1665_v56   ;;  %v1670_v56 = vsub.f32 %v15758_v1, %v1652_v28  ;;  %v12198_v1 = vld [vmem:[%s19806_s8] ss:$0 sm:$0xff] }
 0x36c   :  { %v1674_v17 = vpop.permute.xlu0 %1673  ;;  %v1923_v28 = vadd.f32 %v15897_v22, %v12198_v1  ;;  %v1933_v22 = vadd.f32 %v15984_v42, %v12198_v1  ;;  %v1938_v42 = vadd.f32 %v12198_v1, %v15998_v20 }
 0x36d   :  { %v1697_v36 = vsub.f32 %v15650_v4, %v1674_v17  ;;  %v1699_v17 = vsub.f32 %v15827_v5, %v1678_v15  ;;  %v1624_v15 = vsub.f32 0.0, %v15937_v43  ;;  %v1813_v43 = vmul.f32 %v15834_v48, %v15615_v35 }
 0x36e   :  { %v16093_v33 = vpop.permute.xlu1 %2440 }
 0x36f   :  { %13938 = vset.pattern.permute.xlu1 %v19777_v27 }
 0x370   :  { %v16095_v29 = vpop.permute.xlu0 %1681  ;;  %2755 = vperm.xlu1 %13938, %v1697_v36   ;;  %v1698_v36 = vsub.f32 %v15818_v26, %v1676_v2 }
 0x371   :  { %v1701_v48 = vsub.f32 %v15623_v47, %v16095_v29 }
 0x372   :  { %v16100_v58 = vpop.permute.xlu1 %2460 }
 0x374   :  { %v1646_v11 = vpop.permute.xlu0 %1645  ;;  %13939 = vset.pattern.permute.xlu1 %v19775_v30 }
 0x375   :  { %v1667_v32 = vsub.f32 %v15809_v13, %v1646_v11  ;;  %2634 = vperm.xlu1 %13939, %v1666_v37   ;;  %v16121_v11 = vmul.f32 %v1923_v28, %v15514_v10  ;;  %v19821_v10 = vld [vmem:[#allocation43_spill] sm:$0xff] }
 0x376   :  { %v1648_v9 = vpop.permute.xlu1 %1647 }
 0x377   :  { %2639 = vperm.xlu0 %13937, %v1667_v32   ;;  %v1668_v13 = vsub.f32 %v15863_v46, %v1648_v9  ;;  %v16162_v32 = vmul.f32 %v1938_v42, %v15695_v23  ;;  %v19818_v23 = vld [vmem:[#allocation38_spill] sm:$0xff] }
 0x378   :  { %v1654_v4 = vpop.permute.xlu0 %1653 }
 0x379   :  { %2654 = vperm.xlu1 %13939, %v1670_v56   ;;  %v1671_v5 = vsub.f32 %v15767_v31, %v1654_v4  ;;  %v1918_v31 = vadd.f32 %v12198_v1, %v15900_v54  ;;  %v1816_v56 = vmul.f32 %v16004_v14, %v15796_v0 }
 0x37a   :  { %v1656_v26 = vpop.permute.xlu1 %1655 }
 0x37b   :  { %13942 = vset.pattern.permute.xlu0 %v19777_v27  ;;  %v1672_v46 = vsub.f32 %v15870_v24, %v1656_v26  ;;  %v16130_v24 = vmul.f32 %v1918_v31, %v15502_v25 }
 0x37c   :  { %v16106_v16 = vpop.permute.xlu0 %1683  ;;  %2765 = vperm.xlu0 %13942, %v1699_v17   ;;  %v1703_v17 = vsub.f32 %v15848_v62, %v16089_v18  ;;  %v19807_v62 = vld [vmem:[#allocation6_spill] sm:$0xff] }
 0x37d   :  { %13940 = vset.pattern.permute.xlu1 %v19777_v27  ;;  %v1702_v35 = vsub.f32 %v15838_v12, %v16106_v16 }
 0x37e   :  { %2760 = vperm.xlu1 %13940, %v1698_v36  }
 0x37f   :  { %v16203_v18 = vpop.permute.xlu1 %2445 }
 0x380   :  { %13943 = vset.pattern.permute.xlu0 %v19775_v30  ;;  %v1680_v37 = vpop.permute.xlu0 %1679 }
 0x381   :  { %2644 = vperm.xlu0 %13943, %v1668_v13   ;;  %v1700_v2 = vsub.f32 %v15883_v44, %v1680_v37  ;;  %v1928_v44 = vadd.f32 %v12198_v1, %v15986_v34 }
 0x382   :  { %13941 = vset.pattern.permute.xlu1 %v19775_v30 }
 0x383   :  { %2659 = vperm.xlu1 %13941, %v1671_v5   ;;  %v16140_v54 = vmul.f32 %v1928_v44, %v15697_v60  ;;  %v16209_v12 = vpop.permute.xlu1 %2455 }
 0x384   :  { %v1688_v0 = vpop.permute.xlu0 %1687 }
 0x385   :  { %13944 = vset.pattern.permute.xlu0 %v19777_v27  ;;  %v1704_v14 = vsub.f32 %v15877_v8, %v1688_v0  ;;  %v2044_v8 = vcombine.high %v15232_v19, %v15232_v19 }
 0x386   :  { %2770 = vperm.xlu0 %13944, %v1700_v2  }
 0x387   :  { %2664 = vperm.xlu1 %13941, %v1672_v46   ;;  %v2058_v28 = vrot.slane %v2044_v8, %v19807_v62  ;;  %v19809_v46 = vld [vmem:[#allocation23_spill] sm:$0xff]  ;;  %v19812_v8 = vld [vmem:[#allocation36_spill] sm:$0xff] }
 0x38a   :  { %2408 = vrot.lane.b32.xlu0 %v16121_v11, %s14202_s30 }
 0x38b   :  { %2171 = vrot.lane.b32.xlu1 %v16121_v11, %s14199_s11  ;;  %13945 = vset.pattern.permute.xlu0 %v19775_v30  ;;  %v16143_v30 = vmul.f32 %v1933_v22, %v15676_v38 }
 0x38c   :  { %13946 = vset.pattern.permute.xlu1 %v19779_v39  ;;  %v1943_v39 = vadd.f32 %v15996_v21, %v12198_v1  ;;  %v1953_v21 = vadd.f32 %v16050_v55, %v12198_v1  ;;  %v1948_v55 = vadd.f32 %v12198_v1, %v16052_v41  ;;  %v16199_v41 = vpop.permute.xlu0 %2450  ;;  %v19808_v1 = vld [vmem:[#allocation7_spill] sm:$0xff] }
 0x38e   :  { %2169 = vrot.lane.b32.xlu0 %v16130_v24, %s14199_s11  ;;  %v16155_v34 = vmul.f32 %v1943_v39, %v15656_v61  ;;  %v16171_v20 = vmul.f32 %v1953_v21, %v15781_v63  ;;  %v16185_v4 = vmul.f32 %v1948_v55, %v15721_v50  ;;  %v19810_v39 = vld [vmem:[#allocation24_spill] sm:$0xff] }
 0x38f   :  { %2406 = vrot.lane.b32.xlu1 %v16130_v24, %s14202_s30 }
 0x390   :  { %v16205_v9 = vpop.permute.xlu0 %2465 }
 0x392   :  { %2410 = vrot.lane.b32.xlu0 %v16140_v54, %s14202_s30 }
 0x393   :  { %2412 = vrot.lane.b32.xlu1 %v16143_v30, %s14202_s30 }
 0x394   :  { %v16213_v13 = vpop.permute.xlu0 %2470 }
 0x396   :  { %2173 = vrot.lane.b32.xlu0 %v16140_v54, %s14199_s11 }
 0x397   :  { %2175 = vrot.lane.b32.xlu1 %v16143_v30, %s14199_s11 }
 0x398   :  { %v16230_v21 = vpop.permute.xlu0 %2475 }
 0x39a   :  { %2416 = vrot.lane.b32.xlu0 %v16155_v34, %s14202_s30 }
 0x39b   :  { %2380 = vperm.xlu1 %13946, %v1624_v15  }
 0x39e   :  { %2179 = vrot.lane.b32.xlu0 %v16155_v34, %s14199_s11 }
 0x39f   :  { %2177 = vrot.lane.b32.xlu1 %v16162_v32, %s14199_s11 }
 0x3a0   :  { %13947 = vset.pattern.permute.xlu1 %v19777_v27 }
 0x3a2   :  { %2414 = vrot.lane.b32.xlu0 %v16162_v32, %s14202_s30 }
 0x3a3   :  { %2420 = vrot.lane.b32.xlu1 %v16171_v20, %s14202_s30 }
 0x3a6   :  { %2712 = vperm.xlu0 %13945, %v1813_v43   ;;  %v2074_v43 = vrot.slane %v2058_v28, %v19807_v62 }
 0x3a7   :  { %2183 = vrot.lane.b32.xlu1 %v16171_v20, %s14199_s11 }
 0x3aa   :  { %2727 = vperm.xlu0 %13945, %v1816_v56  }
 0x3ab   :  { %2418 = vrot.lane.b32.xlu1 %v16185_v4, %s14202_s30 }
 0x3ae   :  { %13948 = vset.pattern.permute.xlu0 %v19777_v27  ;;  %v2051_v27 = vrot.slane %v15232_v19, %v19807_v62 }
 0x3af   :  { %2785 = vperm.xlu0 %13948, %v1703_v17   ;;  %2181 = vrot.lane.b32.xlu1 %v16185_v4, %s14199_s11 }
 0x3b0   :  { %v2059_v36 = vcombine.high %v2051_v27, %v2051_v27  ;;  %v2067_v47 = vrot.slane %v2051_v27, %v19807_v62 }
 0x3b2   :  { %v2081_v29 = vrot.slane %v2059_v36, %v19807_v62  ;;  %v2089_v16 = vcombine.high %v2067_v47, %v2067_v47  ;;  %v2096_v5 = vrot.slane %v2067_v47, %v19808_v1  ;;  %v2112_v36 = vrot.slane %v2074_v43, %v19808_v1  ;;  %v19811_v47 = vld [vmem:[#allocation41_spill] sm:$0xff] }
 0x3b3   :  { %2775 = vperm.xlu1 %13947, %v1701_v48  }
 0x3b4   :  { %v2100_v37 = vrot.slane %v2081_v29, %v19808_v1  ;;  %v2104_v2 = vrot.slane %v2089_v16, %v19808_v1  ;;  %v2136_v44 = vadd.f32 %v19809_v46, %v2096_v5  ;;  %v2091_v22 = vcombine.high %v2081_v29, %v2081_v29 }
 0x3b5   :  { %v2090_v5 = vcombine.high %v2074_v43, %v2074_v43 }
 0x3b6   :  { %v2137_v31 = vadd.f32 %v19809_v46, %v2100_v37  ;;  %v16227_v42 = vadd.f32 %v19810_v39, %v2136_v44  ;;  %v2138_v15 = vadd.f32 %v19809_v46, %v2104_v2 }
 0x3b7   :  { %2780 = vperm.xlu1 %13947, %v1702_v35   ;;  %v2060_v35 = vcombine.high %v2058_v28, %v2058_v28  ;;  %v19813_v28 = vld [vmem:[#allocation37_spill] sm:$0xff] }
 0x3b8   :  { %v16224_v19 = vadd.f32 %v19810_v39, %v2137_v31  ;;  %v2217_v17 = vmul.f32 %v16227_v42, %v16130_v24  ;;  %v16240_v48 = vadd.f32 %v19810_v39, %v2138_v15  ;;  %v19814_v31 = vld [vmem:[#allocation42_spill] sm:$0xff] }
 0x3b9   :  { %v2088_v24 = vrot.slane %v2060_v35, %v19807_v62  ;;  %v19817_v35 = vld [vmem:[#allocation25_spill] sm:$0xff] }
 0x3ba   :  { %v2218_v56 = vmul.f32 %v16224_v19, %v16121_v11  ;;  %v2219_v0 = vmul.f32 %v16240_v48, %v16140_v54  ;;  %v2265_v11 = vmul.f32 %v19812_v8, %v2217_v17  ;;  %v2140_v54 = vadd.f32 %v19809_v46, %v2112_v36  ;;  %v19822_v62 = vld [vmem:[#allocation13_spill] sm:$0xff] }
 0x3bb   :  { %2790 = vperm.xlu1 %13947, %v1704_v14   ;;  %v2108_v14 = vrot.slane %v2091_v22, %v19808_v1  ;;  %v2383_v43 = vmul.f32 %v19817_v35, %v2217_v17  ;;  %v2092_v38 = vcombine.high %v2088_v24, %v2088_v24 }
 0x3bc   :  { %v2266_v29 = vmul.f32 %v19811_v47, %v2218_v56  ;;  %v2321_v2 = vmul.f32 %v19813_v28, %v2218_v56  ;;  %v2267_v44 = vmul.f32 %v19814_v31, %v2219_v0  ;;  %v19815_v47 = vld [vmem:[#allocation26_spill] sm:$0xff]  ;;  %v2273_v61 = vsel %vm2201_vm12, %v2265_v11, 0.0 }
 0x3bd   :  { %v2139_v16 = vadd.f32 %v19809_v46, %v2108_v14  ;;  %v2384_v8 = vmul.f32 %v19815_v47, %v2218_v56  ;;  %v19816_v14 = vld [vmem:[#allocation32_spill] sm:$0xff]  ;;  %v16270_v28 = vadd.f32 %v19810_v39, %v2140_v54  ;;  %v2322_v56 = vmul.f32 %v19818_v23, %v2219_v0 }
 0x3be   :  { %v2320_v63 = vmul.f32 %v19816_v14, %v2217_v17  ;;  %v2274_v50 = vsel %vm2201_vm12, %v2266_v29, 0.0  ;;  %v19819_v47 = vld [vmem:[#allocation28_spill] sm:$0xff]  ;;  %v2329_v17 = vsel %vm2201_vm12, %v2321_v2, 0.0  ;;  %v2276_v29 = vsel %vm2201_vm12, %v2267_v44, 0.0 }
 0x3bf   :  { %v16258_v22 = vadd.f32 %v19810_v39, %v2139_v16  ;;  %v2120_v16 = vrot.slane %v2090_v5, %v19808_v1  ;;  %v2385_v14 = vmul.f32 %v19819_v47, %v2219_v0  ;;  %v2116_v11 = vrot.slane %v2088_v24, %v19808_v1 }
 0x3c0   :  { %v2392_v54 = vsel %vm2201_vm12, %v2384_v8, 0.0  ;;  %v2275_v35 = vadd.f32 %v2274_v50, %v2273_v61  ;;  %v2328_v5 = vsel %vm2201_vm12, %v2320_v63, 0.0  ;;  %v2391_v60 = vsel %vm2201_vm12, %v2383_v43, 0.0  ;;  %v19820_v63 = vld [vmem:[#allocation39_spill] sm:$0xff] }
 0x3c1   :  { %v2220_v36 = vmul.f32 %v16258_v22, %v16143_v30  ;;  %v2221_v30 = vmul.f32 %v16270_v28, %v16162_v32  ;;  %v2141_v2 = vadd.f32 %v19809_v46, %v2116_v11  ;;  %v2331_v47 = vsel %vm2201_vm12, %v2322_v56, 0.0 }
 0x3c2   :  { %v2277_v44 = vadd.f32 %v2276_v29, %v2275_v35  ;;  %v2142_v25 = vadd.f32 %v19809_v46, %v2120_v16  ;;  %v2394_v32 = vsel %vm2201_vm12, %v2385_v14, 0.0  ;;  %v2330_v61 = vadd.f32 %v2329_v17, %v2328_v5 }
 0x3c3   :  { %v2268_v0 = vmul.f32 %v16077_v49, %v2220_v36  ;;  %v16295_v50 = vadd.f32 %v19810_v39, %v2141_v2  ;;  %v2269_v24 = vmul.f32 %v19820_v63, %v2221_v30  ;;  %v2393_v43 = vadd.f32 %v2392_v54, %v2391_v60  ;;  %v19823_v60 = vld [vmem:[#allocation34_spill] sm:$0xff] }
 0x3c4   :  { %v2323_v49 = vmul.f32 %v19821_v10, %v2220_v36  ;;  %v2386_v11 = vmul.f32 %v19822_v62, %v2220_v36  ;;  %v16301_v29 = vadd.f32 %v19810_v39, %v2142_v25  ;;  %v2332_v56 = vadd.f32 %v2331_v47, %v2330_v61  ;;  %v19824_v10 = vld [vmem:[#allocation30_spill] sm:$0xff] }
 0x3c5   :  { %v2278_v16 = vsel %vm2201_vm12, %v2268_v0, 0.0  ;;  %v2222_v14 = vmul.f32 %v16295_v50, %v16155_v34  ;;  %v2395_v17 = vadd.f32 %v2394_v32, %v2393_v43  ;;  %v2124_v35 = vrot.slane %v2092_v38, %v19808_v1 }
 0x3c6   :  { %v2279_v2 = vadd.f32 %v2278_v16, %v2277_v44  ;;  %v2324_v54 = vmul.f32 %v19823_v60, %v2221_v30  ;;  %v2387_v63 = vmul.f32 %v19824_v10, %v2221_v30  ;;  %v2223_v25 = vmul.f32 %v16301_v29, %v16185_v4  ;;  %v19825_v16 = vld [vmem:[#allocation44_spill] sm:$0xff]  ;;  %v19828_v10 = vld [vmem:[#allocation35_spill] sm:$0xff] }
 0x3c7   :  { %v2280_v62 = vsel %vm2201_vm12, %v2269_v24, 0.0  ;;  %v2333_v0 = vsel %vm2201_vm12, %v2323_v49, 0.0  ;;  %v2143_v34 = vadd.f32 %v19809_v46, %v2124_v35  ;;  %v2396_v38 = vsel %vm2201_vm12, %v2386_v11, 0.0  ;;  %v19826_v46 = vld [vmem:[#allocation40_spill] sm:$0xff] }
 0x3c8   :  { %v2334_v47 = vadd.f32 %v2333_v0, %v2332_v56  ;;  %v2270_v44 = vmul.f32 %v16008_v7, %v2222_v14  ;;  %v2397_v32 = vadd.f32 %v2396_v38, %v2395_v17  ;;  %v2281_v30 = vadd.f32 %v2280_v62, %v2279_v2  ;;  %v19827_v56 = vld [vmem:[#allocation31_spill] sm:$0xff]  ;;  %v19829_v62 = vld [vmem:[#allocation33_spill] sm:$0xff] }
 0x3c9   :  { %v16321_v61 = vadd.f32 %v19810_v39, %v2143_v34  ;;  %v2335_v4 = vsel %vm2201_vm12, %v2324_v54, 0.0  ;;  %v2398_v24 = vsel %vm2201_vm12, %v2387_v63, 0.0  ;;  %v2271_v49 = vmul.f32 %v19825_v16, %v2223_v25 }
 0x3ca   :  { %v2325_v11 = vmul.f32 %v19826_v46, %v2222_v14  ;;  %v2388_v39 = vmul.f32 %v19827_v56, %v2222_v14  ;;  %v2282_v17 = vsel %vm2201_vm12, %v2270_v44, 0.0  ;;  %v2336_v35 = vadd.f32 %v2335_v4, %v2334_v47  ;;  %v19830_v47 = vld [vmem:[#allocation45_spill] sm:$0xff] }
 0x3cb   :  { %v16333_v7 = vmul.f32 %v16321_v61, %v16171_v20  ;;  %v2399_v2 = vadd.f32 %v2398_v24, %v2397_v32  ;;  %v2283_v54 = vadd.f32 %v2282_v17, %v2281_v30  ;;  %v2326_v63 = vmul.f32 %v19828_v10, %v2223_v25 }
 0x3cc   :  { %v2389_v0 = vmul.f32 %v19829_v62, %v2223_v25  ;;  %v2284_v38 = vsel %vm2201_vm12, %v2271_v49, 0.0  ;;  %v2337_v20 = vsel %vm2201_vm12, %v2325_v11, 0.0  ;;  %v2400_v44 = vsel %vm2201_vm12, %v2388_v39, 0.0 }
 0x3cd   :  { %v2272_v14 = vmul.f32 %v16021_v3, %v16333_v7  ;;  %v2327_v32 = vmul.f32 %v19830_v47, %v16333_v7  ;;  %v2338_v30 = vadd.f32 %v2337_v20, %v2336_v35  ;;  %v2401_v4 = vadd.f32 %v2400_v44, %v2399_v2 }
 0x3ce   :  { %v2285_v24 = vadd.f32 %v2284_v38, %v2283_v54  ;;  %v2339_v25 = vsel %vm2201_vm12, %v2326_v63, 0.0  ;;  %v2402_v49 = vsel %vm2201_vm12, %v2389_v0, 0.0 }
 0x3cf   :  { %v2286_v39 = vsel %vm2201_vm12, %v2272_v14, 0.0  ;;  %v16356_v35 = vadd.f32 %v2339_v25, %v2338_v30  ;;  %v16359_v2 = vsel %vm2201_vm12, %v2327_v32, 0.0  ;;  %v16361_v54 = vadd.f32 %v2402_v49, %v2401_v4 }
 0x3d5   :  { %v16245_v27 = vpop.permute.xlu0 %2649 }
 0x3ea   :  { %v16217_v26 = vpop.permute.xlu1 %2629 }
 0x3ef   :  { %v16233_v55 = vpop.permute.xlu1 %2755 }
 0x3f4   :  { %v16252_v37 = vpop.permute.xlu1 %2634 }
 0x3f6   :  { %v16260_v15 = vpop.permute.xlu0 %2639 }
 0x3f8   :  { %v16273_v31 = vpop.permute.xlu1 %2654 }
 0x3fb   :  { %v16285_v23 = vpop.permute.xlu0 %2765 }
 0x3fd   :  { %v16292_v8 = vpop.permute.xlu1 %2760 }
 0x400   :  { %v16307_v5 = vpop.permute.xlu0 %2644 }
 0x402   :  { %v16314_v36 = vpop.permute.xlu1 %2659 }
 0x405   :  { %v16325_v43 = vpop.permute.xlu0 %2770 }
 0x406   :  { %v16328_v60 = vpop.permute.xlu1 %2664 }
 0x409   :  { %v2409_v34 = vpop.permute.xlu0 %2408 }
 0x40a   :  { %v2431_v16 = vmul.f32 %v2409_v34, %v16224_v19  ;;  %v2172_v46 = vpop.permute.xlu1 %2171 }
 0x40b   :  { %v2194_v63 = vmul.f32 %v2172_v46, %v16224_v19 }
 0x40c   :  { %v2479_v56 = vmul.f32 %v16203_v18, %v2431_v16  ;;  %v2542_v11 = vmul.f32 %v16044_v52, %v2431_v16  ;;  %v2605_v10 = vmul.f32 %v16082_v45, %v2431_v16  ;;  %v2668_v18 = vmul.f32 %v16252_v37, %v2431_v16 }
 0x40d   :  { %v2170_v17 = vpop.permute.xlu0 %2169  ;;  %v16365_v52 = vadd.f32 %v2286_v39, %v2285_v24  ;;  %v2731_v45 = vmul.f32 %v16057_v40, %v2431_v16 }
 0x40e   :  { %v2407_v3 = vpop.permute.xlu1 %2406  ;;  %v2487_v0 = vsel %vm2201_vm12, %v2479_v56, 0.0  ;;  %v2550_v37 = vsel %vm2201_vm12, %v2542_v11, 0.0  ;;  %v2613_v19 = vsel %vm2201_vm12, %v2605_v10, 0.0  ;;  %v2676_v32 = vsel %vm2201_vm12, %v2668_v18, 0.0 }
 0x40f   :  { %v16354_v62 = vmul.f32 %v2407_v3, %v16227_v42  ;;  %v2193_v30 = vmul.f32 %v2170_v17, %v16227_v42 }
 0x411   :  { %v2478_v34 = vmul.f32 %v16093_v33, %v16354_v62  ;;  %v2541_v38 = vmul.f32 %v16080_v51, %v16354_v62  ;;  %v2604_v20 = vmul.f32 %v16026_v57, %v16354_v62  ;;  %v2411_v14 = vpop.permute.xlu0 %2410  ;;  %v2667_v46 = vmul.f32 %v16217_v26, %v16354_v62 }
 0x412   :  { %v16380_v40 = vmul.f32 %v2411_v14, %v16240_v48  ;;  %v2413_v44 = vpop.permute.xlu1 %2412 }
 0x413   :  { %v2486_v33 = vsel %vm2201_vm12, %v2478_v34, 0.0  ;;  %v2549_v47 = vsel %vm2201_vm12, %v2541_v38, 0.0  ;;  %v2612_v51 = vsel %vm2201_vm12, %v2604_v20, 0.0  ;;  %v16386_v57 = vmul.f32 %v2413_v44, %v16258_v22 }
 0x414   :  { %v2488_v4 = vadd.f32 %v2487_v0, %v2486_v33  ;;  %v2551_v24 = vadd.f32 %v2550_v37, %v2549_v47  ;;  %v2675_v26 = vsel %vm2201_vm12, %v2667_v46, 0.0  ;;  %v2480_v25 = vmul.f32 %v16199_v41, %v16380_v40 }
 0x415   :  { %v2543_v49 = vmul.f32 %v16046_v59, %v16380_v40  ;;  %v2606_v56 = vmul.f32 %v16048_v6, %v16380_v40  ;;  %v2174_v11 = vpop.permute.xlu0 %2173  ;;  %v2614_v10 = vadd.f32 %v2613_v19, %v2612_v51  ;;  %v2669_v3 = vmul.f32 %v16260_v15, %v16380_v40  ;;  %v19831_v6 = vld [vmem:[#allocation59_spill] sm:$0xff] }
 0x416   :  { %v2481_v42 = vmul.f32 %v16209_v12, %v16386_v57  ;;  %v2544_v17 = vmul.f32 %v16084_v53, %v16386_v57  ;;  %v2176_v39 = vpop.permute.xlu1 %2175  ;;  %v2489_v41 = vsel %vm2201_vm12, %v2480_v25, 0.0  ;;  %v2607_v0 = vmul.f32 %v19831_v6, %v16386_v57 }
 0x417   :  { %v2552_v18 = vsel %vm2201_vm12, %v2543_v49, 0.0  ;;  %v2615_v59 = vsel %vm2201_vm12, %v2606_v56, 0.0  ;;  %v2203_v34 = vsel %vm2201_vm12, %v2194_v63, 0.0  ;;  %v2202_v15 = vsel %vm2201_vm12, %v2193_v30, 0.0  ;;  %v19832_v63 = vld [vmem:[#allocation48_spill] sm:$0xff] }
 0x418   :  { %v2677_v38 = vadd.f32 %v2676_v32, %v2675_v26  ;;  %v2794_v12 = vmul.f32 %v16292_v8, %v2431_v16  ;;  %v2490_v20 = vadd.f32 %v2489_v41, %v2488_v4  ;;  %v2553_v14 = vadd.f32 %v2552_v18, %v2551_v24  ;;  %v19835_v18 = vld [vmem:[#allocation51_spill] sm:$0xff] }
 0x419   :  { %v2678_v53 = vsel %vm2201_vm12, %v2669_v3, 0.0  ;;  %v2670_v37 = vmul.f32 %v16307_v5, %v16386_v57  ;;  %v2417_v19 = vpop.permute.xlu0 %2416  ;;  %v2616_v46 = vadd.f32 %v2615_v59, %v2614_v10  ;;  %v2491_v44 = vsel %vm2201_vm12, %v2481_v42, 0.0 }
 0x41a   :  { %v2554_v33 = vsel %vm2201_vm12, %v2544_v17, 0.0  ;;  %v2381_v47 = vpop.permute.xlu1 %2380  ;;  %v2730_v51 = vmul.f32 %v19832_v63, %v16354_v62  ;;  %v2617_v32 = vsel %vm2201_vm12, %v2607_v0, 0.0  ;;  %v2195_v8 = vmul.f32 %v2174_v11, %v16240_v48  ;;  %v19833_v11 = vld [vmem:[#allocation49_spill] sm:$0xff] }
 0x41b   :  { %v16421_v16 = vmul.f32 %v2417_v19, %v16295_v50  ;;  %v2739_v30 = vsel %vm2201_vm12, %v2731_v45, 0.0  ;;  %v2204_v5 = vadd.f32 %v2203_v34, %v2202_v15  ;;  %v2679_v4 = vadd.f32 %v2678_v53, %v2677_v38  ;;  %v19834_v45 = vld [vmem:[#allocation52_spill] sm:$0xff] }
 0x41c   :  { %v2196_v24 = vmul.f32 %v2176_v39, %v16258_v22  ;;  %v16426_v26 = vsel %vm2201_vm12, %v2794_v12, 0.0  ;;  %v2492_v25 = vadd.f32 %v2491_v44, %v2490_v20  ;;  %v2555_v49 = vadd.f32 %v2554_v33, %v2553_v14  ;;  %v19836_v12 = vld [vmem:[#allocation57_spill] sm:$0xff] }
 0x41d   :  { %v2680_v56 = vsel %vm2201_vm12, %v2670_v37, 0.0  ;;  %v2205_v10 = vsel %vm2201_vm12, %v2195_v8, 0.0  ;;  %v2180_v3 = vpop.permute.xlu0 %2179  ;;  %v2618_v48 = vadd.f32 %v2617_v32, %v2616_v46  ;;  %v2546_v42 = vmul.f32 %v19833_v11, %v16421_v16 }
 0x41e   :  { %v2178_v17 = vpop.permute.xlu1 %2177  ;;  %v2732_v41 = vmul.f32 %v19834_v45, %v16380_v40  ;;  %v2738_v22 = vsel %vm2201_vm12, %v2730_v51, 0.0  ;;  %v2206_v39 = vadd.f32 %v2205_v10, %v2204_v5  ;;  %v2609_v59 = vmul.f32 %v19835_v18, %v16421_v16  ;;  %v19840_v45 = vld [vmem:[#allocation56_spill] sm:$0xff] }
 0x41f   :  { %v2198_v6 = vmul.f32 %v2180_v3, %v16295_v50  ;;  %v2197_v0 = vmul.f32 %v2178_v17, %v16270_v28  ;;  %v2681_v34 = vadd.f32 %v2680_v56, %v2679_v4  ;;  %v2207_v15 = vsel %vm2201_vm12, %v2196_v24, 0.0  ;;  %v19837_v50 = vld [vmem:[#allocation54_spill] sm:$0xff] }
 0x420   :  { %v16441_v38 = vmul.f32 %v2381_v47, %v16333_v7  ;;  %v2733_v20 = vmul.f32 %v19836_v12, %v16386_v57  ;;  %v2483_v14 = vmul.f32 %v16205_v9, %v16421_v16  ;;  %v2672_v53 = vmul.f32 %v16273_v31, %v16421_v16 }
 0x421   :  { %v2415_v37 = vpop.permute.xlu0 %2414  ;;  %v2735_v19 = vmul.f32 %v19837_v50, %v16421_v16  ;;  %v2740_v46 = vadd.f32 %v2739_v30, %v2738_v22  ;;  %v2558_v44 = vsel %vm2201_vm12, %v2546_v42, 0.0  ;;  %v2209_v33 = vsel %vm2201_vm12, %v2197_v0, 0.0  ;;  %v19838_v30 = vld [vmem:[#allocation46_spill] sm:$0xff] }
 0x422   :  { %v16454_v7 = vmul.f32 %v2415_v37, %v16270_v28  ;;  %v2421_v47 = vpop.permute.xlu1 %2420  ;;  %v2741_v63 = vsel %vm2201_vm12, %v2732_v41, 0.0  ;;  %v2208_v51 = vadd.f32 %v2207_v15, %v2206_v39  ;;  %v2621_v9 = vsel %vm2201_vm12, %v2609_v59, 0.0  ;;  %v19839_v28 = vld [vmem:[#allocation47_spill] sm:$0xff]  ;;  %v19841_v15 = vld [vmem:[#allocation58_spill] sm:$0xff] }
 0x423   :  { %v2211_v31 = vsel %vm2201_vm12, %v2198_v6, 0.0  ;;  %v16460_v32 = vmul.f32 %v2421_v47, %v16321_v61  ;;  %v2747_v10 = vsel %vm2201_vm12, %v2735_v19, 0.0  ;;  %v2742_v11 = vadd.f32 %v2741_v63, %v2740_v46 }
 0x424   :  { %v2482_v8 = vmul.f32 %v16100_v58, %v16454_v7  ;;  %v2545_v5 = vmul.f32 %v19838_v30, %v16454_v7  ;;  %v2608_v4 = vmul.f32 %v19839_v28, %v16454_v7  ;;  %v2671_v24 = vmul.f32 %v16245_v27, %v16454_v7 }
 0x425   :  { %v2210_v56 = vadd.f32 %v2209_v33, %v2208_v51  ;;  %v2713_v3 = vpop.permute.xlu0 %2712  ;;  %v2743_v42 = vsel %vm2201_vm12, %v2733_v20, 0.0  ;;  %v2548_v41 = vmul.f32 %v19840_v45, %v16460_v32  ;;  %v2495_v39 = vsel %vm2201_vm12, %v2483_v14, 0.0 }
 0x426   :  { %v2556_v17 = vsel %vm2201_vm12, %v2545_v5, 0.0  ;;  %v2619_v58 = vsel %vm2201_vm12, %v2608_v4, 0.0  ;;  %v2184_v22 = vpop.permute.xlu1 %2183  ;;  %v2493_v18 = vsel %vm2201_vm12, %v2482_v8, 0.0  ;;  %v2734_v59 = vmul.f32 %v2713_v3, %v16454_v7  ;;  %v19843_v4 = vld [vmem:[#allocation53_spill] sm:$0xff] }
 0x427   :  { %v2557_v27 = vadd.f32 %v2556_v17, %v2555_v49  ;;  %v2684_v6 = vsel %vm2201_vm12, %v2672_v53, 0.0  ;;  %v2682_v0 = vsel %vm2201_vm12, %v2671_v24, 0.0  ;;  %v2611_v12 = vmul.f32 %v19841_v15, %v16460_v32 }
 0x428   :  { %v2200_v20 = vmul.f32 %v2184_v22, %v16321_v61  ;;  %v2793_v37 = vmul.f32 %v16233_v55, %v16354_v62  ;;  %v2620_v50 = vadd.f32 %v2619_v58, %v2618_v48  ;;  %v2744_v19 = vadd.f32 %v2743_v42, %v2742_v11  ;;  %v19844_v11 = vld [vmem:[#allocation55_spill] sm:$0xff] }
 0x429   :  { %v2745_v14 = vsel %vm2201_vm12, %v2734_v59, 0.0  ;;  %v2728_v46 = vpop.permute.xlu0 %2727  ;;  %v2212_v49 = vadd.f32 %v2211_v31, %v2210_v56  ;;  %v2562_v33 = vsel %vm2201_vm12, %v2548_v41, 0.0  ;;  %v2485_v53 = vmul.f32 %v16230_v21, %v16460_v32 }
 0x42a   :  { %v2419_v47 = vpop.permute.xlu1 %2418  ;;  %v2494_v63 = vadd.f32 %v2493_v18, %v2492_v25  ;;  %v2674_v51 = vmul.f32 %v16328_v60, %v16460_v32  ;;  %v2559_v61 = vadd.f32 %v2558_v44, %v2557_v27  ;;  %v2683_v55 = vadd.f32 %v2682_v0, %v2681_v34  ;;  %v19842_v25 = vld [vmem:[#allocation50_spill] sm:$0xff] }
 0x42b   :  { %v2436_v8 = vmul.f32 %v2419_v47, %v16301_v29  ;;  %v2795_v62 = vmul.f32 %v16285_v23, %v16380_v40  ;;  %v2746_v48 = vadd.f32 %v2745_v14, %v2744_v19  ;;  %v2215_v31 = vsel %vm2201_vm12, %v2200_v20, 0.0 }
 0x42c   :  { %v2737_v30 = vmul.f32 %v2728_v46, %v16460_v32  ;;  %v2801_v5 = vsel %vm2201_vm12, %v2793_v37, 0.0  ;;  %v2496_v24 = vadd.f32 %v2495_v39, %v2494_v63  ;;  %v2499_v34 = vsel %vm2201_vm12, %v2485_v53, 0.0 }
 0x42d   :  { %v2484_v21 = vmul.f32 %v16213_v13, %v2436_v8  ;;  %v2547_v28 = vmul.f32 %v19842_v25, %v2436_v8  ;;  %v2610_v60 = vmul.f32 %v19843_v4, %v2436_v8  ;;  %v2673_v44 = vmul.f32 %v16314_v36, %v2436_v8 }
 0x42e   :  { %v2182_v56 = vpop.permute.xlu1 %2181  ;;  %v2796_v23 = vmul.f32 %v16325_v43, %v16386_v57  ;;  %v2803_v40 = vadd.f32 %v16426_v26, %v2801_v5  ;;  %v2736_v42 = vmul.f32 %v19844_v11, %v2436_v8  ;;  %v2804_v17 = vsel %vm2201_vm12, %v2795_v62, 0.0  ;;  %v2786_v15 = vpop.permute.xlu0 %2785 }
 0x42f   :  { %v2560_v3 = vsel %vm2201_vm12, %v2547_v28, 0.0  ;;  %v2497_v13 = vsel %vm2201_vm12, %v2484_v21, 0.0  ;;  %v2686_v36 = vsel %vm2201_vm12, %v2673_v44, 0.0  ;;  %v2199_v41 = vmul.f32 %v2182_v56, %v16301_v29 }
 0x430   :  { %v2561_v58 = vadd.f32 %v2560_v3, %v2559_v61  ;;  %v2498_v45 = vadd.f32 %v2497_v13, %v2496_v24  ;;  %v2748_v22 = vadd.f32 %v2747_v10, %v2746_v48  ;;  %v2685_v39 = vadd.f32 %v2684_v6, %v2683_v55 }
 0x431   :  { %v2622_v18 = vadd.f32 %v2621_v9, %v2620_v50  ;;  %v2623_v43 = vsel %vm2201_vm12, %v2610_v60, 0.0  ;;  %v2213_v26 = vsel %vm2201_vm12, %v2199_v41, 0.0  ;;  %v2805_v27 = vadd.f32 %v2804_v17, %v2803_v40 }
 0x432   :  { %v16513_v57 = vadd.f32 %v2562_v33, %v2561_v58  ;;  %v2806_v59 = vsel %vm2201_vm12, %v2796_v23, 0.0  ;;  %v2776_v0 = vpop.permute.xlu1 %2775  ;;  %v2687_v20 = vadd.f32 %v2686_v36, %v2685_v39  ;;  %v2214_v37 = vadd.f32 %v2213_v26, %v2212_v49 }
 0x433   :  { %v2797_v19 = vmul.f32 %v2776_v0, %v16454_v7  ;;  %v2624_v14 = vadd.f32 %v2623_v43, %v2622_v18  ;;  %v16518_v29 = vadd.f32 %v2499_v34, %v2498_v45  ;;  %v2625_v10 = vsel %vm2201_vm12, %v2611_v12, 0.0  ;;  %v2884_v0 = vld [vmem:[%s19845_s0] sm:$0xff] }
 0x434   :  { %v2817_v9 = vadd.f32 %v16513_v57, %v16365_v52  ;;  %v2749_v6 = vsel %vm2201_vm12, %v2736_v42, 0.0  ;;  %v16524_v50 = vadd.f32 %v2215_v31, %v2214_v37  ;;  %v16531_v7 = vadd.f32 %v16359_v2, %v16356_v35  ;;  %v12209_v37 = vld [vmem:[%s19846_s9] ss:$0 sm:$0xff] }
 0x435   :  { %v2808_v46 = vsel %vm2201_vm12, %v2797_v19, 0.0  ;;  %v16527_v33 = vadd.f32 %v2625_v10, %v2624_v14  ;;  %v2750_v47 = vadd.f32 %v2749_v6, %v2748_v22  ;;  %v2404_v49 = vsel %vm2201_vm12, %v16441_v38, 0.0  ;;  %v2887_v14 = vld [vmem:[%s19845_s0 + $0x18] sm:$0xff]  ;;  %v2888_v6 = vld [vmem:[%s19845_s0 + $0x20] sm:$0xff] }
 0x436   :  { %v2799_v53 = vmul.f32 %v2786_v15, %v2436_v8  ;;  %v2807_v63 = vadd.f32 %v2806_v59, %v2805_v27  ;;  %v2781_v61 = vpop.permute.xlu1 %2780  ;;  %v2751_v12 = vsel %vm2201_vm12, %v2737_v30, 0.0  ;;  %v2688_v55 = vsel %vm2201_vm12, %v2674_v51, 0.0  ;;  %v2885_v15 = vld [vmem:[%s19845_s0 + $0x8] sm:$0xff] }
 0x437   :  { %v2816_v62 = vadd.f32 %v16518_v29, %v16524_v50  ;;  %v2798_v48 = vmul.f32 %v2781_v61, %v16421_v16  ;;  %v16540_v31 = vadd.f32 %v2688_v55, %v2687_v20  ;;  %v2818_v35 = vadd.f32 %v16527_v33, %v16531_v7  ;;  %v2886_v20 = vld [vmem:[%s19845_s0 + $0x10] sm:$0xff] }
 0x438   :  { %v2809_v5 = vadd.f32 %v2808_v46, %v2807_v63  ;;  %v2819_v2 = vsub.f32 %v16513_v57, %v16365_v52  ;;  %v2826_v38 = vmul.f32 %v2817_v9, %v2817_v9  ;;  %v16547_v21 = vadd.f32 %v2751_v12, %v2750_v47  ;;  %v2889_v46 = vld [vmem:[%s19845_s0 + $0x28] sm:$0xff] }
 0x439   :  { %v2825_v8 = vmul.f32 %v2816_v62, %v2816_v62  ;;  %v2810_v30 = vsel %vm2201_vm12, %v2798_v48, 0.0  ;;  %v16550_v51 = vadd.f32 %v2404_v49, %v16361_v54  ;;  %v2812_v16 = vsel %vm2201_vm12, %v2799_v53, 0.0  ;;  %v2890_v49 = vld [vmem:[%s19845_s0 + $0x30] sm:$0xff]  ;;  %v2891_v53 = vld [vmem:[%s19845_s0 + $0x38] sm:$0xff] }
 0x43a   :  { %v2811_v25 = vadd.f32 %v2810_v30, %v2809_v5  ;;  %v2791_v28 = vpop.permute.xlu1 %2790  ;;  %v2820_v4 = vadd.f32 %v16540_v31, %v16524_v50  ;;  %v2828_v24 = vmul.f32 %v2818_v35, %v2818_v35  ;;  %v2830_v54 = vmul.f32 %v2819_v2, %v2819_v2  ;;  %v12210_v2 = vld [vmem:[%s19567_s12] ss:$0 sm:$0xff] }
 0x43b   :  { %v2827_v60 = vadd.f32 %v2826_v38, %v2825_v8  ;;  %v2800_v44 = vmul.f32 %v2791_v28, %v16460_v32  ;;  %v2821_v23 = vadd.f32 %v16547_v21, %v16550_v51  ;;  %v2822_v42 = vsub.f32 %v16527_v33, %v16531_v7  ;;  %v2892_v38 = vld [vmem:[%s19845_s0 + $0x40] sm:$0xff]  ;;  %v2893_v8 = vld [vmem:[%s19845_s0 + $0x48] sm:$0xff] }
 0x43c   :  { %v2813_v34 = vadd.f32 %v2812_v16, %v2811_v25  ;;  %v2832_v3 = vmul.f32 %v2820_v4, %v2820_v4  ;;  %v2823_v17 = vsub.f32 %v16547_v21, %v16550_v51  ;;  %v13466_v19 = vpack.c.bf16 %v2885_v15, %v2884_v0  ;;  %v2894_v16 = vld [vmem:[%s19845_s0 + $0x50] sm:$0xff]  ;;  %v19854_v0 = vld [vmem:[#allocation21_spill] sm:$0xff] }
 0x43d   :  { %v2814_v56 = vsel %vm2201_vm12, %v2800_v44, 0.0  ;;  %v2829_v40 = vadd.f32 %v2828_v24, %v2827_v60  ;;  %v2834_v58 = vmul.f32 %v2821_v23, %v2821_v23  ;;  %v2836_v41 = vmul.f32 %v2822_v42, %v2822_v42  ;;  %v3647_v42 = vld [vmem:[%s19849_s6] sm:$0xff]  ;;  %v19855_v15 = vld [vmem:[#allocation17_spill] sm:$0xff] }
 0x43e   :  { %v16559_v11 = vadd.f32 %v2814_v56, %v2813_v34  ;;  %v2838_v39 = vmul.f32 %v2823_v17, %v2823_v17  ;;  %13467 = vmatpush3.bf16.msra.mxu1 %v13466_v19  ;;  %v13469_v9 = vpack.c.bf16 %v2887_v14, %v2886_v20  ;;  %v19847_v10 = vmov 0.0|0.0   ;;  %v19856_v20 = vld [vmem:[#allocation8_spill] sm:$0xff]  ;;  %v19858_v14 = vld [vmem:[#allocation9_spill] sm:$0xff] }
 0x43f   :  { %v2831_v13 = vadd.f32 %v2830_v54, %v2829_v40  ;;  %13468 = vmatprep.subr.bf16.mxu1 %v19847_v10  ;;  %v16592_v47 = vpack.c.bf16 %v2889_v46, %v2888_v6  ;;  %v16604_v63 = vpack.c.bf16 %v2891_v53, %v2890_v49  ;;  %v19848_v5 = vmov 0.0   ;;  %v19860_v6 = vld [vmem:[#allocation29_spill] sm:$0xff] }
 0x440   :  { %v2824_v45 = vadd.f32 %v16559_v11, %v16524_v50  ;;  %v16635_v30 = vpack.c.bf16 %v2893_v8, %v2892_v38  ;;  %v3740_v38 = vld [vmem:[%s19861_s3 + $0x18] sm:$0xff] }
 0x441   :  { %v2833_v32 = vadd.f32 %v2832_v3, %v2831_v13  ;;  %13473 = vmatpush3.bf16.msra.mxu0 %v16592_v47  ;;  %v3648_v13 = vld [vmem:[%s19849_s6 + $0x8] sm:$0xff] }
 0x442   :  { %v2840_v18 = vmul.f32 %v2824_v45, %v2824_v45  ;;  %13470 = vmatpush3.bf16.msra.mxu1 %v13469_v9  ;;  %13474 = vmatprep.subr.bf16.mxu0 %v19847_v10  ;;  %v3650_v45 = vld [vmem:[%s19849_s6 + $0x18] sm:$0xff]  ;;  %v19859_v9 = vld [vmem:[#allocation22_spill] sm:$0xff] }
 0x443   :  { %v2835_v36 = vadd.f32 %v2834_v58, %v2833_v32  ;;  %13477 = vmatprep.subr.bf16.mxu1 %v19847_v10  ;;  %v13526_v32 = vpack.c.bf16 %v3648_v13, %v3647_v42  ;;  %v3649_v58 = vld [vmem:[%s19849_s6 + $0x10] sm:$0xff] }
 0x445   :  { %v2837_v22 = vadd.f32 %v2836_v41, %v2835_v36  ;;  %13476 = vmatpush3.bf16.msra.mxu0 %v16604_v63  ;;  %v3950_v36 = vld [vmem:[%s19568_s13] sm:$0xff]  ;;  %v3951_v41 = vld [vmem:[%s19568_s13 + $0x8] sm:$0xff] }
 0x446   :  { %13483 = vmatprep.subr.bf16.mxu0 %v19847_v10 }
 0x447   :  { %v2839_v43 = vadd.f32 %v2838_v39, %v2837_v22  ;;  %v13529_v22 = vpack.c.bf16 %v3650_v45, %v3649_v58  ;;  %v13543_v39 = vpack.c.bf16 %v3951_v41, %v3950_v36 }
 0x449   :  { %v2841_v26 = vadd.f32 %v2840_v18, %v2839_v43  ;;  %v19851_v43 = vld [vmem:[#allocation5_spill] sm:$0xff] }
 0x44b   :  { %2845 = vrot.lane.b32.xlu1 %v2841_v26, %s14202_s30 }
 0x4bd   :  { %v2846_v27 = vpop.permute.xlu1 %2845 }
 0x4be   :  { %v2848_v59 = vsel %vm1969_vm1, %v2846_v27, 0.0 }
 0x4bf   :  { %2849 = vadd.xlane.f32.xlu0 %v2848_v59  ;;  %v19853_v59 = vld [vmem:[#allocation19_spill] sm:$0xff] }
 0x4d5   :  { %2871 = vrot.lane.b32.xlu0 %v12209_v37, %s14199_s11  ;;  %v19857_v37 = vld [vmem:[#allocation14_spill] sm:$0xff] }
 0x4d9   :  { %2897 = vrot.lane.b32.xlu0 %v16524_v50, %s14202_s30 }
 0x4dd   :  { %3047 = vrot.lane.b32.xlu0 %v16531_v7, %s14202_s30 }
 0x4e1   :  { %3347 = vrot.lane.b32.xlu0 %v16527_v33, %s14202_s30 }
 0x54c   :  { %v2850_v61 = vpop.xlane.xlu0 %2849 }
 0x54d   :  { %v2852_v12 = vmul.f32 0.03125, %v2850_v61 }
 0x54f   :  { %v2853_v55 = vsub.f32 %v2841_v26, %v2852_v12  ;;  %v16715_v26 = vsub.s32 1, %v19851_v43 }
 0x550   :  { %v2872_v50 = vpop.permute.xlu0 %2871 }
 0x551   :  { %v2854_v62 = vmul.f32 %v2853_v55, %v2853_v55  ;;  %19852 = vst [vmem:[#allocation7_spill] sm:$0xff] %v16715_v26 }
 0x553   :  { %2856 = vrot.lane.b32.xlu1 %v2854_v62, %s14202_s30 }
 0x554   :  { %v2898_v48 = vpop.permute.xlu0 %2897 }
 0x555   :  { %12723 = vmatmul.mubr.msk.f32.vlgmr.msra.gmra.mrb[2].mxu1 %vm1969_vm1, %v2898_v48 }
 0x556   :  { %13479 = vmatpush3.bf16.msra.mxu1 %v16592_v47  ;;  %12744 = vmatprep.mubr.msk.f32.mxu1 %vm14186_vm0, %v19848_v5 }
 0x557   :  { %13480 = vmatprep.subr.bf16.mxu1 %v19847_v10 }
 0x558   :  { %v3048_v33 = vpop.permute.xlu0 %3047 }
 0x55a   :  { %13482 = vmatpush3.bf16.msra.mxu1 %v16604_v63 }
 0x55b   :  { %13489 = vmatprep.subr.bf16.mxu1 %v19847_v10 }
 0x55c   :  { %v3348_v40 = vpop.permute.xlu0 %3347 }
 0x55d   :  { %12745 = vmatmul.mubr.msk.f32.vlgmr.msra.gmra.mrb[4].mxu1 %vm1969_vm1, %v3048_v33  ;;  %v3737_v33 = vld [vmem:[%s19861_s3] sm:$0xff] }
 0x55e   :  { %12766 = vmatprep.mubr.msk.f32.mxu1 %vm14186_vm0, %v19848_v5  ;;  %13491 = vmatpush3.bf16.msra.mxu1 %v16635_v30 }
 0x55f   :  { %13492 = vmatprep.subr.bf16.mxu1 %v19847_v10 }
 0x5c5   :  { %v2857_v7 = vpop.permute.xlu1 %2856 }
 0x5c6   :  { %v2859_v35 = vsel %vm1969_vm1, %v2857_v7, 0.0  ;;  %v3738_v7 = vld [vmem:[%s19861_s3 + $0x8] sm:$0xff] }
 0x5c7   :  { %2860 = vadd.xlane.f32.xlu1 %v2859_v35  ;;  %v13532_v35 = vpack.c.bf16 %v3738_v7, %v3737_v33  ;;  %v4105_v33 = vld [vmem:[%s19569_s14 + $0x10] sm:$0xff]  ;;  %v4106_v7 = vld [vmem:[%s19569_s14 + $0x18] sm:$0xff] }
 0x5d8   :  { %2880 = vrot.lane.b32.xlu1 %v12210_v2, %s14199_s11  ;;  %v3739_v2 = vld [vmem:[%s19861_s3 + $0x10] sm:$0xff] }
 0x5d9   :  { %v13535_v8 = vpack.c.bf16 %v3740_v38, %v3739_v2 }
 0x5dc   :  { %3197 = vrot.lane.b32.xlu1 %v16518_v29, %s14202_s30  ;;  %v2895_v29 = vld [vmem:[%s19845_s0 + $0x58] sm:$0xff]  ;;  %s19850_s0 = sld [smem:[#allocation70_spill]] }
 0x5dd   :  { %v16653_v25 = vpack.c.bf16 %v2895_v29, %v2894_v16  ;;  %v3742_v16 = vld [vmem:[%s19861_s3 + $0x28] sm:$0xff] }
 0x5df   :  { %13494 = vmatpush3.bf16.msra.mxu1 %v16653_v25 }
 0x5e0   :  { %3497 = vrot.lane.b32.xlu1 %v16547_v21, %s14202_s30  ;;  %13501 = vmatprep.subr.bf16.mxu1 %v19847_v10 }
 0x5e2   :  { %v3646_v18 = vld [vmem:[%s19850_s0] sm:$0x3] }
 0x5e3   :  { %v3655_v49 = vrot.slane %v3646_v18, %v19808_v1 }
 0x5e4   :  { %2972 = vrot.lane.b32.xlu1 %v16365_v52, %s14202_s30 }
 0x5e8   :  { %3272 = vrot.lane.b32.xlu1 %v16513_v57, %s14202_s30 }
 0x5ec   :  { %3572 = vrot.lane.b32.xlu1 %v16559_v11, %s14202_s30 }
 0x628   :  { %v16659_v52 = vpop.f32.mrb[2].mxu1 }
 0x629   :  { %v12724_v57 = vpop.f32.mrb[3].mxu1 }
 0x62a   :  { %v3744_v57 = vld [vmem:[%s19861_s3 + $0x38] sm:$0xff] }
 0x630   :  { %v16661_v21 = vpop.f32.mrb[4].mxu1 }
 0x631   :  { %v12746_v28 = vpop.f32.mrb[5].mxu1 }
 0x632   :  { %v4103_v28 = vld [vmem:[%s19569_s14] sm:$0xff] }
 0x654   :  { %v2861_v4 = vpop.xlane.xlu1 %2860 }
 0x655   :  { %v2862_v60 = vmul.f32 0.03125, %v2861_v4 }
 0x657   :  { %v2863_v44 = vadd.f32 1e-05, %v2862_v60  ;;  %v4104_v60 = vld [vmem:[%s19569_s14 + $0x8] sm:$0xff] }
 0x658   :  { %v2881_v24 = vpop.permute.xlu1 %2880 }
 0x659   :  { %14046 = vrsqrt.f32 %v2863_v44  ;;  %v16801_v44 = vpack.c.bf16 %v4104_v60, %v4103_v28 }
 0x65c   :  { %v3198_v34 = vpop.permute.xlu1 %3197 }
 0x65d   :  { %12767 = vmatmul.mubr.msk.f32.vlgmr.msra.gmra.mrb[6].mxu1 %vm1969_vm1, %v3198_v34 }
 0x65e   :  { %13503 = vmatpush3.bf16.msra.mxu1 %v16635_v30  ;;  %12788 = vmatprep.mubr.msk.f32.mxu1 %vm14186_vm0, %v19848_v5 }
 0x65f   :  { %13504 = vmatprep.subr.bf16.mxu1 %v19847_v10 }
 0x660   :  { %v3498_v56 = vpop.permute.xlu1 %3497 }
 0x662   :  { %13506 = vmatpush3.bf16.msra.mxu1 %v16653_v25 }
 0x663   :  { %v14047_v23 = vpop.eup %14046  ;;  %13513 = vmatprep.subr.bf16.mxu1 %v19847_v10 }
 0x664   :  { %v2865_v54 = vmul.f32 %v14047_v23, %v2853_v55  ;;  %v2973_v3 = vpop.permute.xlu1 %2972 }
 0x665   :  { %12789 = vmatmul.mubr.msk.f32.vlgmr.msra.gmra.mrb[8].mxu1 %vm1969_vm1, %v3348_v40  ;;  %12734 = vmatmul.mubr.msk.f32.vlgmr.msra.gmra.mrb[8].mxu0 %vm1969_vm1, %v2973_v3 }
 0x666   :  { %v2874_v11 = vmul.f32 %v2872_v50, %v2865_v54  ;;  %13515 = vmatpush3.bf16.msra.mxu1 %v16635_v30  ;;  %12810 = vmatprep.mubr.msk.f32.mxu1 %vm14186_vm0, %v19848_v5 }
 0x667   :  { %13516 = vmatprep.subr.bf16.mxu1 %v19847_v10  ;;  %13485 = vmatpush3.bf16.msra.mxu0 %v16592_v47 }
 0x668   :  { %v2883_v17 = vadd.f32 %v2881_v24, %v2874_v11  ;;  %13486 = vmatprep.subr.bf16.mxu0 %v19847_v10  ;;  %12755 = vmatprep.mubr.msk.f32.mxu0 %vm14186_vm0, %v19848_v5  ;;  %v3273_v19 = vpop.permute.xlu1 %3272  ;;  %v16807_v24 = vld [vmem:[%s19571_s16] sm:$0x3] }
 0x669   :  { %v16811_v40 = vrot.slane %v16807_v24, %v19808_v1 }
 0x66a   :  { %13518 = vmatpush3.bf16.msra.mxu1 %v16653_v25  ;;  %3658 = vrot.lane.b32.xlu0 %v2883_v17, %s14202_s30 }
 0x66b   :  { %13525 = vmatprep.subr.bf16.mxu1 %v19847_v10  ;;  %13488 = vmatpush3.bf16.msra.mxu0 %v16604_v63 }
 0x66c   :  { %13495 = vmatprep.subr.bf16.mxu0 %v19847_v10  ;;  %v3573_v47 = vpop.permute.xlu1 %3572 }
 0x66d   :  { %12811 = vmatmul.mubr.msk.f32.vlgmr.msra.gmra.mrb[10].mxu1 %vm1969_vm1, %v3498_v56 }
 0x66e   :  { %3122 = vrot.lane.b32.xlu0 %v16550_v51, %s14202_s30  ;;  %13527 = vmatpush3.bf16.msra.mxu1 %v13526_v32  ;;  %v3748_v51 = vrot.slane %v3646_v18, %v16715_v26 }
 0x66f   :  { %13528 = vmatprep.subr.bf16.mxu1 %v19847_v10  ;;  %12832 = vmatprep.mubr.msk.f32.mxu1 %vm14186_vm0, %v19848_v5 }
 0x670   :  { %3751 = vrot.lane.b32.xlu1 %v3748_v51, %s14203_s1 }
 0x672   :  { %3422 = vrot.lane.b32.xlu0 %v16540_v31, %s14202_s30  ;;  %13530 = vmatpush3.bf16.msra.mxu1 %v13529_v22 }
 0x673   :  { %13544 = vmatprep.subr.bf16.mxu1 %v13543_v39 }
 0x676   :  { %3749 = vrot.lane.b32.xlu0 %v3655_v49, %s14203_s1 }
 0x6dc   :  { %v3659_v27 = vpop.permute.xlu0 %3658 }
 0x6dd   :  { %12833 = vmatmul.mubr.msk.f32.vlgmr.msra.gmra.mrb[12].mxu1 %vm1969_vm1, %v3659_v27 }
 0x6de   :  { %13546 = vmatpush3.bf16.msra.mxu1 %v13543_v39  ;;  %12858 = vmatprep.mubr.msk.f32.mxu1 %vm1826_vm4, %v19853_v59 }
 0x6e0   :  { %v3123_v31 = vpop.permute.xlu0 %3122 }
 0x6e1   :  { %12756 = vmatmul.mubr.msk.f32.vlgmr.msra.gmra.mrb[10].mxu0 %vm1969_vm1, %v3123_v31  ;;  %12859 = vmatmul.mubr.msk.f32.vlgmr.msra.gmra.mrb[14].mxu1 %vm1826_vm4, %v19854_v0 }
 0x6e2   :  { %13497 = vmatpush3.bf16.msra.mxu0 %v16635_v30  ;;  %12861 = vmatprep.mubr.msk.f32.mxu1 %vm1826_vm4, %v19855_v15 }
 0x6e3   :  { %13498 = vmatprep.subr.bf16.mxu0 %v19847_v10  ;;  %12777 = vmatprep.mubr.msk.f32.mxu0 %vm14186_vm0, %v19848_v5 }
 0x6e4   :  { %v3423_v46 = vpop.permute.xlu0 %3422 }
 0x6e5   :  { %12862 = vmatmul.mubr.msk.f32.gmra.mrb[16].mxu1 %vm1826_vm4, %v19856_v20 }
 0x6e6   :  { %13500 = vmatpush3.bf16.msra.mxu0 %v16653_v25  ;;  %12864 = vmatprep.mubr.msk.f32.mxu1 %vm1826_vm4, %v19857_v37 }
 0x6e7   :  { %13507 = vmatprep.subr.bf16.mxu0 %v19847_v10 }
 0x6e9   :  { %12778 = vmatmul.mubr.msk.f32.vlgmr.msra.gmra.mrb[12].mxu0 %vm1969_vm1, %v3273_v19  ;;  %12865 = vmatmul.mubr.msk.f32.gmra.mrb[18].mxu1 %vm1826_vm4, %v19858_v14 }
 0x6ea   :  { %13509 = vmatpush3.bf16.msra.mxu0 %v16635_v30  ;;  %12867 = vmatprep.mubr.msk.f32.mxu1 %vm1826_vm4, %v19859_v9 }
 0x6eb   :  { %13510 = vmatprep.subr.bf16.mxu0 %v19847_v10  ;;  %12799 = vmatprep.mubr.msk.f32.mxu0 %vm14186_vm0, %v19848_v5 }
 0x6ed   :  { %12868 = vmatmul.mubr.msk.f32.gmra.mrb[20].mxu1 %vm1826_vm4, %v19860_v6 }
 0x6ee   :  { %13512 = vmatpush3.bf16.msra.mxu0 %v16653_v25 }
 0x6ef   :  { %13519 = vmatprep.subr.bf16.mxu0 %v19847_v10 }
 0x6f1   :  { %12800 = vmatmul.mubr.msk.f32.vlgmr.msra.gmra.mrb[14].mxu0 %vm1969_vm1, %v3423_v46 }
 0x6f2   :  { %13521 = vmatpush3.bf16.msra.mxu0 %v16635_v30  ;;  %12821 = vmatprep.mubr.msk.f32.mxu0 %vm14186_vm0, %v19848_v5  ;;  %v3741_v30 = vld [vmem:[%s19861_s3 + $0x20] sm:$0xff] }
 0x6f3   :  { %13522 = vmatprep.subr.bf16.mxu0 %v19847_v10  ;;  %v13538_v29 = vpack.c.bf16 %v3742_v16, %v3741_v30 }
 0x6f6   :  { %13524 = vmatpush3.bf16.msra.mxu0 %v16653_v25  ;;  %v3743_v25 = vld [vmem:[%s19861_s3 + $0x30] sm:$0xff] }
 0x6f7   :  { %13531 = vmatprep.subr.bf16.mxu0 %v19847_v10  ;;  %v13541_v4 = vpack.c.bf16 %v3744_v57, %v3743_v25  ;;  %v13551_v57 = vpack.c.bf16 %v4106_v7, %v4105_v33 }
 0x6f9   :  { %12822 = vmatmul.mubr.msk.f32.vlgmr.msra.gmra.mrb[16].mxu0 %vm1969_vm1, %v3573_v47 }
 0x6fa   :  { %12851 = vmatprep.mubr.msk.f32.mxu0 %vm14186_vm0, %v19848_v5  ;;  %13533 = vmatpush3.bf16.msra.mxu0 %v13532_v35 }
 0x6fb   :  { %13534 = vmatprep.subr.bf16.mxu0 %v19847_v10 }
 0x6fe   :  { %13536 = vmatpush3.bf16.msra.mxu0 %v13535_v8 }
 0x6ff   :  { %13537 = vmatprep.subr.bf16.mxu0 %v19847_v10 }
 0x702   :  { %13539 = vmatpush3.bf16.msra.mxu0 %v13538_v29 }
 0x703   :  { %13540 = vmatprep.subr.bf16.mxu0 %v19847_v10 }
 0x706   :  { %13542 = vmatpush3.bf16.msra.mxu0 %v13541_v4 }
 0x707   :  { %13548 = vmatprep.subr.bf16.mxu0 %v16801_v44 }
 0x730   :  { %v16762_v53 = vpop.f32.mrb[6].mxu1 }
 0x731   :  { %v12768_v63 = vpop.f32.mrb[7].mxu1 }
 0x738   :  { %v3417_v61 = vpop.f32.mrb[8].mxu1  ;;  %v16764_v12 = vpop.f32.mrb[8].mxu0 }
 0x739   :  { %3861 = vrot.lane.b32.xlu1 %v3417_v61, %s14203_s1  ;;  %v12790_v55 = vpop.f32.mrb[9].mxu1  ;;  %v12735_v50 = vpop.f32.mrb[9].mxu0 }
 0x740   :  { %v3567_v62 = vpop.f32.mrb[10].mxu1 }
 0x741   :  { %3871 = vrot.lane.b32.xlu1 %v3567_v62, %s14203_s1  ;;  %v12812_v48 = vpop.f32.mrb[11].mxu1 }
 0x7b0   :  { %v3728_v34 = vpop.f32.mrb[12].mxu1 }
 0x7b1   :  { %v3729_v56 = vadd.f32 %v3728_v34, %v3655_v49  ;;  %v12834_v23 = vpop.f32.mrb[13].mxu1 }
 0x7b3   :  { %v3732_v54 = vmul.f32 0.5, %v3729_v56 }
 0x7b4   :  { %v3192_v3 = vpop.f32.mrb[10].mxu0  ;;  %v12860_v11 = vpop.f32.mrb[14].mxu1 }
 0x7b5   :  { %14048 = vtanh.f32 %v3732_v54  ;;  %v16814_v42 = vadd.f32 %v12860_v11, %v16811_v40  ;;  %v4024_v13 = vpop.f32.mrb[15].mxu1  ;;  %3846 = vrot.lane.b32.xlu1 %v3192_v3, %s14199_s11  ;;  %v12757_v17 = vpop.f32.mrb[11].mxu0 }
 0x7b6   :  { %v4025_v32 = vadd.f32 %v4024_v13, %v16811_v40 }
 0x7b7   :  { %v4064_v58 = vmul.f32 0.5, %v16814_v42 }
 0x7b8   :  { %v4063_v45 = vmul.f32 0.5, %v4025_v32  ;;  %v12863_v36 = vpop.f32.mrb[16].mxu1 }
 0x7b9   :  { %14050 = vtanh.f32 %v4064_v58  ;;  %v16820_v41 = vadd.f32 %v12863_v36, %v16811_v40  ;;  %v4034_v22 = vpop.f32.mrb[17].mxu1 }
 0x7ba   :  { %14052 = vtanh.f32 %v4063_v45  ;;  %v4035_v39 = vadd.f32 %v4034_v22, %v16811_v40 }
 0x7bb   :  { %v4066_v18 = vmul.f32 0.5, %v16820_v41 }
 0x7bc   :  { %v4065_v43 = vmul.f32 0.5, %v4035_v39  ;;  %v3342_v51 = vpop.f32.mrb[12].mxu0  ;;  %v12866_v27 = vpop.f32.mrb[18].mxu1 }
 0x7bd   :  { %14054 = vtanh.f32 %v4066_v18  ;;  %v16825_v31 = vadd.f32 %v12866_v27, %v16811_v40  ;;  %3856 = vrot.lane.b32.xlu0 %v3342_v51, %s14203_s1  ;;  %v12779_v19 = vpop.f32.mrb[13].mxu0  ;;  %v4044_v46 = vpop.f32.mrb[19].mxu1 }
 0x7be   :  { %14056 = vtanh.f32 %v4065_v43  ;;  %v4045_v47 = vadd.f32 %v4044_v46, %v16811_v40 }
 0x7bf   :  { %v14049_v49 = vpop.eup %14048  ;;  %v4068_v63 = vmul.f32 0.5, %v16825_v31 }
 0x7c0   :  { %v3734_v61 = vmul.f32 0.5, %v14049_v49  ;;  %v4067_v55 = vmul.f32 0.5, %v4045_v47  ;;  %v12869_v50 = vpop.f32.mrb[20].mxu1 }
 0x7c1   :  { %14058 = vtanh.f32 %v4068_v63  ;;  %v16831_v62 = vadd.f32 %v12869_v50, %v16811_v40  ;;  %3836 = vrot.lane.b32.xlu0 %v16764_v12, %s14199_s11  ;;  %v4054_v48 = vpop.f32.mrb[21].mxu1 }
 0x7c2   :  { %v3735_v35 = vadd.f32 0.5, %v3734_v61  ;;  %14060 = vtanh.f32 %v4067_v55  ;;  %v4055_v2 = vadd.f32 %v4054_v48, %v16811_v40 }
 0x7c3   :  { %v14051_v38 = vpop.eup %14050  ;;  %v4070_v8 = vmul.f32 0.5, %v16831_v62 }
 0x7c4   :  { %v14053_v30 = vpop.eup %14052  ;;  %v3736_v16 = vmul.f32 %v3735_v35, %v3729_v56  ;;  %v4080_v12 = vmul.f32 0.5, %v14051_v38  ;;  %v4069_v29 = vmul.f32 0.5, %v4055_v2  ;;  %v16843_v25 = vpop.f32.mrb[14].mxu0 }
 0x7c5   :  { %v4079_v28 = vmul.f32 0.5, %v14053_v30  ;;  %14062 = vtanh.f32 %v4070_v8  ;;  %3841 = vrot.lane.b32.xlu0 %v16661_v21, %s14199_s11  ;;  %v12801_v4 = vpop.f32.mrb[15].mxu0 }
 0x7c6   :  { %14064 = vtanh.f32 %v4069_v29  ;;  %12852 = vmatmul.mubr.msk.f32.vlgmr.msra.gmra.mrb[18].mxu0 %vm3753_vm14, %v3736_v16  ;;  %v4088_v56 = vadd.f32 0.5, %v4080_v12 }
 0x7c7   :  { %v14055_v60 = vpop.eup %14054  ;;  %v4087_v34 = vadd.f32 0.5, %v4079_v28  ;;  %13550 = vmatpush3.bf16.msra.mxu0 %v16801_v44 }
 0x7c8   :  { %v14057_v23 = vpop.eup %14056  ;;  %v4082_v54 = vmul.f32 0.5, %v14055_v60  ;;  %13552 = vmatprep.subr.bf16.mxu0 %v13551_v57  ;;  %v4096_v58 = vmul.f32 %v4088_v56, %v16814_v42 }
 0x7c9   :  { %v4095_v3 = vmul.f32 %v4087_v34, %v4025_v32  ;;  %v4081_v11 = vmul.f32 0.5, %v14057_v23  ;;  %3851 = vrot.lane.b32.xlu0 %v16762_v53, %s14203_s1 }
 0x7ca   :  { %v4090_v45 = vadd.f32 0.5, %v4082_v54 }
 0x7cb   :  { %v14059_v13 = vpop.eup %14058  ;;  %v4089_v17 = vadd.f32 0.5, %v4081_v11  ;;  %13554 = vmatpush3.bf16.msra.mxu0 %v13551_v57  ;;  %12878 = vmatprep.mubr.msk.f32.mxu0 %vm1969_vm1, %v4095_v3 }
 0x7cc   :  { %v14061_v21 = vpop.eup %14060  ;;  %v4084_v36 = vmul.f32 0.5, %v14059_v13  ;;  %v16853_v44 = vpop.f32.mrb[16].mxu0  ;;  %13571 = vmatprep.subr.bf16.mxu0 %v19847_v10  ;;  %v4098_v27 = vmul.f32 %v4090_v45, %v16820_v41 }
 0x7cd   :  { %v4097_v22 = vmul.f32 %v4089_v17, %v4035_v39  ;;  %v4083_v32 = vmul.f32 0.5, %v14061_v21  ;;  %v12823_v18 = vpop.f32.mrb[17].mxu0  ;;  %v3752_v41 = vpop.permute.xlu1 %3751 }
 0x7ce   :  { %12879 = vmatmul.mubr.msk.f32.vlgmr.msra.gmra.mrb[20].mxu0 %vm1969_vm1, %v4096_v58  ;;  %v4092_v19 = vadd.f32 0.5, %v4084_v36 }
 0x7cf   :  { %v14063_v53 = vpop.eup %14062  ;;  %v4091_v43 = vadd.f32 0.5, %v4083_v32  ;;  %12881 = vmatprep.mubr.msk.f32.mxu0 %vm1969_vm1, %v4097_v22 }
 0x7d0   :  { %v14065_v51 = vpop.eup %14064  ;;  %v4086_v42 = vmul.f32 0.5, %v14063_v53  ;;  %v4100_v39 = vmul.f32 %v4092_v19, %v16825_v31 }
 0x7d1   :  { %v4099_v46 = vmul.f32 %v4091_v43, %v4045_v47  ;;  %v4085_v49 = vmul.f32 0.5, %v14065_v51  ;;  %v3750_v47 = vpop.permute.xlu0 %3749  ;;  %v3862_v34 = vpop.permute.xlu1 %3861 }
 0x7d2   :  { %12882 = vmatmul.mubr.msk.f32.gmra.mrb[22].mxu0 %vm1969_vm1, %v4098_v27  ;;  %v4094_v61 = vadd.f32 0.5, %v4086_v42  ;;  %v3754_v48 = vsel %vm3753_vm14, %v3750_v47, %v3752_v41 }
 0x7d3   :  { %v4093_v63 = vadd.f32 0.5, %v4085_v49  ;;  %12884 = vmatprep.mubr.msk.f32.mxu0 %vm1969_vm1, %v4099_v46 }
 0x7d4   :  { %v4102_v50 = vmul.f32 %v4094_v61, %v16831_v62 }
 0x7d5   :  { %v4101_v55 = vmul.f32 %v4093_v63, %v4055_v2  ;;  %v3872_v13 = vpop.permute.xlu1 %3871 }
 0x7d6   :  { %12885 = vmatmul.mubr.msk.f32.gmra.mrb[24].mxu0 %vm1969_vm1, %v4100_v39 }
 0x7d7   :  { %12887 = vmatprep.mubr.msk.f32.mxu0 %vm1969_vm1, %v4101_v55 }
 0x7da   :  { %12888 = vmatmul.mubr.msk.f32.gmra.mrb[26].mxu0 %vm1969_vm1, %v4102_v50 }
 0x7db   :  { %12926 = vmatprep.mubr.msk.f32.mxu0 %vm14186_vm0, %v19848_v5 }
 0x827   :  { %v3847_v45 = vpop.permute.xlu1 %3846 }
 0x82f   :  { %v3857_v29 = vpop.permute.xlu0 %3856 }
 0x833   :  { %v3837_v3 = vpop.permute.xlu0 %3836 }
 0x837   :  { %v3842_v17 = vpop.permute.xlu0 %3841 }
 0x899   :  { %v3825_v33 = vpop.f32.mrb[18].mxu0 }
 0x89a   :  { %v3826_v7 = vadd.f32 %v3825_v33, %v3754_v48  ;;  %v12853_v31 = vpop.f32.mrb[19].mxu0 }
 0x89c   :  { %v3829_v35 = vmul.f32 0.5, %v3826_v7 }
 0x89e   :  { %14066 = vtanh.f32 %v3829_v35  ;;  %v3926_v35 = vld [vmem:[%s19572_s17] sm:$0xff] }
 0x8a1   :  { %v16869_v2 = vpop.f32.mrb[20].mxu0 }
 0x8a2   :  { %v16871_v38 = vpop.f32.mrb[21].mxu0 }
 0x8a5   :  { %v16873_v8 = vpop.f32.mrb[22].mxu0 }
 0x8a6   :  { %v16875_v62 = vpop.f32.mrb[23].mxu0 }
 0x8a8   :  { %v14067_v30 = vpop.eup %14066 }
 0x8a9   :  { %v3831_v16 = vmul.f32 0.5, %v14067_v30  ;;  %v16877_v12 = vpop.f32.mrb[24].mxu0  ;;  %v3927_v30 = vld [vmem:[%s19572_s17 + $0x8] sm:$0xff] }
 0x8aa   :  { %v16879_v57 = vpop.f32.mrb[25].mxu0 }
 0x8ab   :  { %v3832_v28 = vadd.f32 0.5, %v3831_v16  ;;  %v3928_v16 = vld [vmem:[%s19572_s17 + $0x10] sm:$0xff] }
 0x8ad   :  { %v16881_v4 = vmul.f32 %v3832_v28, %v3826_v7  ;;  %v16883_v60 = vpop.f32.mrb[26].mxu0  ;;  %v3929_v28 = vld [vmem:[%s19572_s17 + $0x18] sm:$0xff] }
 0x8ae   :  { %v16885_v23 = vpop.f32.mrb[27].mxu0 }
 0x8af   :  { %v3864_v56 = vmul.f32 %v3862_v34, %v16881_v4  ;;  %v3859_v54 = vmul.f32 %v3857_v29, %v16881_v4  ;;  %v3839_v11 = vmul.f32 %v3837_v3, %v16881_v4  ;;  %v3874_v21 = vmul.f32 %v3872_v13, %v16881_v4 }
 0x8b0   :  { %v3844_v58 = vmul.f32 %v3842_v17, %v16881_v4  ;;  %v3849_v36 = vmul.f32 %v3847_v45, %v16881_v4  ;;  %v13572_v29 = vpack.c.bf16 %v3927_v30, %v3926_v35  ;;  %v13575_v34 = vpack.c.bf16 %v3929_v28, %v3928_v16  ;;  %v4279_v16 = vld [vmem:[%s19570_s15] sm:$0xff] }
 0x8b1   :  { %3891 = vrot.lane.b32.xlu0 %v3864_v56, %s14202_s30  ;;  %3886 = vrot.lane.b32.xlu1 %v3859_v54, %s14202_s30 }
 0x8b2   :  { %13573 = vmatpush3.bf16.msra.mxu0 %v13572_v29  ;;  %v4280_v29 = vld [vmem:[%s19570_s15 + $0x8] sm:$0xff] }
 0x8b3   :  { %13574 = vmatprep.subr.bf16.mxu0 %v19847_v10 }
 0x8b5   :  { %3866 = vrot.lane.b32.xlu1 %v16843_v25, %s14203_s1  ;;  %3896 = vrot.lane.b32.xlu0 %v3839_v11, %s14199_s11  ;;  %v3852_v25 = vpop.permute.xlu0 %3851 }
 0x8b6   :  { %v3854_v22 = vmul.f32 %v3852_v25, %v16881_v4  ;;  %13576 = vmatpush3.bf16.msra.mxu0 %v13575_v34  ;;  %v13555_v34 = vpack.c.bf16 %v4280_v29, %v4279_v16 }
 0x8b7   :  { %13583 = vmatprep.subr.bf16.mxu0 %v19847_v10 }
 0x8b8   :  { %13556 = vmatprep.subr.bf16.mxu1 %v13555_v34 }
 0x8b9   :  { %3906 = vrot.lane.b32.xlu1 %v3874_v21, %s14202_s30  ;;  %3911 = vrot.lane.b32.xlu0 %v3844_v58, %s14199_s11 }
 0x8ba   :  { %13558 = vmatpush3.bf16.msra.mxu1 %v13555_v34 }
 0x8bd   :  { %3876 = vrot.lane.b32.xlu1 %v16853_v44, %s14203_s1  ;;  %3916 = vrot.lane.b32.xlu0 %v3849_v36, %s14199_s11 }
 0x8c1   :  { %3881 = vrot.lane.b32.xlu1 %v3854_v22, %s14203_s1 }
 0x923   :  { %v3887_v32 = vpop.permute.xlu1 %3886  ;;  %v3892_v18 = vpop.permute.xlu0 %3891 }
 0x924   :  { %v16905_v53 = vadd.f32 %v3887_v32, %v3839_v11  ;;  %v16909_v51 = vadd.f32 %v3892_v18, %v3844_v58 }
 0x926   :  { %v4475_v43 = vmul.f32 %v16905_v53, %v16905_v53  ;;  %v4481_v46 = vmul.f32 %v16909_v51, %v16909_v51 }
 0x927   :  { %v3867_v27 = vpop.permute.xlu1 %3866  ;;  %v3897_v19 = vpop.permute.xlu0 %3896 }
 0x928   :  { %v3869_v44 = vmul.f32 %v3867_v27, %v16881_v4  ;;  %v16912_v42 = vsub.f32 %v3859_v54, %v3897_v19  ;;  %4477 = vrot.lane.b32.xlu0 %v4475_v43, %s14202_s30  ;;  %v3834_v54 = vmul.f32 %v16881_v4, %v16659_v52 }
 0x92a   :  { %3901 = vrot.lane.b32.xlu1 %v3869_v44, %s14203_s1  ;;  %v4487_v39 = vmul.f32 %v16912_v42, %v16912_v42 }
 0x92b   :  { %v3907_v49 = vpop.permute.xlu1 %3906  ;;  %v3912_v63 = vpop.permute.xlu0 %3911 }
 0x92c   :  { %v16920_v61 = vadd.f32 %v3907_v49, %v3849_v36  ;;  %4483 = vrot.lane.b32.xlu0 %v4481_v46, %s14202_s30  ;;  %v16925_v50 = vsub.f32 %v3864_v56, %v3912_v63 }
 0x92e   :  { %v4495_v55 = vmul.f32 %v16920_v61, %v16920_v61  ;;  %4489 = vrot.lane.b32.xlu1 %v4487_v39, %s14203_s1  ;;  %v4501_v7 = vmul.f32 %v16925_v50, %v16925_v50 }
 0x92f   :  { %v3877_v41 = vpop.permute.xlu1 %3876  ;;  %v3917_v47 = vpop.permute.xlu0 %3916 }
 0x930   :  { %v3879_v48 = vmul.f32 %v3877_v41, %v16881_v4  ;;  %v16929_v33 = vsub.f32 %v3874_v21, %v3917_v47  ;;  %4497 = vrot.lane.b32.xlu0 %v4495_v55, %s14202_s30 }
 0x932   :  { %3921 = vrot.lane.b32.xlu1 %v3879_v48, %s14203_s1  ;;  %v4507_v31 = vmul.f32 %v16929_v33, %v16929_v33 }
 0x933   :  { %v3882_v56 = vpop.permute.xlu1 %3881 }
 0x934   :  { %4503 = vrot.lane.b32.xlu0 %v4501_v7, %s14203_s1  ;;  %v3884_v3 = vadd.f32 %v3882_v56, %v3834_v54 }
 0x936   :  { %4509 = vrot.lane.b32.xlu1 %v4507_v31, %s14203_s1  ;;  %v4474_v13 = vmul.f32 %v3884_v3, %v3884_v3 }
 0x99a   :  { %v4478_v11 = vpop.permute.xlu0 %4477 }
 0x99b   :  { %v4480_v21 = vadd.f32 %v4478_v11, %v4474_v13  ;;  %v4282_v11 = vld [vmem:[%s19570_s15 + $0x18] sm:$0xff]  ;;  %v4284_v13 = vld [vmem:[%s19570_s15 + $0x28] sm:$0xff] }
 0x99c   :  { %v3902_v17 = vpop.permute.xlu1 %3901 }
 0x99d   :  { %v3904_v58 = vadd.f32 %v3902_v17, %v3834_v54 }
 0x99e   :  { %v4484_v45 = vpop.permute.xlu0 %4483 }
 0x99f   :  { %v4486_v36 = vadd.f32 %v4484_v45, %v4480_v21  ;;  %v4493_v22 = vmul.f32 %v3904_v58, %v3904_v58  ;;  %v4286_v45 = vld [vmem:[%s19570_s15 + $0x38] sm:$0xff] }
 0x9a0   :  { %v4490_v25 = vpop.permute.xlu1 %4489 }
 0x9a1   :  { %v4492_v32 = vadd.f32 %v4490_v25, %v4486_v36  ;;  %v3930_v36 = vld [vmem:[%s19572_s17 + $0x20] sm:$0xff]  ;;  %v3931_v25 = vld [vmem:[%s19572_s17 + $0x28] sm:$0xff] }
 0x9a2   :  { %v4498_v18 = vpop.permute.xlu0 %4497 }
 0x9a3   :  { %v4494_v43 = vadd.f32 %v4493_v22, %v4492_v32  ;;  %v3932_v22 = vld [vmem:[%s19572_s17 + $0x30] sm:$0xff]  ;;  %v17023_v32 = vpack.c.bf16 %v3931_v25, %v3930_v36 }
 0x9a4   :  { %v3922_v27 = vpop.permute.xlu1 %3921 }
 0x9a5   :  { %v4500_v19 = vadd.f32 %v4498_v18, %v4494_v43  ;;  %v3924_v44 = vadd.f32 %v3922_v27, %v3834_v54  ;;  %v3933_v18 = vld [vmem:[%s19572_s17 + $0x38] sm:$0xff] }
 0x9a6   :  { %v4504_v46 = vpop.permute.xlu0 %4503  ;;  %v17028_v43 = vpack.c.bf16 %v3933_v18, %v3932_v22 }
 0x9a7   :  { %v4506_v49 = vadd.f32 %v4504_v46, %v4500_v19  ;;  %v4513_v52 = vmul.f32 %v3924_v44, %v3924_v44 }
 0x9a8   :  { %v4510_v63 = vpop.permute.xlu1 %4509 }
 0x9a9   :  { %v4512_v4 = vadd.f32 %v4510_v63, %v4506_v49 }
 0x9ab   :  { %v4514_v39 = vadd.f32 %v4513_v52, %v4512_v4 }
 0x9ad   :  { %v4515_v55 = vadd.f32 1.0, %v4514_v39 }
 0x9af   :  { %14068 = vrcp.f32 %v4515_v55 }
 0x9b9   :  { %v14069_v41 = vpop.eup %14068 }
 0x9ba   :  { %4520 = vrot.lane.b32.xlu1 %v14069_v41, %s14199_s11  ;;  %4525 = vrot.lane.b32.xlu0 %v14069_v41, %s14203_s1  ;;  %v16957_v47 = vmul.f32 %v14069_v41, %v3884_v3  ;;  %v16959_v48 = vmul.f32 %v14069_v41, %v3904_v58  ;;  %v16961_v7 = vmul.f32 %v14069_v41, %v3924_v44  ;;  %v4281_v3 = vld [vmem:[%s19570_s15 + $0x10] sm:$0xff] }
 0x9bb   :  { %v4285_v58 = vld [vmem:[%s19570_s15 + $0x30] sm:$0xff] }
 0x9bc   :  { %19862 = vst [vmem:[#allocation23_spill] sm:$0xff] %v16957_v47  ;;  %19863 = vst [vmem:[#allocation24_spill] sm:$0xff] %v16959_v48  ;;  %v4534_v31 = vadd.f32 %v16959_v48, %v16957_v47 }
 0x9bd   :  { %19864 = vst [vmem:[#allocation41_spill] sm:$0xff] %v16961_v7 }
 0x9be   :  { %v4535_v35 = vadd.f32 %v4534_v31, %v16961_v7 }
 0x9c0   :  { %v16966_v30 = vmul.f32 0.33333334, %v4535_v35 }
 0x9c2   :  { %12927 = vmatmul.mubr.msk.f32.vlgmr.msra.gmra.mrb[28].mxu0 %vm1969_vm1, %v16966_v30 }
 0x9c3   :  { %12948 = vmatprep.mubr.msk.f32.mxu0 %vm14186_vm0, %v19848_v5  ;;  %13585 = vmatpush3.bf16.msra.mxu0 %v17023_v32 }
 0x9c4   :  { %13586 = vmatprep.subr.bf16.mxu0 %v19847_v10 }
 0x9c7   :  { %13588 = vmatpush3.bf16.msra.mxu0 %v17028_v43 }
 0x9c8   :  { %13595 = vmatprep.subr.bf16.mxu0 %v19847_v10 }
 0xa2c   :  { %v4526_v28 = vpop.permute.xlu0 %4525  ;;  %v4521_v44 = vpop.permute.xlu1 %4520 }
 0xa2d   :  { %v16979_v56 = vmul.f32 %v4526_v28, %v16912_v42  ;;  %v16982_v54 = vmul.f32 %v4526_v28, %v16925_v50  ;;  %v4283_v42 = vld [vmem:[%s19570_s15 + $0x20] sm:$0xff]  ;;  %v13559_v50 = vpack.c.bf16 %v4282_v11, %v4281_v3  ;;  %v17001_v17 = vmul.f32 %v4526_v28, %v16929_v33 }
 0xa2e   :  { %v13563_v21 = vpack.c.bf16 %v4284_v13, %v4283_v42  ;;  %v13567_v33 = vpack.c.bf16 %v4286_v45, %v4285_v58  ;;  %v17037_v46 = vmul.f32 %v4521_v44, %v16905_v53  ;;  %v17040_v49 = vmul.f32 %v4521_v44, %v16909_v51 }
 0xa2f   :  { %19865 = vst [vmem:[#allocation36_spill] sm:$0xff] %v16979_v56  ;;  %19866 = vst [vmem:[#allocation37_spill] sm:$0xff] %v16982_v54  ;;  %4538 = vrot.lane.b32.xlu0 %v16979_v56, %s14202_s30  ;;  %4544 = vrot.lane.b32.xlu1 %v16982_v54, %s14202_s30  ;;  %v17045_v55 = vmul.f32 %v4521_v44, %v16920_v61 }
 0xa30   :  { %19867 = vst [vmem:[#allocation42_spill] sm:$0xff] %v17001_v17  ;;  %13560 = vmatprep.subr.bf16.mxu1 %v13559_v50  ;;  %19868 = vst [vmem:[#allocation26_spill] sm:$0xff] %v17037_v46 }
 0xa31   :  { %13562 = vmatpush3.bf16.msra.mxu1 %v13559_v50  ;;  %19869 = vst [vmem:[#allocation32_spill] sm:$0xff] %v17040_v49  ;;  %19870 = vst [vmem:[#allocation25_spill] sm:$0xff] %v17045_v55 }
 0xa32   :  { %13564 = vmatprep.subr.bf16.mxu1 %v13563_v21 }
 0xa33   :  { %4550 = vrot.lane.b32.xlu0 %v17001_v17, %s14202_s30  ;;  %4107 = vrot.lane.b32.xlu1 %v16811_v40, %s14202_s30 }
 0xa35   :  { %13566 = vmatpush3.bf16.msra.mxu1 %v13563_v21 }
 0xa36   :  { %13568 = vmatprep.subr.bf16.mxu1 %v13567_v33 }
 0xa39   :  { %13570 = vmatpush3.bf16.msra.mxu1 %v13567_v33 }
 0xa3a   :  { %13577 = vmatprep.subr.bf16.mxu1 %v19847_v10 }
 0xa95   :  { %v17034_v27 = vpop.f32.mrb[28].mxu0 }
 0xa96   :  { %v12928_v19 = vpop.f32.mrb[29].mxu0 }
 0xaa1   :  { %v4539_v63 = vpop.permute.xlu0 %4538  ;;  %v4545_v52 = vpop.permute.xlu1 %4544 }
 0xaa2   :  { %v4541_v4 = vsub.f32 %v17037_v46, %v4539_v63  ;;  %v4547_v39 = vsub.f32 %v17040_v49, %v4545_v52  ;;  %v4556_v31 = vadd.f32 %v4539_v63, %v17037_v46  ;;  %v4558_v53 = vadd.f32 %v4545_v52, %v17040_v49 }
 0xaa4   :  { %v4542_v41 = vmul.f32 0.5, %v4541_v4  ;;  %v4548_v35 = vmul.f32 0.5, %v4547_v39  ;;  %v4557_v11 = vmul.f32 0.5, %v4556_v31 }
 0xaa5   :  { %v4551_v16 = vpop.permute.xlu0 %4550  ;;  %v4108_v29 = vpop.permute.xlu1 %4107 }
 0xaa6   :  { %v4553_v51 = vsub.f32 %v17045_v55, %v4551_v16  ;;  %4638 = vrot.lane.b32.xlu0 %v4542_v41, %s14202_s30  ;;  %4713 = vrot.lane.b32.xlu1 %v4548_v35, %s14202_s30  ;;  %v4201_v28 = vadd.f32 %v16871_v38, %v4108_v29  ;;  %v4206_v34 = vadd.f32 %v16869_v2, %v4108_v29 }
 0xaa7   :  { %v4211_v61 = vadd.f32 %v16875_v62, %v4108_v29  ;;  %v4216_v3 = vadd.f32 %v16873_v8, %v4108_v29  ;;  %v4221_v50 = vadd.f32 %v16879_v57, %v4108_v29  ;;  %v17058_v13 = vadd.f32 %v16877_v12, %v4108_v29 }
 0xaa8   :  { %v4554_v42 = vmul.f32 0.5, %v4553_v51  ;;  %v4561_v21 = vadd.f32 %v4551_v16, %v17045_v55  ;;  %v4239_v58 = vmul.f32 0.5, %v4201_v28  ;;  %v4240_v45 = vmul.f32 0.5, %v4206_v34 }
 0xaa9   :  { %v4241_v33 = vmul.f32 0.5, %v4211_v61  ;;  %v4242_v38 = vmul.f32 0.5, %v4216_v3  ;;  %v4231_v2 = vadd.f32 %v16885_v23, %v4108_v29  ;;  %v17064_v62 = vadd.f32 %v16883_v60, %v4108_v29 }
 0xaaa   :  { %4788 = vrot.lane.b32.xlu0 %v4554_v42, %s14202_s30  ;;  %4936 = vrot.lane.b32.xlu1 %v4557_v11, %s14202_s30  ;;  %14070 = vtanh.f32 %v4239_v58  ;;  %v4243_v8 = vmul.f32 0.5, %v4221_v50  ;;  %v4559_v57 = vmul.f32 0.5, %v4558_v53  ;;  %v4244_v12 = vmul.f32 0.5, %v17058_v13 }
 0xaab   :  { %14072 = vtanh.f32 %v4240_v45  ;;  %v4562_v36 = vmul.f32 0.5, %v4561_v21  ;;  %v4245_v25 = vmul.f32 0.5, %v4231_v2  ;;  %v4246_v22 = vmul.f32 0.5, %v17064_v62 }
 0xaac   :  { %14074 = vtanh.f32 %v4241_v33  ;;  %v4290_v60 = vrot.slane %v16807_v24, %v16715_v26 }
 0xaad   :  { %14076 = vtanh.f32 %v4242_v38 }
 0xaae   :  { %5011 = vrot.lane.b32.xlu0 %v4559_v57, %s14202_s30  ;;  %5159 = vrot.lane.b32.xlu1 %v4562_v36, %s14202_s30  ;;  %14078 = vtanh.f32 %v4243_v8 }
 0xaaf   :  { %14080 = vtanh.f32 %v4244_v12 }
 0xab0   :  { %14082 = vtanh.f32 %v4245_v25 }
 0xab1   :  { %14084 = vtanh.f32 %v4246_v22  ;;  %v3936_v22 = vld [vmem:[%s19572_s17 + $0x50] sm:$0xff] }
 0xab2   :  { %4291 = vrot.lane.b32.xlu0 %v16811_v40, %s14199_s11  ;;  %4293 = vrot.lane.b32.xlu1 %v4290_v60, %s14199_s11 }
 0xab4   :  { %v14071_v23 = vpop.eup %14070 }
 0xab5   :  { %v14073_v18 = vpop.eup %14072  ;;  %v4255_v19 = vmul.f32 0.5, %v14071_v23 }
 0xab6   :  { %v14075_v44 = vpop.eup %14074  ;;  %v4256_v63 = vmul.f32 0.5, %v14073_v18 }
 0xab7   :  { %v14077_v52 = vpop.eup %14076  ;;  %v4263_v4 = vadd.f32 0.5, %v4255_v19  ;;  %v4257_v39 = vmul.f32 0.5, %v14075_v44  ;;  %v4560_v44 = vsub.f32 %v16959_v48, %v16966_v30 }
 0xab8   :  { %v14079_v41 = vpop.eup %14078  ;;  %v4264_v31 = vadd.f32 0.5, %v4256_v63  ;;  %v4258_v35 = vmul.f32 0.5, %v14077_v52  ;;  %v4563_v52 = vsub.f32 %v16961_v7, %v16966_v30 }
 0xab9   :  { %v14081_v24 = vpop.eup %14080  ;;  %v4271_v16 = vmul.f32 %v4263_v4, %v4201_v28  ;;  %v4265_v53 = vadd.f32 0.5, %v4257_v39  ;;  %v4259_v29 = vmul.f32 0.5, %v14079_v41 }
 0xaba   :  { %v14083_v51 = vpop.eup %14082  ;;  %v4272_v11 = vmul.f32 %v4264_v31, %v4206_v34  ;;  %v4266_v40 = vadd.f32 0.5, %v4258_v35  ;;  %v4260_v42 = vmul.f32 0.5, %v14081_v24 }
 0xabb   :  { %v14085_v21 = vpop.eup %14084  ;;  %12906 = vmatprep.mubr.msk.f32.mxu1 %vm3753_vm14, %v4271_v16  ;;  %v4273_v58 = vmul.f32 %v4265_v53, %v4211_v61  ;;  %v4267_v45 = vadd.f32 0.5, %v4259_v29  ;;  %v4261_v33 = vmul.f32 0.5, %v14083_v51  ;;  %v19871_v29 = vld [vmem:[#allocation6_spill] sm:$0xff] }
 0xabc   :  { %12907 = vmatmul.mubr.msk.f32.vlgmr.msra.gmra.mrb[22].mxu1 %vm3753_vm14, %v4272_v11  ;;  %v4274_v38 = vmul.f32 %v4266_v40, %v4216_v3  ;;  %v4268_v28 = vadd.f32 0.5, %v4260_v42  ;;  %v4262_v8 = vmul.f32 0.5, %v14085_v21 }
 0xabd   :  { %12909 = vmatprep.mubr.msk.f32.mxu1 %vm3753_vm14, %v4273_v58  ;;  %13579 = vmatpush3.bf16.msra.mxu1 %v17023_v32  ;;  %v4275_v34 = vmul.f32 %v4267_v45, %v4221_v50  ;;  %v4269_v57 = vadd.f32 0.5, %v4261_v33  ;;  %v3934_v50 = vld [vmem:[%s19572_s17 + $0x40] sm:$0xff] }
 0xabe   :  { %13580 = vmatprep.subr.bf16.mxu1 %v19847_v10  ;;  %v4276_v61 = vmul.f32 %v4268_v28, %v17058_v13  ;;  %v4270_v12 = vadd.f32 0.5, %v4262_v8  ;;  %v3935_v13 = vld [vmem:[%s19572_s17 + $0x48] sm:$0xff] }
 0xabf   :  { %v4277_v36 = vmul.f32 %v4269_v57, %v4231_v2  ;;  %v13596_v2 = vpack.c.bf16 %v3935_v13, %v3934_v50 }
 0xac0   :  { %12910 = vmatmul.mubr.msk.f32.gmra.mrb[24].mxu1 %vm3753_vm14, %v4274_v38  ;;  %v4278_v3 = vmul.f32 %v4270_v12, %v17064_v62  ;;  %v3937_v62 = vld [vmem:[%s19572_s17 + $0x58] sm:$0xff] }
 0xac1   :  { %12912 = vmatprep.mubr.msk.f32.mxu1 %vm3753_vm14, %v4275_v34  ;;  %13582 = vmatpush3.bf16.msra.mxu1 %v17028_v43  ;;  %v13599_v23 = vpack.c.bf16 %v3937_v62, %v3936_v22 }
 0xac2   :  { %13589 = vmatprep.subr.bf16.mxu1 %v19847_v10 }
 0xac4   :  { %12913 = vmatmul.mubr.msk.f32.gmra.mrb[26].mxu1 %vm3753_vm14, %v4276_v61 }
 0xac5   :  { %12915 = vmatprep.mubr.msk.f32.mxu1 %vm3753_vm14, %v4277_v36 }
 0xac8   :  { %12916 = vmatmul.mubr.msk.f32.gmra.mrb[28].mxu1 %vm3753_vm14, %v4278_v3 }
 0xac9   :  { %12937 = vmatprep.mubr.msk.f32.mxu1 %vm14186_vm0, %v19848_v5 }
 0xb18   :  { %v4639_v25 = vpop.permute.xlu0 %4638  ;;  %v4714_v60 = vpop.permute.xlu1 %4713 }
 0xb19   :  { %12938 = vmatmul.mubr.msk.f32.vlgmr.msra.gmra.mrb[30].mxu1 %vm1969_vm1, %v4639_v25  ;;  %12949 = vmatmul.mubr.msk.f32.vlgmr.msra.gmra.mrb[30].mxu0 %vm1969_vm1, %v4714_v60 }
 0xb1a   :  { %13591 = vmatpush3.bf16.msra.mxu1 %v17023_v32  ;;  %13597 = vmatpush3.bf16.msra.mxu0 %v13596_v2  ;;  %v4555_v32 = vsub.f32 %v16957_v47, %v16966_v30 }
 0xb1b   :  { %13592 = vmatprep.subr.bf16.mxu1 %v19847_v10  ;;  %13598 = vmatprep.subr.bf16.mxu0 %v19847_v10 }
 0xb1c   :  { %12959 = vmatprep.mubr.msk.f32.mxu1 %vm14186_vm0, %v19848_v5  ;;  %12970 = vmatprep.mubr.msk.f32.mxu0 %vm14186_vm0, %v19848_v5  ;;  %v4789_v18 = vpop.permute.xlu0 %4788 }
 0xb1e   :  { %13594 = vmatpush3.bf16.msra.mxu1 %v17028_v43  ;;  %13600 = vmatpush3.bf16.msra.mxu0 %v13599_v23  ;;  %v4937_v43 = vpop.permute.xlu1 %4936 }
 0xb1f   :  { %13601 = vmatprep.subr.bf16.mxu1 %v19847_v10  ;;  %13607 = vmatprep.subr.bf16.mxu0 %v19847_v10 }
 0xb20   :  { %v5012_v19 = vpop.permute.xlu0 %5011 }
 0xb21   :  { %12960 = vmatmul.mubr.msk.f32.vlgmr.msra.gmra.mrb[32].mxu1 %vm1969_vm1, %v4789_v18  ;;  %12971 = vmatmul.mubr.msk.f32.vlgmr.msra.gmra.mrb[32].mxu0 %vm1969_vm1, %v4555_v32 }
 0xb22   :  { %13603 = vmatpush3.bf16.msra.mxu1 %v13596_v2  ;;  %13609 = vmatpush3.bf16.msra.mxu0 %v13596_v2  ;;  %v5160_v63 = vpop.permute.xlu1 %5159 }
 0xb23   :  { %13604 = vmatprep.subr.bf16.mxu1 %v19847_v10  ;;  %13610 = vmatprep.subr.bf16.mxu0 %v19847_v10 }
 0xb24   :  { %12981 = vmatprep.mubr.msk.f32.mxu1 %vm14186_vm0, %v19848_v5  ;;  %12992 = vmatprep.mubr.msk.f32.mxu0 %vm14186_vm0, %v19848_v5 }
 0xb26   :  { %13606 = vmatpush3.bf16.msra.mxu1 %v13599_v23  ;;  %13612 = vmatpush3.bf16.msra.mxu0 %v13599_v23 }
 0xb27   :  { %13613 = vmatprep.subr.bf16.mxu1 %v19847_v10  ;;  %13619 = vmatprep.subr.bf16.mxu0 %v19847_v10 }
 0xb29   :  { %12982 = vmatmul.mubr.msk.f32.vlgmr.msra.gmra.mrb[34].mxu1 %vm1969_vm1, %v4937_v43  ;;  %12993 = vmatmul.mubr.msk.f32.vlgmr.msra.gmra.mrb[34].mxu0 %vm1969_vm1, %v5012_v19 }
 0xb2a   :  { %13615 = vmatpush3.bf16.msra.mxu1 %v13596_v2  ;;  %13621 = vmatpush3.bf16.msra.mxu0 %v13596_v2 }
 0xb2b   :  { %13616 = vmatprep.subr.bf16.mxu1 %v19847_v10  ;;  %13622 = vmatprep.subr.bf16.mxu0 %v19847_v10 }
 0xb2c   :  { %13003 = vmatprep.mubr.msk.f32.mxu1 %vm14186_vm0, %v19848_v5  ;;  %13014 = vmatprep.mubr.msk.f32.mxu0 %vm14186_vm0, %v19848_v5 }
 0xb2e   :  { %13618 = vmatpush3.bf16.msra.mxu1 %v13599_v23  ;;  %13624 = vmatpush3.bf16.msra.mxu0 %v13599_v23 }
 0xb2f   :  { %13625 = vmatprep.subr.bf16.mxu1 %v19847_v10  ;;  %13631 = vmatprep.subr.bf16.mxu0 %v19847_v10 }
 0xb31   :  { %13004 = vmatmul.mubr.msk.f32.vlgmr.msra.gmra.mrb[36].mxu1 %vm1969_vm1, %v4560_v44  ;;  %13015 = vmatmul.mubr.msk.f32.vlgmr.msra.gmra.mrb[36].mxu0 %vm1969_vm1, %v5160_v63 }
 0xb32   :  { %13627 = vmatpush3.bf16.msra.mxu1 %v13596_v2  ;;  %13025 = vmatprep.mubr.msk.f32.mxu1 %vm14186_vm0, %v19848_v5 }
 0xb33   :  { %13628 = vmatprep.subr.bf16.mxu1 %v19847_v10  ;;  %13036 = vmatprep.mubr.msk.f32.mxu0 %vm14186_vm0, %v19848_v5 }
 0xb36   :  { %13630 = vmatpush3.bf16.msra.mxu1 %v13599_v23 }
 0xb37   :  { %13637 = vmatprep.subr.bf16.mxu1 %v19847_v10 }
 0xb39   :  { %13026 = vmatmul.mubr.msk.f32.vlgmr.msra.gmra.mrb[38].mxu1 %vm1969_vm1, %v4563_v52 }
 0xb3a   :  { %13047 = vmatprep.mubr.msk.f32.mxu1 %vm14186_vm0, %v19848_v5 }
 0xb8f   :  { %v17153_v4 = vpop.f32.mrb[22].mxu1 }
 0xb90   :  { %v17155_v39 = vpop.f32.mrb[23].mxu1 }
 0xb93   :  { %v17157_v41 = vpop.f32.mrb[24].mxu1 }
 0xb94   :  { %v17159_v31 = vpop.f32.mrb[25].mxu1 }
 0xb97   :  { %v17161_v35 = vpop.f32.mrb[26].mxu1 }
 0xb98   :  { %v17163_v24 = vpop.f32.mrb[27].mxu1 }
 0xb9b   :  { %v17165_v30 = vpop.f32.mrb[28].mxu1 }
 0xb9c   :  { %v17167_v16 = vpop.f32.mrb[29].mxu1 }
 0xbec   :  { %v4708_v53 = vpop.f32.mrb[30].mxu1  ;;  %v4783_v11 = vpop.f32.mrb[30].mxu0 }
 0xbed   :  { %v5436_v51 = vrot.slane %v4708_v53, %v19871_v29  ;;  %v12939_v40 = vpop.f32.mrb[31].mxu1  ;;  %v5558_v42 = vcombine.high %v4783_v11, %v4783_v11  ;;  %v5565_v21 = vrot.slane %v4783_v11, %v19871_v29  ;;  %v12950_v58 = vpop.f32.mrb[31].mxu0  ;;  %v5429_v36 = vcombine.high %v4708_v53, %v4708_v53 }
 0xbef   :  { %v5444_v45 = vcombine.high %v5436_v51, %v5436_v51  ;;  %v5452_v33 = vrot.slane %v5436_v51, %v19871_v29  ;;  %v5581_v38 = vrot.slane %v5565_v21, %v19871_v29  ;;  %v5573_v28 = vcombine.high %v5565_v21, %v5565_v21 }
 0xbf0   :  { %v5572_v57 = vrot.slane %v5558_v42, %v19871_v29  ;;  %v5443_v18 = vrot.slane %v5429_v36, %v19871_v29 }
 0xbf1   :  { %v5481_v8 = vrot.slane %v5452_v33, %v19808_v1  ;;  %v5474_v34 = vcombine.high %v5452_v33, %v5452_v33  ;;  %v5610_v61 = vrot.slane %v5581_v38, %v19808_v1  ;;  %v5466_v12 = vrot.slane %v5444_v45, %v19871_v29 }
 0xbf2   :  { %v5595_v25 = vrot.slane %v5573_v28, %v19871_v29  ;;  %v5588_v23 = vrot.slane %v5572_v57, %v19871_v29  ;;  %v5603_v43 = vcombine.high %v5581_v38, %v5581_v38  ;;  %v5445_v63 = vcombine.high %v5443_v18, %v5443_v18 }
 0xbf3   :  { %5510 = vrot.lane.b32.xlu0 %v5481_v8, %s14199_s11  ;;  %5639 = vrot.lane.b32.xlu1 %v5610_v61, %s14199_s11  ;;  %v5489_v2 = vrot.slane %v5474_v34, %v19808_v1  ;;  %v5485_v60 = vrot.slane %v5466_v12, %v19808_v1  ;;  %v5476_v44 = vcombine.high %v5466_v12, %v5466_v12 }
 0xbf4   :  { %v4858_v3 = vpop.f32.mrb[32].mxu1  ;;  %v17179_v50 = vpop.f32.mrb[32].mxu0  ;;  %v5614_v32 = vrot.slane %v5595_v25, %v19808_v1  ;;  %v5626_v19 = vrot.slane %v5588_v23, %v19808_v1  ;;  %v5574_v52 = vcombine.high %v5572_v57, %v5572_v57  ;;  %v5618_v45 = vrot.slane %v5603_v43, %v19808_v1 }
 0xbf5   :  { %v12961_v13 = vpop.f32.mrb[33].mxu1  ;;  %v17185_v22 = vadd.f32 %v17179_v50, %v17034_v27  ;;  %v12972_v62 = vpop.f32.mrb[33].mxu0  ;;  %v5459_v33 = vrot.slane %v5443_v18, %v19871_v29  ;;  %v5493_v34 = vrot.slane %v5476_v44, %v19808_v1  ;;  %v5605_v57 = vcombine.high %v5595_v25, %v5595_v25 }
 0xbf6   :  { %v5473_v12 = vrot.slane %v5445_v63, %v19871_v29  ;;  %v5602_v13 = vrot.slane %v5574_v52, %v19871_v29 }
 0xbf7   :  { %5514 = vrot.lane.b32.xlu0 %v5489_v2, %s14199_s11  ;;  %5512 = vrot.lane.b32.xlu1 %v5485_v60, %s14199_s11  ;;  %v5497_v61 = vrot.slane %v5459_v33, %v19808_v1  ;;  %v5622_v36 = vrot.slane %v5605_v57, %v19808_v1  ;;  %v5475_v43 = vcombine.high %v5459_v33, %v5459_v33 }
 0xbf8   :  { %v5630_v52 = vrot.slane %v5602_v13, %v19808_v1 }
 0xbfb   :  { %5641 = vrot.lane.b32.xlu0 %v5614_v32, %s14199_s11  ;;  %5647 = vrot.lane.b32.xlu1 %v5626_v19, %s14199_s11  ;;  %v5501_v32 = vrot.slane %v5473_v12, %v19808_v1 }
 0xbfc   :  { %v17195_v51 = vpop.f32.mrb[34].mxu1  ;;  %v17204_v21 = vpop.f32.mrb[34].mxu0 }
 0xbfd   :  { %v17199_v40 = vadd.f32 %v17195_v51, %v4708_v53  ;;  %v17202_v42 = vsub.f32 %v17195_v51, %v4708_v53  ;;  %v12983_v58 = vpop.f32.mrb[35].mxu1  ;;  %v17209_v38 = vadd.f32 %v17204_v21, %v4783_v11  ;;  %v17212_v28 = vsub.f32 %v17204_v21, %v4783_v11  ;;  %v12994_v8 = vpop.f32.mrb[35].mxu0 }
 0xbfe   :  { %v5687_v53 = vcombine.high %v4858_v3, %v4858_v3  ;;  %v5694_v11 = vrot.slane %v4858_v3, %v19871_v29  ;;  %v5477_v58 = vcombine.high %v5473_v12, %v5473_v12  ;;  %v5604_v8 = vcombine.high %v5588_v23, %v5588_v23 }
 0xbff   :  { %5643 = vrot.lane.b32.xlu0 %v5618_v45, %s14199_s11  ;;  %5516 = vrot.lane.b32.xlu1 %v5493_v34, %s14199_s11  ;;  %v5505_v45 = vrot.slane %v5475_v43, %v19808_v1  ;;  %v5606_v23 = vcombine.high %v5602_v13, %v5602_v13 }
 0xc00   :  { %v5701_v25 = vrot.slane %v5687_v53, %v19871_v29  ;;  %v5710_v33 = vrot.slane %v5694_v11, %v19871_v29  ;;  %v5509_v57 = vrot.slane %v5477_v58, %v19808_v1  ;;  %v5702_v53 = vcombine.high %v5694_v11, %v5694_v11 }
 0xc01   :  { %v5638_v11 = vrot.slane %v5606_v23, %v19808_v1 }
 0xc02   :  { %v5703_v34 = vcombine.high %v5701_v25, %v5701_v25 }
 0xc03   :  { %5518 = vrot.lane.b32.xlu0 %v5497_v61, %s14199_s11  ;;  %5645 = vrot.lane.b32.xlu1 %v5622_v36, %s14199_s11  ;;  %v5634_v36 = vrot.slane %v5604_v8, %v19808_v1 }
 0xc04   :  { %v17224_v2 = vpop.f32.mrb[36].mxu1  ;;  %v17231_v60 = vpop.f32.mrb[36].mxu0  ;;  %v5731_v43 = vrot.slane %v5703_v34, %v19871_v29 }
 0xc05   :  { %v17229_v62 = vadd.f32 %v17224_v2, %v17034_v27  ;;  %v13005_v18 = vpop.f32.mrb[37].mxu1  ;;  %v17235_v19 = vadd.f32 %v17231_v60, %v4858_v3  ;;  %v17238_v44 = vsub.f32 %v17231_v60, %v4858_v3  ;;  %v13016_v63 = vpop.f32.mrb[37].mxu0 }
 0xc06   :  { %v5717_v18 = vrot.slane %v5701_v25, %v19871_v29  ;;  %v5724_v63 = vrot.slane %v5702_v53, %v19871_v29  ;;  %v5732_v25 = vcombine.high %v5710_v33, %v5710_v33  ;;  %v5735_v34 = vcombine.high %v5731_v43, %v5731_v43 }
 0xc07   :  { %5520 = vrot.lane.b32.xlu0 %v5501_v32, %s14199_s11  ;;  %5649 = vrot.lane.b32.xlu1 %v5630_v52, %s14199_s11  ;;  %v5739_v32 = vrot.slane %v5710_v33, %v19808_v1  ;;  %v5759_v52 = vrot.slane %v5731_v43, %v19808_v1  ;;  %v5953_v53 = vrot.slane %v17195_v51, %v19871_v29 }
 0xc08   :  { %v5733_v58 = vcombine.high %v5717_v18, %v5717_v18  ;;  %v5743_v13 = vrot.slane %v5724_v63, %v19808_v1  ;;  %v5755_v23 = vrot.slane %v5717_v18, %v19808_v1 }
 0xc09   :  { %v5969_v43 = vrot.slane %v5953_v53, %v19871_v29 }
 0xc0a   :  { %v5763_v8 = vrot.slane %v5733_v58, %v19808_v1  ;;  %v6075_v58 = vcombine.high %v17204_v21, %v17204_v21 }
 0xc0b   :  { %5522 = vrot.lane.b32.xlu0 %v5505_v45, %s14199_s11  ;;  %5524 = vrot.lane.b32.xlu1 %v5509_v57, %s14199_s11  ;;  %v6082_v45 = vrot.slane %v17204_v21, %v19871_v29  ;;  %v5747_v57 = vrot.slane %v5732_v25, %v19808_v1 }
 0xc0c   :  { %v17248_v3 = vpop.f32.mrb[38].mxu1 }
 0xc0d   :  { %v17252_v61 = vadd.f32 %v17248_v3, %v17034_v27  ;;  %v13027_v12 = vpop.f32.mrb[39].mxu1  ;;  %v6090_v33 = vcombine.high %v6082_v45, %v6082_v45 }
 0xc0e   :  { %v6098_v12 = vrot.slane %v6082_v45, %v19871_v29  ;;  %v5998_v45 = vrot.slane %v5969_v43, %v19808_v1 }
 0xc0f   :  { %5651 = vrot.lane.b32.xlu0 %v5634_v36, %s14199_s11  ;;  %5768 = vrot.lane.b32.xlu1 %v5739_v32, %s14199_s11  ;;  %v5767_v36 = vrot.slane %v5735_v34, %v19808_v1  ;;  %v5734_v32 = vcombine.high %v5724_v63, %v5724_v63  ;;  %v6112_v25 = vrot.slane %v6090_v33, %v19871_v29 }
 0xc10   :  { %v6120_v18 = vcombine.high %v6098_v12, %v6098_v12  ;;  %v5946_v63 = vcombine.high %v17195_v51, %v17195_v51 }
 0xc11   :  { %v6131_v34 = vrot.slane %v6112_v25, %v19808_v1 }
 0xc13   :  { %5653 = vrot.lane.b32.xlu0 %v5638_v11, %s14199_s11  ;;  %5778 = vrot.lane.b32.xlu1 %v5759_v52, %s14199_s11  ;;  %v6127_v11 = vrot.slane %v6098_v12, %v19808_v1  ;;  %v5961_v52 = vcombine.high %v5953_v53, %v5953_v53  ;;  %v5991_v53 = vcombine.high %v5969_v43, %v5969_v43 }
 0xc14   :  { %v5960_v12 = vrot.slane %v5946_v63, %v19871_v29 }
 0xc15   :  { %v5983_v21 = vrot.slane %v5961_v52, %v19871_v29 }
 0xc17   :  { %5770 = vrot.lane.b32.xlu0 %v5743_v13, %s14199_s11  ;;  %5780 = vrot.lane.b32.xlu1 %v5763_v8, %s14199_s11  ;;  %v5751_v13 = vrot.slane %v5734_v32, %v19808_v1  ;;  %v6089_v8 = vrot.slane %v6075_v58, %v19871_v29  ;;  %v6122_v32 = vcombine.high %v6112_v25, %v6112_v25 }
 0xc18   :  { %v5993_v25 = vcombine.high %v5983_v21, %v5983_v21 }
 0xc19   :  { %v6105_v33 = vrot.slane %v6089_v8, %v19871_v29  ;;  %v6091_v51 = vcombine.high %v6089_v8, %v6089_v8  ;;  %v6139_v52 = vrot.slane %v6122_v32, %v19808_v1  ;;  %v6204_v32 = vcombine.high %v17224_v2, %v17224_v2 }
 0xc1a   :  { %v6010_v8 = vrot.slane %v5993_v25, %v19808_v1 }
 0xc1b   :  { %5772 = vrot.lane.b32.xlu0 %v5747_v57, %s14199_s11  ;;  %5782 = vrot.lane.b32.xlu1 %v5767_v36, %s14199_s11  ;;  %v6135_v57 = vrot.slane %v6120_v18, %v19808_v1  ;;  %v6002_v36 = vrot.slane %v5983_v21, %v19808_v1  ;;  %v6143_v43 = vrot.slane %v6105_v33, %v19808_v1 }
 0xc1c   :  { %v6119_v58 = vrot.slane %v6091_v51, %v19871_v29  ;;  %v6121_v63 = vcombine.high %v6105_v33, %v6105_v33  ;;  %v6340_v21 = vrot.slane %v17231_v60, %v19871_v29  ;;  %v6218_v25 = vrot.slane %v6204_v32, %v19871_v29 }
 0xc1e   :  { %v6147_v18 = vrot.slane %v6119_v58, %v19808_v1 }
 0xc1f   :  { %5776 = vrot.lane.b32.xlu0 %v5755_v23, %s14199_s11  ;;  %6156 = vrot.lane.b32.xlu1 %v6127_v11, %s14203_s1  ;;  %v6006_v23 = vrot.slane %v5991_v53, %v19808_v1  ;;  %v5976_v11 = vrot.slane %v5960_v12, %v19871_v29  ;;  %v6151_v53 = vrot.slane %v6121_v63, %v19808_v1 }
 0xc21   :  { %v5992_v33 = vcombine.high %v5976_v11, %v5976_v11 }
 0xc23   :  { %5774 = vrot.lane.b32.xlu0 %v5751_v13, %s14199_s11  ;;  %6027 = vrot.lane.b32.xlu1 %v5998_v45, %s14203_s1  ;;  %v5962_v13 = vcombine.high %v5960_v12, %v5960_v12  ;;  %v6014_v45 = vrot.slane %v5976_v11, %v19808_v1  ;;  %v6123_v12 = vcombine.high %v6119_v58, %v6119_v58 }
 0xc24   :  { %v6022_v58 = vrot.slane %v5992_v33, %v19808_v1 }
 0xc27   :  { %6158 = vrot.lane.b32.xlu0 %v6131_v34, %s14203_s1  ;;  %6160 = vrot.lane.b32.xlu1 %v6135_v57, %s14203_s1  ;;  %v17316_v34 = vrot.slane %v5962_v13, %v19871_v29  ;;  %v6211_v57 = vrot.slane %v17224_v2, %v19871_v29  ;;  %v6333_v2 = vcombine.high %v17231_v60, %v17231_v60 }
 0xc29   :  { %v6227_v51 = vrot.slane %v6211_v57, %v19871_v29 }
 0xc2b   :  { %6029 = vrot.lane.b32.xlu0 %v6002_v36, %s14203_s1  ;;  %6031 = vrot.lane.b32.xlu1 %v6006_v23, %s14203_s1  ;;  %v6018_v36 = vrot.slane %v17316_v34, %v19808_v1  ;;  %v6155_v23 = vrot.slane %v6123_v12, %v19808_v1  ;;  %v6249_v13 = vcombine.high %v6227_v51, %v6227_v51  ;;  %v4292_v12 = vpop.permute.xlu0 %4291 }
 0xc2c   :  { %v6256_v11 = vrot.slane %v6227_v51, %v19808_v1 }
 0xc2f   :  { %6164 = vrot.lane.b32.xlu0 %v6143_v43, %s14203_s1  ;;  %6162 = vrot.lane.b32.xlu1 %v6139_v52, %s14203_s1  ;;  %v6219_v43 = vcombine.high %v6211_v57, %v6211_v57  ;;  %v6356_v52 = vrot.slane %v6340_v21, %v19871_v29 }
 0xc31   :  { %v6385_v63 = vrot.slane %v6356_v52, %v19808_v1  ;;  %v6378_v51 = vcombine.high %v6356_v52, %v6356_v52 }
 0xc33   :  { %6035 = vrot.lane.b32.xlu0 %v6014_v45, %s14203_s1  ;;  %6166 = vrot.lane.b32.xlu1 %v6147_v18, %s14203_s1  ;;  %v6348_v45 = vcombine.high %v6340_v21, %v6340_v21  ;;  %v6241_v18 = vrot.slane %v6219_v43, %v19871_v29  ;;  %v6234_v21 = vrot.slane %v6218_v25, %v19871_v29 }
 0xc35   :  { %v6370_v57 = vrot.slane %v6348_v45, %v19871_v29  ;;  %v6260_v33 = vrot.slane %v6241_v18, %v19808_v1  ;;  %v6272_v32 = vrot.slane %v6234_v21, %v19808_v1 }
 0xc37   :  { %6033 = vrot.lane.b32.xlu0 %v6010_v8, %s14203_s1  ;;  %6168 = vrot.lane.b32.xlu1 %v6151_v53, %s14203_s1  ;;  %v6264_v8 = vrot.slane %v6249_v13, %v19808_v1  ;;  %v4294_v53 = vpop.permute.xlu1 %4293  ;;  %v6389_v60 = vrot.slane %v6370_v57, %v19808_v1  ;;  %v6393_v13 = vrot.slane %v6378_v51, %v19808_v1 }
 0xc38   :  { %v6380_v45 = vcombine.high %v6370_v57, %v6370_v57 }
 0xc3b   :  { %6037 = vrot.lane.b32.xlu0 %v6018_v36, %s14203_s1  ;;  %6170 = vrot.lane.b32.xlu1 %v6155_v23, %s14203_s1  ;;  %v6347_v36 = vrot.slane %v6333_v2, %v19871_v29  ;;  %v4295_v23 = vsel %vm1969_vm1, %v4292_v12, %v4294_v53  ;;  %v6397_v53 = vrot.slane %v6380_v45, %v19808_v1 }
 0xc3c   :  { %v17362_v52 = vadd.f32 %v17155_v39, %v4295_v23  ;;  %v17366_v2 = vadd.f32 %v17157_v41, %v4295_v23  ;;  %v17373_v12 = vadd.f32 %v17159_v31, %v4295_v23  ;;  %v6462_v45 = vcombine.high %v17248_v3, %v17248_v3 }
 0xc3d   :  { %v6363_v43 = vrot.slane %v6347_v36, %v19871_v29 }
 0xc3e   :  { %v4426_v39 = vmul.f32 0.5, %v17362_v52  ;;  %v4429_v41 = vmul.f32 0.5, %v17366_v2 }
 0xc3f   :  { %6039 = vrot.lane.b32.xlu0 %v6022_v58, %s14203_s1  ;;  %6285 = vrot.lane.b32.xlu1 %v6256_v11, %s14203_s1  ;;  %v6220_v58 = vcombine.high %v6218_v25, %v6218_v25  ;;  %v17358_v11 = vadd.f32 %v17153_v4, %v4295_v23  ;;  %v6349_v25 = vcombine.high %v6347_v36, %v6347_v36 }
 0xc41   :  { %v6248_v57 = vrot.slane %v6220_v58, %v19871_v29  ;;  %v4427_v4 = vmul.f32 0.5, %v17358_v11  ;;  %v6377_v51 = vrot.slane %v6349_v25, %v19871_v29  ;;  %v17389_v58 = vadd.f32 %v17161_v35, %v4295_v23 }
 0xc42   :  { %v6379_v25 = vcombine.high %v6363_v43, %v6363_v43 }
 0xc43   :  { %6414 = vrot.lane.b32.xlu0 %v6385_v63, %s14203_s1  ;;  %6289 = vrot.lane.b32.xlu1 %v6264_v8, %s14203_s1  ;;  %v6401_v63 = vrot.slane %v6363_v43, %v19808_v1  ;;  %v6251_v8 = vcombine.high %v6241_v18, %v6241_v18  ;;  %v17380_v18 = vadd.f32 %v17163_v24, %v4295_v23  ;;  %14086 = vtanh.f32 %v4427_v4 }
 0xc44   :  { %v6276_v31 = vrot.slane %v6248_v57, %v19808_v1  ;;  %14088 = vtanh.f32 %v4426_v39  ;;  %v4431_v35 = vmul.f32 0.5, %v17389_v58  ;;  %v6381_v4 = vcombine.high %v6377_v51, %v6377_v51 }
 0xc45   :  { %v6268_v36 = vrot.slane %v6251_v8, %v19808_v1  ;;  %14090 = vtanh.f32 %v4429_v41  ;;  %v4430_v24 = vmul.f32 0.5, %v17380_v18  ;;  %v6405_v8 = vrot.slane %v6377_v51, %v19808_v1 }
 0xc46   :  { %v6476_v39 = vrot.slane %v6462_v45, %v19871_v29  ;;  %v6409_v41 = vrot.slane %v6379_v25, %v19808_v1 }
 0xc47   :  { %6287 = vrot.lane.b32.xlu0 %v6260_v33, %s14203_s1  ;;  %6416 = vrot.lane.b32.xlu1 %v6389_v60, %s14203_s1  ;;  %v6250_v33 = vcombine.high %v6234_v21, %v6234_v21  ;;  %v6469_v60 = vrot.slane %v17248_v3, %v19871_v29  ;;  %v17406_v3 = vadd.f32 %v17167_v16, %v4295_v23 }
 0xc48   :  { %v6492_v51 = vrot.slane %v6476_v39, %v19871_v29 }
 0xc49   :  { %v6280_v21 = vrot.slane %v6250_v33, %v19808_v1  ;;  %v6485_v33 = vrot.slane %v6469_v60, %v19871_v29 }
 0xc4a   :  { %v6530_v25 = vrot.slane %v6492_v51, %v19808_v1  ;;  %v6508_v7 = vcombine.high %v6492_v51, %v6492_v51 }
 0xc4b   :  { %6293 = vrot.lane.b32.xlu0 %v6272_v32, %s14203_s1  ;;  %6418 = vrot.lane.b32.xlu1 %v6393_v13, %s14203_s1  ;;  %v4428_v32 = vmul.f32 0.5, %v17373_v12  ;;  %v6252_v13 = vcombine.high %v6248_v57, %v6248_v57 }
 0xc4d   :  { %14092 = vtanh.f32 %v4428_v32  ;;  %v6284_v57 = vrot.slane %v6252_v13, %v19808_v1 }
 0xc4e   :  { %14094 = vtanh.f32 %v4430_v24 }
 0xc4f   :  { %6422 = vrot.lane.b32.xlu0 %v6401_v63, %s14203_s1  ;;  %6420 = vrot.lane.b32.xlu1 %v6397_v53, %s14203_s1  ;;  %v6477_v63 = vcombine.high %v6469_v60, %v6469_v60  ;;  %v17401_v53 = vadd.f32 %v17165_v30, %v4295_v23  ;;  %14096 = vtanh.f32 %v4431_v35  ;;  %v4432_v23 = vmul.f32 0.5, %v17406_v3 }
 0xc50   :  { %v6514_v60 = vrot.slane %v6485_v33, %v19808_v1 }
 0xc51   :  { %v6499_v43 = vrot.slane %v6477_v63, %v19871_v29  ;;  %v4433_v30 = vmul.f32 0.5, %v17401_v53  ;;  %v6507_v63 = vcombine.high %v6485_v33, %v6485_v33  ;;  %v5994_v33 = vcombine.high %v17316_v34, %v17316_v34 }
 0xc52   :  { %v5816_v34 = vcombine.high %v17179_v50, %v17179_v50 }
 0xc53   :  { %6291 = vrot.lane.b32.xlu0 %v6268_v36, %s14203_s1  ;;  %6295 = vrot.lane.b32.xlu1 %v6276_v31, %s14203_s1  ;;  %v14087_v36 = vpop.eup %14086  ;;  %v6413_v31 = vrot.slane %v6381_v4, %v19808_v1  ;;  %v6518_v32 = vrot.slane %v6499_v43, %v19808_v1  ;;  %14098 = vtanh.f32 %v4433_v30  ;;  %v6509_v35 = vcombine.high %v6499_v43, %v6499_v43 }
 0xc54   :  { %v14089_v16 = vpop.eup %14088  ;;  %14100 = vtanh.f32 %v4432_v23  ;;  %v6026_v26 = vrot.slane %v5994_v33, %v19808_v1 }
 0xc55   :  { %v14091_v24 = vpop.eup %14090  ;;  %v4442_v45 = vmul.f32 0.5, %v14089_v16  ;;  %v6522_v16 = vrot.slane %v6507_v63, %v19808_v1 }
 0xc57   :  { %6297 = vrot.lane.b32.xlu0 %v6280_v21, %s14203_s1  ;;  %6424 = vrot.lane.b32.xlu1 %v6405_v8, %s14203_s1  ;;  %v4443_v21 = vmul.f32 0.5, %v14087_v36  ;;  %v14093_v13 = vpop.eup %14092  ;;  %v6478_v8 = vcombine.high %v6476_v39, %v6476_v39  ;;  %v4450_v23 = vadd.f32 0.5, %v4442_v45  ;;  %v5823_v39 = vrot.slane %v17179_v50, %v19871_v29 }
 0xc59   :  { %v4451_v4 = vadd.f32 0.5, %v4443_v21  ;;  %v6506_v21 = vrot.slane %v6478_v8, %v19871_v29  ;;  %v4458_v8 = vmul.f32 %v4450_v23, %v17362_v52  ;;  %v5830_v23 = vrot.slane %v5816_v34, %v19871_v29 }
 0xc5b   :  { %6299 = vrot.lane.b32.xlu0 %v6284_v57, %s14203_s1  ;;  %6426 = vrot.lane.b32.xlu1 %v6409_v41, %s14203_s1  ;;  %v14095_v57 = vpop.eup %14094  ;;  %v4445_v41 = vmul.f32 0.5, %v14091_v24 }
 0xc5c   :  { %v14097_v30 = vpop.eup %14096  ;;  %v4446_v24 = vmul.f32 0.5, %v14095_v57  ;;  %v5831_v57 = vcombine.high %v5823_v39, %v5823_v39 }
 0xc5d   :  { %v4447_v63 = vmul.f32 0.5, %v14097_v30 }
 0xc5f   :  { %6428 = vrot.lane.b32.xlu0 %v6413_v31, %s14203_s1  ;;  %6545 = vrot.lane.b32.xlu1 %v6518_v32, %s14203_s1  ;;  %v4444_v31 = vmul.f32 0.5, %v14093_v13  ;;  %v6526_v32 = vrot.slane %v6509_v35, %v19808_v1  ;;  %v4459_v13 = vmul.f32 %v4451_v4, %v17358_v11  ;;  %v14099_v35 = vpop.eup %14098  ;;  %v6510_v11 = vcombine.high %v6506_v21, %v6506_v21 }
 0xc60   :  { %v4454_v4 = vadd.f32 0.5, %v4446_v24  ;;  %v4455_v51 = vadd.f32 0.5, %v4447_v63  ;;  %v4449_v52 = vmul.f32 0.5, %v14099_v35  ;;  %v6538_v24 = vrot.slane %v6508_v7, %v19808_v1  ;;  %v19875_v7 = vld [vmem:[#allocation11_spill] sm:$0xff] }
 0xc63   :  { %6543 = vrot.lane.b32.xlu0 %v6514_v60, %s14203_s1  ;;  %6551 = vrot.lane.b32.xlu1 %v6530_v25, %s14203_s1  ;;  %v4453_v60 = vadd.f32 0.5, %v4445_v41  ;;  %v4452_v25 = vadd.f32 0.5, %v4444_v31  ;;  %v14101_v41 = vpop.eup %14100  ;;  %v19872_v31 = vld [vmem:[#allocation20_spill] sm:$0xff] }
 0xc64   :  { %v17442_v30 = vmul.f32 %v4459_v13, %v19872_v31  ;;  %v5853_v13 = vrot.slane %v5831_v57, %v19871_v29  ;;  %v4448_v63 = vmul.f32 0.5, %v14101_v41 }
 0xc65   :  { %v5511_v36 = vpop.permute.xlu0 %5510  ;;  %v5640_v43 = vpop.permute.xlu1 %5639  ;;  %v4461_v50 = vmul.f32 %v4453_v60, %v17366_v2  ;;  %v4460_v33 = vmul.f32 %v4452_v25, %v17373_v12  ;;  %v6542_v12 = vrot.slane %v6510_v11, %v19808_v1  ;;  %v4462_v25 = vmul.f32 %v4454_v4, %v17380_v18 }
 0xc67   :  { %6547 = vrot.lane.b32.xlu0 %v6522_v16, %s14203_s1  ;;  %6549 = vrot.lane.b32.xlu1 %v6526_v32, %s14203_s1  ;;  %v6534_v16 = vrot.slane %v6506_v21, %v19808_v1  ;;  %v5839_v32 = vrot.slane %v5823_v39, %v19871_v29  ;;  %v19874_v39 = vld [vmem:[#allocation10_spill] sm:$0xff]  ;;  %v17464_v35 = vmul.f32 %v4460_v33, %v19875_v7  ;;  %v19876_v7 = vld [vmem:[#allocation16_spill] sm:$0xff] }
 0xc68   :  { %v17461_v34 = vmul.f32 %v4461_v50, %v19874_v39  ;;  %v5872_v33 = vrot.slane %v5853_v13, %v19808_v1 }
 0xc69   :  { %v5515_v45 = vpop.permute.xlu0 %5514  ;;  %v5513_v48 = vpop.permute.xlu1 %5512  ;;  %v5861_v11 = vcombine.high %v5839_v32, %v5839_v32  ;;  %v5868_v18 = vrot.slane %v5839_v32, %v19808_v1 }
 0xc6a   :  { %v5535_v2 = vmul.f32 %v5513_v48, %v17442_v30  ;;  %v4457_v48 = vadd.f32 0.5, %v4449_v52 }
 0xc6b   :  { %6041 = vrot.lane.b32.xlu0 %v6026_v26, %s14203_s1  ;;  %6553 = vrot.lane.b32.xlu1 %v6534_v16, %s14203_s1  ;;  %v19873_v26 = vld [vmem:[#allocation18_spill] sm:$0xff]  ;;  %v5832_v16 = vcombine.high %v5830_v23, %v5830_v23 }
 0xc6c   :  { %v17451_v47 = vmul.f32 %v4458_v8, %v19873_v26  ;;  %v4463_v8 = vmul.f32 %v4455_v51, %v17389_v58  ;;  %v5543_v4 = vsel %vm2201_vm12, %v5535_v2, 0.0  ;;  %v17474_v58 = vmul.f32 %v4462_v25, %v19876_v7  ;;  %v19877_v7 = vld [vmem:[#allocation15_spill] sm:$0xff] }
 0xc6d   :  { %v5642_v21 = vpop.permute.xlu0 %5641  ;;  %v17455_v60 = vpop.permute.xlu1 %5647  ;;  %v5846_v51 = vrot.slane %v5830_v23, %v19871_v29  ;;  %v5536_v2 = vmul.f32 %v5515_v45, %v17464_v35  ;;  %v5860_v23 = vrot.slane %v5832_v16, %v19871_v29 }
 0xc6e   :  { %v5534_v57 = vmul.f32 %v5511_v36, %v17451_v47  ;;  %v5664_v41 = vmul.f32 %v5642_v21, %v17442_v30  ;;  %v4456_v36 = vadd.f32 0.5, %v4448_v63  ;;  %v5663_v52 = vmul.f32 %v5640_v43, %v17451_v47 }
 0xc6f   :  { %6555 = vrot.lane.b32.xlu0 %v6538_v24, %s14203_s1  ;;  %6557 = vrot.lane.b32.xlu1 %v6542_v12, %s14203_s1  ;;  %v5863_v24 = vcombine.high %v5853_v13, %v5853_v13  ;;  %v5876_v63 = vrot.slane %v5861_v11, %v19808_v1  ;;  %v17487_v43 = vmul.f32 %v4463_v8, %v19877_v7  ;;  %v5545_v11 = vsel %vm2201_vm12, %v5536_v2, 0.0 }
 0xc70   :  { %v5542_v32 = vsel %vm2201_vm12, %v5534_v57, 0.0  ;;  %v5884_v16 = vrot.slane %v5846_v51, %v19808_v1  ;;  %v5671_v8 = vsel %vm2201_vm12, %v5663_v52, 0.0  ;;  %v5864_v2 = vcombine.high %v5860_v23, %v5860_v23 }
 0xc71   :  { %v5644_v26 = vpop.permute.xlu0 %5643  ;;  %v5517_v50 = vpop.permute.xlu1 %5516  ;;  %v5544_v13 = vadd.f32 %v5543_v4, %v5542_v32 }
 0xc72   :  { %v5665_v21 = vmul.f32 %v5644_v26, %v17464_v35  ;;  %v5537_v12 = vmul.f32 %v5517_v50, %v17461_v34  ;;  %v5880_v26 = vrot.slane %v5863_v24, %v19808_v1  ;;  %v4465_v50 = vmul.f32 %v4457_v48, %v17401_v53 }
 0xc73   :  { %5897 = vrot.lane.b32.xlu0 %v5868_v18, %s14203_s1  ;;  %5899 = vrot.lane.b32.xlu1 %v5872_v33, %s14203_s1  ;;  %v5672_v18 = vsel %vm2201_vm12, %v5664_v41, 0.0  ;;  %v4464_v33 = vmul.f32 %v4456_v36, %v17406_v3  ;;  %v5546_v53 = vadd.f32 %v5545_v11, %v5544_v13  ;;  %v5888_v3 = vrot.slane %v5860_v23, %v19808_v1 }
 0xc74   :  { %v5674_v41 = vsel %vm2201_vm12, %v5665_v21, 0.0  ;;  %v5547_v32 = vsel %vm2201_vm12, %v5537_v12, 0.0  ;;  %v5673_v24 = vadd.f32 %v5672_v18, %v5671_v8  ;;  %v5862_v36 = vcombine.high %v5846_v51, %v5846_v51  ;;  %v19878_v12 = vld [vmem:[#allocation12_spill] sm:$0xff]  ;;  %v19879_v18 = vld [vmem:[#allocation27_spill] sm:$0xff] }
 0xc75   :  { %v5519_v25 = vpop.permute.xlu0 %5518  ;;  %v5646_v45 = vpop.permute.xlu1 %5645  ;;  %v5548_v21 = vadd.f32 %v5547_v32, %v5546_v53  ;;  %v5667_v13 = vmul.f32 %v17455_v60, %v17474_v58  ;;  %v5896_v32 = vrot.slane %v5864_v2, %v19808_v1 }
 0xc76   :  { %v5538_v57 = vmul.f32 %v5519_v25, %v17474_v58  ;;  %v5666_v4 = vmul.f32 %v5646_v45, %v17461_v34  ;;  %v5675_v7 = vadd.f32 %v5674_v41, %v5673_v24  ;;  %v5892_v11 = vrot.slane %v5862_v36, %v19808_v1 }
 0xc77   :  { %5901 = vrot.lane.b32.xlu0 %v5876_v63, %s14203_s1  ;;  %5903 = vrot.lane.b32.xlu1 %v5880_v26, %s14203_s1  ;;  %v17508_v26 = vmul.f32 %v4464_v33, %v19878_v12 }
 0xc78   :  { %v5549_v25 = vsel %vm2201_vm12, %v5538_v57, 0.0  ;;  %v5676_v63 = vsel %vm2201_vm12, %v5666_v4, 0.0  ;;  %v17515_v57 = vmul.f32 %v4465_v50, %v19879_v18  ;;  %v5678_v50 = vsel %vm2201_vm12, %v5667_v13, 0.0 }
 0xc79   :  { %v5521_v48 = vpop.permute.xlu0 %5520  ;;  %v5650_v45 = vpop.permute.xlu1 %5649  ;;  %v5550_v4 = vadd.f32 %v5549_v25, %v5548_v21  ;;  %v5677_v8 = vadd.f32 %v5676_v63, %v5675_v7 }
 0xc7a   :  { %v5539_v52 = vmul.f32 %v5521_v48, %v17487_v43 }
 0xc7b   :  { %5905 = vrot.lane.b32.xlu0 %v5884_v16, %s14203_s1  ;;  %5907 = vrot.lane.b32.xlu1 %v5888_v3, %s14203_s1  ;;  %v5668_v16 = vmul.f32 %v5650_v45, %v17487_v43  ;;  %v5679_v7 = vadd.f32 %v5678_v50, %v5677_v8 }
 0xc7c   :  { %v5551_v51 = vsel %vm2201_vm12, %v5539_v52, 0.0 }
 0xc7d   :  { %v5523_v23 = vpop.permute.xlu0 %5522  ;;  %v5525_v41 = vpop.permute.xlu1 %5524  ;;  %v5552_v60 = vadd.f32 %v5551_v51, %v5550_v4  ;;  %v5680_v36 = vsel %vm2201_vm12, %v5668_v16, 0.0 }
 0xc7e   :  { %v5540_v33 = vmul.f32 %v5523_v23, %v17508_v26  ;;  %v5541_v24 = vmul.f32 %v5525_v41, %v17515_v57  ;;  %v5681_v21 = vadd.f32 %v5680_v36, %v5679_v7 }
 0xc7f   :  { %5909 = vrot.lane.b32.xlu0 %v5892_v11, %s14203_s1  ;;  %5911 = vrot.lane.b32.xlu1 %v5896_v32, %s14203_s1 }
 0xc80   :  { %v5553_v53 = vsel %vm2201_vm12, %v5540_v33, 0.0  ;;  %v5555_v25 = vsel %vm2201_vm12, %v5541_v24, 0.0 }
 0xc81   :  { %v5554_v48 = vadd.f32 %v5553_v53, %v5552_v60  ;;  %v5652_v3 = vpop.permute.xlu0 %5651  ;;  %v17529_v52 = vpop.permute.xlu1 %5768 }
 0xc82   :  { %v5669_v63 = vmul.f32 %v5652_v3, %v17508_v26 }
 0xc83   :  { %v17531_v45 = vadd.f32 %v5555_v25, %v5554_v48 }
 0xc84   :  { %v5682_v2 = vsel %vm2201_vm12, %v5669_v63, 0.0 }
 0xc85   :  { %v5654_v13 = vpop.permute.xlu0 %5653  ;;  %6606 = vrot.lane.b32.xlu0 %v17531_v45, %s14199_s11  ;;  %v17536_v51 = vpop.permute.xlu1 %5778  ;;  %v5683_v8 = vadd.f32 %v5682_v2, %v5681_v21 }
 0xc86   :  { %v5670_v4 = vmul.f32 %v5654_v13, %v17515_v57 }
 0xc88   :  { %v5684_v23 = vsel %vm2201_vm12, %v5670_v4, 0.0 }
 0xc89   :  { %v17540_v11 = vadd.f32 %v5684_v23, %v5683_v8  ;;  %v5771_v16 = vpop.permute.xlu0 %5770  ;;  %v17542_v33 = vpop.permute.xlu1 %5780 }
 0xc8b   :  { %6621 = vrot.lane.b32.xlu0 %v17540_v11, %s14199_s11 }
 0xc8d   :  { %v5773_v41 = vpop.permute.xlu0 %5772  ;;  %v17546_v32 = vpop.permute.xlu1 %5782 }
 0xc91   :  { %v17548_v60 = vpop.permute.xlu0 %5776  ;;  %v6157_v24 = vpop.permute.xlu1 %6156 }
 0xc92   :  { %v6180_v36 = vmul.f32 %v6157_v24, %v17451_v47 }
 0xc94   :  { %v6188_v21 = vsel %vm5929_vm15, %v6180_v36, 0.0 }
 0xc95   :  { %v5775_v50 = vpop.permute.xlu0 %5774  ;;  %v17550_v53 = vpop.permute.xlu1 %6027 }
 0xc99   :  { %v6159_v7 = vpop.permute.xlu0 %6158  ;;  %v6161_v48 = vpop.permute.xlu1 %6160 }
 0xc9a   :  { %v6181_v3 = vmul.f32 %v6159_v7, %v17442_v30  ;;  %v6182_v13 = vmul.f32 %v6161_v48, %v17464_v35 }
 0xc9c   :  { %v6189_v25 = vsel %vm5929_vm15, %v6181_v3, 0.0  ;;  %v6191_v18 = vsel %vm5929_vm15, %v6182_v13, 0.0 }
 0xc9d   :  { %v17555_v63 = vpop.permute.xlu0 %6029  ;;  %v17557_v2 = vpop.permute.xlu1 %6031  ;;  %v6190_v4 = vadd.f32 %v6189_v25, %v6188_v21 }
 0xc9f   :  { %v6192_v12 = vadd.f32 %v6191_v18, %v6190_v4 }
 0xca1   :  { %v6165_v8 = vpop.permute.xlu0 %6164  ;;  %v6163_v23 = vpop.permute.xlu1 %6162 }
 0xca2   :  { %v6183_v7 = vmul.f32 %v6163_v23, %v17461_v34  ;;  %v6184_v3 = vmul.f32 %v6165_v8, %v17474_v58 }
 0xca4   :  { %v6193_v24 = vsel %vm5929_vm15, %v6183_v7, 0.0  ;;  %v6195_v48 = vsel %vm5929_vm15, %v6184_v3, 0.0 }
 0xca5   :  { %v17565_v39 = vpop.permute.xlu0 %6035  ;;  %v6194_v31 = vadd.f32 %v6193_v24, %v6192_v12  ;;  %v6167_v17 = vpop.permute.xlu1 %6166 }
 0xca6   :  { %v6185_v36 = vmul.f32 %v6167_v17, %v17487_v43 }
 0xca7   :  { %v6196_v21 = vadd.f32 %v6195_v48, %v6194_v31 }
 0xca8   :  { %v6197_v13 = vsel %vm5929_vm15, %v6185_v36, 0.0 }
 0xca9   :  { %v17569_v25 = vpop.permute.xlu0 %6033  ;;  %v6169_v54 = vpop.permute.xlu1 %6168  ;;  %v6198_v8 = vadd.f32 %v6197_v13, %v6196_v21  ;;  %v5792_v13 = vmul.f32 %v17529_v52, %v17451_v47 }
 0xcaa   :  { %v6186_v18 = vmul.f32 %v6169_v54, %v17508_v26 }
 0xcab   :  { %v5800_v56 = vsel %vm2201_vm12, %v5792_v13, 0.0 }
 0xcac   :  { %v6199_v4 = vsel %vm5929_vm15, %v6186_v18, 0.0  ;;  %v5793_v18 = vmul.f32 %v5771_v16, %v17442_v30 }
 0xcad   :  { %v17574_v23 = vpop.permute.xlu0 %6037  ;;  %v6171_v7 = vpop.permute.xlu1 %6170  ;;  %v6200_v24 = vadd.f32 %v6199_v4, %v6198_v8  ;;  %v5794_v4 = vmul.f32 %v5773_v41, %v17464_v35 }
 0xcae   :  { %v6187_v12 = vmul.f32 %v6171_v7, %v17515_v57 }
 0xcaf   :  { %v5803_v16 = vsel %vm2201_vm12, %v5794_v4, 0.0  ;;  %v5796_v4 = vmul.f32 %v17548_v60, %v17474_v58 }
 0xcb0   :  { %v6201_v17 = vsel %vm5929_vm15, %v6187_v12, 0.0  ;;  %v5801_v12 = vsel %vm2201_vm12, %v5793_v18, 0.0 }
 0xcb1   :  { %v17578_v3 = vpop.permute.xlu0 %6039  ;;  %v17580_v55 = vadd.f32 %v6201_v17, %v6200_v24  ;;  %v6286_v31 = vpop.permute.xlu1 %6285  ;;  %v5795_v24 = vmul.f32 %v5775_v50, %v17461_v34  ;;  %v5802_v6 = vadd.f32 %v5801_v12, %v5800_v56  ;;  %v5807_v60 = vsel %vm2201_vm12, %v5796_v4, 0.0 }
 0xcb2   :  { %v6309_v17 = vmul.f32 %v6286_v31, %v17451_v47 }
 0xcb3   :  { %6601 = vrot.lane.b32.xlu1 %v17580_v55, %s14202_s30  ;;  %v5805_v9 = vsel %vm2201_vm12, %v5795_v24, 0.0  ;;  %v5804_v13 = vadd.f32 %v5803_v16, %v5802_v6 }
 0xcb4   :  { %v6317_v18 = vsel %vm5929_vm15, %v6309_v17, 0.0 }
 0xcb5   :  { %v6415_v54 = vpop.permute.xlu0 %6414  ;;  %v6290_v36 = vpop.permute.xlu1 %6289  ;;  %v5806_v12 = vadd.f32 %v5805_v9, %v5804_v13  ;;  %v6052_v9 = vmul.f32 %v17555_v63, %v17442_v30 }
 0xcb6   :  { %v6438_v41 = vmul.f32 %v6415_v54, %v17451_v47  ;;  %v6311_v50 = vmul.f32 %v6290_v36, %v17464_v35  ;;  %v5797_v54 = vmul.f32 %v17536_v51, %v17487_v43 }
 0xcb8   :  { %v6446_v24 = vsel %vm5929_vm15, %v6438_v41, 0.0  ;;  %v6320_v36 = vsel %vm5929_vm15, %v6311_v50, 0.0  ;;  %v5808_v50 = vadd.f32 %v5807_v60, %v5806_v12 }
 0xcb9   :  { %v6288_v48 = vpop.permute.xlu0 %6287  ;;  %v6417_v21 = vpop.permute.xlu1 %6416 }
 0xcba   :  { %v6310_v8 = vmul.f32 %v6288_v48, %v17442_v30  ;;  %v6439_v52 = vmul.f32 %v6417_v21, %v17442_v30 }
 0xcbc   :  { %v6318_v46 = vsel %vm5929_vm15, %v6310_v8, 0.0  ;;  %v6447_v21 = vsel %vm5929_vm15, %v6439_v52, 0.0 }
 0xcbd   :  { %v6294_v7 = vpop.permute.xlu0 %6293  ;;  %v6419_v49 = vpop.permute.xlu1 %6418  ;;  %v6319_v8 = vadd.f32 %v6318_v46, %v6317_v18  ;;  %v6448_v52 = vadd.f32 %v6447_v21, %v6446_v24  ;;  %v5809_v21 = vsel %vm2201_vm12, %v5797_v54, 0.0  ;;  %v6054_v54 = vmul.f32 %v17569_v25, %v17461_v34 }
 0xcbe   :  { %v6440_v31 = vmul.f32 %v6419_v49, %v17464_v35  ;;  %v6313_v49 = vmul.f32 %v6294_v7, %v17474_v58  ;;  %v5799_v25 = vmul.f32 %v17546_v32, %v17515_v57 }
 0xcbf   :  { %v6321_v51 = vadd.f32 %v6320_v36, %v6319_v8  ;;  %v5798_v36 = vmul.f32 %v17542_v33, %v17508_v26 }
 0xcc0   :  { %v6449_v6 = vsel %vm5929_vm15, %v6440_v31, 0.0  ;;  %v6324_v4 = vsel %vm5929_vm15, %v6313_v49, 0.0  ;;  %v5813_v32 = vsel %vm2201_vm12, %v5799_v25, 0.0 }
 0xcc1   :  { %v6423_v48 = vpop.permute.xlu0 %6422  ;;  %v6421_v14 = vpop.permute.xlu1 %6420  ;;  %v6450_v31 = vadd.f32 %v6449_v6, %v6448_v52  ;;  %v6060_v6 = vsel %vm5929_vm15, %v6052_v9, 0.0 }
 0xcc2   :  { %v6441_v56 = vmul.f32 %v6421_v14, %v17461_v34  ;;  %v6051_v14 = vmul.f32 %v17550_v53, %v17451_v47  ;;  %v6442_v37 = vmul.f32 %v6423_v48, %v17474_v58  ;;  %v6053_v48 = vmul.f32 %v17557_v2, %v17464_v35 }
 0xcc3   :  { %v5811_v2 = vsel %vm2201_vm12, %v5798_v36, 0.0 }
 0xcc4   :  { %v6451_v41 = vsel %vm5929_vm15, %v6441_v56, 0.0  ;;  %v6059_v12 = vsel %vm5929_vm15, %v6051_v14, 0.0  ;;  %v6453_v52 = vsel %vm5929_vm15, %v6442_v37, 0.0 }
 0xcc5   :  { %v6292_v17 = vpop.permute.xlu0 %6291  ;;  %v6296_v16 = vpop.permute.xlu1 %6295  ;;  %v6452_v63 = vadd.f32 %v6451_v41, %v6450_v31  ;;  %v6061_v41 = vadd.f32 %v6060_v6, %v6059_v12  ;;  %v6055_v12 = vmul.f32 %v17565_v39, %v17474_v58 }
 0xcc6   :  { %v6312_v46 = vmul.f32 %v6292_v17, %v17461_v34  ;;  %v6314_v18 = vmul.f32 %v6296_v16, %v17487_v43  ;;  %v5810_v16 = vadd.f32 %v5809_v21, %v5808_v50  ;;  %v6064_v21 = vsel %vm5929_vm15, %v6054_v54, 0.0 }
 0xcc7   :  { %v6056_v54 = vmul.f32 %v17574_v23, %v17487_v43  ;;  %v6066_v39 = vsel %vm5929_vm15, %v6055_v12, 0.0 }
 0xcc8   :  { %v6322_v7 = vsel %vm5929_vm15, %v6312_v46, 0.0  ;;  %v6326_v49 = vsel %vm5929_vm15, %v6314_v18, 0.0  ;;  %v6454_v18 = vadd.f32 %v6453_v52, %v6452_v63 }
 0xcc9   :  { %v6323_v13 = vadd.f32 %v6322_v7, %v6321_v51  ;;  %v6298_v17 = vpop.permute.xlu0 %6297  ;;  %v6425_v8 = vpop.permute.xlu1 %6424 }
 0xcca   :  { %v6315_v53 = vmul.f32 %v6298_v17, %v17508_v26  ;;  %v6443_v56 = vmul.f32 %v6425_v8, %v17487_v43  ;;  %v6062_v8 = vsel %vm5929_vm15, %v6053_v48, 0.0 }
 0xccb   :  { %v6325_v24 = vadd.f32 %v6324_v4, %v6323_v13 }
 0xccc   :  { %v6328_v51 = vsel %vm5929_vm15, %v6315_v53, 0.0  ;;  %v6455_v33 = vsel %vm5929_vm15, %v6443_v56, 0.0  ;;  %v5812_v53 = vadd.f32 %v5811_v2, %v5810_v16  ;;  %v6063_v56 = vadd.f32 %v6062_v8, %v6061_v41 }
 0xccd   :  { %v6327_v46 = vadd.f32 %v6326_v49, %v6325_v24  ;;  %v6300_v60 = vpop.permute.xlu0 %6299  ;;  %v6427_v9 = vpop.permute.xlu1 %6426  ;;  %v6456_v37 = vadd.f32 %v6455_v33, %v6454_v18  ;;  %v6057_v33 = vmul.f32 %v17578_v3, %v17508_v26  ;;  %v6068_v41 = vsel %vm5929_vm15, %v6056_v54, 0.0 }
 0xcce   :  { %v6316_v14 = vmul.f32 %v6300_v60, %v17515_v57  ;;  %v6444_v50 = vmul.f32 %v6427_v9, %v17508_v26  ;;  %v6065_v49 = vadd.f32 %v6064_v21, %v6063_v56 }
 0xccf   :  { %v6329_v7 = vadd.f32 %v6328_v51, %v6327_v46  ;;  %v17654_v46 = vadd.f32 %v5813_v32, %v5812_v53 }
 0xcd0   :  { %v6330_v31 = vsel %vm5929_vm15, %v6316_v14, 0.0  ;;  %v6457_v17 = vsel %vm5929_vm15, %v6444_v50, 0.0  ;;  %v6067_v9 = vadd.f32 %v6066_v39, %v6065_v49 }
 0xcd1   :  { %v6331_v13 = vadd.f32 %v6330_v31, %v6329_v7  ;;  %v6429_v4 = vpop.permute.xlu0 %6428  ;;  %v6546_v63 = vpop.permute.xlu1 %6545  ;;  %v6458_v36 = vadd.f32 %v6457_v17, %v6456_v37  ;;  %v6070_v31 = vsel %vm5929_vm15, %v6057_v33, 0.0 }
 0xcd2   :  { %v6445_v24 = vmul.f32 %v6429_v4, %v17515_v57  ;;  %v6568_v60 = vmul.f32 %v6546_v63, %v17442_v30 }
 0xcd3   :  { %6611 = vrot.lane.b32.xlu1 %v6331_v13, %s14203_s1  ;;  %v6069_v13 = vadd.f32 %v6068_v41, %v6067_v9 }
 0xcd4   :  { %v6459_v6 = vsel %vm5929_vm15, %v6445_v24, 0.0  ;;  %v6576_v18 = vsel %vm5929_vm15, %v6568_v60, 0.0 }
 0xcd5   :  { %v17652_v16 = vadd.f32 %v6459_v6, %v6458_v36  ;;  %v6544_v48 = vpop.permute.xlu0 %6543  ;;  %v6552_v52 = vpop.permute.xlu1 %6551  ;;  %v6071_v63 = vadd.f32 %v6070_v31, %v6069_v13 }
 0xcd6   :  { %v6567_v51 = vmul.f32 %v6544_v48, %v17451_v47  ;;  %v6571_v3 = vmul.f32 %v6552_v52, %v17474_v58 }
 0xcd7   :  { %6626 = vrot.lane.b32.xlu1 %v17654_v46, %s14199_s11  ;;  %6616 = vrot.lane.b32.xlu0 %v17652_v16, %s14202_s30 }
 0xcd8   :  { %v6575_v14 = vsel %vm5929_vm15, %v6567_v51, 0.0  ;;  %v6582_v36 = vsel %vm5929_vm15, %v6571_v3, 0.0 }
 0xcd9   :  { %v6548_v23 = vpop.permute.xlu0 %6547  ;;  %v6550_v7 = vpop.permute.xlu1 %6549  ;;  %v6577_v2 = vadd.f32 %v6576_v18, %v6575_v14 }
 0xcda   :  { %v6569_v50 = vmul.f32 %v6548_v23, %v17464_v35  ;;  %v6570_v25 = vmul.f32 %v6550_v7, %v17461_v34 }
 0xcdb   :  { %6774 = vrot.lane.b32.xlu0 %v17235_v19, %s14203_s1 }
 0xcdc   :  { %v6578_v37 = vsel %vm5929_vm15, %v6569_v50, 0.0  ;;  %v6580_v53 = vsel %vm5929_vm15, %v6570_v25, 0.0 }
 0xcdd   :  { %v6579_v17 = vadd.f32 %v6578_v37, %v6577_v2  ;;  %v6042_v4 = vpop.permute.xlu0 %6041  ;;  %v6554_v8 = vpop.permute.xlu1 %6553 }
 0xcde   :  { %v6058_v21 = vmul.f32 %v6042_v4, %v17515_v57  ;;  %v6572_v56 = vmul.f32 %v6554_v8, %v17487_v43 }
 0xcdf   :  { %v6581_v24 = vadd.f32 %v6580_v53, %v6579_v17 }
 0xce0   :  { %v6072_v32 = vsel %vm5929_vm15, %v6058_v21, 0.0  ;;  %v6584_v48 = vsel %vm5929_vm15, %v6572_v56, 0.0 }
 0xce1   :  { %v6583_v12 = vadd.f32 %v6582_v36, %v6581_v24  ;;  %v6073_v6 = vadd.f32 %v6072_v32, %v6071_v63  ;;  %v6556_v49 = vpop.permute.xlu0 %6555  ;;  %v6558_v54 = vpop.permute.xlu1 %6557 }
 0xce2   :  { %v6573_v60 = vmul.f32 %v6556_v49, %v17508_v26  ;;  %v6574_v51 = vmul.f32 %v6558_v54, %v17515_v57 }
 0xce3   :  { %v6585_v52 = vadd.f32 %v6584_v48, %v6583_v12  ;;  %6596 = vrot.lane.b32.xlu1 %v6073_v6, %s14202_s30 }
 0xce4   :  { %v6586_v39 = vsel %vm5929_vm15, %v6573_v60, 0.0  ;;  %v6588_v9 = vsel %vm5929_vm15, %v6574_v51, 0.0 }
 0xce5   :  { %v6587_v33 = vadd.f32 %v6586_v39, %v6585_v52  ;;  %v5898_v14 = vpop.permute.xlu0 %5897  ;;  %v5900_v23 = vpop.permute.xlu1 %5899 }
 0xce6   :  { %v5921_v41 = vmul.f32 %v5898_v14, %v17451_v47  ;;  %v5922_v7 = vmul.f32 %v5900_v23, %v17442_v30 }
 0xce7   :  { %v6589_v18 = vadd.f32 %v6588_v9, %v6587_v33 }
 0xce8   :  { %v5930_v50 = vsel %vm5929_vm15, %v5921_v41, 0.0  ;;  %v5931_v2 = vsel %vm5929_vm15, %v5922_v7, 0.0  ;;  %v5323_v7 = vrot.slane %v17034_v27, %v19871_v29 }
 0xce9   :  { %v5902_v25 = vpop.permute.xlu0 %5901  ;;  %6631 = vrot.lane.b32.xlu0 %v6589_v18, %s14203_s1  ;;  %v5904_v31 = vpop.permute.xlu1 %5903  ;;  %v5932_v37 = vadd.f32 %v5931_v2, %v5930_v50 }
 0xcea   :  { %v5923_v3 = vmul.f32 %v5902_v25, %v17464_v35  ;;  %v5924_v13 = vmul.f32 %v5904_v31, %v17461_v34  ;;  %v5339_v50 = vrot.slane %v5323_v7, %v19871_v29  ;;  %v5316_v25 = vcombine.high %v17034_v27, %v17034_v27 }
 0xcec   :  { %v5933_v17 = vsel %vm5929_vm15, %v5923_v3, 0.0  ;;  %v5935_v8 = vsel %vm5929_vm15, %v5924_v13, 0.0  ;;  %v5361_v31 = vcombine.high %v5339_v50, %v5339_v50  ;;  %v5368_v3 = vrot.slane %v5339_v50, %v19808_v1 }
 0xced   :  { %v5934_v4 = vadd.f32 %v5933_v17, %v5932_v37  ;;  %v5906_v53 = vpop.permute.xlu0 %5905  ;;  %6647 = vrot.lane.b32.xlu0 %v17212_v28, %s14199_s11  ;;  %v5908_v21 = vpop.permute.xlu1 %5907  ;;  %v5330_v37 = vrot.slane %v5316_v25, %v19871_v29 }
 0xcee   :  { %v5925_v63 = vmul.f32 %v5906_v53, %v17474_v58  ;;  %v5926_v24 = vmul.f32 %v5908_v21, %v17487_v43  ;;  %v5376_v17 = vrot.slane %v5361_v31, %v19808_v1  ;;  %v5405_v53 = vmul.f32 %v5368_v3, %v17451_v47 }
 0xcef   :  { %v5936_v56 = vadd.f32 %v5935_v8, %v5934_v4 }
 0xcf0   :  { %v5937_v36 = vsel %vm5929_vm15, %v5925_v63, 0.0  ;;  %v5939_v49 = vsel %vm5929_vm15, %v5926_v24, 0.0  ;;  %v5407_v27 = vmul.f32 %v5376_v17, %v17464_v35  ;;  %v5346_v63 = vrot.slane %v5330_v37, %v19871_v29 }
 0xcf1   :  { %v5938_v32 = vadd.f32 %v5937_v36, %v5936_v56  ;;  %v5910_v12 = vpop.permute.xlu0 %5909  ;;  %6668 = vrot.lane.b32.xlu0 %v17238_v44, %s14199_s11  ;;  %v5912_v48 = vpop.permute.xlu1 %5911  ;;  %v5413_v24 = vsel %vm1969_vm1, %v5405_v53, 0.0  ;;  %v5332_v36 = vcombine.high %v5330_v37, %v5330_v37 }
 0xcf2   :  { %v5927_v54 = vmul.f32 %v5910_v12, %v17508_v26  ;;  %v5928_v60 = vmul.f32 %v5912_v48, %v17515_v57 }
 0xcf3   :  { %v5940_v52 = vadd.f32 %v5939_v49, %v5938_v32  ;;  %v5416_v32 = vsel %vm1969_vm1, %v5407_v27, 0.0  ;;  %v5360_v48 = vrot.slane %v5332_v36, %v19871_v29 }
 0xcf4   :  { %v5941_v51 = vsel %vm5929_vm15, %v5927_v54, 0.0  ;;  %v5943_v33 = vsel %vm5929_vm15, %v5928_v60, 0.0  ;;  %v5362_v54 = vcombine.high %v5346_v63, %v5346_v63 }
 0xcf5   :  { %v5942_v39 = vadd.f32 %v5941_v51, %v5940_v52  ;;  %6689 = vrot.lane.b32.xlu0 %v17252_v61, %s14199_s11  ;;  %v5388_v51 = vrot.slane %v5360_v48, %v19808_v1 }
 0xcf7   :  { %v5944_v14 = vadd.f32 %v5943_v33, %v5942_v39  ;;  %v6607_v9 = vpop.permute.xlu0 %6606  ;;  %v5392_v33 = vrot.slane %v5362_v54, %v19808_v1 }
 0xcf8   :  { %v17711_v23 = vsub.f32 %v6073_v6, %v6607_v9  ;;  %v5331_v6 = vcombine.high %v5323_v7, %v5323_v7 }
 0xcf9   :  { %6591 = vrot.lane.b32.xlu1 %v5944_v14, %s14203_s1  ;;  %v5410_v14 = vmul.f32 %v5388_v51, %v17487_v43 }
 0xcfa   :  { %6823 = vrot.lane.b32.xlu0 %v17711_v23, %s14203_s1  ;;  %v5353_v2 = vrot.slane %v5331_v6, %v19871_v29 }
 0xcfb   :  { %v5422_v7 = vsel %vm1969_vm1, %v5410_v14, 0.0 }
 0xcfc   :  { %v5363_v21 = vcombine.high %v5353_v2, %v5353_v2 }
 0xcfd   :  { %6637 = vrot.lane.b32.xlu1 %v17202_v42, %s14199_s11  ;;  %v6622_v41 = vpop.permute.xlu0 %6621 }
 0xcfe   :  { %v17719_v18 = vsub.f32 %v17580_v55, %v6622_v41  ;;  %v5372_v55 = vrot.slane %v5353_v2, %v19808_v1  ;;  %v5364_v41 = vcombine.high %v5360_v48, %v5360_v48 }
 0xd00   :  { %v5406_v8 = vmul.f32 %v5372_v55, %v17442_v30  ;;  %v5384_v30 = vrot.slane %v5346_v63, %v19808_v1 }
 0xd01   :  { %6829 = vrot.lane.b32.xlu1 %v17719_v18, %s14203_s1 }
 0xd02   :  { %v5414_v56 = vsel %vm1969_vm1, %v5406_v8, 0.0  ;;  %v5409_v35 = vmul.f32 %v5384_v30, %v17474_v58  ;;  %v5396_v58 = vrot.slane %v5364_v41, %v19808_v1 }
 0xd03   :  { %v5415_v47 = vadd.f32 %v5414_v56, %v5413_v24 }
 0xd04   :  { %v5420_v39 = vsel %vm1969_vm1, %v5409_v35, 0.0  ;;  %v5412_v2 = vmul.f32 %v5396_v58, %v17515_v57 }
 0xd05   :  { %v5417_v49 = vadd.f32 %v5416_v32, %v5415_v47 }
 0xd06   :  { %v5426_v31 = vsel %vm1969_vm1, %v5412_v2, 0.0 }
 0xd25   :  { %v6602_v13 = vpop.permute.xlu1 %6601 }
 0xd26   :  { %v17734_v4 = vadd.f32 %v6602_v13, %v17540_v11  ;;  %v5380_v11 = vrot.slane %v5363_v21, %v19808_v1 }
 0xd28   :  { %6809 = vrot.lane.b32.xlu1 %v17734_v4, %s14202_s30  ;;  %v5408_v12 = vmul.f32 %v5380_v11, %v17461_v34  ;;  %v5411_v34 = vmul.f32 %v5392_v33, %v17508_v26 }
 0xd2a   :  { %v5418_v60 = vsel %vm1969_vm1, %v5408_v12, 0.0  ;;  %v5424_v50 = vsel %vm1969_vm1, %v5411_v34, 0.0 }
 0xd2b   :  { %v5419_v52 = vadd.f32 %v5418_v60, %v5417_v49 }
 0xd2d   :  { %v5421_v9 = vadd.f32 %v5420_v39, %v5419_v52 }
 0xd2f   :  { %v5423_v6 = vadd.f32 %v5422_v7, %v5421_v9 }
 0xd31   :  { %v5425_v25 = vadd.f32 %v5424_v50, %v5423_v6 }
 0xd33   :  { %v5427_v3 = vadd.f32 %v5426_v31, %v5425_v25 }
 0xd45   :  { %v6612_v55 = vpop.permute.xlu1 %6611 }
 0xd46   :  { %v17761_v37 = vadd.f32 %v6612_v55, %v5427_v3 }
 0xd48   :  { %v6720_v43 = vmul.f32 %v17761_v37, %v17229_v62  ;;  %v6703_v30 = vmul.f32 %v17761_v37, %v17202_v42  ;;  %v6737_v51 = vmul.f32 %v17761_v37, %v17235_v19 }
 0xd49   :  { %v6627_v26 = vpop.permute.xlu1 %6626  ;;  %v6617_v13 = vpop.permute.xlu0 %6616 }
 0xd4a   :  { %v6619_v17 = vadd.f32 %v6617_v13, %v17654_v46  ;;  %6834 = vrot.lane.b32.xlu1 %v6720_v43, %s14199_s11  ;;  %v17768_v53 = vsub.f32 %v17652_v16, %v6627_v26 }
 0xd4c   :  { %6814 = vrot.lane.b32.xlu0 %v6619_v17, %s14202_s30 }
 0xd4d   :  { %v6775_v57 = vpop.permute.xlu0 %6774 }
 0xd4e   :  { %v17772_v8 = vmul.f32 %v6775_v57, %v17768_v53 }
 0xd50   :  { %6839 = vrot.lane.b32.xlu1 %v17772_v8, %s14202_s30 }
 0xd54   :  { %6803 = vrot.lane.b32.xlu1 %v17768_v53, %s14203_s1 }
 0xd55   :  { %v6597_v21 = vpop.permute.xlu1 %6596 }
 0xd56   :  { %v17779_v46 = vadd.f32 %v6597_v21, %v17531_v45 }
 0xd58   :  { %6796 = vrot.lane.b32.xlu0 %v17779_v46, %s14202_s30  ;;  %6658 = vrot.lane.b32.xlu1 %v17229_v62, %s14199_s11 }
 0xd5b   :  { %v6632_v16 = vpop.permute.xlu0 %6631 }
 0xd5c   :  { %v17785_v27 = vadd.f32 %v6632_v16, %v5427_v3  ;;  %6679 = vrot.lane.b32.xlu1 %v17235_v19, %s14199_s11 }
 0xd5e   :  { %v6779_v63 = vmul.f32 %v17785_v27, %v17252_v61  ;;  %v6755_v6 = vmul.f32 %v17785_v27, %v17212_v28  ;;  %v6767_v2 = vmul.f32 %v17785_v27, %v17238_v44  ;;  %v6846_v16 = vmul.f32 %v17785_v27, %v17235_v19 }
 0xd5f   :  { %v6648_v24 = vpop.permute.xlu0 %6647 }
 0xd60   :  { %6699 = vrot.lane.b32.xlu1 %v17185_v22, %s14203_s1  ;;  %6859 = vrot.lane.b32.xlu0 %v6779_v63, %s14199_s11  ;;  %v6709_v45 = vmul.f32 %v6648_v24, %v6619_v17  ;;  %v17797_v36 = vmul.f32 %v6648_v24, %v17734_v4 }
 0xd63   :  { %v17794_v56 = vpop.permute.xlu0 %6668 }
 0xd64   :  { %v6726_v11 = vmul.f32 %v17794_v56, %v6619_v17  ;;  %6716 = vrot.lane.b32.xlu0 %v17199_v40, %s14203_s1  ;;  %6711 = vrot.lane.b32.xlu1 %v6709_v45, %s14199_s11 }
 0xd66   :  { %v6858_v32 = vadd.f32 %v6726_v11, %v17797_v36 }
 0xd67   :  { %v17804_v47 = vpop.permute.xlu0 %6689 }
 0xd68   :  { %6733 = vrot.lane.b32.xlu0 %v17209_v38, %s14203_s1  ;;  %6728 = vrot.lane.b32.xlu1 %v6726_v11, %s14199_s11  ;;  %v6743_v35 = vmul.f32 %v17804_v47, %v6619_v17 }
 0xd6b   :  { %v6592_v12 = vpop.permute.xlu1 %6591 }
 0xd6c   :  { %v17811_v49 = vadd.f32 %v6592_v12, %v5427_v3  ;;  %6705 = vrot.lane.b32.xlu0 %v6703_v30, %s14203_s1  ;;  %6750 = vrot.lane.b32.xlu1 %v17202_v42, %s14203_s1  ;;  %v6824_v48 = vpop.permute.xlu0 %6823 }
 0xd6d   :  { %v6849_v52 = vmul.f32 %v6824_v48, %v17238_v44  ;;  %v6826_v34 = vmul.f32 %v6824_v48, %v17229_v62 }
 0xd6e   :  { %v6848_v60 = vmul.f32 %v17811_v49, %v17212_v28  ;;  %v6821_v41 = vmul.f32 %v17811_v49, %v17202_v42 }
 0xd6f   :  { %v6638_v54 = vpop.permute.xlu1 %6637 }
 0xd70   :  { %6722 = vrot.lane.b32.xlu0 %v6720_v43, %s14203_s1  ;;  %6745 = vrot.lane.b32.xlu1 %v6743_v35, %s14199_s11  ;;  %v6850_v33 = vadd.f32 %v6849_v52, %v6848_v60  ;;  %v6827_v58 = vadd.f32 %v6826_v34, %v6821_v41  ;;  %v6640_v55 = vmul.f32 %v6638_v54, %v17779_v46 }
 0xd73   :  { %v6830_v39 = vpop.permute.xlu1 %6829 }
 0xd74   :  { %v6851_v14 = vmul.f32 %v6830_v39, %v17252_v61  ;;  %6739 = vrot.lane.b32.xlu0 %v6737_v51, %s14203_s1  ;;  %v6832_v7 = vmul.f32 %v6830_v39, %v17235_v19 }
 0xd76   :  { %v6852_v9 = vadd.f32 %v6851_v14, %v6850_v33  ;;  %v6833_v50 = vadd.f32 %v6832_v7, %v6827_v58  ;;  %v6692_v14 = vmul.f32 %v17804_v47, %v17734_v4 }
 0xd78   :  { %6882 = vrot.lane.b32.xlu1 %v6852_v9, %s14203_s1  ;;  %6762 = vrot.lane.b32.xlu0 %v17229_v62, %s14203_s1 }
 0xd7c   :  { %6757 = vrot.lane.b32.xlu0 %v6755_v6, %s14203_s1 }
 0xd80   :  { %6867 = vrot.lane.b32.xlu0 %v6833_v50, %s14203_s1 }
 0xd84   :  { %6769 = vrot.lane.b32.xlu0 %v6767_v2, %s14203_s1 }
 0xd88   :  { %6781 = vrot.lane.b32.xlu0 %v6779_v63, %s14203_s1 }
 0xd9a   :  { %v17841_v25 = vpop.permute.xlu1 %6809 }
 0xd9b   :  { %v6843_v26 = vmul.f32 %v17841_v25, %v17202_v42 }
 0xdbc   :  { %v6835_v31 = vpop.permute.xlu1 %6834 }
 0xdbd   :  { %v6837_v13 = vadd.f32 %v6835_v31, %v6640_v55 }
 0xdbe   :  { %v17843_v3 = vpop.permute.xlu0 %6814 }
 0xdbf   :  { %v6844_v43 = vmul.f32 %v17843_v3, %v17229_v62  ;;  %v6854_v62 = vmul.f32 %v17761_v37, %v17238_v44 }
 0xdc1   :  { %v6845_v57 = vadd.f32 %v6844_v43, %v6843_v26 }
 0xdc2   :  { %v6840_v17 = vpop.permute.xlu1 %6839 }
 0xdc3   :  { %v6842_v21 = vadd.f32 %v6840_v17, %v6837_v13  ;;  %v6847_v63 = vadd.f32 %v6846_v16, %v6845_v57 }
 0xdc5   :  { %6872 = vrot.lane.b32.xlu1 %v6842_v21, %s14199_s11 }
 0xdc6   :  { %v17854_v24 = vpop.permute.xlu1 %6803 }
 0xdc7   :  { %v6856_v11 = vmul.f32 %v17854_v24, %v17252_v61  ;;  %v6671_v61 = vmul.f32 %v17794_v56, %v17734_v4 }
 0xdc9   :  { %6877 = vrot.lane.b32.xlu1 %v6847_v63, %s14203_s1 }
 0xdca   :  { %v17856_v45 = vpop.permute.xlu0 %6796  ;;  %v6659_v35 = vpop.permute.xlu1 %6658 }
 0xdcb   :  { %v6853_v42 = vmul.f32 %v17856_v45, %v17212_v28  ;;  %v6661_v44 = vmul.f32 %v6659_v35, %v17779_v46 }
 0xdcd   :  { %v6855_v30 = vadd.f32 %v6854_v62, %v6853_v42 }
 0xdce   :  { %v6680_v52 = vpop.permute.xlu1 %6679 }
 0xdcf   :  { %v6857_v12 = vadd.f32 %v6856_v11, %v6855_v30  ;;  %v6682_v51 = vmul.f32 %v6680_v52, %v17779_v46 }
 0xdd1   :  { %6887 = vrot.lane.b32.xlu1 %v6857_v12, %s14203_s1 }
 0xdd2   :  { %v6860_v19 = vpop.permute.xlu0 %6859  ;;  %v6700_v9 = vpop.permute.xlu1 %6699 }
 0xdd3   :  { %v6862_v48 = vadd.f32 %v6860_v19, %v6858_v32  ;;  %v6749_v43 = vmul.f32 %v6700_v9, %v17719_v18 }
 0xdd5   :  { %6642 = vrot.lane.b32.xlu1 %v6640_v55, %s14202_s30  ;;  %6892 = vrot.lane.b32.xlu0 %v6862_v48, %s14199_s11 }
 0xdd6   :  { %v6717_v54 = vpop.permute.xlu0 %6716  ;;  %v6712_v46 = vpop.permute.xlu1 %6711 }
 0xdd7   :  { %v6719_v60 = vmul.f32 %v6717_v54, %v17711_v23 }
 0xdd9   :  { %6786 = vrot.lane.b32.xlu1 %v6719_v60, %s14203_s1  ;;  %6663 = vrot.lane.b32.xlu0 %v6661_v44, %s14202_s30  ;;  %v6761_v44 = vmul.f32 %v6717_v54, %v17719_v18 }
 0xdda   :  { %v6734_v28 = vpop.permute.xlu0 %6733  ;;  %v6729_v4 = vpop.permute.xlu1 %6728 }
 0xddb   :  { %v6773_v39 = vmul.f32 %v6734_v28, %v17719_v18  ;;  %v6736_v17 = vmul.f32 %v6734_v28, %v17711_v23 }
 0xddd   :  { %6673 = vrot.lane.b32.xlu1 %v6671_v61, %s14202_s30  ;;  %6652 = vrot.lane.b32.xlu0 %v17797_v36, %s14202_s30  ;;  %v6702_v36 = vmul.f32 %v6700_v9, %v17711_v23  ;;  %v6799_v9 = vmul.f32 %v17856_v45, %v17185_v22  ;;  %v6806_v45 = vmul.f32 %v17854_v24, %v17209_v38 }
 0xdde   :  { %v6706_v32 = vpop.permute.xlu0 %6705  ;;  %v6751_v47 = vpop.permute.xlu1 %6750  ;;  %v6819_v24 = vmul.f32 %v17785_v27, %v17209_v38 }
 0xddf   :  { %v6708_v34 = vadd.f32 %v6706_v32, %v6702_v36  ;;  %v6753_v55 = vmul.f32 %v6751_v47, %v17768_v53  ;;  %v6800_v36 = vmul.f32 %v17761_v37, %v17199_v40  ;;  %v6817_v37 = vmul.f32 %v17843_v3, %v17199_v40 }
 0xde0   :  { %v6635_v3 = vmul.f32 %v17811_v49, %v17185_v22 }
 0xde1   :  { %6791 = vrot.lane.b32.xlu1 %v6773_v39, %s14203_s1  ;;  %6684 = vrot.lane.b32.xlu0 %v6682_v51, %s14202_s30  ;;  %v6714_v6 = vadd.f32 %v6712_v46, %v6708_v34  ;;  %v6754_v57 = vadd.f32 %v6753_v55, %v6749_v43  ;;  %v6778_v51 = vadd.f32 %v17772_v8, %v6773_v39 }
 0xde2   :  { %v6723_v33 = vpop.permute.xlu0 %6722  ;;  %v6746_v31 = vpop.permute.xlu1 %6745  ;;  %v6656_v46 = vmul.f32 %v17811_v49, %v17199_v40 }
 0xde3   :  { %v6725_v26 = vadd.f32 %v6723_v33, %v6719_v60 }
 0xde5   :  { %6694 = vrot.lane.b32.xlu0 %v6692_v14, %s14202_s30  ;;  %v6731_v63 = vadd.f32 %v6729_v4, %v6725_v26 }
 0xde6   :  { %v6740_v56 = vpop.permute.xlu0 %6739 }
 0xde7   :  { %v6742_v21 = vadd.f32 %v6740_v56, %v6736_v17 }
 0xde9   :  { %v6748_v12 = vadd.f32 %v6746_v31, %v6742_v21  ;;  %v6812_v31 = vmul.f32 %v17841_v25, %v17185_v22 }
 0xdea   :  { %v6763_v41 = vpop.permute.xlu0 %6762  ;;  %v6883_v13 = vpop.permute.xlu1 %6882 }
 0xdeb   :  { %v6765_v48 = vmul.f32 %v6763_v41, %v17768_v53  ;;  %v6818_v26 = vadd.f32 %v6817_v37, %v6812_v31 }
 0xded   :  { %v6766_v61 = vadd.f32 %v6765_v48, %v6761_v44  ;;  %v6820_v21 = vadd.f32 %v6819_v24, %v6818_v26 }
 0xdee   :  { %v6758_v7 = vpop.permute.xlu0 %6757 }
 0xdef   :  { %v6760_v16 = vadd.f32 %v6758_v7, %v6754_v57  ;;  %v6801_v7 = vadd.f32 %v6800_v36, %v6799_v9  ;;  %v3938_v36 = vld [vmem:[%s19572_s17 + $0x60] sm:$0xff] }
 0xdf1   :  { %v17894_v11 = vadd.f32 %v6883_v13, %v6760_v16  ;;  %v6807_v4 = vadd.f32 %v6806_v45, %v6801_v7  ;;  %v6677_v13 = vmul.f32 %v17811_v49, %v17209_v38  ;;  %v3943_v7 = vld [vmem:[%s19572_s17 + $0x88] sm:$0xff] }
 0xdf2   :  { %v6868_v58 = vpop.permute.xlu0 %6867 }
 0xdf3   :  { %v17884_v50 = vadd.f32 %v6868_v58, %v6714_v6  ;;  %v6919_v60 = vmul.f32 %v17894_v11, %v17894_v11 }
 0xdf5   :  { %v6901_v2 = vmul.f32 %v17884_v50, %v17884_v50 }
 0xdf6   :  { %v6770_v23 = vpop.permute.xlu0 %6769 }
 0xdf7   :  { %6903 = vrot.lane.b32.xlu1 %v6901_v2, %s14203_s1  ;;  %v6772_v52 = vadd.f32 %v6770_v23, %v6766_v61 }
 0xdfa   :  { %v6782_v53 = vpop.permute.xlu0 %6781 }
 0xdfb   :  { %v6784_v14 = vadd.f32 %v6782_v53, %v6778_v51 }
 0xe37   :  { %v6873_v62 = vpop.permute.xlu1 %6872 }
 0xe38   :  { %v17892_v42 = vadd.f32 %v6873_v62, %v6731_v63 }
 0xe3a   :  { %v6907_v30 = vmul.f32 %v17892_v42, %v17892_v42 }
 0xe3b   :  { %v6878_v19 = vpop.permute.xlu1 %6877 }
 0xe3c   :  { %v17899_v35 = vadd.f32 %v6878_v19, %v6748_v12  ;;  %6909 = vrot.lane.b32.xlu0 %v6907_v30, %s14203_s1 }
 0xe3e   :  { %v6913_v28 = vmul.f32 %v17899_v35, %v17899_v35 }
 0xe40   :  { %6921 = vrot.lane.b32.xlu0 %v6919_v60, %s14203_s1  ;;  %6915 = vrot.lane.b32.xlu1 %v6913_v28, %s14203_s1 }
 0xe43   :  { %v6888_v32 = vpop.permute.xlu1 %6887 }
 0xe44   :  { %v17910_v33 = vadd.f32 %v6888_v32, %v6772_v52 }
 0xe46   :  { %v6925_v18 = vmul.f32 %v17910_v33, %v17910_v33 }
 0xe47   :  { %v6643_v54 = vpop.permute.xlu1 %6642  ;;  %v6893_v56 = vpop.permute.xlu0 %6892 }
 0xe48   :  { %v17916_v41 = vadd.f32 %v6893_v56, %v6784_v14  ;;  %6927 = vrot.lane.b32.xlu1 %v6925_v18, %s14203_s1  ;;  %v6645_v62 = vadd.f32 %v6643_v54, %v6635_v3 }
 0xe4a   :  { %v6931_v8 = vmul.f32 %v17916_v41, %v17916_v41 }
 0xe4b   :  { %v6787_v39 = vpop.permute.xlu1 %6786  ;;  %v6664_v34 = vpop.permute.xlu0 %6663 }
 0xe4c   :  { %6933 = vrot.lane.b32.xlu0 %v6931_v8, %s14203_s1  ;;  %v6666_v6 = vadd.f32 %v6664_v34, %v6656_v46  ;;  %v6789_v63 = vadd.f32 %v6787_v39, %v6635_v3  ;;  %v3939_v8 = vld [vmem:[%s19572_s17 + $0x68] sm:$0xff]  ;;  %v3942_v34 = vld [vmem:[%s19572_s17 + $0x80] sm:$0xff]  ;;  %v3940_v46 = vld [vmem:[%s19572_s17 + $0x70] sm:$0xff] }
 0xe4d   :  { %v13632_v39 = vpack.c.bf16 %v3939_v8, %v3938_v36  ;;  %v13638_v45 = vpack.c.bf16 %v3943_v7, %v3942_v34  ;;  %v19880_v36 = vld [vmem:[#allocation14_spill] sm:$0xff]  ;;  %v19881_v8 = vld [vmem:[#allocation9_spill] sm:$0xff] }
 0xe4e   :  { %v19883_v34 = vld [vmem:[#allocation29_spill] sm:$0xff] }
 0xe4f   :  { %v6674_v58 = vpop.permute.xlu1 %6673  ;;  %v6653_v2 = vpop.permute.xlu0 %6652  ;;  %13633 = vmatpush3.bf16.msra.mxu0 %v13632_v39  ;;  %13639 = vmatpush3.bf16.msra.mxu1 %v13638_v45  ;;  %v19882_v39 = vld [vmem:[#allocation22_spill] sm:$0xff] }
 0xe50   :  { %v6676_v47 = vadd.f32 %v6674_v58, %v6666_v6  ;;  %v6655_v12 = vadd.f32 %v6653_v2, %v6645_v62  ;;  %13634 = vmatprep.subr.bf16.mxu0 %v19847_v10  ;;  %v3941_v6 = vld [vmem:[%s19572_s17 + $0x78] sm:$0xff]  ;;  %v3944_v58 = vld [vmem:[%s19572_s17 + $0x90] sm:$0xff]  ;;  %13640 = vmatprep.subr.bf16.mxu1 %v19847_v10 }
 0xe51   :  { %v3945_v2 = vld [vmem:[%s19572_s17 + $0x98] sm:$0xff]  ;;  %v13635_v37 = vpack.c.bf16 %v3941_v6, %v3940_v46 }
 0xe52   :  { %v17932_v55 = vadd.f32 %v6807_v4, %v6676_v47  ;;  %v13641_v47 = vpack.c.bf16 %v3945_v2, %v3944_v58 }
 0xe53   :  { %v6685_v43 = vpop.permute.xlu0 %6684  ;;  %v6792_v25 = vpop.permute.xlu1 %6791  ;;  %13636 = vmatpush3.bf16.msra.mxu0 %v13635_v37 }
 0xe54   :  { %v6687_v17 = vadd.f32 %v6685_v43, %v6677_v13  ;;  %v6794_v30 = vadd.f32 %v6792_v25, %v6789_v63  ;;  %v6897_v23 = vmul.f32 %v17932_v55, %v17932_v55  ;;  %13643 = vmatprep.subr.bf16.mxu0 %v19847_v10  ;;  %13642 = vmatpush3.bf16.msra.mxu1 %v13641_v47 }
 0xe55   :  { %13649 = vmatprep.subr.bf16.mxu1 %v19847_v10 }
 0xe56   :  { %v6863_v19 = vadd.f32 %v6794_v30, %v6655_v12 }
 0xe57   :  { %v6695_v57 = vpop.permute.xlu0 %6694 }
 0xe58   :  { %v6697_v16 = vadd.f32 %v6695_v57, %v6687_v17  ;;  %v6896_v48 = vmul.f32 %v6863_v19, %v6863_v19 }
 0xe5a   :  { %v17938_v40 = vadd.f32 %v6820_v21, %v6697_v16  ;;  %v6898_v27 = vadd.f32 %v6897_v23, %v6896_v48  ;;  %v3947_v48 = vld [vmem:[%s19572_s17 + $0xa8] sm:$0xff]  ;;  %v3948_v23 = vld [vmem:[%s19572_s17 + $0xb0] sm:$0xff] }
 0xe5c   :  { %v6899_v38 = vmul.f32 %v17938_v40, %v17938_v40 }
 0xe5e   :  { %v6900_v60 = vadd.f32 %v6899_v38, %v6898_v27  ;;  %v3949_v38 = vld [vmem:[%s19572_s17 + $0xb8] sm:$0xff] }
 0xe69   :  { %v6904_v44 = vpop.permute.xlu1 %6903 }
 0xe6a   :  { %v6906_v61 = vadd.f32 %v6904_v44, %v6900_v60  ;;  %v18030_v44 = vpack.c.bf16 %v3949_v38, %v3948_v23 }
 0xeae   :  { %v6910_v28 = vpop.permute.xlu0 %6909 }
 0xeaf   :  { %v6912_v22 = vadd.f32 %v6910_v28, %v6906_v61 }
 0xeb2   :  { %v6916_v52 = vpop.permute.xlu1 %6915  ;;  %v6922_v53 = vpop.permute.xlu0 %6921 }
 0xeb3   :  { %v6918_v49 = vadd.f32 %v6916_v52, %v6912_v22 }
 0xeb5   :  { %v6924_v51 = vadd.f32 %v6922_v53, %v6918_v49 }
 0xeba   :  { %v6928_v32 = vpop.permute.xlu1 %6927 }
 0xebb   :  { %v6930_v14 = vadd.f32 %v6928_v32, %v6924_v51 }
 0xebe   :  { %v6934_v18 = vpop.permute.xlu0 %6933 }
 0xebf   :  { %v6936_v54 = vadd.f32 %v6934_v18, %v6930_v14  ;;  %v7870_v18 = vld [vmem:[%s19573_s18] sm:$0xff] }
 0xec1   :  { %v6937_v56 = vadd.f32 1.0, %v6936_v54  ;;  %v7871_v54 = vld [vmem:[%s19573_s18 + $0x8] sm:$0xff] }
 0xec3   :  { %14102 = vrcp.f32 %v6937_v56  ;;  %v13691_v56 = vpack.c.bf16 %v7871_v54, %v7870_v18 }
 0xecd   :  { %v17946_v9 = vpop.eup %14102 }
 0xece   :  { %6944 = vrot.lane.b32.xlu1 %v17946_v9, %s14203_s1  ;;  %v6941_v3 = vmul.f32 %v17946_v9, %v17932_v55  ;;  %v3946_v55 = vld [vmem:[%s19572_s17 + $0xa0] sm:$0xff]  ;;  %v6942_v22 = vmul.f32 %v17946_v9, %v17938_v40 }
 0xf40   :  { %v6945_v4 = vpop.permute.xlu1 %6944 }
 0xf41   :  { %v17977_v31 = vmul.f32 %v6945_v4, %v17916_v41  ;;  %v17980_v43 = vmul.f32 %v6945_v4, %v17892_v42  ;;  %v6949_v26 = vmul.f32 %v6945_v4, %v17899_v35  ;;  %v6951_v13 = vmul.f32 %v6945_v4, %v17910_v33 }
 0xf42   :  { %v6947_v17 = vmul.f32 %v6945_v4, %v17884_v50  ;;  %v17995_v33 = vmul.f32 %v17946_v9, %v6863_v19  ;;  %v6950_v19 = vmul.f32 %v6945_v4, %v17894_v11  ;;  %v18019_v11 = vpack.c.bf16 %v3947_v48, %v3946_v55 }
 0xf43   :  { %6959 = vrot.lane.b32.xlu1 %v17977_v31, %s14203_s1  ;;  %6954 = vrot.lane.b32.xlu0 %v17980_v43, %s14203_s1  ;;  %v6976_v41 = vsub.f32 %v6949_v26, %v6951_v13  ;;  %v6988_v35 = vadd.f32 %v6951_v13, %v6949_v26  ;;  %v8026_v13 = vld [vmem:[%s19574_s19 + $0x18] sm:$0xff] }
 0xf45   :  { %v6977_v42 = vmul.f32 0.5, %v6976_v41  ;;  %v6989_v24 = vmul.f32 0.5, %v6988_v35 }
 0xf47   :  { %6965 = vrot.lane.b32.xlu1 %v6947_v17, %s14203_s1 }
 0xf4b   :  { %7210 = vrot.lane.b32.xlu1 %v6977_v42, %s14203_s1 }
 0xf4f   :  { %7579 = vrot.lane.b32.xlu1 %v6989_v24, %s14203_s1 }
 0xfb5   :  { %v6960_v57 = vpop.permute.xlu1 %6959  ;;  %v6955_v21 = vpop.permute.xlu0 %6954 }
 0xfb6   :  { %v6957_v16 = vadd.f32 %v6955_v21, %v17995_v33 }
 0xfb8   :  { %v6962_v50 = vadd.f32 %v6960_v57, %v6957_v16 }
 0xfb9   :  { %v6966_v25 = vpop.permute.xlu1 %6965 }
 0xfba   :  { %v6963_v63 = vmul.f32 0.33333334, %v6962_v50  ;;  %v6968_v62 = vsub.f32 %v6941_v3, %v6966_v25  ;;  %v6979_v60 = vadd.f32 %v6966_v25, %v6941_v3  ;;  %v18135_v3 = vld [vmem:[%s19576_s21] sm:$0x3] }
 0xfbc   :  { %v6978_v30 = vsub.f32 %v17995_v33, %v6963_v63  ;;  %v6969_v12 = vmul.f32 0.5, %v6968_v62  ;;  %6984 = vrot.lane.b32.xlu0 %v6963_v63, %s14203_s1  ;;  %13037 = vmatmul.mubr.msk.f32.vlgmr.msra.gmra.mrb[38].mxu0 %vm1969_vm1, %v6963_v63  ;;  %v6980_v28 = vmul.f32 0.5, %v6979_v60 }
 0xfbd   :  { %13645 = vmatpush3.bf16.msra.mxu0 %v13638_v45  ;;  %13058 = vmatprep.mubr.msk.f32.mxu0 %vm14186_vm0, %v19848_v5  ;;  %v7211_v27 = vpop.permute.xlu1 %7210 }
 0xfbe   :  { %13048 = vmatmul.mubr.msk.f32.vlgmr.msra.gmra.mrb[40].mxu1 %vm1969_vm1, %v6969_v12  ;;  %13646 = vmatprep.subr.bf16.mxu0 %v19847_v10  ;;  %v18145_v12 = vrot.slane %v18135_v3, %v19808_v1 }
 0xfbf   :  { %13651 = vmatpush3.bf16.msra.mxu1 %v13638_v45  ;;  %13069 = vmatprep.mubr.msk.f32.mxu1 %vm14186_vm0, %v19848_v5 }
 0xfc0   :  { %6971 = vrot.lane.b32.xlu0 %v6950_v19, %s14203_s1  ;;  %13652 = vmatprep.subr.bf16.mxu1 %v19847_v10 }
 0xfc1   :  { %13648 = vmatpush3.bf16.msra.mxu0 %v13641_v47  ;;  %v7580_v9 = vpop.permute.xlu1 %7579 }
 0xfc2   :  { %13655 = vmatprep.subr.bf16.mxu0 %v19847_v10 }
 0xfc3   :  { %13654 = vmatpush3.bf16.msra.mxu1 %v13641_v47  ;;  %v8023_v47 = vld [vmem:[%s19574_s19] sm:$0xff] }
 0xfc4   :  { %13661 = vmatprep.subr.bf16.mxu1 %v19847_v10 }
 0xfc6   :  { %13070 = vmatmul.mubr.msk.f32.vlgmr.msra.gmra.mrb[42].mxu1 %vm1969_vm1, %v7211_v27 }
 0xfc7   :  { %13663 = vmatpush3.bf16.msra.mxu1 %v18019_v11  ;;  %13091 = vmatprep.mubr.msk.f32.mxu1 %vm14186_vm0, %v19848_v5 }
 0xfc8   :  { %13664 = vmatprep.subr.bf16.mxu1 %v19847_v10 }
 0xfcb   :  { %13666 = vmatpush3.bf16.msra.mxu1 %v18030_v44 }
 0xfcc   :  { %13673 = vmatprep.subr.bf16.mxu1 %v19847_v10 }
 0xfce   :  { %13092 = vmatmul.mubr.msk.f32.vlgmr.msra.gmra.mrb[44].mxu1 %vm1969_vm1, %v6980_v28 }
 0xfcf   :  { %13675 = vmatpush3.bf16.msra.mxu1 %v18019_v11  ;;  %13113 = vmatprep.mubr.msk.f32.mxu1 %vm14186_vm0, %v19848_v5 }
 0xfd0   :  { %13676 = vmatprep.subr.bf16.mxu1 %v19847_v10 }
 0xfd3   :  { %13678 = vmatpush3.bf16.msra.mxu1 %v18030_v44 }
 0xfd4   :  { %13685 = vmatprep.subr.bf16.mxu1 %v19847_v10 }
0x102e   :  { %v6985_v61 = vpop.permute.xlu0 %6984 }
0x102f   :  { %v6987_v52 = vsub.f32 %v17980_v43, %v6985_v61  ;;  %v6990_v53 = vsub.f32 %v17977_v31, %v6985_v61  ;;  %v8024_v31 = vld [vmem:[%s19574_s19 + $0x8] sm:$0xff]  ;;  %v8025_v43 = vld [vmem:[%s19574_s19 + $0x10] sm:$0xff] }
0x1030   :  { %v13695_v26 = vpack.c.bf16 %v8024_v31, %v8023_v47  ;;  %v13699_v17 = vpack.c.bf16 %v8026_v13, %v8025_v43 }
0x1031   :  { %7504 = vrot.lane.b32.xlu0 %v6987_v52, %s14203_s1 }
0x1032   :  { %v6972_v49 = vpop.permute.xlu0 %6971 }
0x1033   :  { %v6974_v32 = vsub.f32 %v6942_v22, %v6972_v49  ;;  %v6981_v40 = vadd.f32 %v6972_v49, %v6942_v22 }
0x1035   :  { %v6975_v51 = vmul.f32 0.5, %v6974_v32  ;;  %7654 = vrot.lane.b32.xlu0 %v6990_v53, %s14203_s1  ;;  %v6982_v14 = vmul.f32 0.5, %v6981_v40 }
0x1037   :  { %13059 = vmatmul.mubr.msk.f32.vlgmr.msra.gmra.mrb[40].mxu0 %vm1969_vm1, %v6975_v51 }
0x1038   :  { %13657 = vmatpush3.bf16.msra.mxu0 %v18019_v11  ;;  %13080 = vmatprep.mubr.msk.f32.mxu0 %vm14186_vm0, %v19848_v5 }
0x1039   :  { %13658 = vmatprep.subr.bf16.mxu0 %v19847_v10 }
0x103c   :  { %13660 = vmatpush3.bf16.msra.mxu0 %v18030_v44 }
0x103d   :  { %13667 = vmatprep.subr.bf16.mxu0 %v19847_v10 }
0x103f   :  { %13081 = vmatmul.mubr.msk.f32.vlgmr.msra.gmra.mrb[42].mxu0 %vm1969_vm1, %v6978_v30 }
0x1040   :  { %13669 = vmatpush3.bf16.msra.mxu0 %v18019_v11  ;;  %13102 = vmatprep.mubr.msk.f32.mxu0 %vm14186_vm0, %v19848_v5 }
0x1041   :  { %13670 = vmatprep.subr.bf16.mxu0 %v19847_v10 }
0x1044   :  { %13672 = vmatpush3.bf16.msra.mxu0 %v18030_v44 }
0x1045   :  { %13679 = vmatprep.subr.bf16.mxu0 %v19847_v10 }
0x1047   :  { %13103 = vmatmul.mubr.msk.f32.vlgmr.msra.gmra.mrb[44].mxu0 %vm1969_vm1, %v6982_v14 }
0x1048   :  { %13681 = vmatpush3.bf16.msra.mxu0 %v18019_v11  ;;  %13124 = vmatprep.mubr.msk.f32.mxu0 %vm14186_vm0, %v19848_v5 }
0x1049   :  { %13682 = vmatprep.subr.bf16.mxu0 %v19847_v10 }
0x104c   :  { %13684 = vmatpush3.bf16.msra.mxu0 %v18030_v44 }
0x104d   :  { %13692 = vmatprep.subr.bf16.mxu0 %v13691_v56 }
0x104f   :  { %13125 = vmatmul.mubr.msk.f32.vlgmr.msra.gmra.mrb[46].mxu0 %vm1969_vm1, %v7580_v9 }
0x1050   :  { %13694 = vmatpush3.bf16.msra.mxu0 %v13691_v56  ;;  %13142 = vmatprep.mubr.msk.f32.mxu0 %vm1826_vm4, %v19853_v59 }
0x1053   :  { %13143 = vmatmul.mubr.msk.f32.vlgmr.msra.gmra.mrb[48].mxu0 %vm1826_vm4, %v19854_v0 }
0x1054   :  { %13145 = vmatprep.mubr.msk.f32.mxu0 %vm1826_vm4, %v19855_v15 }
0x1057   :  { %13146 = vmatmul.mubr.msk.f32.gmra.mrb[50].mxu0 %vm1826_vm4, %v19856_v20 }
0x1058   :  { %13148 = vmatprep.mubr.msk.f32.mxu0 %vm1826_vm4, %v19880_v36 }
0x105b   :  { %13149 = vmatmul.mubr.msk.f32.gmra.mrb[52].mxu0 %vm1826_vm4, %v19881_v8 }
0x105c   :  { %13151 = vmatprep.mubr.msk.f32.mxu0 %vm1826_vm4, %v19882_v39 }
0x105f   :  { %13152 = vmatmul.mubr.msk.f32.gmra.mrb[54].mxu0 %vm1826_vm4, %v19883_v34 }
0x108f   :  { %v18093_v59 = vpop.f32.mrb[38].mxu0 }
0x1090   :  { %v13038_v0 = vpop.f32.mrb[39].mxu0 }
0x1091   :  { %v7132_v7 = vpop.f32.mrb[40].mxu1 }
0x1092   :  { %v13049_v15 = vpop.f32.mrb[41].mxu1 }
0x1099   :  { %v7280_v46 = vpop.f32.mrb[42].mxu1 }
0x109a   :  { %v13071_v45 = vpop.f32.mrb[43].mxu1 }
0x10a1   :  { %v7426_v20 = vpop.f32.mrb[44].mxu1 }
0x10a2   :  { %v18095_v6 = vadd.f32 %v7426_v20, %v7132_v7  ;;  %v18097_v58 = vsub.f32 %v7426_v20, %v7132_v7  ;;  %v13093_v2 = vpop.f32.mrb[45].mxu1 }
0x10a3   :  { %v7505_v37 = vpop.permute.xlu0 %7504 }
0x10a4   :  { %7782 = vrot.lane.b32.xlu1 %v18095_v6, %s14199_s11  ;;  %13114 = vmatmul.mubr.msk.f32.vlgmr.msra.gmra.mrb[46].mxu1 %vm1969_vm1, %v7505_v37 }
0x10a5   :  { %13687 = vmatpush3.bf16.msra.mxu1 %v18019_v11  ;;  %13135 = vmatprep.mubr.msk.f32.mxu1 %vm14186_vm0, %v19848_v5 }
0x10a6   :  { %13688 = vmatprep.subr.bf16.mxu1 %v19847_v10 }
0x10a7   :  { %v7655_v4 = vpop.permute.xlu0 %7654 }
0x10a8   :  { %7802 = vrot.lane.b32.xlu1 %v18097_v58, %s14203_s1 }
0x10a9   :  { %13690 = vmatpush3.bf16.msra.mxu1 %v18030_v44 }
0x10aa   :  { %13696 = vmatprep.subr.bf16.mxu1 %v13695_v26 }
0x10ac   :  { %13136 = vmatmul.mubr.msk.f32.vlgmr.msra.gmra.mrb[48].mxu1 %vm1969_vm1, %v7655_v4 }
0x10ad   :  { %13698 = vmatpush3.bf16.msra.mxu1 %v13695_v26 }
0x10ae   :  { %13700 = vmatprep.subr.bf16.mxu1 %v13699_v17 }
0x10b1   :  { %13702 = vmatpush3.bf16.msra.mxu1 %v13699_v17 }
0x10b2   :  { %13719 = vmatprep.subr.bf16.mxu1 %v19847_v10 }
0x110a   :  { %v7205_v41 = vpop.f32.mrb[40].mxu0 }
0x110b   :  { %v13060_v42 = vpop.f32.mrb[41].mxu0 }
0x1112   :  { %v7353_v35 = vpop.f32.mrb[42].mxu0 }
0x1113   :  { %v18124_v24 = vadd.f32 %v7353_v35, %v18093_v59  ;;  %v13082_v33 = vpop.f32.mrb[43].mxu0 }
0x111a   :  { %v7499_v57 = vpop.f32.mrb[44].mxu0 }
0x111b   :  { %v18126_v21 = vadd.f32 %v7499_v57, %v7205_v41  ;;  %v18128_v16 = vsub.f32 %v7499_v57, %v7205_v41  ;;  %v13104_v50 = vpop.f32.mrb[45].mxu0 }
0x111d   :  { %7792 = vrot.lane.b32.xlu1 %v18126_v21, %s14199_s11 }
0x1121   :  { %7824 = vrot.lane.b32.xlu1 %v18128_v16, %s14203_s1 }
0x1122   :  { %v7649_v25 = vpop.f32.mrb[46].mxu0 }
0x1123   :  { %v18139_v63 = vadd.f32 %v7649_v25, %v7280_v46  ;;  %v18141_v62 = vsub.f32 %v7649_v25, %v7280_v46  ;;  %v13126_v30 = vpop.f32.mrb[47].mxu0 }
0x1125   :  { %7814 = vrot.lane.b32.xlu1 %v18139_v63, %s14199_s11 }
0x1126   :  { %v13144_v19 = vpop.f32.mrb[48].mxu0 }
0x1127   :  { %v7950_v55 = vadd.f32 %v13144_v19, %v18145_v12  ;;  %v7944_v48 = vpop.f32.mrb[49].mxu0 }
0x1128   :  { %v7945_v11 = vadd.f32 %v7944_v48, %v18145_v12 }
0x1129   :  { %v7984_v23 = vmul.f32 0.5, %v7950_v55  ;;  %7834 = vrot.lane.b32.xlu1 %v18141_v62, %s14203_s1 }
0x112a   :  { %v7983_v38 = vmul.f32 0.5, %v7945_v11  ;;  %v13147_v27 = vpop.f32.mrb[50].mxu0 }
0x112b   :  { %14104 = vtanh.f32 %v7984_v23  ;;  %v7960_v44 = vadd.f32 %v13147_v27, %v18145_v12  ;;  %v7954_v60 = vpop.f32.mrb[51].mxu0 }
0x112c   :  { %14106 = vtanh.f32 %v7983_v38  ;;  %v7955_v28 = vadd.f32 %v7954_v60, %v18145_v12 }
0x112d   :  { %v7986_v61 = vmul.f32 0.5, %v7960_v44 }
0x112e   :  { %v7985_v52 = vmul.f32 0.5, %v7955_v28  ;;  %v13150_v22 = vpop.f32.mrb[52].mxu0 }
0x112f   :  { %14108 = vtanh.f32 %v7986_v61  ;;  %v7970_v49 = vadd.f32 %v13150_v22, %v18145_v12  ;;  %v7964_v53 = vpop.f32.mrb[53].mxu0 }
0x1130   :  { %14110 = vtanh.f32 %v7985_v52  ;;  %v7965_v32 = vadd.f32 %v7964_v53, %v18145_v12  ;;  %v7752_v52 = vmul.f32 %v18097_v58, %v18124_v24  ;;  %v7745_v53 = vmul.f32 %v18141_v62, %v18126_v21 }
0x1131   :  { %v7988_v51 = vmul.f32 0.5, %v7970_v49 }
0x1132   :  { %v7987_v40 = vmul.f32 0.5, %v7965_v32  ;;  %v13153_v14 = vpop.f32.mrb[54].mxu0 }
0x1133   :  { %14112 = vtanh.f32 %v7988_v51  ;;  %v7980_v18 = vadd.f32 %v13153_v14, %v18145_v12  ;;  %v7974_v54 = vpop.f32.mrb[55].mxu0  ;;  %v7748_v51 = vmul.f32 %v18139_v63, %v18095_v6  ;;  %v7767_v14 = vmul.f32 %v18141_v62, %v18097_v58 }
0x1134   :  { %14114 = vtanh.f32 %v7987_v40  ;;  %v7975_v56 = vadd.f32 %v7974_v54, %v18145_v12 }
0x1135   :  { %v14105_v9 = vpop.eup %14104  ;;  %v7990_v36 = vmul.f32 0.5, %v7980_v18 }
0x1136   :  { %v14107_v8 = vpop.eup %14106  ;;  %v8000_v39 = vmul.f32 0.5, %v14105_v9  ;;  %v7989_v34 = vmul.f32 0.5, %v7975_v56 }
0x1137   :  { %v7999_v0 = vmul.f32 0.5, %v14107_v8  ;;  %14116 = vtanh.f32 %v7990_v36  ;;  %v7755_v36 = vmul.f32 %v18128_v16, %v18139_v63  ;;  %v7761_v8 = vmul.f32 %v18097_v58, %v18126_v21 }
0x1138   :  { %v8008_v7 = vadd.f32 0.5, %v8000_v39  ;;  %14118 = vtanh.f32 %v7989_v34  ;;  %v7766_v39 = vmul.f32 %v18128_v16, %v18124_v24  ;;  %v7771_v34 = vmul.f32 %v18128_v16, %v18095_v6 }
0x1139   :  { %v14109_v15 = vpop.eup %14108  ;;  %v8007_v46 = vadd.f32 0.5, %v7999_v0 }
0x113a   :  { %v14111_v45 = vpop.eup %14110  ;;  %v8002_v20 = vmul.f32 0.5, %v14109_v15  ;;  %v8016_v4 = vmul.f32 %v8008_v7, %v7950_v55 }
0x113b   :  { %v8015_v2 = vmul.f32 %v8007_v46, %v7945_v11  ;;  %v8001_v37 = vmul.f32 0.5, %v14111_v45 }
0x113c   :  { %v8010_v47 = vadd.f32 0.5, %v8002_v20  ;;  %v7768_v20 = vadd.f32 %v7767_v14, %v7766_v39 }
0x113d   :  { %v14113_v31 = vpop.eup %14112  ;;  %v8009_v43 = vadd.f32 0.5, %v8001_v37  ;;  %13162 = vmatprep.mubr.msk.f32.mxu1 %vm1969_vm1, %v8015_v2 }
0x113e   :  { %v14115_v26 = vpop.eup %14114  ;;  %v8004_v13 = vmul.f32 0.5, %v14113_v31  ;;  %13163 = vmatmul.mubr.msk.f32.vlgmr.msra.gmra.mrb[50].mxu1 %vm1969_vm1, %v8016_v4  ;;  %v8018_v42 = vmul.f32 %v8010_v47, %v7960_v44 }
0x113f   :  { %v8017_v17 = vmul.f32 %v8009_v43, %v7955_v28  ;;  %v8003_v41 = vmul.f32 0.5, %v14115_v26  ;;  %v7742_v28 = vmul.f32 %v18095_v6, %v18124_v24 }
0x1140   :  { %v8012_v35 = vadd.f32 0.5, %v8004_v13 }
0x1141   :  { %v14117_v33 = vpop.eup %14116  ;;  %v8011_v57 = vadd.f32 0.5, %v8003_v41  ;;  %13165 = vmatprep.mubr.msk.f32.mxu1 %vm1969_vm1, %v8017_v17  ;;  %v7783_v17 = vpop.permute.xlu1 %7782 }
0x1142   :  { %v14119_v50 = vpop.eup %14118  ;;  %v8006_v25 = vmul.f32 0.5, %v14117_v33  ;;  %13166 = vmatmul.mubr.msk.f32.gmra.mrb[52].mxu1 %vm1969_vm1, %v8018_v42  ;;  %v8020_v55 = vmul.f32 %v8012_v35, %v7970_v49  ;;  %v19884_v35 = vld [vmem:[#allocation26_spill] sm:$0xff] }
0x1143   :  { %v8019_v30 = vmul.f32 %v8011_v57, %v7965_v32  ;;  %v8005_v19 = vmul.f32 0.5, %v14119_v50  ;;  %v7785_v33 = vadd.f32 %v7783_v17, %v19884_v35  ;;  %v7740_v35 = vmul.f32 %v18128_v16, %v18126_v21 }
0x1144   :  { %v8014_v48 = vadd.f32 0.5, %v8006_v25 }
0x1145   :  { %v8013_v11 = vadd.f32 0.5, %v8005_v19  ;;  %13168 = vmatprep.mubr.msk.f32.mxu1 %vm1969_vm1, %v8019_v30  ;;  %v7803_v41 = vpop.permute.xlu1 %7802  ;;  %v19885_v30 = vld [vmem:[#allocation36_spill] sm:$0xff] }
0x1146   :  { %13169 = vmatmul.mubr.msk.f32.gmra.mrb[54].mxu1 %vm1969_vm1, %v8020_v55  ;;  %v8022_v38 = vmul.f32 %v8014_v48, %v7980_v18  ;;  %v7805_v19 = vadd.f32 %v7803_v41, %v19885_v30  ;;  %v7737_v41 = vmul.f32 %v18124_v24, %v18124_v24  ;;  %v19890_v30 = vld [vmem:[#allocation23_spill] sm:$0xff] }
0x1147   :  { %v8021_v23 = vmul.f32 %v8013_v11, %v7975_v56  ;;  %v7747_v56 = vmul.f32 %v18126_v21, %v18124_v24 }
0x1149   :  { %13171 = vmatprep.mubr.msk.f32.mxu1 %vm1969_vm1, %v8021_v23  ;;  %v7749_v15 = vadd.f32 %v7748_v51, %v7747_v56  ;;  %v19886_v23 = vld [vmem:[#allocation32_spill] sm:$0xff]  ;;  %v19888_v51 = vld [vmem:[#allocation37_spill] sm:$0xff] }
0x114a   :  { %13172 = vmatmul.mubr.msk.f32.gmra.mrb[56].mxu1 %vm1969_vm1, %v8022_v38 }
0x114b   :  { %13210 = vmatprep.mubr.msk.f32.mxu1 %vm14186_vm0, %v19848_v5 }
0x1177   :  { %v7574_v27 = vpop.f32.mrb[46].mxu1 }
0x1178   :  { %v18170_v44 = vadd.f32 %v7574_v27, %v18093_v59  ;;  %v13115_v60 = vpop.f32.mrb[47].mxu1 }
0x117a   :  { %v7743_v61 = vmul.f32 %v18170_v44, %v18095_v6  ;;  %v7753_v22 = vmul.f32 %v18170_v44, %v18097_v58  ;;  %v7762_v40 = vmul.f32 %v18139_v63, %v18170_v44  ;;  %v7772_v18 = vmul.f32 %v18141_v62, %v18170_v44 }
0x117c   :  { %v7744_v49 = vadd.f32 %v7743_v61, %v7742_v28  ;;  %v7754_v32 = vadd.f32 %v7753_v22, %v7752_v52  ;;  %v7763_v45 = vadd.f32 %v7762_v40, %v7761_v8  ;;  %v7773_v2 = vadd.f32 %v7772_v18, %v7771_v34  ;;  %v19887_v52 = vld [vmem:[#allocation25_spill] sm:$0xff] }
0x117e   :  { %v7746_v54 = vadd.f32 %v7745_v53, %v7744_v49  ;;  %v7756_v46 = vadd.f32 %v7755_v36, %v7754_v32 }
0x117f   :  { %v7724_v9 = vpop.f32.mrb[48].mxu1 }
0x1180   :  { %v18201_v0 = vadd.f32 %v7724_v9, %v18093_v59  ;;  %v13137_v7 = vpop.f32.mrb[49].mxu1  ;;  %7787 = vrot.lane.b32.xlu0 %v7746_v54, %s14199_s11  ;;  %v19889_v9 = vld [vmem:[#allocation42_spill] sm:$0xff] }
0x1182   :  { %v7750_v37 = vmul.f32 %v18201_v0, %v18126_v21  ;;  %v7764_v4 = vmul.f32 %v18201_v0, %v18139_v63  ;;  %v7769_v47 = vmul.f32 %v18201_v0, %v18128_v16  ;;  %v7774_v59 = vmul.f32 %v18201_v0, %v18141_v62 }
0x1184   :  { %7807 = vrot.lane.b32.xlu0 %v7756_v46, %s14203_s1  ;;  %v7751_v31 = vadd.f32 %v7750_v37, %v7749_v15  ;;  %v7765_v43 = vadd.f32 %v7764_v4, %v7763_v45  ;;  %v7770_v26 = vadd.f32 %v7769_v47, %v7768_v20  ;;  %v7775_v13 = vadd.f32 %v7774_v59, %v7773_v2  ;;  %v7846_v20 = vld [vmem:[%s19577_s22] sm:$0xff]  ;;  %v7847_v2 = vld [vmem:[%s19577_s22 + $0x8] sm:$0xff]  ;;  %v7848_v37 = vld [vmem:[%s19577_s22 + $0x10] sm:$0xff] }
0x1185   :  { %v13720_v47 = vpack.c.bf16 %v7847_v2, %v7846_v20  ;;  %v7849_v59 = vld [vmem:[%s19577_s22 + $0x18] sm:$0xff] }
0x1187   :  { %13721 = vmatpush3.bf16.msra.mxu1 %v13720_v47 }
0x1188   :  { %7797 = vrot.lane.b32.xlu0 %v7751_v31, %s14199_s11  ;;  %v13723_v31 = vpack.c.bf16 %v7849_v59, %v7848_v37  ;;  %13722 = vmatprep.subr.bf16.mxu1 %v19847_v10 }
0x118b   :  { %13724 = vmatpush3.bf16.msra.mxu1 %v13723_v31 }
0x118c   :  { %7819 = vrot.lane.b32.xlu0 %v7765_v43, %s14199_s11  ;;  %13725 = vmatprep.subr.bf16.mxu1 %v19847_v10 }
0x118f   :  { %v7793_v42 = vpop.permute.xlu1 %7792 }
0x1190   :  { %7829 = vrot.lane.b32.xlu0 %v7770_v26, %s14203_s1  ;;  %v7795_v38 = vadd.f32 %v7793_v42, %v19886_v23  ;;  %v7738_v42 = vmul.f32 %v18097_v58, %v18095_v6  ;;  %v7759_v23 = vmul.f32 %v18141_v62, %v18139_v63  ;;  %v19891_v6 = vld [vmem:[#allocation24_spill] sm:$0xff] }
0x1191   :  { %v7811_v58 = vadd.f32 %v18170_v44, %v19891_v6  ;;  %v8206_v6 = vld [vmem:[%s19575_s20 + $0x38] sm:$0xff] }
0x1193   :  { %v7825_v25 = vpop.permute.xlu1 %7824 }
0x1194   :  { %7839 = vrot.lane.b32.xlu0 %v7775_v13, %s14203_s1  ;;  %v7827_v40 = vadd.f32 %v7825_v25, %v19888_v51  ;;  %v7776_v51 = vadd.f32 %v7759_v23, %v7740_v35 }
0x1197   :  { %v7815_v60 = vpop.permute.xlu1 %7814 }
0x1198   :  { %v7817_v22 = vadd.f32 %v7815_v60, %v19887_v52 }
0x119b   :  { %v7835_v18 = vpop.permute.xlu1 %7834 }
0x119c   :  { %v7837_v36 = vadd.f32 %v7835_v18, %v19889_v9  ;;  %v19892_v18 = vld [vmem:[#allocation41_spill] sm:$0xff] }
0x11f2   :  { %v7788_v57 = vpop.permute.xlu0 %7787 }
0x11f3   :  { %v18218_v50 = vadd.f32 %v7788_v57, %v7785_v33  ;;  %v7739_v33 = vadd.f32 %v7738_v42, %v7737_v41  ;;  %v7757_v57 = vmul.f32 %v18170_v44, %v18170_v44 }
0x11f5   :  { %v8395_v55 = vmul.f32 %v18218_v50, %v18218_v50  ;;  %v7741_v25 = vadd.f32 %v7740_v35, %v7739_v33  ;;  %v8199_v35 = vld [vmem:[%s19575_s20] sm:$0xff]  ;;  %v8200_v33 = vld [vmem:[%s19575_s20 + $0x8] sm:$0xff] }
0x11f6   :  { %v7808_v48 = vpop.permute.xlu0 %7807 }
0x11f7   :  { %v18223_v11 = vadd.f32 %v7808_v48, %v7805_v19  ;;  %8397 = vrot.lane.b32.xlu1 %v8395_v55, %s14202_s30  ;;  %v7779_v19 = vadd.f32 %v18124_v24, %v19890_v30  ;;  %v7758_v55 = vadd.f32 %v7757_v57, %v7738_v42 }
0x11f9   :  { %v8407_v27 = vmul.f32 %v18223_v11, %v18223_v11  ;;  %v7780_v48 = vadd.f32 %v7779_v19, %v7741_v25  ;;  %v13703_v25 = vpack.c.bf16 %v8200_v33, %v8199_v35 }
0x11fa   :  { %v7798_v28 = vpop.permute.xlu0 %7797 }
0x11fb   :  { %v18229_v61 = vadd.f32 %v7798_v28, %v7795_v38  ;;  %8409 = vrot.lane.b32.xlu1 %v8407_v27, %s14203_s1  ;;  %v7760_v38 = vadd.f32 %v7759_v23, %v7758_v55  ;;  %v8394_v60 = vmul.f32 %v7780_v48, %v7780_v48  ;;  %13704 = vmatprep.subr.bf16.mxu0 %v13703_v25  ;;  %v8201_v55 = vld [vmem:[%s19575_s20 + $0x10] sm:$0xff]  ;;  %v8204_v23 = vld [vmem:[%s19575_s20 + $0x28] sm:$0xff] }
0x11fc   :  { %13706 = vmatpush3.bf16.msra.mxu0 %v13703_v25 }
0x11fd   :  { %v8401_v49 = vmul.f32 %v18229_v61, %v18229_v61  ;;  %v7812_v16 = vadd.f32 %v7811_v58, %v7760_v38  ;;  %v7850_v58 = vld [vmem:[%s19577_s22 + $0x20] sm:$0xff] }
0x11fe   :  { %v7820_v53 = vpop.permute.xlu0 %7819 }
0x11ff   :  { %v18235_v32 = vadd.f32 %v7820_v53, %v7817_v22  ;;  %8403 = vrot.lane.b32.xlu0 %v8401_v49, %s14202_s30  ;;  %v7777_v22 = vmul.f32 %v18201_v0, %v18201_v0  ;;  %v8413_v53 = vmul.f32 %v7812_v16, %v7812_v16 }
0x1201   :  { %v8415_v14 = vmul.f32 %v18235_v32, %v18235_v32 }
0x1202   :  { %v7830_v54 = vpop.permute.xlu0 %7829 }
0x1203   :  { %v18241_v56 = vadd.f32 %v7830_v54, %v7827_v40  ;;  %8417 = vrot.lane.b32.xlu0 %v8415_v14, %s14202_s30  ;;  %v7778_v14 = vadd.f32 %v7777_v22, %v7776_v51  ;;  %v7843_v54 = vadd.f32 %v18201_v0, %v19892_v18 }
0x1205   :  { %v8421_v8 = vmul.f32 %v18241_v56, %v18241_v56  ;;  %v7844_v44 = vadd.f32 %v7843_v54, %v7778_v14 }
0x1206   :  { %v7840_v39 = vpop.permute.xlu0 %7839 }
0x1207   :  { %v18247_v34 = vadd.f32 %v7840_v39, %v7837_v36  ;;  %8423 = vrot.lane.b32.xlu1 %v8421_v8, %s14203_s1  ;;  %v8433_v39 = vmul.f32 %v7844_v44, %v7844_v44 }
0x1209   :  { %v8427_v7 = vmul.f32 %v18247_v34, %v18247_v34 }
0x120b   :  { %8429 = vrot.lane.b32.xlu0 %v8427_v7, %s14203_s1 }
0x1211   :  { %v18253_v15 = vpop.f32.mrb[50].mxu1 }
0x1212   :  { %v18255_v46 = vpop.f32.mrb[51].mxu1 }
0x1215   :  { %v18257_v45 = vpop.f32.mrb[52].mxu1 }
0x1216   :  { %v18268_v4 = vpop.f32.mrb[53].mxu1 }
0x1219   :  { %v18273_v43 = vpop.f32.mrb[54].mxu1 }
0x121a   :  { %v18276_v26 = vpop.f32.mrb[55].mxu1 }
0x121d   :  { %v18278_v13 = vpop.f32.mrb[56].mxu1 }
0x121e   :  { %v18281_v17 = vpop.f32.mrb[57].mxu1 }
0x1269   :  { %v8398_v27 = vpop.permute.xlu1 %8397 }
0x126a   :  { %v8400_v21 = vadd.f32 %v8398_v27, %v8394_v60  ;;  %v8205_v60 = vld [vmem:[%s19575_s20 + $0x30] sm:$0xff] }
0x126d   :  { %v8410_v49 = vpop.permute.xlu1 %8409 }
0x1271   :  { %v8404_v28 = vpop.permute.xlu0 %8403 }
0x1272   :  { %v8406_v52 = vadd.f32 %v8404_v28, %v8400_v21  ;;  %v7851_v21 = vld [vmem:[%s19577_s22 + $0x28] sm:$0xff] }
0x1273   :  { %v18369_v28 = vpack.c.bf16 %v7851_v21, %v7850_v58 }
0x1274   :  { %v8412_v24 = vadd.f32 %v8410_v49, %v8406_v52  ;;  %v7853_v52 = vld [vmem:[%s19577_s22 + $0x38] sm:$0xff] }
0x1275   :  { %v8418_v63 = vpop.permute.xlu0 %8417 }
0x1276   :  { %v8414_v40 = vadd.f32 %v8413_v53, %v8412_v24 }
0x1278   :  { %v8420_v62 = vadd.f32 %v8418_v63, %v8414_v40 }
0x1279   :  { %v8424_v9 = vpop.permute.xlu1 %8423 }
0x127a   :  { %v8426_v36 = vadd.f32 %v8424_v9, %v8420_v62 }
0x127d   :  { %v8430_v8 = vpop.permute.xlu0 %8429 }
0x127e   :  { %v8432_v7 = vadd.f32 %v8430_v8, %v8426_v36 }
0x1280   :  { %v8434_v20 = vadd.f32 %v8433_v39, %v8432_v7 }
0x1282   :  { %v8435_v2 = vadd.f32 1.0, %v8434_v20 }
0x1284   :  { %14120 = vrcp.f32 %v8435_v2 }
0x128e   :  { %v14121_v37 = vpop.eup %14120 }
0x128f   :  { %v18301_v47 = vmul.f32 %v14121_v37, %v7780_v48  ;;  %v18303_v59 = vmul.f32 %v14121_v37, %v7812_v16  ;;  %v18305_v31 = vmul.f32 %v14121_v37, %v7844_v44  ;;  %8440 = vrot.lane.b32.xlu0 %v14121_v37, %s14199_s11  ;;  %8445 = vrot.lane.b32.xlu1 %v14121_v37, %s14203_s1  ;;  %v8202_v48 = vld [vmem:[%s19575_s20 + $0x18] sm:$0xff]  ;;  %v7852_v16 = vld [vmem:[%s19577_s22 + $0x30] sm:$0xff] }
0x1290   :  { %v18375_v22 = vpack.c.bf16 %v7853_v52, %v7852_v16 }
0x1291   :  { %v8454_v0 = vadd.f32 %v18303_v59, %v18301_v47 }
0x1293   :  { %v8455_v41 = vadd.f32 %v8454_v0, %v18305_v31 }
0x1295   :  { %v18312_v42 = vmul.f32 0.33333334, %v8455_v41 }
0x1297   :  { %13211 = vmatmul.mubr.msk.f32.vlgmr.msra.gmra.mrb[58].mxu1 %vm1969_vm1, %v18312_v42 }
0x1298   :  { %13221 = vmatprep.mubr.msk.f32.mxu1 %vm14186_vm0, %v19848_v5  ;;  %13727 = vmatpush3.bf16.msra.mxu1 %v18369_v28 }
0x1299   :  { %13728 = vmatprep.subr.bf16.mxu1 %v19847_v10 }
0x129c   :  { %13730 = vmatpush3.bf16.msra.mxu1 %v18375_v22 }
0x129d   :  { %13737 = vmatprep.subr.bf16.mxu1 %v19847_v10 }
0x1301   :  { %v8446_v57 = vpop.permute.xlu1 %8445  ;;  %v8441_v53 = vpop.permute.xlu0 %8440 }
0x1302   :  { %v18325_v30 = vmul.f32 %v8446_v57, %v18223_v11  ;;  %v18328_v19 = vmul.f32 %v8446_v57, %v18241_v56  ;;  %v8203_v11 = vld [vmem:[%s19575_s20 + $0x20] sm:$0xff]  ;;  %v13707_v56 = vpack.c.bf16 %v8202_v48, %v8201_v55  ;;  %v18347_v38 = vmul.f32 %v8446_v57, %v18247_v34 }
0x1303   :  { %v13711_v27 = vpack.c.bf16 %v8204_v23, %v8203_v11  ;;  %v13715_v34 = vpack.c.bf16 %v8206_v6, %v8205_v60  ;;  %v18383_v51 = vmul.f32 %v8441_v53, %v18218_v50  ;;  %v18386_v40 = vmul.f32 %v8441_v53, %v18229_v61 }
0x1304   :  { %19893 = vst [vmem:[#allocation38_spill] sm:$0xff] %v18328_v19  ;;  %8458 = vrot.lane.b32.xlu1 %v18325_v30, %s14202_s30  ;;  %8464 = vrot.lane.b32.xlu0 %v18328_v19, %s14202_s30  ;;  %19894 = vst [vmem:[#allocation28_spill] sm:$0xff] %v18347_v38  ;;  %v18391_v54 = vmul.f32 %v8441_v53, %v18235_v32 }
0x1305   :  { %13708 = vmatprep.subr.bf16.mxu0 %v13707_v56  ;;  %19895 = vst [vmem:[#allocation39_spill] sm:$0xff] %v18383_v51  ;;  %19896 = vst [vmem:[#allocation43_spill] sm:$0xff] %v18386_v40 }
0x1306   :  { %13710 = vmatpush3.bf16.msra.mxu0 %v13707_v56  ;;  %19897 = vst [vmem:[#allocation13_spill] sm:$0xff] %v18391_v54 }
0x1307   :  { %13712 = vmatprep.subr.bf16.mxu0 %v13711_v27 }
0x1308   :  { %8470 = vrot.lane.b32.xlu1 %v18347_v38, %s14202_s30  ;;  %8027 = vrot.lane.b32.xlu0 %v18145_v12, %s14202_s30 }
0x130a   :  { %13714 = vmatpush3.bf16.msra.mxu0 %v13711_v27 }
0x130b   :  { %13716 = vmatprep.subr.bf16.mxu0 %v13715_v34 }
0x130e   :  { %13718 = vmatpush3.bf16.msra.mxu0 %v13715_v34 }
0x130f   :  { %13731 = vmatprep.subr.bf16.mxu0 %v19847_v10 }
0x136a   :  { %v18380_v49 = vpop.f32.mrb[58].mxu1 }
0x136b   :  { %v13212_v24 = vpop.f32.mrb[59].mxu1 }
0x1376   :  { %v8459_v14 = vpop.permute.xlu1 %8458  ;;  %v8465_v63 = vpop.permute.xlu0 %8464 }
0x1377   :  { %v8461_v62 = vsub.f32 %v18383_v51, %v8459_v14  ;;  %v8467_v18 = vsub.f32 %v18386_v40, %v8465_v63  ;;  %v8476_v44 = vadd.f32 %v8459_v14, %v18383_v51  ;;  %v8478_v50 = vadd.f32 %v8465_v63, %v18386_v40 }
0x1379   :  { %v8462_v9 = vmul.f32 0.5, %v8461_v62  ;;  %v8468_v36 = vmul.f32 0.5, %v8467_v18  ;;  %v8477_v37 = vmul.f32 0.5, %v8476_v44 }
0x137a   :  { %v8471_v8 = vpop.permute.xlu1 %8470  ;;  %v8028_v39 = vpop.permute.xlu0 %8027 }
0x137b   :  { %v8473_v61 = vsub.f32 %v18391_v54, %v8471_v8  ;;  %8558 = vrot.lane.b32.xlu1 %v8462_v9, %s14202_s30  ;;  %8633 = vrot.lane.b32.xlu0 %v8468_v36, %s14202_s30  ;;  %v8121_v7 = vadd.f32 %v18255_v46, %v8028_v39  ;;  %v8126_v20 = vadd.f32 %v18253_v15, %v8028_v39 }
0x137c   :  { %v8131_v32 = vadd.f32 %v18268_v4, %v8028_v39  ;;  %v8136_v2 = vadd.f32 %v18257_v45, %v8028_v39  ;;  %v8141_v41 = vadd.f32 %v18276_v26, %v8028_v39  ;;  %v18404_v35 = vadd.f32 %v18273_v43, %v8028_v39 }
0x137d   :  { %v8474_v0 = vmul.f32 0.5, %v8473_v61  ;;  %v8481_v33 = vadd.f32 %v8471_v8, %v18391_v54  ;;  %v8159_v57 = vmul.f32 0.5, %v8121_v7  ;;  %v8160_v25 = vmul.f32 0.5, %v8126_v20 }
0x137e   :  { %v8161_v55 = vmul.f32 0.5, %v8131_v32  ;;  %v8162_v46 = vmul.f32 0.5, %v8136_v2  ;;  %v8151_v15 = vadd.f32 %v18281_v17, %v8028_v39  ;;  %v18410_v4 = vadd.f32 %v18278_v13, %v8028_v39  ;;  %v19898_v13 = vld [vmem:[#allocation7_spill] sm:$0xff] }
0x137f   :  { %8708 = vrot.lane.b32.xlu1 %v8474_v0, %s14202_s30  ;;  %8856 = vrot.lane.b32.xlu0 %v8477_v37, %s14202_s30  ;;  %14122 = vtanh.f32 %v8159_v57  ;;  %v8163_v45 = vmul.f32 0.5, %v8141_v41  ;;  %v8479_v26 = vmul.f32 0.5, %v8478_v50  ;;  %v8164_v43 = vmul.f32 0.5, %v18404_v35 }
0x1380   :  { %14124 = vtanh.f32 %v8160_v25  ;;  %v8482_v48 = vmul.f32 0.5, %v8481_v33  ;;  %v8165_v11 = vmul.f32 0.5, %v8151_v15  ;;  %v8166_v56 = vmul.f32 0.5, %v18410_v4 }
0x1381   :  { %14126 = vtanh.f32 %v8161_v55  ;;  %v8210_v17 = vrot.slane %v18135_v3, %v19898_v13 }
0x1382   :  { %14128 = vtanh.f32 %v8162_v46  ;;  %v7856_v46 = vld [vmem:[%s19577_s22 + $0x50] sm:$0xff] }
0x1383   :  { %8931 = vrot.lane.b32.xlu1 %v8479_v26, %s14202_s30  ;;  %9079 = vrot.lane.b32.xlu0 %v8482_v48, %s14202_s30  ;;  %14130 = vtanh.f32 %v8163_v45  ;;  %v8480_v48 = vsub.f32 %v18303_v59, %v18312_v42 }
0x1384   :  { %14132 = vtanh.f32 %v8164_v43 }
0x1385   :  { %14134 = vtanh.f32 %v8165_v11 }
0x1386   :  { %14136 = vtanh.f32 %v8166_v56  ;;  %v8483_v56 = vsub.f32 %v18305_v31, %v18312_v42 }
0x1387   :  { %8211 = vrot.lane.b32.xlu1 %v18145_v12, %s14199_s11  ;;  %8213 = vrot.lane.b32.xlu0 %v8210_v17, %s14199_s11 }
0x1389   :  { %v14123_v23 = vpop.eup %14122 }
0x138a   :  { %v14125_v27 = vpop.eup %14124  ;;  %v8175_v60 = vmul.f32 0.5, %v14123_v23 }
0x138b   :  { %v14127_v6 = vpop.eup %14126  ;;  %v8176_v34 = vmul.f32 0.5, %v14125_v27 }
0x138c   :  { %v14129_v58 = vpop.eup %14128  ;;  %v8183_v21 = vadd.f32 0.5, %v8175_v60  ;;  %v8177_v16 = vmul.f32 0.5, %v14127_v6 }
0x138d   :  { %v14131_v52 = vpop.eup %14130  ;;  %v8184_v24 = vadd.f32 0.5, %v8176_v34  ;;  %v8178_v53 = vmul.f32 0.5, %v14129_v58 }
0x138e   :  { %v14133_v3 = vpop.eup %14132  ;;  %v8191_v14 = vmul.f32 %v8183_v21, %v8121_v7  ;;  %v8185_v63 = vadd.f32 0.5, %v8177_v16  ;;  %v8179_v62 = vmul.f32 0.5, %v14131_v52 }
0x138f   :  { %v14135_v18 = vpop.eup %14134  ;;  %v8192_v9 = vmul.f32 %v8184_v24, %v8126_v20  ;;  %v8186_v12 = vadd.f32 0.5, %v8178_v53  ;;  %v8180_v44 = vmul.f32 0.5, %v14133_v3 }
0x1390   :  { %v14137_v36 = vpop.eup %14136  ;;  %13190 = vmatprep.mubr.msk.f32.mxu0 %vm3753_vm14, %v8191_v14  ;;  %v8193_v8 = vmul.f32 %v8185_v63, %v8131_v32  ;;  %v8187_v50 = vadd.f32 0.5, %v8179_v62  ;;  %v8181_v39 = vmul.f32 0.5, %v14135_v18 }
0x1391   :  { %13191 = vmatmul.mubr.msk.f32.vlgmr.msra.gmra.mrb[56].mxu0 %vm3753_vm14, %v8192_v9  ;;  %v8194_v61 = vmul.f32 %v8186_v12, %v8136_v2  ;;  %v8188_v7 = vadd.f32 0.5, %v8180_v44  ;;  %v8182_v37 = vmul.f32 0.5, %v14137_v36 }
0x1392   :  { %13193 = vmatprep.mubr.msk.f32.mxu0 %vm3753_vm14, %v8193_v8  ;;  %13733 = vmatpush3.bf16.msra.mxu0 %v18369_v28  ;;  %v8195_v20 = vmul.f32 %v8187_v50, %v8141_v41  ;;  %v8189_v0 = vadd.f32 0.5, %v8181_v39  ;;  %v7854_v41 = vld [vmem:[%s19577_s22 + $0x40] sm:$0xff] }
0x1393   :  { %13734 = vmatprep.subr.bf16.mxu0 %v19847_v10  ;;  %v8196_v32 = vmul.f32 %v8188_v7, %v18404_v35  ;;  %v8190_v33 = vadd.f32 0.5, %v8182_v37  ;;  %v7855_v35 = vld [vmem:[%s19577_s22 + $0x48] sm:$0xff] }
0x1394   :  { %v8197_v57 = vmul.f32 %v8189_v0, %v8151_v15  ;;  %v13744_v25 = vpack.c.bf16 %v7855_v35, %v7854_v41  ;;  %v7857_v15 = vld [vmem:[%s19577_s22 + $0x58] sm:$0xff] }
0x1395   :  { %13194 = vmatmul.mubr.msk.f32.gmra.mrb[58].mxu0 %vm3753_vm14, %v8194_v61  ;;  %v8198_v2 = vmul.f32 %v8190_v33, %v18410_v4  ;;  %v13747_v45 = vpack.c.bf16 %v7857_v15, %v7856_v46 }
0x1396   :  { %13196 = vmatprep.mubr.msk.f32.mxu0 %vm3753_vm14, %v8195_v20  ;;  %13736 = vmatpush3.bf16.msra.mxu0 %v18375_v22 }
0x1397   :  { %13743 = vmatprep.subr.bf16.mxu0 %v19847_v10 }
0x1399   :  { %13197 = vmatmul.mubr.msk.f32.gmra.mrb[60].mxu0 %vm3753_vm14, %v8196_v32 }
0x139a   :  { %13199 = vmatprep.mubr.msk.f32.mxu0 %vm3753_vm14, %v8197_v57 }
0x139d   :  { %13200 = vmatmul.mubr.msk.f32.gmra.mrb[62].mxu0 %vm3753_vm14, %v8198_v2 }
0x139e   :  { %13232 = vmatprep.mubr.msk.f32.mxu0 %vm14186_vm0, %v19848_v5 }
0x13ed   :  { %v8559_v55 = vpop.permute.xlu1 %8558  ;;  %v8634_v4 = vpop.permute.xlu0 %8633 }
0x13ee   :  { %13222 = vmatmul.mubr.msk.f32.vlgmr.msra.gmra.mrb[60].mxu1 %vm1969_vm1, %v8559_v55  ;;  %13233 = vmatmul.mubr.msk.f32.vlgmr.msra.gmra.mrb[64].mxu0 %vm1969_vm1, %v8634_v4 }
0x13ef   :  { %13739 = vmatpush3.bf16.msra.mxu1 %v18369_v28  ;;  %13745 = vmatpush3.bf16.msra.mxu0 %v13744_v25  ;;  %v8475_v28 = vsub.f32 %v18301_v47, %v18312_v42 }
0x13f0   :  { %13740 = vmatprep.subr.bf16.mxu1 %v19847_v10  ;;  %13746 = vmatprep.subr.bf16.mxu0 %v19847_v10 }
0x13f1   :  { %13243 = vmatprep.mubr.msk.f32.mxu1 %vm14186_vm0, %v19848_v5  ;;  %13254 = vmatprep.mubr.msk.f32.mxu0 %vm14186_vm0, %v19848_v5  ;;  %v8709_v26 = vpop.permute.xlu1 %8708 }
0x13f3   :  { %13742 = vmatpush3.bf16.msra.mxu1 %v18375_v22  ;;  %13748 = vmatpush3.bf16.msra.mxu0 %v13747_v45  ;;  %v8857_v22 = vpop.permute.xlu0 %8856 }
0x13f4   :  { %13749 = vmatprep.subr.bf16.mxu1 %v19847_v10  ;;  %13755 = vmatprep.subr.bf16.mxu0 %v19847_v10 }
0x13f5   :  { %v8932_v43 = vpop.permute.xlu1 %8931 }
0x13f6   :  { %13244 = vmatmul.mubr.msk.f32.vlgmr.msra.gmra.mrb[62].mxu1 %vm1969_vm1, %v8709_v26  ;;  %13255 = vmatmul.mubr.msk.f32.vlgmr.msra.gmra.mrb[66].mxu0 %vm1969_vm1, %v8475_v28 }
0x13f7   :  { %13751 = vmatpush3.bf16.msra.mxu1 %v13744_v25  ;;  %13757 = vmatpush3.bf16.msra.mxu0 %v13744_v25  ;;  %v9080_v11 = vpop.permute.xlu0 %9079 }
0x13f8   :  { %13752 = vmatprep.subr.bf16.mxu1 %v19847_v10  ;;  %13758 = vmatprep.subr.bf16.mxu0 %v19847_v10 }
0x13f9   :  { %13265 = vmatprep.mubr.msk.f32.mxu1 %vm14186_vm0, %v19848_v5  ;;  %13276 = vmatprep.mubr.msk.f32.mxu0 %vm14186_vm0, %v19848_v5 }
0x13fb   :  { %13754 = vmatpush3.bf16.msra.mxu1 %v13747_v45  ;;  %13760 = vmatpush3.bf16.msra.mxu0 %v13747_v45 }
0x13fc   :  { %13761 = vmatprep.subr.bf16.mxu1 %v19847_v10  ;;  %13767 = vmatprep.subr.bf16.mxu0 %v19847_v10 }
0x13fe   :  { %13266 = vmatmul.mubr.msk.f32.vlgmr.msra.gmra.mrb[64].mxu1 %vm1969_vm1, %v8857_v22  ;;  %13277 = vmatmul.mubr.msk.f32.vlgmr.msra.gmra.mrb[68].mxu0 %vm1969_vm1, %v8932_v43 }
0x13ff   :  { %13763 = vmatpush3.bf16.msra.mxu1 %v13744_v25  ;;  %13769 = vmatpush3.bf16.msra.mxu0 %v13744_v25 }
0x1400   :  { %13764 = vmatprep.subr.bf16.mxu1 %v19847_v10  ;;  %13770 = vmatprep.subr.bf16.mxu0 %v19847_v10 }
0x1401   :  { %13287 = vmatprep.mubr.msk.f32.mxu1 %vm14186_vm0, %v19848_v5  ;;  %13298 = vmatprep.mubr.msk.f32.mxu0 %vm14186_vm0, %v19848_v5 }
0x1403   :  { %13766 = vmatpush3.bf16.msra.mxu1 %v13747_v45  ;;  %13772 = vmatpush3.bf16.msra.mxu0 %v13747_v45 }
0x1404   :  { %13773 = vmatprep.subr.bf16.mxu1 %v19847_v10  ;;  %13779 = vmatprep.subr.bf16.mxu0 %v19847_v10 }
0x1406   :  { %13288 = vmatmul.mubr.msk.f32.vlgmr.msra.gmra.mrb[66].mxu1 %vm1969_vm1, %v8480_v48  ;;  %13299 = vmatmul.mubr.msk.f32.vlgmr.msra.gmra.mrb[70].mxu0 %vm1969_vm1, %v9080_v11 }
0x1407   :  { %13775 = vmatpush3.bf16.msra.mxu1 %v13744_v25  ;;  %13309 = vmatprep.mubr.msk.f32.mxu1 %vm14186_vm0, %v19848_v5 }
0x1408   :  { %13776 = vmatprep.subr.bf16.mxu1 %v19847_v10  ;;  %13320 = vmatprep.mubr.msk.f32.mxu0 %vm14186_vm0, %v19848_v5 }
0x140b   :  { %13778 = vmatpush3.bf16.msra.mxu1 %v13747_v45 }
0x140c   :  { %13785 = vmatprep.subr.bf16.mxu1 %v19847_v10 }
0x140e   :  { %13310 = vmatmul.mubr.msk.f32.vlgmr.msra.gmra.mrb[68].mxu1 %vm1969_vm1, %v8483_v56 }
0x140f   :  { %13331 = vmatprep.mubr.msk.f32.mxu1 %vm14186_vm0, %v19848_v5 }
0x1464   :  { %v18499_v13 = vpop.f32.mrb[56].mxu0 }
0x1465   :  { %v18501_v17 = vpop.f32.mrb[57].mxu0 }
0x1468   :  { %v18503_v23 = vpop.f32.mrb[58].mxu0 }
0x1469   :  { %v18505_v27 = vpop.f32.mrb[59].mxu0 }
0x146c   :  { %v18507_v60 = vpop.f32.mrb[60].mxu0 }
0x146d   :  { %v18509_v6 = vpop.f32.mrb[61].mxu0 }
0x1470   :  { %v18511_v42 = vpop.f32.mrb[62].mxu0 }
0x1471   :  { %v18513_v34 = vpop.f32.mrb[63].mxu0 }
0x14c1   :  { %v8628_v58 = vpop.f32.mrb[60].mxu1  ;;  %v8703_v16 = vpop.f32.mrb[64].mxu0 }
0x14c2   :  { %v9356_v21 = vrot.slane %v8628_v58, %v19871_v29  ;;  %v13223_v52 = vpop.f32.mrb[61].mxu1  ;;  %v9478_v24 = vcombine.high %v8703_v16, %v8703_v16  ;;  %v9485_v53 = vrot.slane %v8703_v16, %v19871_v29  ;;  %v13234_v3 = vpop.f32.mrb[65].mxu0  ;;  %v9349_v50 = vcombine.high %v8628_v58, %v8628_v58 }
0x14c4   :  { %v9364_v14 = vcombine.high %v9356_v21, %v9356_v21  ;;  %v9372_v63 = vrot.slane %v9356_v21, %v19871_v29  ;;  %v9501_v62 = vrot.slane %v9485_v53, %v19871_v29  ;;  %v9493_v18 = vcombine.high %v9485_v53, %v9485_v53 }
0x14c5   :  { %v9492_v44 = vrot.slane %v9478_v24, %v19871_v29  ;;  %v9363_v2 = vrot.slane %v9349_v50, %v19871_v29 }
0x14c6   :  { %v9401_v9 = vrot.slane %v9372_v63, %v19808_v1  ;;  %v9394_v12 = vcombine.high %v9372_v63, %v9372_v63  ;;  %v9530_v36 = vrot.slane %v9501_v62, %v19808_v1  ;;  %v9386_v8 = vrot.slane %v9364_v14, %v19871_v29 }
0x14c7   :  { %v9515_v20 = vrot.slane %v9493_v18, %v19871_v29  ;;  %v9508_v57 = vrot.slane %v9492_v44, %v19871_v29  ;;  %v9523_v35 = vcombine.high %v9501_v62, %v9501_v62  ;;  %v9365_v46 = vcombine.high %v9363_v2, %v9363_v2 }
0x14c8   :  { %9430 = vrot.lane.b32.xlu1 %v9401_v9, %s14199_s11  ;;  %9559 = vrot.lane.b32.xlu0 %v9530_v36, %s14199_s11  ;;  %v9409_v37 = vrot.slane %v9394_v12, %v19808_v1  ;;  %v9405_v33 = vrot.slane %v9386_v8, %v19808_v1  ;;  %v9396_v55 = vcombine.high %v9386_v8, %v9386_v8 }
0x14c9   :  { %v8778_v39 = vpop.f32.mrb[62].mxu1  ;;  %v18525_v61 = vpop.f32.mrb[66].mxu0  ;;  %v9534_v41 = vrot.slane %v9515_v20, %v19808_v1  ;;  %v9546_v25 = vrot.slane %v9508_v57, %v19808_v1  ;;  %v9494_v15 = vcombine.high %v9492_v44, %v9492_v44  ;;  %v9538_v43 = vrot.slane %v9523_v35, %v19808_v1 }
0x14ca   :  { %v13245_v7 = vpop.f32.mrb[63].mxu1  ;;  %v18531_v0 = vadd.f32 %v18525_v61, %v18380_v49  ;;  %v13256_v32 = vpop.f32.mrb[67].mxu0  ;;  %v9379_v48 = vrot.slane %v9363_v2, %v19871_v29  ;;  %v9413_v52 = vrot.slane %v9396_v55, %v19808_v1  ;;  %v9525_v24 = vcombine.high %v9515_v20, %v9515_v20 }
0x14cb   :  { %v9393_v3 = vrot.slane %v9365_v46, %v19871_v29  ;;  %v9522_v63 = vrot.slane %v9494_v15, %v19871_v29  ;;  %v9524_v2 = vcombine.high %v9508_v57, %v9508_v57 }
0x14cc   :  { %9434 = vrot.lane.b32.xlu1 %v9409_v37, %s14199_s11  ;;  %9432 = vrot.lane.b32.xlu0 %v9405_v33, %s14199_s11  ;;  %v9417_v53 = vrot.slane %v9379_v48, %v19808_v1  ;;  %v9542_v14 = vrot.slane %v9525_v24, %v19808_v1  ;;  %v9395_v8 = vcombine.high %v9379_v48, %v9379_v48 }
0x14cd   :  { %v9421_v36 = vrot.slane %v9393_v3, %v19808_v1  ;;  %v9550_v20 = vrot.slane %v9522_v63, %v19808_v1  ;;  %v9397_v32 = vcombine.high %v9393_v3, %v9393_v3  ;;  %v9526_v57 = vcombine.high %v9522_v63, %v9522_v63 }
0x14ce   :  { %v9425_v33 = vrot.slane %v9395_v8, %v19808_v1 }
0x14d0   :  { %9561 = vrot.lane.b32.xlu1 %v9534_v41, %s14199_s11  ;;  %9567 = vrot.lane.b32.xlu0 %v9546_v25, %s14199_s11  ;;  %v9429_v25 = vrot.slane %v9397_v32, %v19808_v1 }
0x14d1   :  { %v18541_v4 = vpop.f32.mrb[64].mxu1  ;;  %v18550_v28 = vpop.f32.mrb[68].mxu0 }
0x14d2   :  { %v18545_v45 = vadd.f32 %v18541_v4, %v8628_v58  ;;  %v18548_v26 = vsub.f32 %v18541_v4, %v8628_v58  ;;  %v13267_v22 = vpop.f32.mrb[65].mxu1  ;;  %v18555_v11 = vadd.f32 %v18550_v28, %v8703_v16  ;;  %v18558_v56 = vsub.f32 %v18550_v28, %v8703_v16  ;;  %v13278_v21 = vpop.f32.mrb[69].mxu0 }
0x14d3   :  { %v9607_v58 = vcombine.high %v8778_v39, %v8778_v39  ;;  %v9614_v16 = vrot.slane %v8778_v39, %v19871_v29  ;;  %v9554_v22 = vrot.slane %v9524_v2, %v19808_v1  ;;  %v10001_v63 = vrot.slane %v18550_v28, %v19871_v29 }
0x14d4   :  { %9563 = vrot.lane.b32.xlu1 %v9538_v43, %s14199_s11  ;;  %9436 = vrot.lane.b32.xlu0 %v9413_v52, %s14199_s11  ;;  %v9558_v52 = vrot.slane %v9526_v57, %v19808_v1 }
0x14d5   :  { %v9621_v18 = vrot.slane %v9607_v58, %v19871_v29  ;;  %v9630_v35 = vrot.slane %v9614_v16, %v19871_v29  ;;  %v9622_v55 = vcombine.high %v9614_v16, %v9614_v16  ;;  %v10017_v8 = vrot.slane %v10001_v63, %v19871_v29 }
0x14d7   :  { %v9623_v41 = vcombine.high %v9621_v18, %v9621_v18  ;;  %v9637_v43 = vrot.slane %v9621_v18, %v19871_v29  ;;  %v9659_v48 = vrot.slane %v9630_v35, %v19808_v1  ;;  %v9644_v24 = vrot.slane %v9622_v55, %v19871_v29 }
0x14d8   :  { %9438 = vrot.lane.b32.xlu1 %v9417_v53, %s14199_s11  ;;  %9565 = vrot.lane.b32.xlu0 %v9542_v14, %s14199_s11  ;;  %v9652_v14 = vcombine.high %v9630_v35, %v9630_v35  ;;  %v10039_v57 = vcombine.high %v10017_v8, %v10017_v8 }
0x14d9   :  { %v18569_v62 = vpop.f32.mrb[66].mxu1  ;;  %v18577_v12 = vpop.f32.mrb[70].mxu0  ;;  %v9651_v21 = vrot.slane %v9623_v41, %v19871_v29  ;;  %v9653_v53 = vcombine.high %v9637_v43, %v9637_v43  ;;  %v9663_v3 = vrot.slane %v9644_v24, %v19808_v1  ;;  %v9675_v32 = vrot.slane %v9637_v43, %v19808_v1 }
0x14da   :  { %v18575_v9 = vadd.f32 %v18569_v62, %v18380_v49  ;;  %v13289_v44 = vpop.f32.mrb[67].mxu1  ;;  %v18581_v50 = vadd.f32 %v18577_v12, %v8778_v39  ;;  %v18584_v7 = vsub.f32 %v18577_v12, %v8778_v39  ;;  %v13300_v37 = vpop.f32.mrb[71].mxu0  ;;  %v10046_v41 = vrot.slane %v10017_v8, %v19808_v1 }
0x14db   :  { %v9679_v58 = vrot.slane %v9651_v21, %v19808_v1  ;;  %v9683_v16 = vrot.slane %v9653_v53, %v19808_v1  ;;  %v9655_v18 = vcombine.high %v9651_v21, %v9651_v21  ;;  %v9667_v44 = vrot.slane %v9652_v14, %v19808_v1 }
0x14dc   :  { %9440 = vrot.lane.b32.xlu1 %v9421_v36, %s14199_s11  ;;  %9569 = vrot.lane.b32.xlu0 %v9550_v20, %s14199_s11  ;;  %v9872_v36 = vrot.slane %v18541_v4, %v19871_v29  ;;  %v10009_v20 = vcombine.high %v10001_v63, %v10001_v63  ;;  %v9865_v43 = vcombine.high %v18541_v4, %v18541_v4 }
0x14dd   :  { %v9687_v37 = vrot.slane %v9655_v18, %v19808_v1 }
0x14de   :  { %v9888_v2 = vrot.slane %v9872_v36, %v19871_v29  ;;  %v9880_v35 = vcombine.high %v9872_v36, %v9872_v36 }
0x14e0   :  { %9442 = vrot.lane.b32.xlu1 %v9425_v33, %s14199_s11  ;;  %9444 = vrot.lane.b32.xlu0 %v9429_v25, %s14199_s11  ;;  %v9654_v33 = vcombine.high %v9644_v24, %v9644_v24  ;;  %v9994_v25 = vcombine.high %v18550_v28, %v18550_v28  ;;  %v9902_v28 = vrot.slane %v9880_v35, %v19871_v29 }
0x14e1   :  { %v18593_v39 = vpop.f32.mrb[68].mxu1  ;;  %v9910_v24 = vcombine.high %v9888_v2, %v9888_v2  ;;  %v10130_v35 = vrot.slane %v18569_v62, %v19871_v29 }
0x14e2   :  { %v18598_v46 = vadd.f32 %v18593_v39, %v18380_v49  ;;  %v13311_v15 = vpop.f32.mrb[69].mxu1  ;;  %v9671_v55 = vrot.slane %v9654_v33, %v19808_v1  ;;  %v9921_v53 = vrot.slane %v9902_v28, %v19808_v1 }
0x14e3   :  { %v10031_v15 = vrot.slane %v10009_v20, %v19871_v29  ;;  %v9925_v14 = vrot.slane %v9910_v24, %v19808_v1  ;;  %v9912_v20 = vcombine.high %v9902_v28, %v9902_v28  ;;  %v10138_v28 = vcombine.high %v10130_v35, %v10130_v35 }
0x14e4   :  { %9571 = vrot.lane.b32.xlu1 %v9554_v22, %s14199_s11  ;;  %9688 = vrot.lane.b32.xlu0 %v9659_v48, %s14199_s11  ;;  %v9917_v22 = vrot.slane %v9888_v2, %v19808_v1  ;;  %v10008_v48 = vrot.slane %v9994_v25, %v19871_v29 }
0x14e5   :  { %v10050_v21 = vrot.slane %v10031_v15, %v19808_v1  ;;  %v10041_v63 = vcombine.high %v10031_v15, %v10031_v15  ;;  %v9929_v2 = vrot.slane %v9912_v20, %v19808_v1  ;;  %v10259_v15 = vrot.slane %v18577_v12, %v19871_v29 }
0x14e6   :  { %v10010_v4 = vcombine.high %v10008_v48, %v10008_v48 }
0x14e8   :  { %9573 = vrot.lane.b32.xlu1 %v9558_v52, %s14199_s11  ;;  %9698 = vrot.lane.b32.xlu0 %v9679_v58, %s14199_s11  ;;  %v10054_v52 = vrot.slane %v10039_v57, %v19808_v1  ;;  %v9879_v58 = vrot.slane %v9865_v43, %v19871_v29  ;;  %v10038_v36 = vrot.slane %v10010_v4, %v19871_v29 }
0x14e9   :  { %v10146_v43 = vrot.slane %v10130_v35, %v19871_v29 }
0x14ea   :  { %v9895_v18 = vrot.slane %v9879_v58, %v19871_v29  ;;  %v9881_v8 = vcombine.high %v9879_v58, %v9879_v58 }
0x14eb   :  { %v10168_v58 = vcombine.high %v10146_v43, %v10146_v43 }
0x14ec   :  { %9690 = vrot.lane.b32.xlu1 %v9663_v3, %s14199_s11  ;;  %9700 = vrot.lane.b32.xlu0 %v9683_v16, %s14199_s11  ;;  %v10024_v3 = vrot.slane %v10008_v48, %v19871_v29  ;;  %v9911_v57 = vcombine.high %v9895_v18, %v9895_v18 }
0x14ee   :  { %v10062_v16 = vrot.slane %v10024_v3, %v19808_v1  ;;  %v10040_v33 = vcombine.high %v10024_v3, %v10024_v3  ;;  %v9941_v24 = vrot.slane %v9911_v57, %v19808_v1  ;;  %v10175_v3 = vrot.slane %v10146_v43, %v19808_v1 }
0x14f0   :  { %9692 = vrot.lane.b32.xlu1 %v9667_v44, %s14199_s11  ;;  %9702 = vrot.lane.b32.xlu0 %v9687_v37, %s14199_s11  ;;  %v10058_v44 = vrot.slane %v10041_v63, %v19808_v1  ;;  %v9933_v37 = vrot.slane %v9895_v18, %v19808_v1  ;;  %v10070_v25 = vrot.slane %v10040_v33, %v19808_v1 }
0x14f4   :  { %9696 = vrot.lane.b32.xlu1 %v9675_v32, %s14199_s11  ;;  %10075 = vrot.lane.b32.xlu0 %v10046_v41, %s14203_s1  ;;  %v10066_v32 = vrot.slane %v10038_v36, %v19808_v1  ;;  %v18662_v41 = vrot.slane %v9881_v8, %v19871_v29 }
0x14f8   :  { %9694 = vrot.lane.b32.xlu1 %v9671_v55, %s14199_s11  ;;  %9946 = vrot.lane.b32.xlu0 %v9917_v22, %s14203_s1  ;;  %v10042_v55 = vcombine.high %v10038_v36, %v10038_v36  ;;  %v9937_v22 = vrot.slane %v18662_v41, %v19808_v1  ;;  %v8212_v36 = vpop.permute.xlu1 %8211 }
0x14fa   :  { %v10074_v48 = vrot.slane %v10042_v55, %v19808_v1 }
0x14fc   :  { %10077 = vrot.lane.b32.xlu1 %v10050_v21, %s14203_s1  ;;  %10079 = vrot.lane.b32.xlu0 %v10054_v52, %s14203_s1  ;;  %v10123_v21 = vcombine.high %v18569_v62, %v18569_v62  ;;  %v10275_v52 = vrot.slane %v10259_v15, %v19871_v29  ;;  %v10252_v62 = vcombine.high %v18577_v12, %v18577_v12 }
0x14fe   :  { %v10137_v4 = vrot.slane %v10123_v21, %v19871_v29  ;;  %v10304_v63 = vrot.slane %v10275_v52, %v19808_v1 }
0x1500   :  { %9948 = vrot.lane.b32.xlu1 %v9921_v53, %s14203_s1  ;;  %9950 = vrot.lane.b32.xlu0 %v9925_v14, %s14203_s1  ;;  %v10267_v53 = vcombine.high %v10259_v15, %v10259_v15  ;;  %v10160_v14 = vrot.slane %v10138_v28, %v19871_v29  ;;  %v10153_v8 = vrot.slane %v10137_v4, %v19871_v29 }
0x1502   :  { %v10289_v18 = vrot.slane %v10267_v53, %v19871_v29  ;;  %v10179_v20 = vrot.slane %v10160_v14, %v19808_v1  ;;  %v10170_v21 = vcombine.high %v10160_v14, %v10160_v14  ;;  %v10388_v14 = vrot.slane %v18593_v39, %v19871_v29 }
0x1504   :  { %10083 = vrot.lane.b32.xlu1 %v10062_v16, %s14203_s1  ;;  %10081 = vrot.lane.b32.xlu0 %v10058_v44, %s14203_s1  ;;  %v10183_v16 = vrot.slane %v10168_v58, %v19808_v1  ;;  %v8214_v44 = vpop.permute.xlu0 %8213  ;;  %v10308_v12 = vrot.slane %v10289_v18, %v19808_v1  ;;  %v10299_v15 = vcombine.high %v10289_v18, %v10289_v18 }
0x1505   :  { %v8215_v33 = vsel %vm1969_vm1, %v8212_v36, %v8214_v44  ;;  %v10381_v36 = vcombine.high %v18593_v39, %v18593_v39 }
0x1506   :  { %v18708_v57 = vadd.f32 %v18501_v17, %v8215_v33  ;;  %v18712_v43 = vadd.f32 %v18503_v23, %v8215_v33  ;;  %v18719_v58 = vadd.f32 %v18505_v27, %v8215_v33  ;;  %v18726_v53 = vadd.f32 %v18509_v6, %v8215_v33 }
0x1507   :  { %v18752_v39 = vadd.f32 %v18513_v34, %v8215_v33 }
0x1508   :  { %9954 = vrot.lane.b32.xlu1 %v9933_v37, %s14203_s1  ;;  %10085 = vrot.lane.b32.xlu0 %v10066_v32, %s14203_s1  ;;  %v10266_v37 = vrot.slane %v10252_v62, %v19871_v29  ;;  %v10297_v32 = vcombine.high %v10275_v52, %v10275_v52  ;;  %v10316_v52 = vrot.slane %v10299_v15, %v19808_v1  ;;  %v8346_v17 = vmul.f32 0.5, %v18708_v57 }
0x1509   :  { %v8349_v23 = vmul.f32 0.5, %v18712_v43  ;;  %v8350_v6 = vmul.f32 0.5, %v18726_v53 }
0x150a   :  { %v10282_v35 = vrot.slane %v10266_v37, %v19871_v29  ;;  %v10312_v55 = vrot.slane %v10297_v32, %v19808_v1  ;;  %v10268_v28 = vcombine.high %v10266_v37, %v10266_v37 }
0x150c   :  { %9952 = vrot.lane.b32.xlu1 %v9929_v2, %s14203_s1  ;;  %10087 = vrot.lane.b32.xlu0 %v10070_v25, %s14203_s1  ;;  %v10191_v2 = vrot.slane %v10153_v8, %v19808_v1  ;;  %v10139_v25 = vcombine.high %v10137_v4, %v10137_v4  ;;  %v10169_v4 = vcombine.high %v10153_v8, %v10153_v8 }
0x150d   :  { %v10296_v62 = vrot.slane %v10268_v28, %v19871_v29  ;;  %v10396_v8 = vcombine.high %v10388_v14, %v10388_v14 }
0x150e   :  { %v10199_v18 = vrot.slane %v10169_v4, %v19808_v1 }
0x150f   :  { %v10324_v37 = vrot.slane %v10296_v62, %v19808_v1 }
0x1510   :  { %9956 = vrot.lane.b32.xlu1 %v9937_v22, %s14203_s1  ;;  %10089 = vrot.lane.b32.xlu0 %v10074_v48, %s14203_s1  ;;  %v18704_v22 = vadd.f32 %v18499_v13, %v8215_v33  ;;  %v10320_v48 = vrot.slane %v10282_v35, %v19808_v1 }
0x1512   :  { %v8347_v13 = vmul.f32 0.5, %v18704_v22 }
0x1514   :  { %9958 = vrot.lane.b32.xlu1 %v9941_v24, %s14203_s1  ;;  %10204 = vrot.lane.b32.xlu0 %v10175_v3, %s14203_s1  ;;  %v10167_v24 = vrot.slane %v10139_v25, %v19871_v29  ;;  %v10187_v3 = vrot.slane %v10170_v21, %v19808_v1  ;;  %14138 = vtanh.f32 %v8347_v13  ;;  %v10395_v25 = vrot.slane %v10381_v36, %v19871_v29 }
0x1515   :  { %14140 = vtanh.f32 %v8346_v17 }
0x1516   :  { %v10195_v27 = vrot.slane %v10167_v24, %v19808_v1  ;;  %14142 = vtanh.f32 %v8349_v23  ;;  %v10171_v44 = vcombine.high %v10167_v24, %v10167_v24  ;;  %v10411_v28 = vrot.slane %v10395_v25, %v19871_v29 }
0x1518   :  { %10333 = vrot.lane.b32.xlu1 %v10304_v63, %s14203_s1  ;;  %10208 = vrot.lane.b32.xlu0 %v10183_v16, %s14203_s1  ;;  %v8348_v63 = vmul.f32 0.5, %v18719_v58  ;;  %v18735_v16 = vadd.f32 %v18507_v60, %v8215_v33  ;;  %v10203_v32 = vrot.slane %v10171_v44, %v19808_v1 }
0x151a   :  { %14144 = vtanh.f32 %v8348_v63  ;;  %v8351_v60 = vmul.f32 0.5, %v18735_v16 }
0x151b   :  { %14146 = vtanh.f32 %v8350_v6 }
0x151c   :  { %10206 = vrot.lane.b32.xlu1 %v10179_v20, %s14203_s1  ;;  %10335 = vrot.lane.b32.xlu0 %v10308_v12, %s14203_s1  ;;  %v10298_v20 = vcombine.high %v10282_v35, %v10282_v35  ;;  %v18747_v12 = vadd.f32 %v18511_v42, %v8215_v33  ;;  %v10418_v35 = vrot.slane %v10396_v8, %v19871_v29  ;;  %14148 = vtanh.f32 %v8351_v60 }
0x151d   :  { %v8352_v33 = vmul.f32 0.5, %v18752_v39 }
0x151e   :  { %v8353_v42 = vmul.f32 0.5, %v18747_v12  ;;  %v14139_v15 = vpop.eup %14138 }
0x151f   :  { %v14141_v34 = vpop.eup %14140  ;;  %v8363_v13 = vmul.f32 0.5, %v14139_v15 }
0x1520   :  { %10212 = vrot.lane.b32.xlu1 %v10191_v2, %s14203_s1  ;;  %10337 = vrot.lane.b32.xlu0 %v10312_v55, %s14203_s1  ;;  %v10300_v2 = vcombine.high %v10296_v62, %v10296_v62  ;;  %v10328_v55 = vrot.slane %v10298_v20, %v19808_v1  ;;  %v14143_v24 = vpop.eup %14142  ;;  %14150 = vtanh.f32 %v8353_v42  ;;  %v8362_v23 = vmul.f32 0.5, %v14141_v34 }
0x1521   :  { %14152 = vtanh.f32 %v8352_v33  ;;  %v10428_v62 = vcombine.high %v10418_v35, %v10418_v35  ;;  %v8371_v6 = vadd.f32 0.5, %v8363_v13  ;;  %v9913_v20 = vcombine.high %v18662_v41, %v18662_v41 }
0x1522   :  { %v10332_v21 = vrot.slane %v10300_v2, %v19808_v1  ;;  %v8370_v60 = vadd.f32 0.5, %v8362_v23  ;;  %v9736_v41 = vcombine.high %v18525_v61, %v18525_v61 }
0x1523   :  { %v8379_v42 = vmul.f32 %v8371_v6, %v18704_v22  ;;  %v9945_v33 = vrot.slane %v9913_v20, %v19808_v1 }
0x1524   :  { %10341 = vrot.lane.b32.xlu1 %v10320_v48, %s14203_s1  ;;  %10339 = vrot.lane.b32.xlu0 %v10316_v52, %s14203_s1  ;;  %v10404_v48 = vrot.slane %v10388_v14, %v19871_v29  ;;  %v10437_v52 = vrot.slane %v10418_v35, %v19808_v1  ;;  %v14145_v17 = vpop.eup %14144  ;;  %v10397_v14 = vcombine.high %v10395_v25, %v10395_v25 }
0x1525   :  { %v14147_v63 = vpop.eup %14146  ;;  %v8364_v44 = vmul.f32 0.5, %v14145_v17  ;;  %v10445_v25 = vrot.slane %v10428_v62, %v19808_v1  ;;  %v8378_v13 = vmul.f32 %v8370_v60, %v18708_v57  ;;  %v9750_v6 = vrot.slane %v9736_v41, %v19871_v29 }
0x1526   :  { %v10433_v4 = vrot.slane %v10404_v48, %v19808_v1  ;;  %v14149_v36 = vpop.eup %14148  ;;  %v10425_v35 = vrot.slane %v10397_v14, %v19871_v29 }
0x1528   :  { %10210 = vrot.lane.b32.xlu1 %v10187_v3, %s14203_s1  ;;  %10214 = vrot.lane.b32.xlu0 %v10195_v27, %s14203_s1  ;;  %v10426_v3 = vcombine.high %v10404_v48, %v10404_v48  ;;  %v10449_v27 = vrot.slane %v10411_v28, %v19808_v1  ;;  %v8372_v48 = vadd.f32 0.5, %v8364_v44  ;;  %v10429_v22 = vcombine.high %v10425_v35, %v10425_v35 }
0x152c   :  { %10216 = vrot.lane.b32.xlu1 %v10199_v18, %s14203_s1  ;;  %10343 = vrot.lane.b32.xlu0 %v10324_v37, %s14203_s1  ;;  %v8365_v18 = vmul.f32 0.5, %v14143_v24  ;;  %v10441_v37 = vrot.slane %v10426_v3, %v19808_v1  ;;  %v14151_v24 = vpop.eup %14150  ;;  %v10453_v3 = vrot.slane %v10425_v35, %v19808_v1 }
0x152d   :  { %v14153_v14 = vpop.eup %14152  ;;  %v8369_v57 = vmul.f32 0.5, %v14151_v24 }
0x152e   :  { %v8373_v15 = vadd.f32 0.5, %v8365_v18 }
0x1530   :  { %10218 = vrot.lane.b32.xlu1 %v10203_v32, %s14203_s1  ;;  %10345 = vrot.lane.b32.xlu0 %v10328_v55, %s14203_s1  ;;  %v9743_v32 = vrot.slane %v18525_v61, %v19871_v29  ;;  %v8366_v55 = vmul.f32 0.5, %v14147_v63  ;;  %v8381_v61 = vmul.f32 %v8373_v15, %v18712_v43  ;;  %v8380_v63 = vmul.f32 %v8372_v48, %v18719_v58  ;;  %v19902_v15 = vld [vmem:[#allocation11_spill] sm:$0xff] }
0x1531   :  { %v10461_v58 = vrot.slane %v10429_v22, %v19808_v1 }
0x1532   :  { %v9751_v17 = vcombine.high %v9743_v32, %v9743_v32  ;;  %v9759_v18 = vrot.slane %v9743_v32, %v19871_v29  ;;  %v19901_v32 = vld [vmem:[#allocation10_spill] sm:$0xff]  ;;  %v18810_v48 = vmul.f32 %v8380_v63, %v19902_v15 }
0x1534   :  { %10347 = vrot.lane.b32.xlu1 %v10332_v21, %s14203_s1  ;;  %10464 = vrot.lane.b32.xlu0 %v10437_v52, %s14203_s1  ;;  %v8367_v21 = vmul.f32 0.5, %v14149_v36  ;;  %v10427_v52 = vcombine.high %v10411_v28, %v10411_v28  ;;  %v9773_v60 = vrot.slane %v9751_v17, %v19871_v29  ;;  %v9781_v24 = vcombine.high %v9759_v18, %v9759_v18 }
0x1536   :  { %v8375_v28 = vadd.f32 0.5, %v8367_v21  ;;  %v10457_v36 = vrot.slane %v10427_v52, %v19808_v1  ;;  %v9752_v52 = vcombine.high %v9750_v6, %v9750_v6  ;;  %v9792_v22 = vrot.slane %v9773_v60, %v19808_v1 }
0x1538   :  { %10462 = vrot.lane.b32.xlu1 %v10433_v4, %s14203_s1  ;;  %10470 = vrot.lane.b32.xlu0 %v10449_v27, %s14203_s1  ;;  %v8374_v4 = vadd.f32 0.5, %v8366_v55  ;;  %v19899_v27 = vld [vmem:[#allocation20_spill] sm:$0xff]  ;;  %v8368_v55 = vmul.f32 0.5, %v14153_v14  ;;  %v8383_v21 = vmul.f32 %v8375_v28, %v18735_v16 }
0x1539   :  { %v18788_v62 = vmul.f32 %v8379_v42, %v19899_v27  ;;  %v18807_v42 = vmul.f32 %v8381_v61, %v19901_v32  ;;  %v19903_v14 = vld [vmem:[#allocation16_spill] sm:$0xff]  ;;  %v9766_v27 = vrot.slane %v9750_v6, %v19871_v29  ;;  %v9780_v6 = vrot.slane %v9752_v52, %v19871_v29 }
0x153a   :  { %v9431_v8 = vpop.permute.xlu1 %9430  ;;  %v9560_v2 = vpop.permute.xlu0 %9559  ;;  %v8382_v35 = vmul.f32 %v8374_v4, %v18726_v53  ;;  %v9788_v53 = vrot.slane %v9759_v18, %v19808_v1  ;;  %v9783_v4 = vcombine.high %v9773_v60, %v9773_v60  ;;  %v19904_v60 = vld [vmem:[#allocation15_spill] sm:$0xff] }
0x153c   :  { %10466 = vrot.lane.b32.xlu1 %v10441_v37, %s14203_s1  ;;  %10468 = vrot.lane.b32.xlu0 %v10445_v25, %s14203_s1  ;;  %v19900_v37 = vld [vmem:[#allocation18_spill] sm:$0xff]  ;;  %v18820_v16 = vmul.f32 %v8382_v35, %v19903_v14  ;;  %v9800_v35 = vrot.slane %v9783_v4, %v19808_v1  ;;  %v9784_v14 = vcombine.high %v9780_v6, %v9780_v6 }
0x153d   :  { %v18797_v20 = vmul.f32 %v8378_v13, %v19900_v37  ;;  %v9796_v37 = vrot.slane %v9781_v24, %v19808_v1 }
0x153e   :  { %v9435_v34 = vpop.permute.xlu1 %9434  ;;  %v9433_v23 = vpop.permute.xlu0 %9432 }
0x153f   :  { %v9455_v43 = vmul.f32 %v9433_v23, %v18788_v62  ;;  %v9454_v41 = vmul.f32 %v9431_v8, %v18797_v20  ;;  %v8376_v8 = vadd.f32 0.5, %v8368_v55  ;;  %v9583_v61 = vmul.f32 %v9560_v2, %v18797_v20 }
0x1540   :  { %9960 = vrot.lane.b32.xlu1 %v9945_v33, %s14203_s1  ;;  %10472 = vrot.lane.b32.xlu0 %v10453_v3, %s14203_s1  ;;  %v8377_v33 = vadd.f32 0.5, %v8369_v57  ;;  %v9456_v28 = vmul.f32 %v9435_v34, %v18810_v48  ;;  %v18833_v2 = vmul.f32 %v8383_v21, %v19904_v60 }
0x1541   :  { %v9463_v17 = vsel %vm2201_vm12, %v9455_v43, 0.0  ;;  %v9462_v63 = vsel %vm2201_vm12, %v9454_v41, 0.0  ;;  %v8384_v32 = vmul.f32 %v8376_v8, %v18752_v39  ;;  %v9804_v41 = vrot.slane %v9766_v27, %v19808_v1 }
0x1542   :  { %v9562_v44 = vpop.permute.xlu1 %9561  ;;  %v18801_v25 = vpop.permute.xlu0 %9567  ;;  %v8385_v55 = vmul.f32 %v8377_v33, %v18747_v12  ;;  %v9591_v21 = vsel %vm2201_vm12, %v9583_v61, 0.0  ;;  %v9465_v52 = vsel %vm2201_vm12, %v9456_v28, 0.0  ;;  %v9808_v39 = vrot.slane %v9780_v6, %v19808_v1 }
0x1543   :  { %v9584_v23 = vmul.f32 %v9562_v44, %v18788_v62  ;;  %v9464_v44 = vadd.f32 %v9463_v17, %v9462_v63  ;;  %v9782_v17 = vcombine.high %v9766_v27, %v9766_v27  ;;  %v19905_v63 = vld [vmem:[#allocation12_spill] sm:$0xff] }
0x1544   :  { %10474 = vrot.lane.b32.xlu1 %v10457_v36, %s14203_s1  ;;  %10476 = vrot.lane.b32.xlu0 %v10461_v58, %s14203_s1  ;;  %v18854_v28 = vmul.f32 %v8384_v32, %v19905_v63 }
0x1545   :  { %v9592_v43 = vsel %vm2201_vm12, %v9584_v23, 0.0  ;;  %v9466_v12 = vadd.f32 %v9465_v52, %v9464_v44  ;;  %v9812_v60 = vrot.slane %v9782_v17, %v19808_v1 }
0x1546   :  { %v9564_v13 = vpop.permute.xlu1 %9563  ;;  %v9437_v3 = vpop.permute.xlu0 %9436 }
0x1547   :  { %v9585_v57 = vmul.f32 %v9564_v13, %v18810_v48  ;;  %v9457_v18 = vmul.f32 %v9437_v3, %v18807_v42 }
0x1548   :  { %9817 = vrot.lane.b32.xlu1 %v9788_v53, %s14203_s1  ;;  %9819 = vrot.lane.b32.xlu0 %v9792_v22, %s14203_s1  ;;  %v9593_v53 = vadd.f32 %v9592_v43, %v9591_v21 }
0x1549   :  { %v9594_v24 = vsel %vm2201_vm12, %v9585_v57, 0.0  ;;  %v9467_v13 = vsel %vm2201_vm12, %v9457_v18, 0.0  ;;  %v9587_v57 = vmul.f32 %v18801_v25, %v18820_v16  ;;  %v19906_v18 = vld [vmem:[#allocation27_spill] sm:$0xff] }
0x154a   :  { %v9439_v36 = vpop.permute.xlu1 %9438  ;;  %v9566_v34 = vpop.permute.xlu0 %9565  ;;  %v9595_v8 = vadd.f32 %v9594_v24, %v9593_v53  ;;  %v9468_v61 = vadd.f32 %v9467_v13, %v9466_v12  ;;  %v18861_v44 = vmul.f32 %v8385_v55, %v19906_v18 }
0x154b   :  { %v9458_v58 = vmul.f32 %v9439_v36, %v18820_v16  ;;  %v9586_v15 = vmul.f32 %v9566_v34, %v18807_v42  ;;  %v9598_v55 = vsel %vm2201_vm12, %v9587_v57, 0.0 }
0x154c   :  { %9821 = vrot.lane.b32.xlu1 %v9796_v37, %s14203_s1  ;;  %9823 = vrot.lane.b32.xlu0 %v9800_v35, %s14203_s1  ;;  %v9816_v35 = vrot.slane %v9784_v14, %v19808_v1 }
0x154d   :  { %v9469_v23 = vsel %vm2201_vm12, %v9458_v58, 0.0  ;;  %v9596_v3 = vsel %vm2201_vm12, %v9586_v15, 0.0 }
0x154e   :  { %v9441_v33 = vpop.permute.xlu1 %9440  ;;  %v9570_v4 = vpop.permute.xlu0 %9569  ;;  %v9470_v36 = vadd.f32 %v9469_v23, %v9468_v61  ;;  %v9597_v37 = vadd.f32 %v9596_v3, %v9595_v8 }
0x154f   :  { %v9459_v22 = vmul.f32 %v9441_v33, %v18833_v2  ;;  %v9588_v43 = vmul.f32 %v9570_v4, %v18833_v2 }
0x1550   :  { %9825 = vrot.lane.b32.xlu1 %v9804_v41, %s14203_s1  ;;  %9827 = vrot.lane.b32.xlu0 %v9808_v39, %s14203_s1  ;;  %v9599_v41 = vadd.f32 %v9598_v55, %v9597_v37 }
0x1551   :  { %v9471_v27 = vsel %vm2201_vm12, %v9459_v22, 0.0  ;;  %v9600_v24 = vsel %vm2201_vm12, %v9588_v43, 0.0 }
0x1552   :  { %v9443_v6 = vpop.permute.xlu1 %9442  ;;  %v9445_v34 = vpop.permute.xlu0 %9444  ;;  %v9472_v25 = vadd.f32 %v9471_v27, %v9470_v36  ;;  %v9601_v17 = vadd.f32 %v9600_v24, %v9599_v41 }
0x1553   :  { %v9460_v58 = vmul.f32 %v9443_v6, %v18854_v28  ;;  %v9461_v32 = vmul.f32 %v9445_v34, %v18861_v44 }
0x1554   :  { %9829 = vrot.lane.b32.xlu1 %v9812_v60, %s14203_s1  ;;  %9831 = vrot.lane.b32.xlu0 %v9816_v35, %s14203_s1 }
0x1555   :  { %v9473_v15 = vsel %vm2201_vm12, %v9460_v58, 0.0  ;;  %v9475_v13 = vsel %vm2201_vm12, %v9461_v32, 0.0 }
0x1556   :  { %v9474_v21 = vadd.f32 %v9473_v15, %v9472_v25  ;;  %v9572_v52 = vpop.permute.xlu1 %9571  ;;  %v18875_v12 = vpop.permute.xlu0 %9688 }
0x1557   :  { %v9589_v53 = vmul.f32 %v9572_v52, %v18854_v28 }
0x1558   :  { %v18877_v33 = vadd.f32 %v9475_v13, %v9474_v21 }
0x1559   :  { %v9602_v39 = vsel %vm2201_vm12, %v9589_v53, 0.0 }
0x155a   :  { %v9574_v23 = vpop.permute.xlu1 %9573  ;;  %10525 = vrot.lane.b32.xlu1 %v18877_v33, %s14199_s11  ;;  %v18882_v3 = vpop.permute.xlu0 %9698  ;;  %v9603_v4 = vadd.f32 %v9602_v39, %v9601_v17 }
0x155b   :  { %v9590_v22 = vmul.f32 %v9574_v23, %v18861_v44 }
0x155d   :  { %v9604_v14 = vsel %vm2201_vm12, %v9590_v22, 0.0 }
0x155e   :  { %v18886_v8 = vadd.f32 %v9604_v14, %v9603_v4  ;;  %v9691_v61 = vpop.permute.xlu1 %9690  ;;  %v18888_v63 = vpop.permute.xlu0 %9700 }
0x1560   :  { %10540 = vrot.lane.b32.xlu1 %v18886_v8, %s14199_s11 }
0x1562   :  { %v9693_v57 = vpop.permute.xlu1 %9692  ;;  %v18892_v27 = vpop.permute.xlu0 %9702 }
0x1566   :  { %v18894_v18 = vpop.permute.xlu1 %9696  ;;  %v10076_v36 = vpop.permute.xlu0 %10075 }
0x1567   :  { %v10099_v34 = vmul.f32 %v10076_v36, %v18797_v20 }
0x1569   :  { %v10107_v55 = vsel %vm5929_vm15, %v10099_v34, 0.0 }
0x156a   :  { %v9695_v37 = vpop.permute.xlu1 %9694  ;;  %v18896_v6 = vpop.permute.xlu0 %9946 }
0x156e   :  { %v10078_v60 = vpop.permute.xlu1 %10077  ;;  %v10080_v43 = vpop.permute.xlu0 %10079 }
0x156f   :  { %v10100_v58 = vmul.f32 %v10078_v60, %v18788_v62  ;;  %v10101_v15 = vmul.f32 %v10080_v43, %v18810_v48 }
0x1571   :  { %v10108_v35 = vsel %vm5929_vm15, %v10100_v58, 0.0  ;;  %v10110_v24 = vsel %vm5929_vm15, %v10101_v15, 0.0 }
0x1572   :  { %v18901_v25 = vpop.permute.xlu1 %9948  ;;  %v18903_v32 = vpop.permute.xlu0 %9950  ;;  %v10109_v41 = vadd.f32 %v10108_v35, %v10107_v55 }
0x1574   :  { %v10111_v53 = vadd.f32 %v10110_v24, %v10109_v41 }
0x1576   :  { %v10084_v21 = vpop.permute.xlu1 %10083  ;;  %v10082_v52 = vpop.permute.xlu0 %10081 }
0x1577   :  { %v10102_v13 = vmul.f32 %v10082_v52, %v18807_v42  ;;  %v10103_v17 = vmul.f32 %v10084_v21, %v18820_v16 }
0x1579   :  { %v10112_v39 = vsel %vm5929_vm15, %v10102_v13, 0.0  ;;  %v10114_v36 = vsel %vm5929_vm15, %v10103_v17, 0.0 }
0x157a   :  { %v18911_v23 = vpop.permute.xlu1 %9954  ;;  %v10113_v22 = vadd.f32 %v10112_v39, %v10111_v53  ;;  %v10086_v4 = vpop.permute.xlu0 %10085 }
0x157b   :  { %v10104_v14 = vmul.f32 %v10086_v4, %v18833_v2 }
0x157c   :  { %v10115_v43 = vadd.f32 %v10114_v36, %v10113_v22  ;;  %v9713_v36 = vmul.f32 %v9691_v61, %v18788_v62 }
0x157d   :  { %v10116_v34 = vsel %vm5929_vm15, %v10104_v14, 0.0 }
0x157e   :  { %v18915_v60 = vpop.permute.xlu1 %9952  ;;  %v10088_v58 = vpop.permute.xlu0 %10087  ;;  %v10117_v41 = vadd.f32 %v10116_v34, %v10115_v43  ;;  %v9714_v34 = vmul.f32 %v9693_v57, %v18810_v48 }
0x157f   :  { %v10105_v35 = vmul.f32 %v10088_v58, %v18854_v28  ;;  %v9712_v58 = vmul.f32 %v18875_v12, %v18797_v20 }
0x1580   :  { %v9723_v61 = vsel %vm2201_vm12, %v9714_v34, 0.0  ;;  %v9716_v34 = vmul.f32 %v18894_v18, %v18820_v16 }
0x1581   :  { %v10118_v55 = vsel %vm5929_vm15, %v10105_v35, 0.0 }
0x1582   :  { %v18920_v15 = vpop.permute.xlu1 %9956  ;;  %v10090_v21 = vpop.permute.xlu0 %10089  ;;  %v10119_v24 = vadd.f32 %v10118_v55, %v10117_v41  ;;  %v9721_v41 = vsel %vm2201_vm12, %v9713_v36, 0.0  ;;  %v9727_v18 = vsel %vm2201_vm12, %v9716_v34, 0.0 }
0x1583   :  { %v10106_v52 = vmul.f32 %v10090_v21, %v18861_v44  ;;  %v9715_v21 = vmul.f32 %v9695_v37, %v18807_v42 }
0x1585   :  { %v10120_v13 = vsel %vm5929_vm15, %v10106_v52, 0.0  ;;  %v9725_v51 = vsel %vm2201_vm12, %v9715_v21, 0.0 }
0x1586   :  { %v18924_v53 = vpop.permute.xlu1 %9958  ;;  %v18926_v39 = vadd.f32 %v10120_v13, %v10119_v24  ;;  %v10205_v17 = vpop.permute.xlu0 %10204  ;;  %v9720_v13 = vsel %vm2201_vm12, %v9712_v58, 0.0 }
0x1587   :  { %v10228_v52 = vmul.f32 %v10205_v17, %v18797_v20  ;;  %v9722_v40 = vadd.f32 %v9721_v41, %v9720_v13 }
0x1588   :  { %10520 = vrot.lane.b32.xlu0 %v18926_v39, %s14202_s30 }
0x1589   :  { %v10236_v36 = vsel %vm5929_vm15, %v10228_v52, 0.0  ;;  %v9724_v58 = vadd.f32 %v9723_v61, %v9722_v40 }
0x158a   :  { %v10334_v22 = vpop.permute.xlu1 %10333  ;;  %v10209_v4 = vpop.permute.xlu0 %10208 }
0x158b   :  { %v10357_v57 = vmul.f32 %v10334_v22, %v18797_v20  ;;  %v10230_v37 = vmul.f32 %v10209_v4, %v18810_v48  ;;  %v9717_v22 = vmul.f32 %v18882_v3, %v18833_v2  ;;  %v9726_v21 = vadd.f32 %v9725_v51, %v9724_v58 }
0x158c   :  { %v9971_v51 = vmul.f32 %v18901_v25, %v18788_v62 }
0x158d   :  { %v10365_v52 = vsel %vm5929_vm15, %v10357_v57, 0.0  ;;  %v10239_v4 = vsel %vm5929_vm15, %v10230_v37, 0.0  ;;  %v9728_v37 = vadd.f32 %v9727_v18, %v9726_v21 }
0x158e   :  { %v10207_v14 = vpop.permute.xlu1 %10206  ;;  %v10336_v43 = vpop.permute.xlu0 %10335 }
0x158f   :  { %v10229_v35 = vmul.f32 %v10207_v14, %v18788_v62  ;;  %v10358_v12 = vmul.f32 %v10336_v43, %v18788_v62 }
0x1591   :  { %v10237_v54 = vsel %vm5929_vm15, %v10229_v35, 0.0  ;;  %v10366_v43 = vsel %vm5929_vm15, %v10358_v12, 0.0 }
0x1592   :  { %v10213_v55 = vpop.permute.xlu1 %10212  ;;  %v10338_v24 = vpop.permute.xlu0 %10337  ;;  %v10238_v35 = vadd.f32 %v10237_v54, %v10236_v36  ;;  %v10367_v12 = vadd.f32 %v10366_v43, %v10365_v52  ;;  %v9729_v43 = vsel %vm2201_vm12, %v9717_v22, 0.0  ;;  %v9973_v22 = vmul.f32 %v18915_v60, %v18807_v42 }
0x1593   :  { %v10359_v17 = vmul.f32 %v10338_v24, %v18810_v48  ;;  %v10232_v24 = vmul.f32 %v10213_v55, %v18820_v16  ;;  %v9719_v60 = vmul.f32 %v18892_v27, %v18861_v44 }
0x1594   :  { %v10240_v3 = vadd.f32 %v10239_v4, %v10238_v35  ;;  %v9718_v4 = vmul.f32 %v18888_v63, %v18854_v28 }
0x1595   :  { %v10368_v40 = vsel %vm5929_vm15, %v10359_v17, 0.0  ;;  %v10243_v34 = vsel %vm5929_vm15, %v10232_v24, 0.0  ;;  %v9733_v27 = vsel %vm2201_vm12, %v9719_v60, 0.0 }
0x1596   :  { %v10342_v14 = vpop.permute.xlu1 %10341  ;;  %v10340_v38 = vpop.permute.xlu0 %10339  ;;  %v10369_v17 = vadd.f32 %v10368_v40, %v10367_v12  ;;  %v9979_v40 = vsel %vm5929_vm15, %v9971_v51, 0.0 }
0x1597   :  { %v10360_v41 = vmul.f32 %v10340_v38, %v18807_v42  ;;  %v9970_v38 = vmul.f32 %v18896_v6, %v18797_v20  ;;  %v10361_v19 = vmul.f32 %v10342_v14, %v18820_v16  ;;  %v9972_v14 = vmul.f32 %v18903_v32, %v18810_v48 }
0x1598   :  { %v9731_v32 = vsel %vm2201_vm12, %v9718_v4, 0.0 }
0x1599   :  { %v10370_v57 = vsel %vm5929_vm15, %v10360_v41, 0.0  ;;  %v9978_v21 = vsel %vm5929_vm15, %v9970_v38, 0.0  ;;  %v10372_v12 = vsel %vm5929_vm15, %v10361_v19, 0.0 }
0x159a   :  { %v10211_v13 = vpop.permute.xlu1 %10210  ;;  %v10215_v61 = vpop.permute.xlu0 %10214  ;;  %v10371_v25 = vadd.f32 %v10370_v57, %v10369_v17  ;;  %v9980_v57 = vadd.f32 %v9979_v40, %v9978_v21  ;;  %v9974_v21 = vmul.f32 %v18911_v23, %v18820_v16 }
0x159b   :  { %v10231_v54 = vmul.f32 %v10211_v13, %v18807_v42  ;;  %v10233_v36 = vmul.f32 %v10215_v61, %v18833_v2  ;;  %v9730_v61 = vadd.f32 %v9729_v43, %v9728_v37  ;;  %v9983_v43 = vsel %vm5929_vm15, %v9973_v22, 0.0 }
0x159c   :  { %v9975_v22 = vmul.f32 %v18920_v15, %v18833_v2  ;;  %v9985_v23 = vsel %vm5929_vm15, %v9974_v21, 0.0 }
0x159d   :  { %v10241_v55 = vsel %vm5929_vm15, %v10231_v54, 0.0  ;;  %v10245_v24 = vsel %vm5929_vm15, %v10233_v36, 0.0  ;;  %v10373_v36 = vadd.f32 %v10372_v12, %v10371_v25 }
0x159e   :  { %v10242_v58 = vadd.f32 %v10241_v55, %v10240_v3  ;;  %v10217_v13 = vpop.permute.xlu1 %10216  ;;  %v10344_v35 = vpop.permute.xlu0 %10343 }
0x159f   :  { %v10234_v6 = vmul.f32 %v10217_v13, %v18854_v28  ;;  %v10362_v41 = vmul.f32 %v10344_v35, %v18833_v2  ;;  %v9981_v35 = vsel %vm5929_vm15, %v9972_v14, 0.0 }
0x15a0   :  { %v10244_v52 = vadd.f32 %v10243_v34, %v10242_v58 }
0x15a1   :  { %v10247_v3 = vsel %vm5929_vm15, %v10234_v6, 0.0  ;;  %v10374_v63 = vsel %vm5929_vm15, %v10362_v41, 0.0  ;;  %v9732_v6 = vadd.f32 %v9731_v32, %v9730_v61  ;;  %v9982_v41 = vadd.f32 %v9981_v35, %v9980_v57 }
0x15a2   :  { %v10246_v54 = vadd.f32 %v10245_v24, %v10244_v52  ;;  %v10219_v18 = vpop.permute.xlu1 %10218  ;;  %v10346_v51 = vpop.permute.xlu0 %10345  ;;  %v10375_v19 = vadd.f32 %v10374_v63, %v10373_v36  ;;  %v9976_v63 = vmul.f32 %v18924_v53, %v18854_v28  ;;  %v9987_v57 = vsel %vm5929_vm15, %v9975_v22, 0.0 }
0x15a3   :  { %v10235_v38 = vmul.f32 %v10219_v18, %v18861_v44  ;;  %v10363_v37 = vmul.f32 %v10346_v51, %v18854_v28  ;;  %v9984_v24 = vadd.f32 %v9983_v43, %v9982_v41 }
0x15a4   :  { %v10248_v55 = vadd.f32 %v10247_v3, %v10246_v54  ;;  %v19000_v54 = vadd.f32 %v9733_v27, %v9732_v6 }
0x15a5   :  { %v10249_v17 = vsel %vm5929_vm15, %v10235_v38, 0.0  ;;  %v10376_v13 = vsel %vm5929_vm15, %v10363_v37, 0.0  ;;  %v9986_v51 = vadd.f32 %v9985_v23, %v9984_v24 }
0x15a6   :  { %v10250_v58 = vadd.f32 %v10249_v17, %v10248_v55  ;;  %v10348_v34 = vpop.permute.xlu1 %10347  ;;  %v10465_v25 = vpop.permute.xlu0 %10464  ;;  %v10377_v4 = vadd.f32 %v10376_v13, %v10375_v19  ;;  %v9989_v17 = vsel %vm5929_vm15, %v9976_v63, 0.0 }
0x15a7   :  { %v10364_v52 = vmul.f32 %v10348_v34, %v18861_v44  ;;  %v10487_v18 = vmul.f32 %v10465_v25, %v18788_v62 }
0x15a8   :  { %10530 = vrot.lane.b32.xlu0 %v10250_v58, %s14203_s1  ;;  %v9988_v58 = vadd.f32 %v9987_v57, %v9986_v51 }
0x15a9   :  { %v10378_v40 = vsel %vm5929_vm15, %v10364_v52, 0.0  ;;  %v10495_v36 = vsel %vm5929_vm15, %v10487_v18, 0.0 }
0x15aa   :  { %v18998_v61 = vadd.f32 %v10378_v40, %v10377_v4  ;;  %v10463_v14 = vpop.permute.xlu1 %10462  ;;  %v10471_v12 = vpop.permute.xlu0 %10470  ;;  %v9990_v25 = vadd.f32 %v9989_v17, %v9988_v58 }
0x15ab   :  { %v10486_v3 = vmul.f32 %v10463_v14, %v18797_v20  ;;  %v10490_v53 = vmul.f32 %v10471_v12, %v18820_v16 }
0x15ac   :  { %10545 = vrot.lane.b32.xlu0 %v19000_v54, %s14199_s11  ;;  %10535 = vrot.lane.b32.xlu1 %v18998_v61, %s14202_s30 }
0x15ad   :  { %v10494_v38 = vsel %vm5929_vm15, %v10486_v3, 0.0  ;;  %v10501_v4 = vsel %vm5929_vm15, %v10490_v53, 0.0 }
0x15ae   :  { %v10467_v15 = vpop.permute.xlu1 %10466  ;;  %v10469_v55 = vpop.permute.xlu0 %10468  ;;  %v10496_v32 = vadd.f32 %v10495_v36, %v10494_v38 }
0x15af   :  { %v10488_v37 = vmul.f32 %v10467_v15, %v18810_v48  ;;  %v10489_v60 = vmul.f32 %v10469_v55, %v18807_v42 }
0x15b0   :  { %10693 = vrot.lane.b32.xlu1 %v18581_v50, %s14203_s1 }
0x15b1   :  { %v10497_v19 = vsel %vm5929_vm15, %v10488_v37, 0.0  ;;  %v10499_v6 = vsel %vm5929_vm15, %v10489_v60, 0.0 }
0x15b2   :  { %v10498_v13 = vadd.f32 %v10497_v19, %v10496_v32  ;;  %v9961_v34 = vpop.permute.xlu1 %9960  ;;  %v10473_v35 = vpop.permute.xlu0 %10472 }
0x15b3   :  { %v9977_v43 = vmul.f32 %v9961_v34, %v18861_v44  ;;  %v10491_v41 = vmul.f32 %v10473_v35, %v18833_v2 }
0x15b4   :  { %v10500_v52 = vadd.f32 %v10499_v6, %v10498_v13 }
0x15b5   :  { %v9991_v27 = vsel %vm5929_vm15, %v9977_v43, 0.0  ;;  %v10503_v14 = vsel %vm5929_vm15, %v10491_v41, 0.0 }
0x15b6   :  { %v10502_v21 = vadd.f32 %v10501_v4, %v10500_v52  ;;  %v9992_v40 = vadd.f32 %v9991_v27, %v9990_v25  ;;  %v10475_v24 = vpop.permute.xlu1 %10474  ;;  %v10477_v22 = vpop.permute.xlu0 %10476 }
0x15b7   :  { %v10492_v18 = vmul.f32 %v10475_v24, %v18854_v28  ;;  %v10493_v3 = vmul.f32 %v10477_v22, %v18861_v44 }
0x15b8   :  { %v10504_v12 = vadd.f32 %v10503_v14, %v10502_v21  ;;  %10515 = vrot.lane.b32.xlu0 %v9992_v40, %s14202_s30 }
0x15b9   :  { %v10505_v23 = vsel %vm5929_vm15, %v10492_v18, 0.0  ;;  %v10507_v51 = vsel %vm5929_vm15, %v10493_v3, 0.0 }
0x15ba   :  { %v10506_v63 = vadd.f32 %v10505_v23, %v10504_v12  ;;  %v9818_v38 = vpop.permute.xlu1 %9817  ;;  %v9820_v15 = vpop.permute.xlu0 %9819 }
0x15bb   :  { %v9841_v57 = vmul.f32 %v9818_v38, %v18797_v20  ;;  %v9842_v55 = vmul.f32 %v9820_v15, %v18788_v62 }
0x15bc   :  { %v10508_v36 = vadd.f32 %v10507_v51, %v10506_v63 }
0x15bd   :  { %v9849_v37 = vsel %vm5929_vm15, %v9841_v57, 0.0  ;;  %v9850_v32 = vsel %vm5929_vm15, %v9842_v55, 0.0  ;;  %v9243_v55 = vrot.slane %v18380_v49, %v19871_v29 }
0x15be   :  { %v9822_v60 = vpop.permute.xlu1 %9821  ;;  %10550 = vrot.lane.b32.xlu1 %v10508_v36, %s14203_s1  ;;  %v9824_v17 = vpop.permute.xlu0 %9823  ;;  %v9851_v19 = vadd.f32 %v9850_v32, %v9849_v37 }
0x15bf   :  { %v9843_v53 = vmul.f32 %v9822_v60, %v18810_v48  ;;  %v9844_v58 = vmul.f32 %v9824_v17, %v18807_v42  ;;  %v9259_v37 = vrot.slane %v9243_v55, %v19871_v29  ;;  %v9236_v60 = vcombine.high %v18380_v49, %v18380_v49 }
0x15c1   :  { %v9852_v13 = vsel %vm5929_vm15, %v9843_v53, 0.0  ;;  %v9854_v35 = vsel %vm5929_vm15, %v9844_v58, 0.0  ;;  %v9281_v17 = vcombine.high %v9259_v37, %v9259_v37  ;;  %v9288_v53 = vrot.slane %v9259_v37, %v19808_v1 }
0x15c2   :  { %v9853_v34 = vadd.f32 %v9852_v13, %v9851_v19  ;;  %v9826_v6 = vpop.permute.xlu1 %9825  ;;  %10566 = vrot.lane.b32.xlu1 %v18558_v56, %s14199_s11  ;;  %v9828_v43 = vpop.permute.xlu0 %9827  ;;  %v9250_v19 = vrot.slane %v9236_v60, %v19871_v29 }
0x15c3   :  { %v9845_v25 = vmul.f32 %v9826_v6, %v18820_v16  ;;  %v9846_v52 = vmul.f32 %v9828_v43, %v18833_v2  ;;  %v9296_v13 = vrot.slane %v9281_v17, %v19808_v1 }
0x15c4   :  { %v9855_v41 = vadd.f32 %v9854_v35, %v9853_v34  ;;  %v9325_v35 = vmul.f32 %v9288_v53, %v18797_v20 }
0x15c5   :  { %v9856_v4 = vsel %vm5929_vm15, %v9845_v25, 0.0  ;;  %v9858_v24 = vsel %vm5929_vm15, %v9846_v52, 0.0  ;;  %v9327_v49 = vmul.f32 %v9296_v13, %v18810_v48  ;;  %v9266_v25 = vrot.slane %v9250_v19, %v19871_v29 }
0x15c6   :  { %v9857_v27 = vadd.f32 %v9856_v4, %v9855_v41  ;;  %v9830_v21 = vpop.permute.xlu1 %9829  ;;  %10587 = vrot.lane.b32.xlu1 %v18584_v7, %s14199_s11  ;;  %v9832_v14 = vpop.permute.xlu0 %9831  ;;  %v9333_v41 = vsel %vm1969_vm1, %v9325_v35, 0.0  ;;  %v9252_v4 = vcombine.high %v9250_v19, %v9250_v19 }
0x15c7   :  { %v9847_v22 = vmul.f32 %v9830_v21, %v18854_v28  ;;  %v9848_v18 = vmul.f32 %v9832_v14, %v18861_v44  ;;  %v9304_v20 = vrot.slane %v9266_v25, %v19808_v1 }
0x15c8   :  { %v9859_v12 = vadd.f32 %v9858_v24, %v9857_v27  ;;  %v9336_v27 = vsel %vm1969_vm1, %v9327_v49, 0.0  ;;  %v9280_v14 = vrot.slane %v9252_v4, %v19871_v29 }
0x15c9   :  { %v9860_v3 = vsel %vm5929_vm15, %v9847_v22, 0.0  ;;  %v9862_v63 = vsel %vm5929_vm15, %v9848_v18, 0.0  ;;  %v9329_v48 = vmul.f32 %v9304_v20, %v18820_v16  ;;  %v9282_v22 = vcombine.high %v9266_v25, %v9266_v25 }
0x15ca   :  { %v9861_v23 = vadd.f32 %v9860_v3, %v9859_v12  ;;  %10608 = vrot.lane.b32.xlu1 %v18598_v46, %s14199_s11  ;;  %v9308_v3 = vrot.slane %v9280_v14, %v19808_v1 }
0x15cc   :  { %v9863_v38 = vadd.f32 %v9862_v63, %v9861_v23  ;;  %v10526_v51 = vpop.permute.xlu1 %10525  ;;  %v9340_v23 = vsel %vm1969_vm1, %v9329_v48, 0.0  ;;  %v9312_v63 = vrot.slane %v9282_v22, %v19808_v1 }
0x15cd   :  { %v19057_v15 = vsub.f32 %v9992_v40, %v10526_v51  ;;  %v9251_v40 = vcombine.high %v9243_v55, %v9243_v55 }
0x15ce   :  { %10510 = vrot.lane.b32.xlu0 %v9863_v38, %s14203_s1  ;;  %v9330_v38 = vmul.f32 %v9308_v3, %v18833_v2 }
0x15cf   :  { %10742 = vrot.lane.b32.xlu1 %v19057_v15, %s14203_s1  ;;  %v9273_v32 = vrot.slane %v9251_v40, %v19871_v29 }
0x15d0   :  { %v9342_v29 = vsel %vm1969_vm1, %v9330_v38, 0.0 }
0x15d1   :  { %v9283_v43 = vcombine.high %v9273_v32, %v9273_v32 }
0x15d2   :  { %10556 = vrot.lane.b32.xlu0 %v18548_v26, %s14199_s11  ;;  %v10541_v57 = vpop.permute.xlu1 %10540 }
0x15d3   :  { %v19065_v36 = vsub.f32 %v18926_v39, %v10541_v57  ;;  %v9292_v39 = vrot.slane %v9273_v32, %v19808_v1  ;;  %v9284_v57 = vcombine.high %v9280_v14, %v9280_v14 }
0x15d5   :  { %v9326_v6 = vmul.f32 %v9292_v39, %v18788_v62  ;;  %v9316_v16 = vrot.slane %v9284_v57, %v19808_v1 }
0x15d6   :  { %10748 = vrot.lane.b32.xlu0 %v19065_v36, %s14203_s1 }
0x15d7   :  { %v9334_v52 = vsel %vm1969_vm1, %v9326_v6, 0.0  ;;  %v9332_v37 = vmul.f32 %v9316_v16, %v18861_v44 }
0x15d8   :  { %v9335_v62 = vadd.f32 %v9334_v52, %v9333_v41 }
0x15d9   :  { %v9346_v60 = vsel %vm1969_vm1, %v9332_v37, 0.0 }
0x15da   :  { %v9337_v24 = vadd.f32 %v9336_v27, %v9335_v62 }
0x15fa   :  { %v10521_v58 = vpop.permute.xlu0 %10520 }
0x15fb   :  { %v19080_v34 = vadd.f32 %v10521_v58, %v18886_v8  ;;  %v9300_v8 = vrot.slane %v9283_v43, %v19808_v1 }
0x15fd   :  { %10728 = vrot.lane.b32.xlu0 %v19080_v34, %s14202_s30  ;;  %v9328_v21 = vmul.f32 %v9300_v8, %v18807_v42  ;;  %v9331_v42 = vmul.f32 %v9312_v63, %v18854_v28 }
0x15ff   :  { %v9338_v18 = vsel %vm1969_vm1, %v9328_v21, 0.0  ;;  %v9344_v40 = vsel %vm1969_vm1, %v9331_v42, 0.0 }
0x1600   :  { %v9339_v12 = vadd.f32 %v9338_v18, %v9337_v24 }
0x1602   :  { %v9341_v51 = vadd.f32 %v9340_v23, %v9339_v12 }
0x1604   :  { %v9343_v55 = vadd.f32 %v9342_v29, %v9341_v51 }
0x1606   :  { %v9345_v32 = vadd.f32 %v9344_v40, %v9343_v55 }
0x1608   :  { %v9347_v17 = vadd.f32 %v9346_v60, %v9345_v32 }
0x161a   :  { %v10531_v53 = vpop.permute.xlu0 %10530 }
0x161b   :  { %v19107_v39 = vadd.f32 %v10531_v53, %v9347_v17 }
0x161d   :  { %v10639_v2 = vmul.f32 %v19107_v39, %v18575_v9  ;;  %v10622_v20 = vmul.f32 %v19107_v39, %v18548_v26  ;;  %v10656_v12 = vmul.f32 %v19107_v39, %v18581_v50 }
0x161e   :  { %v10546_v28 = vpop.permute.xlu0 %10545  ;;  %v10536_v19 = vpop.permute.xlu1 %10535 }
0x161f   :  { %v10538_v58 = vadd.f32 %v10536_v19, %v19000_v54  ;;  %10753 = vrot.lane.b32.xlu0 %v10639_v2, %s14199_s11  ;;  %v19114_v1 = vsub.f32 %v18998_v61, %v10546_v28 }
0x1621   :  { %10733 = vrot.lane.b32.xlu1 %v10538_v58, %s14202_s30 }
0x1622   :  { %v10694_v44 = vpop.permute.xlu1 %10693 }
0x1623   :  { %v19118_v13 = vmul.f32 %v10694_v44, %v19114_v1 }
0x1625   :  { %10758 = vrot.lane.b32.xlu0 %v19118_v13, %s14202_s30 }
0x1629   :  { %10722 = vrot.lane.b32.xlu0 %v19114_v1, %s14203_s1 }
0x162a   :  { %v10516_v6 = vpop.permute.xlu0 %10515 }
0x162b   :  { %v19125_v54 = vadd.f32 %v10516_v6, %v18877_v33 }
0x162d   :  { %10715 = vrot.lane.b32.xlu1 %v19125_v54, %s14202_s30  ;;  %10577 = vrot.lane.b32.xlu0 %v18575_v9, %s14199_s11 }
0x1630   :  { %v10551_v61 = vpop.permute.xlu1 %10550 }
0x1631   :  { %v19131_v35 = vadd.f32 %v10551_v61, %v9347_v17  ;;  %10598 = vrot.lane.b32.xlu0 %v18581_v50, %s14199_s11 }
0x1633   :  { %v10698_v43 = vmul.f32 %v19131_v35, %v18598_v46  ;;  %v10674_v29 = vmul.f32 %v19131_v35, %v18558_v56  ;;  %v10686_v40 = vmul.f32 %v19131_v35, %v18584_v7  ;;  %v10738_v6 = vmul.f32 %v19131_v35, %v18555_v11 }
0x1634   :  { %v10567_v49 = vpop.permute.xlu1 %10566 }
0x1635   :  { %v19138_v25 = vmul.f32 %v10567_v49, %v19080_v34  ;;  %10778 = vrot.lane.b32.xlu1 %v10698_v43, %s14199_s11  ;;  %10618 = vrot.lane.b32.xlu0 %v18531_v0, %s14203_s1  ;;  %v10628_v33 = vmul.f32 %v10567_v49, %v10538_v58 }
0x1638   :  { %v10588_v52 = vpop.permute.xlu1 %10587 }
0x1639   :  { %v19144_v41 = vmul.f32 %v10588_v52, %v19080_v34  ;;  %v10645_v4 = vmul.f32 %v10588_v52, %v10538_v58  ;;  %10635 = vrot.lane.b32.xlu1 %v18545_v45, %s14203_s1  ;;  %10630 = vrot.lane.b32.xlu0 %v10628_v33, %s14199_s11  ;;  %v10765_v52 = vmul.f32 %v19131_v35, %v18581_v50 }
0x163b   :  { %v19150_v8 = vadd.f32 %v10645_v4, %v19138_v25 }
0x163c   :  { %v10609_v27 = vpop.permute.xlu1 %10608 }
0x163d   :  { %v19153_v62 = vmul.f32 %v10609_v27, %v19080_v34  ;;  %10652 = vrot.lane.b32.xlu1 %v18555_v11, %s14203_s1  ;;  %10647 = vrot.lane.b32.xlu0 %v10645_v4, %s14199_s11  ;;  %v10662_v48 = vmul.f32 %v10609_v27, %v10538_v58 }
0x1640   :  { %v10511_v21 = vpop.permute.xlu0 %10510 }
0x1641   :  { %v19160_v24 = vadd.f32 %v10511_v21, %v9347_v17  ;;  %10669 = vrot.lane.b32.xlu0 %v18548_v26, %s14203_s1  ;;  %10624 = vrot.lane.b32.xlu1 %v10622_v20, %s14203_s1  ;;  %v10743_v14 = vpop.permute.xlu1 %10742  ;;  %v10719_v21 = vmul.f32 %v19107_v39, %v18545_v45 }
0x1642   :  { %v10768_v18 = vmul.f32 %v10743_v14, %v18584_v7  ;;  %v10745_v57 = vmul.f32 %v10743_v14, %v18575_v9 }
0x1643   :  { %v10767_v22 = vmul.f32 %v19160_v24, %v18558_v56  ;;  %v10740_v51 = vmul.f32 %v19160_v24, %v18548_v26 }
0x1644   :  { %v10557_v34 = vpop.permute.xlu0 %10556 }
0x1645   :  { %10664 = vrot.lane.b32.xlu0 %v10662_v48, %s14199_s11  ;;  %10641 = vrot.lane.b32.xlu1 %v10639_v2, %s14203_s1  ;;  %v10769_v23 = vadd.f32 %v10768_v18, %v10767_v22  ;;  %v10746_v55 = vadd.f32 %v10745_v57, %v10740_v51  ;;  %v10559_v17 = vmul.f32 %v10557_v34, %v19125_v54 }
0x1646   :  { %v10773_v48 = vmul.f32 %v19107_v39, %v18584_v7 }
0x1648   :  { %v10749_v3 = vpop.permute.xlu0 %10748 }
0x1649   :  { %v10770_v63 = vmul.f32 %v10749_v3, %v18598_v46  ;;  %10658 = vrot.lane.b32.xlu1 %v10656_v12, %s14203_s1  ;;  %v10751_v42 = vmul.f32 %v10749_v3, %v18581_v50 }
0x164b   :  { %v10771_v38 = vadd.f32 %v10770_v63, %v10769_v23  ;;  %v10752_v16 = vadd.f32 %v10751_v42, %v10746_v55 }
0x164d   :  { %10681 = vrot.lane.b32.xlu1 %v18575_v9, %s14203_s1  ;;  %10801 = vrot.lane.b32.xlu0 %v10771_v38, %s14203_s1 }
0x1651   :  { %10676 = vrot.lane.b32.xlu1 %v10674_v29, %s14203_s1 }
0x1655   :  { %10786 = vrot.lane.b32.xlu1 %v10752_v16, %s14203_s1 }
0x1659   :  { %10688 = vrot.lane.b32.xlu1 %v10686_v40, %s14203_s1 }
0x165d   :  { %10700 = vrot.lane.b32.xlu1 %v10698_v43, %s14203_s1 }
0x166f   :  { %v10729_v37 = vpop.permute.xlu0 %10728 }
0x1670   :  { %v10731_v53 = vmul.f32 %v10729_v37, %v18531_v0  ;;  %v10762_v19 = vmul.f32 %v10729_v37, %v18548_v26 }
0x1691   :  { %v10754_v32 = vpop.permute.xlu0 %10753 }
0x1692   :  { %v10756_v58 = vadd.f32 %v10754_v32, %v10559_v17 }
0x1693   :  { %v10734_v60 = vpop.permute.xlu1 %10733 }
0x1694   :  { %v10736_v2 = vmul.f32 %v10734_v60, %v18545_v45  ;;  %v10763_v28 = vmul.f32 %v10734_v60, %v18575_v9 }
0x1696   :  { %v10737_v44 = vadd.f32 %v10736_v2, %v10731_v53  ;;  %v10764_v43 = vadd.f32 %v10763_v28, %v10762_v19 }
0x1697   :  { %v10759_v61 = vpop.permute.xlu0 %10758 }
0x1698   :  { %v10761_v49 = vadd.f32 %v10759_v61, %v10756_v58  ;;  %v19196_v33 = vadd.f32 %v10738_v6, %v10737_v44  ;;  %v10766_v27 = vadd.f32 %v10765_v52, %v10764_v43 }
0x169a   :  { %10791 = vrot.lane.b32.xlu0 %v10761_v49, %s14199_s11 }
0x169b   :  { %v10723_v4 = vpop.permute.xlu0 %10722 }
0x169c   :  { %v10725_v50 = vmul.f32 %v10723_v4, %v18555_v11  ;;  %v10775_v35 = vmul.f32 %v10723_v4, %v18598_v46 }
0x169e   :  { %10796 = vrot.lane.b32.xlu0 %v10766_v27, %s14203_s1 }
0x169f   :  { %v10716_v26 = vpop.permute.xlu1 %10715  ;;  %v10578_v9 = vpop.permute.xlu0 %10577 }
0x16a0   :  { %v10718_v20 = vmul.f32 %v10716_v26, %v18531_v0  ;;  %v10772_v14 = vmul.f32 %v10716_v26, %v18558_v56  ;;  %v10580_v7 = vmul.f32 %v10578_v9, %v19125_v54 }
0x16a2   :  { %v10720_v34 = vadd.f32 %v10719_v21, %v10718_v20  ;;  %v10774_v22 = vadd.f32 %v10773_v48, %v10772_v14 }
0x16a3   :  { %v10599_v18 = vpop.permute.xlu0 %10598 }
0x16a4   :  { %v10776_v12 = vadd.f32 %v10775_v35, %v10774_v22  ;;  %v19210_v3 = vadd.f32 %v10725_v50, %v10720_v34  ;;  %v10601_v57 = vmul.f32 %v10599_v18, %v19125_v54 }
0x16a6   :  { %10806 = vrot.lane.b32.xlu0 %v10776_v12, %s14203_s1 }
0x16a7   :  { %v10779_v23 = vpop.permute.xlu1 %10778  ;;  %v10619_v38 = vpop.permute.xlu0 %10618 }
0x16a8   :  { %v10781_v63 = vadd.f32 %v10779_v23, %v19150_v8  ;;  %v10621_v60 = vmul.f32 %v10619_v38, %v19057_v15 }
0x16aa   :  { %10561 = vrot.lane.b32.xlu0 %v10559_v17, %s14202_s30  ;;  %10811 = vrot.lane.b32.xlu1 %v10781_v63, %s14199_s11  ;;  %v10668_v17 = vmul.f32 %v10619_v38, %v19065_v36 }
0x16ab   :  { %v10636_v56 = vpop.permute.xlu1 %10635  ;;  %v10631_v39 = vpop.permute.xlu0 %10630 }
0x16ac   :  { %v10638_v46 = vmul.f32 %v10636_v56, %v19057_v15  ;;  %v10680_v53 = vmul.f32 %v10636_v56, %v19065_v36 }
0x16ae   :  { %10705 = vrot.lane.b32.xlu0 %v10638_v46, %s14203_s1  ;;  %10582 = vrot.lane.b32.xlu1 %v10580_v7, %s14202_s30 }
0x16af   :  { %v10653_v51 = vpop.permute.xlu1 %10652  ;;  %v10648_v29 = vpop.permute.xlu0 %10647 }
0x16b0   :  { %v10692_v42 = vmul.f32 %v10653_v51, %v19065_v36  ;;  %v10655_v40 = vmul.f32 %v10653_v51, %v19057_v15 }
0x16b2   :  { %10592 = vrot.lane.b32.xlu0 %v19144_v41, %s14202_s30  ;;  %10571 = vrot.lane.b32.xlu1 %v19138_v25, %s14202_s30  ;;  %v10697_v18 = vadd.f32 %v19118_v13, %v10692_v42  ;;  %v10575_v13 = vmul.f32 %v19160_v24, %v18545_v45  ;;  %v10554_v45 = vmul.f32 %v19160_v24, %v18531_v0 }
0x16b3   :  { %v10625_v8 = vpop.permute.xlu1 %10624  ;;  %v10670_v41 = vpop.permute.xlu0 %10669 }
0x16b4   :  { %v10672_v32 = vmul.f32 %v10670_v41, %v19114_v1  ;;  %v10627_v28 = vadd.f32 %v10625_v8, %v10621_v60 }
0x16b6   :  { %10710 = vrot.lane.b32.xlu0 %v10692_v42, %s14203_s1  ;;  %10603 = vrot.lane.b32.xlu1 %v10601_v57, %s14202_s30  ;;  %v10673_v19 = vadd.f32 %v10672_v32, %v10668_v17 }
0x16b7   :  { %v10642_v55 = vpop.permute.xlu1 %10641  ;;  %v10665_v15 = vpop.permute.xlu0 %10664 }
0x16b8   :  { %v10644_v16 = vadd.f32 %v10642_v55, %v10638_v46 }
0x16ba   :  { %10613 = vrot.lane.b32.xlu1 %v19153_v62, %s14202_s30  ;;  %v10633_v62 = vadd.f32 %v10631_v39, %v10627_v28  ;;  %v10650_v4 = vadd.f32 %v10648_v29, %v10644_v16 }
0x16bb   :  { %v10659_v37 = vpop.permute.xlu1 %10658 }
0x16bc   :  { %v10661_v25 = vadd.f32 %v10659_v37, %v10655_v40  ;;  %v10596_v40 = vmul.f32 %v19160_v24, %v18555_v11 }
0x16be   :  { %v10667_v9 = vadd.f32 %v10665_v15, %v10661_v25 }
0x16bf   :  { %v10682_v54 = vpop.permute.xlu1 %10681  ;;  %v10802_v52 = vpop.permute.xlu0 %10801 }
0x16c0   :  { %v10684_v2 = vmul.f32 %v10682_v54, %v19114_v1 }
0x16c2   :  { %v10685_v58 = vadd.f32 %v10684_v2, %v10680_v53 }
0x16c3   :  { %v10677_v44 = vpop.permute.xlu1 %10676 }
0x16c4   :  { %v10679_v6 = vadd.f32 %v10677_v44, %v10673_v19 }
0x16c6   :  { %v19243_v1 = vadd.f32 %v10802_v52, %v10679_v6 }
0x16c7   :  { %v10787_v61 = vpop.permute.xlu1 %10786 }
0x16c8   :  { %v19236_v43 = vadd.f32 %v10787_v61, %v10633_v62  ;;  %v10838_v48 = vmul.f32 %v19243_v1, %v19243_v1 }
0x16ca   :  { %v10820_v49 = vmul.f32 %v19236_v43, %v19236_v43 }
0x16cb   :  { %v10689_v14 = vpop.permute.xlu1 %10688 }
0x16cc   :  { %10822 = vrot.lane.b32.xlu0 %v10820_v49, %s14203_s1  ;;  %v10691_v35 = vadd.f32 %v10689_v14, %v10685_v58  ;;  %v7858_v14 = vld [vmem:[%s19577_s22 + $0x60] sm:$0xff] }
0x16cf   :  { %v10701_v34 = vpop.permute.xlu1 %10700 }
0x16d0   :  { %v10703_v23 = vadd.f32 %v10701_v34, %v10697_v18  ;;  %v7863_v34 = vld [vmem:[%s19577_s22 + $0x88] sm:$0xff] }
0x170c   :  { %v10792_v36 = vpop.permute.xlu0 %10791 }
0x170d   :  { %v19241_v27 = vadd.f32 %v10792_v36, %v10650_v4 }
0x170f   :  { %v10826_v26 = vmul.f32 %v19241_v27, %v19241_v27 }
0x1710   :  { %v10797_v20 = vpop.permute.xlu0 %10796 }
0x1711   :  { %v19247_v21 = vadd.f32 %v10797_v20, %v10667_v9  ;;  %10828 = vrot.lane.b32.xlu1 %v10826_v26, %s14203_s1 }
0x1713   :  { %v10832_v50 = vmul.f32 %v19247_v21, %v19247_v21 }
0x1715   :  { %10840 = vrot.lane.b32.xlu1 %v10838_v48, %s14203_s1  ;;  %10834 = vrot.lane.b32.xlu0 %v10832_v50, %s14203_s1  ;;  %v7859_v48 = vld [vmem:[%s19577_s22 + $0x68] sm:$0xff] }
0x1716   :  { %v13780_v50 = vpack.c.bf16 %v7859_v48, %v7858_v14 }
0x1718   :  { %v10807_v22 = vpop.permute.xlu0 %10806  ;;  %13781 = vmatpush3.bf16.msra.mxu0 %v13780_v50 }
0x1719   :  { %v19257_v12 = vadd.f32 %v10807_v22, %v10691_v35  ;;  %13782 = vmatprep.subr.bf16.mxu0 %v19847_v10  ;;  %v7862_v35 = vld [vmem:[%s19577_s22 + $0x80] sm:$0xff]  ;;  %v7860_v22 = vld [vmem:[%s19577_s22 + $0x70] sm:$0xff] }
0x171a   :  { %v13786_v18 = vpack.c.bf16 %v7863_v34, %v7862_v35 }
0x171b   :  { %v10844_v63 = vmul.f32 %v19257_v12, %v19257_v12 }
0x171c   :  { %v10562_v38 = vpop.permute.xlu0 %10561  ;;  %v10812_v56 = vpop.permute.xlu1 %10811  ;;  %13787 = vmatpush3.bf16.msra.mxu1 %v13786_v18 }
0x171d   :  { %v19261_v7 = vadd.f32 %v10812_v56, %v10703_v23  ;;  %10846 = vrot.lane.b32.xlu0 %v10844_v63, %s14203_s1  ;;  %v10564_v17 = vadd.f32 %v10562_v38, %v10554_v45  ;;  %v7861_v23 = vld [vmem:[%s19577_s22 + $0x78] sm:$0xff]  ;;  %v7864_v63 = vld [vmem:[%s19577_s22 + $0x90] sm:$0xff]  ;;  %13788 = vmatprep.subr.bf16.mxu1 %v19847_v10 }
0x171e   :  { %v7865_v38 = vld [vmem:[%s19577_s22 + $0x98] sm:$0xff]  ;;  %v13783_v56 = vpack.c.bf16 %v7861_v23, %v7860_v22 }
0x171f   :  { %v10850_v46 = vmul.f32 %v19261_v7, %v19261_v7 }
0x1720   :  { %v10706_v39 = vpop.permute.xlu0 %10705  ;;  %v10583_v51 = vpop.permute.xlu1 %10582  ;;  %13784 = vmatpush3.bf16.msra.mxu0 %v13783_v56 }
0x1721   :  { %10852 = vrot.lane.b32.xlu1 %v10850_v46, %s14203_s1  ;;  %v10585_v8 = vadd.f32 %v10583_v51, %v10575_v13  ;;  %v10708_v60 = vadd.f32 %v10706_v39, %v10554_v45  ;;  %v13789_v39 = vpack.c.bf16 %v7865_v38, %v7864_v63  ;;  %13791 = vmatprep.subr.bf16.mxu0 %v19847_v10 }
0x1723   :  { %13790 = vmatpush3.bf16.msra.mxu1 %v13789_v39 }
0x1724   :  { %v10593_v57 = vpop.permute.xlu0 %10592  ;;  %v10572_v42 = vpop.permute.xlu1 %10571  ;;  %13797 = vmatprep.subr.bf16.mxu1 %v19847_v10 }
0x1725   :  { %v10595_v29 = vadd.f32 %v10593_v57, %v10585_v8  ;;  %v10574_v2 = vadd.f32 %v10572_v42, %v10564_v17 }
0x1727   :  { %v19270_v55 = vadd.f32 %v19210_v3, %v10595_v29 }
0x1728   :  { %v10604_v16 = vpop.permute.xlu1 %10603  ;;  %v10711_v54 = vpop.permute.xlu0 %10710 }
0x1729   :  { %v10606_v41 = vadd.f32 %v10604_v16, %v10596_v40  ;;  %v10713_v53 = vadd.f32 %v10711_v54, %v10708_v60  ;;  %v10816_v19 = vmul.f32 %v19270_v55, %v19270_v55 }
0x172b   :  { %v10782_v3 = vadd.f32 %v10713_v53, %v10574_v2  ;;  %v7867_v2 = vld [vmem:[%s19577_s22 + $0xa8] sm:$0xff] }
0x172c   :  { %v10614_v37 = vpop.permute.xlu1 %10613 }
0x172d   :  { %v10616_v25 = vadd.f32 %v10614_v37, %v10606_v41  ;;  %v10815_v28 = vmul.f32 %v10782_v3, %v10782_v3 }
0x172f   :  { %v19275_v32 = vadd.f32 %v19196_v33, %v10616_v25  ;;  %v10817_v58 = vadd.f32 %v10816_v19, %v10815_v28  ;;  %v7869_v28 = vld [vmem:[%s19577_s22 + $0xb8] sm:$0xff] }
0x1731   :  { %v10818_v11 = vmul.f32 %v19275_v32, %v19275_v32 }
0x1733   :  { %v10819_v33 = vadd.f32 %v10818_v11, %v10817_v58 }
0x173e   :  { %v10823_v44 = vpop.permute.xlu0 %10822 }
0x173f   :  { %v10825_v62 = vadd.f32 %v10823_v44, %v10819_v33 }
0x1783   :  { %v10829_v6 = vpop.permute.xlu1 %10828 }
0x1784   :  { %v10831_v0 = vadd.f32 %v10829_v6, %v10825_v62 }
0x1787   :  { %v10835_v61 = vpop.permute.xlu0 %10834  ;;  %v10841_v49 = vpop.permute.xlu1 %10840 }
0x1788   :  { %v10837_v24 = vadd.f32 %v10835_v61, %v10831_v0 }
0x178a   :  { %v10843_v52 = vadd.f32 %v10841_v49, %v10837_v24 }
0x178f   :  { %v10847_v15 = vpop.permute.xlu0 %10846 }
0x1790   :  { %v10849_v4 = vadd.f32 %v10847_v15, %v10843_v52 }
0x1793   :  { %v10853_v36 = vpop.permute.xlu1 %10852 }
0x1794   :  { %v10855_v26 = vadd.f32 %v10853_v36, %v10849_v4 }
0x1796   :  { %v10856_v9 = vadd.f32 1.0, %v10855_v26 }
0x1798   :  { %14154 = vrcp.f32 %v10856_v9 }
0x17a2   :  { %v19283_v20 = vpop.eup %14154 }
0x17a3   :  { %10863 = vrot.lane.b32.xlu0 %v19283_v20, %s14203_s1  ;;  %v10860_v37 = vmul.f32 %v19283_v20, %v19270_v55  ;;  %v7866_v55 = vld [vmem:[%s19577_s22 + $0xa0] sm:$0xff]  ;;  %v10861_v62 = vmul.f32 %v19283_v20, %v19275_v32 }
0x1815   :  { %v10864_v46 = vpop.permute.xlu0 %10863 }
0x1816   :  { %v19314_v51 = vmul.f32 %v10864_v46, %v19261_v7  ;;  %v19317_v13 = vmul.f32 %v10864_v46, %v19241_v27  ;;  %v10868_v8 = vmul.f32 %v10864_v46, %v19247_v21  ;;  %v10870_v57 = vmul.f32 %v10864_v46, %v19257_v12 }
0x1817   :  { %v10866_v42 = vmul.f32 %v10864_v46, %v19236_v43  ;;  %v19332_v12 = vmul.f32 %v19283_v20, %v10782_v3  ;;  %v10869_v53 = vmul.f32 %v10864_v46, %v19243_v1  ;;  %v19356_v1 = vpack.c.bf16 %v7867_v2, %v7866_v55  ;;  %v7868_v3 = vld [vmem:[%s19577_s22 + $0xb0] sm:$0xff] }
0x1818   :  { %10878 = vrot.lane.b32.xlu0 %v19314_v51, %s14203_s1  ;;  %10873 = vrot.lane.b32.xlu1 %v19317_v13, %s14203_s1  ;;  %v10895_v7 = vsub.f32 %v10868_v8, %v10870_v57  ;;  %v10907_v21 = vadd.f32 %v10870_v57, %v10868_v8  ;;  %v13807_v11 = vpack.c.bf16 %v7869_v28, %v7868_v3 }
0x181a   :  { %v10896_v27 = vmul.f32 0.5, %v10895_v7  ;;  %v10908_v29 = vmul.f32 0.5, %v10907_v21 }
0x181c   :  { %10884 = vrot.lane.b32.xlu0 %v10866_v42, %s14203_s1 }
0x1820   :  { %11129 = vrot.lane.b32.xlu0 %v10896_v27, %s14203_s1 }
0x1824   :  { %11498 = vrot.lane.b32.xlu0 %v10908_v29, %s14203_s1 }
0x188a   :  { %v10879_v16 = vpop.permute.xlu0 %10878  ;;  %v10874_v40 = vpop.permute.xlu1 %10873 }
0x188b   :  { %v10876_v41 = vadd.f32 %v10874_v40, %v19332_v12 }
0x188d   :  { %v10881_v43 = vadd.f32 %v10879_v16, %v10876_v41 }
0x188e   :  { %v10885_v25 = vpop.permute.xlu0 %10884 }
0x188f   :  { %v10882_v45 = vmul.f32 0.33333334, %v10881_v43  ;;  %v10887_v54 = vsub.f32 %v10860_v37, %v10885_v25  ;;  %v10898_v58 = vadd.f32 %v10885_v25, %v10860_v37 }
0x1891   :  { %v10897_v60 = vsub.f32 %v19332_v12, %v10882_v45  ;;  %v10888_v17 = vmul.f32 0.5, %v10887_v54  ;;  %10903 = vrot.lane.b32.xlu1 %v10882_v45, %s14203_s1  ;;  %13321 = vmatmul.mubr.msk.f32.vlgmr.msra.gmra.mrb[72].mxu0 %vm1969_vm1, %v10882_v45  ;;  %v10899_v44 = vmul.f32 0.5, %v10898_v58 }
0x1892   :  { %13793 = vmatpush3.bf16.msra.mxu0 %v13786_v18  ;;  %13342 = vmatprep.mubr.msk.f32.mxu0 %vm14186_vm0, %v19848_v5  ;;  %v11130_v19 = vpop.permute.xlu0 %11129 }
0x1893   :  { %13332 = vmatmul.mubr.msk.f32.vlgmr.msra.gmra.mrb[70].mxu1 %vm1969_vm1, %v10888_v17  ;;  %13794 = vmatprep.subr.bf16.mxu0 %v19847_v10 }
0x1894   :  { %13799 = vmatpush3.bf16.msra.mxu1 %v13786_v18  ;;  %13353 = vmatprep.mubr.msk.f32.mxu1 %vm14186_vm0, %v19848_v5 }
0x1895   :  { %10890 = vrot.lane.b32.xlu1 %v10869_v53, %s14203_s1  ;;  %13800 = vmatprep.subr.bf16.mxu1 %v19847_v10 }
0x1896   :  { %13796 = vmatpush3.bf16.msra.mxu0 %v13789_v39  ;;  %v11499_v52 = vpop.permute.xlu0 %11498 }
0x1897   :  { %13803 = vmatprep.subr.bf16.mxu0 %v19847_v10 }
0x1898   :  { %13802 = vmatpush3.bf16.msra.mxu1 %v13789_v39 }
0x1899   :  { %13809 = vmatprep.subr.bf16.mxu1 %v19847_v10 }
0x189b   :  { %13354 = vmatmul.mubr.msk.f32.vlgmr.msra.gmra.mrb[72].mxu1 %vm1969_vm1, %v11130_v19 }
0x189c   :  { %13811 = vmatpush3.bf16.msra.mxu1 %v19356_v1  ;;  %13375 = vmatprep.mubr.msk.f32.mxu1 %vm14186_vm0, %v19848_v5 }
0x189d   :  { %13812 = vmatprep.subr.bf16.mxu1 %v19847_v10 }
0x18a0   :  { %13814 = vmatpush3.bf16.msra.mxu1 %v13807_v11 }
0x18a1   :  { %13821 = vmatprep.subr.bf16.mxu1 %v19847_v10 }
0x18a3   :  { %13376 = vmatmul.mubr.msk.f32.vlgmr.msra.gmra.mrb[74].mxu1 %vm1969_vm1, %v10899_v44 }
0x18a4   :  { %13823 = vmatpush3.bf16.msra.mxu1 %v19356_v1  ;;  %13397 = vmatprep.mubr.msk.f32.mxu1 %vm14186_vm0, %v19848_v5 }
0x18a5   :  { %13824 = vmatprep.subr.bf16.mxu1 %v19847_v10 }
0x18a8   :  { %13826 = vmatpush3.bf16.msra.mxu1 %v13807_v11 }
0x18a9   :  { %13833 = vmatprep.subr.bf16.mxu1 %v19847_v10 }
0x1903   :  { %v10904_v33 = vpop.permute.xlu1 %10903 }
0x1904   :  { %v10906_v6 = vsub.f32 %v19317_v13, %v10904_v33  ;;  %v10909_v0 = vsub.f32 %v19314_v51, %v10904_v33 }
0x1906   :  { %11423 = vrot.lane.b32.xlu1 %v10906_v6, %s14203_s1 }
0x1907   :  { %v10891_v61 = vpop.permute.xlu1 %10890 }
0x1908   :  { %v10893_v24 = vsub.f32 %v10861_v62, %v10891_v61  ;;  %v10900_v32 = vadd.f32 %v10891_v61, %v10861_v62 }
0x190a   :  { %v10894_v49 = vmul.f32 0.5, %v10893_v24  ;;  %11573 = vrot.lane.b32.xlu1 %v10909_v0, %s14203_s1  ;;  %v10901_v15 = vmul.f32 0.5, %v10900_v32 }
0x190c   :  { %13343 = vmatmul.mubr.msk.f32.vlgmr.msra.gmra.mrb[74].mxu0 %vm1969_vm1, %v10894_v49 }
0x190d   :  { %13805 = vmatpush3.bf16.msra.mxu0 %v19356_v1  ;;  %13364 = vmatprep.mubr.msk.f32.mxu0 %vm14186_vm0, %v19848_v5 }
0x190e   :  { %13806 = vmatprep.subr.bf16.mxu0 %v19847_v10 }
0x1911   :  { %13808 = vmatpush3.bf16.msra.mxu0 %v13807_v11 }
0x1912   :  { %13815 = vmatprep.subr.bf16.mxu0 %v19847_v10 }
0x1914   :  { %13365 = vmatmul.mubr.msk.f32.vlgmr.msra.gmra.mrb[76].mxu0 %vm1969_vm1, %v10897_v60 }
0x1915   :  { %13817 = vmatpush3.bf16.msra.mxu0 %v19356_v1  ;;  %13386 = vmatprep.mubr.msk.f32.mxu0 %vm14186_vm0, %v19848_v5 }
0x1916   :  { %13818 = vmatprep.subr.bf16.mxu0 %v19847_v10 }
0x1919   :  { %13820 = vmatpush3.bf16.msra.mxu0 %v13807_v11 }
0x191a   :  { %13827 = vmatprep.subr.bf16.mxu0 %v19847_v10 }
0x191c   :  { %13387 = vmatmul.mubr.msk.f32.vlgmr.msra.gmra.mrb[78].mxu0 %vm1969_vm1, %v10901_v15 }
0x191d   :  { %13829 = vmatpush3.bf16.msra.mxu0 %v19356_v1  ;;  %13408 = vmatprep.mubr.msk.f32.mxu0 %vm14186_vm0, %v19848_v5 }
0x191e   :  { %13830 = vmatprep.subr.bf16.mxu0 %v19847_v10 }
0x1921   :  { %13832 = vmatpush3.bf16.msra.mxu0 %v13807_v11 }
0x1922   :  { %13839 = vmatprep.subr.bf16.mxu0 %v19847_v10 }
0x1924   :  { %13409 = vmatmul.mubr.msk.f32.vlgmr.msra.gmra.mrb[80].mxu0 %vm1969_vm1, %v11499_v52 }
0x1925   :  { %13430 = vmatprep.mubr.msk.f32.mxu0 %vm14186_vm0, %v19848_v5 }
0x1964   :  { %v19404_v4 = vpop.f32.mrb[72].mxu0 }
0x1965   :  { %v13322_v36 = vpop.f32.mrb[73].mxu0 }
0x1966   :  { %v11051_v26 = vpop.f32.mrb[70].mxu1 }
0x1967   :  { %v13333_v9 = vpop.f32.mrb[71].mxu1 }
0x196e   :  { %v11199_v20 = vpop.f32.mrb[72].mxu1 }
0x196f   :  { %v13355_v14 = vpop.f32.mrb[73].mxu1 }
0x1976   :  { %v11345_v48 = vpop.f32.mrb[74].mxu1 }
0x1977   :  { %v19406_v50 = vadd.f32 %v11345_v48, %v11051_v26  ;;  %v11650_v35 = vsub.f32 %v11345_v48, %v11051_v26  ;;  %v13377_v34 = vpop.f32.mrb[75].mxu1 }
0x1978   :  { %v11424_v22 = vpop.permute.xlu1 %11423 }
0x1979   :  { %11721 = vrot.lane.b32.xlu0 %v11650_v35, %s14203_s1  ;;  %13398 = vmatmul.mubr.msk.f32.vlgmr.msra.gmra.mrb[76].mxu1 %vm1969_vm1, %v11424_v22  ;;  %v11657_v40 = vmul.f32 %v11650_v35, %v19406_v50 }
0x197a   :  { %13835 = vmatpush3.bf16.msra.mxu1 %v19356_v1  ;;  %13419 = vmatprep.mubr.msk.f32.mxu1 %vm14186_vm0, %v19848_v5 }
0x197b   :  { %13836 = vmatprep.subr.bf16.mxu1 %v19847_v10 }
0x197c   :  { %v11574_v18 = vpop.permute.xlu1 %11573 }
0x197e   :  { %13838 = vmatpush3.bf16.msra.mxu1 %v13807_v11 }
0x197f   :  { %13845 = vmatprep.subr.bf16.mxu1 %v19847_v10 }
0x1981   :  { %13420 = vmatmul.mubr.msk.f32.vlgmr.msra.gmra.mrb[78].mxu1 %vm1969_vm1, %v11574_v18 }
0x1982   :  { %13441 = vmatprep.mubr.msk.f32.mxu1 %vm14186_vm0, %v19848_v5 }
0x19df   :  { %v11124_v23 = vpop.f32.mrb[74].mxu0 }
0x19e0   :  { %v13344_v63 = vpop.f32.mrb[75].mxu0 }
0x19e7   :  { %v11272_v38 = vpop.f32.mrb[76].mxu0 }
0x19e8   :  { %v11647_v56 = vadd.f32 %v11272_v38, %v19404_v4  ;;  %v13366_v46 = vpop.f32.mrb[77].mxu0 }
0x19ea   :  { %v11656_v21 = vmul.f32 %v11647_v56, %v11647_v56  ;;  %v11671_v37 = vmul.f32 %v11650_v35, %v11647_v56  ;;  %v11661_v54 = vmul.f32 %v19406_v50, %v11647_v56  ;;  %v11698_v6 = vadd.f32 %v11647_v56, %v18301_v47 }
0x19ec   :  { %v11658_v45 = vadd.f32 %v11657_v40, %v11656_v21 }
0x19ef   :  { %v11418_v39 = vpop.f32.mrb[78].mxu0 }
0x19f0   :  { %v19419_v51 = vadd.f32 %v11418_v39, %v11124_v23  ;;  %v11653_v13 = vsub.f32 %v11418_v39, %v11124_v23  ;;  %v13388_v8 = vpop.f32.mrb[79].mxu0 }
0x19f2   :  { %11743 = vrot.lane.b32.xlu1 %v11653_v13, %s14203_s1  ;;  %v11659_v41 = vmul.f32 %v11653_v13, %v19419_v51  ;;  %v11685_v61 = vmul.f32 %v11653_v13, %v11647_v56  ;;  %v11666_v0 = vmul.f32 %v19419_v51, %v11647_v56  ;;  %v11690_v52 = vmul.f32 %v11653_v13, %v19406_v50 }
0x19f4   :  { %v11660_v1 = vadd.f32 %v11659_v41, %v11658_v45 }
0x19f6   :  { %v11699_v47 = vadd.f32 %v11698_v6, %v11660_v1 }
0x19f7   :  { %v11568_v57 = vpop.f32.mrb[80].mxu0 }
0x19f8   :  { %v19422_v42 = vadd.f32 %v11568_v57, %v11199_v20  ;;  %v11654_v7 = vsub.f32 %v11568_v57, %v11199_v20  ;;  %v13410_v27 = vpop.f32.mrb[81].mxu0 }
0x19fa   :  { %v11678_v17 = vmul.f32 %v11654_v7, %v19422_v42  ;;  %v11674_v2 = vmul.f32 %v11653_v13, %v19422_v42  ;;  %v11686_v3 = vmul.f32 %v11654_v7, %v11650_v35  ;;  %v11667_v19 = vmul.f32 %v19422_v42, %v19406_v50 }
0x19fb   :  { %v11664_v8 = vmul.f32 %v11654_v7, %v19419_v51 }
0x19fc   :  { %v11695_v36 = vadd.f32 %v11678_v17, %v11659_v41  ;;  %v11687_v26 = vadd.f32 %v11686_v3, %v11685_v61  ;;  %v11668_v9 = vadd.f32 %v11667_v19, %v11666_v0  ;;  %v19910_v0 = vld [vmem:[#allocation43_spill] sm:$0xff] }
0x1a4c   :  { %v11493_v29 = vpop.f32.mrb[76].mxu1 }
0x1a4d   :  { %v11651_v12 = vadd.f32 %v11493_v29, %v19404_v4  ;;  %v13399_v16 = vpop.f32.mrb[77].mxu1 }
0x1a4f   :  { %v11676_v43 = vmul.f32 %v11651_v12, %v11651_v12  ;;  %v11672_v25 = vmul.f32 %v11651_v12, %v11650_v35  ;;  %v11662_v60 = vmul.f32 %v11651_v12, %v19406_v50  ;;  %v11730_v58 = vadd.f32 %v11651_v12, %v18303_v59 }
0x1a50   :  { %v11691_v33 = vmul.f32 %v11654_v7, %v11651_v12  ;;  %v11681_v24 = vmul.f32 %v19422_v42, %v11651_v12  ;;  %v11680_v59 = vmul.f32 %v11650_v35, %v19419_v51 }
0x1a51   :  { %v11677_v53 = vadd.f32 %v11676_v43, %v11657_v40  ;;  %v11673_v55 = vadd.f32 %v11672_v25, %v11671_v37  ;;  %v11663_v28 = vadd.f32 %v11662_v60, %v11661_v54  ;;  %v11722_v43 = vpop.permute.xlu0 %11721 }
0x1a52   :  { %v11692_v48 = vadd.f32 %v11691_v33, %v11690_v52  ;;  %v11682_v18 = vadd.f32 %v11681_v24, %v11680_v59  ;;  %v11724_v37 = vadd.f32 %v11722_v43, %v18325_v30  ;;  %v19911_v52 = vld [vmem:[#allocation13_spill] sm:$0xff] }
0x1a53   :  { %v11679_v11 = vadd.f32 %v11678_v17, %v11677_v53  ;;  %v11675_v44 = vadd.f32 %v11674_v2, %v11673_v55  ;;  %v11665_v27 = vadd.f32 %v11664_v8, %v11663_v28  ;;  %v19908_v55 = vld [vmem:[#allocation28_spill] sm:$0xff] }
0x1a54   :  { %v11643_v62 = vpop.f32.mrb[78].mxu1 }
0x1a55   :  { %v11731_v49 = vadd.f32 %v11730_v58, %v11679_v11  ;;  %v11655_v32 = vadd.f32 %v11643_v62, %v19404_v4  ;;  %v13421_v15 = vpop.f32.mrb[79].mxu1  ;;  %11726 = vrot.lane.b32.xlu0 %v11675_v44, %s14203_s1  ;;  %v19909_v44 = vld [vmem:[#allocation39_spill] sm:$0xff] }
0x1a57   :  { %v11696_v20 = vmul.f32 %v11655_v32, %v11655_v32  ;;  %v11688_v14 = vmul.f32 %v11655_v32, %v11653_v13  ;;  %v11693_v34 = vmul.f32 %v11655_v32, %v11654_v7  ;;  %v11669_v22 = vmul.f32 %v11655_v32, %v19419_v51 }
0x1a58   :  { %v11683_v4 = vmul.f32 %v11655_v32, %v19422_v42  ;;  %v11764_v23 = vadd.f32 %v11731_v49, %v11699_v47  ;;  %v11762_v38 = vadd.f32 %v11655_v32, %v18305_v31 }
0x1a59   :  { %v11697_v63 = vadd.f32 %v11696_v20, %v11695_v36  ;;  %11753 = vrot.lane.b32.xlu0 %v11654_v7, %s14203_s1  ;;  %v11689_v35 = vadd.f32 %v11688_v14, %v11687_v26  ;;  %v11694_v56 = vadd.f32 %v11693_v34, %v11692_v48  ;;  %v11670_v46 = vadd.f32 %v11669_v22, %v11668_v9 }
0x1a5a   :  { %v11684_v39 = vadd.f32 %v11683_v4, %v11682_v18 }
0x1a5b   :  { %11748 = vrot.lane.b32.xlu1 %v11689_v35, %s14203_s1  ;;  %v11763_v13 = vadd.f32 %v11762_v38, %v11697_v63 }
0x1a5d   :  { %11701 = vrot.lane.b32.xlu0 %v19406_v50, %s14199_s11  ;;  %v11765_v57 = vadd.f32 %v11764_v23, %v11763_v13 }
0x1a5f   :  { %11758 = vrot.lane.b32.xlu1 %v11694_v56, %s14203_s1  ;;  %v19450_v21 = vmul.f32 0.33333334, %v11765_v57 }
0x1a61   :  { %11706 = vrot.lane.b32.xlu0 %v11665_v27, %s14199_s11  ;;  %v11785_v31 = vsub.f32 %v11699_v47, %v19450_v21  ;;  %v11790_v29 = vsub.f32 %v11731_v49, %v19450_v21  ;;  %v11793_v12 = vsub.f32 %v11763_v13, %v19450_v21 }
0x1a63   :  { %11711 = vrot.lane.b32.xlu1 %v19419_v51, %s14199_s11  ;;  %v11802_v50 = vmul.f32 %v11785_v31, %v11785_v31  ;;  %v11803_v16 = vmul.f32 %v11790_v29, %v11790_v29  ;;  %v11805_v40 = vmul.f32 %v11793_v12, %v11793_v12  ;;  %v19907_v51 = vld [vmem:[#allocation38_spill] sm:$0xff] }
0x1a64   :  { %v11744_v54 = vpop.permute.xlu1 %11743 }
0x1a65   :  { %11733 = vrot.lane.b32.xlu0 %v19422_v42, %s14199_s11  ;;  %v11804_v7 = vadd.f32 %v11803_v16, %v11802_v50  ;;  %v11746_v60 = vadd.f32 %v11744_v54, %v19907_v51  ;;  %v11794_v50 = vmul.f32 3.0, %v19450_v21 }
0x1a67   :  { %11716 = vrot.lane.b32.xlu1 %v11670_v46, %s14199_s11  ;;  %v19461_v41 = vadd.f32 %v11805_v40, %v11804_v7  ;;  %v11795_v16 = vmul.f32 %v11794_v50, %v19450_v21 }
0x1a69   :  { %v11818_v7 = vsel %vm1969_vm1, %v11795_v16, 0.0 }
0x1a6b   :  { %11738 = vrot.lane.b32.xlu1 %v11684_v39, %s14199_s11  ;;  %s14204_s11 = smov [#allocation2]  }
0x1a6c   :  { %s12141_s4 = sshll.u32 %s14204_s11, 4  ;;  %s12142_s4 = int_to_ptr.vmem [resolvable:$true] %s12141_s4 }
0x1a6d   :  { %s14160_s21 = scalar_lea.vmem %s12142_s4, 128  ;;  %p14165_p1 = scmp.lt.s32.totalorder %s12142_s4, %s12142_s4 }
0x1a6e   :  { %p14161_p0 = scmp.ne.s32.totalorder %s12142_s4, %s14160_s21  ;;  %p14166_p2 = scmp.lt.s32.totalorder %s14160_s21, %s14160_s21 }
0x1a70   :  { %p14167_p3 = por %p14166_p2, %p14165_p1 }
0x1a72   :  { %p14168_p4 = pnand %p14167_p3, %p14161_p0 }
0x1ac7   :  { %v11727_v25 = vpop.permute.xlu0 %11726 }
0x1ac8   :  { %v11729_v45 = vadd.f32 %v11727_v25, %v11724_v37 }
0x1aca   :  { %11768 = vrot.lane.b32.xlu0 %v11729_v45, %s14202_s30 }
0x1acb   :  { %v11754_v17 = vpop.permute.xlu0 %11753 }
0x1acc   :  { %v11756_v2 = vadd.f32 %v11754_v17, %v19908_v55 }
0x1acd   :  { %v11749_v42 = vpop.permute.xlu1 %11748 }
0x1ace   :  { %v11751_v53 = vadd.f32 %v11749_v42, %v11746_v60 }
0x1acf   :  { %v11702_v28 = vpop.permute.xlu0 %11701 }
0x1ad0   :  { %11774 = vrot.lane.b32.xlu1 %v11751_v53, %s14202_s30  ;;  %v11704_v33 = vadd.f32 %v11702_v28, %v19909_v44  ;;  %v12312_v28 = vld [vmem:[%s19579_s24] ss:$0 sm:$0xff] }
0x1ad1   :  { %v11759_v1 = vpop.permute.xlu1 %11758 }
0x1ad2   :  { %v11761_v3 = vadd.f32 %v11759_v1, %v11756_v2 }
0x1ad3   :  { %v11707_v19 = vpop.permute.xlu0 %11706 }
0x1ad4   :  { %11780 = vrot.lane.b32.xlu0 %v11761_v3, %s14202_s30  ;;  %v11709_v61 = vadd.f32 %v11707_v19, %v11704_v33  ;;  %v12311_v3 = vld [vmem:[%s19578_s23] ss:$0 sm:$0xff] }
0x1ad5   :  { %v11712_v30 = vpop.permute.xlu1 %11711  ;;  %v11887_v33 = vld [vmem:[%s19580_s25] sm:$0xff] }
0x1ad6   :  { %v11714_v24 = vadd.f32 %v11712_v30, %v19910_v0  ;;  %v11890_v0 = vld [vmem:[%s19580_s25 + $0x18] sm:$0xff] }
0x1ad7   :  { %v11734_v58 = vpop.permute.xlu0 %11733 }
0x1ad8   :  { %v11736_v59 = vadd.f32 %v11734_v58, %v19911_v52 }
0x1ad9   :  { %v11717_v11 = vpop.permute.xlu1 %11716 }
0x1ada   :  { %v11719_v49 = vadd.f32 %v11717_v11, %v11714_v24 }
0x1add   :  { %v11739_v6 = vpop.permute.xlu1 %11738 }
0x1ade   :  { %v11741_v47 = vadd.f32 %v11739_v6, %v11736_v59  ;;  %v11888_v6 = vld [vmem:[%s19580_s25 + $0x8] sm:$0xff]  ;;  %v11894_v59 = vld [vmem:[%s19580_s25 + $0x38] sm:$0xff] }
0x1b3c   :  { %v11769_v62 = vpop.permute.xlu0 %11768 }
0x1b3d   :  { %v11771_v32 = vsub.f32 %v11709_v61, %v11769_v62  ;;  %v11786_v15 = vadd.f32 %v11769_v62, %v11709_v61  ;;  %v13846_v62 = vpack.c.bf16 %v11888_v6, %v11887_v33  ;;  %v11889_v61 = vld [vmem:[%s19580_s25 + $0x10] sm:$0xff] }
0x1b3e   :  { %v13849_v24 = vpack.c.bf16 %v11890_v0, %v11889_v61 }
0x1b3f   :  { %v11772_v20 = vmul.f32 0.5, %v11771_v32  ;;  %v11787_v14 = vmul.f32 0.5, %v11786_v15  ;;  %13847 = vmatpush3.bf16.msra.mxu1 %v13846_v62  ;;  %v11892_v32 = vld [vmem:[%s19580_s25 + $0x28] sm:$0xff]  ;;  %v11893_v15 = vld [vmem:[%s19580_s25 + $0x30] sm:$0xff] }
0x1b40   :  { %13848 = vmatprep.subr.bf16.mxu1 %v19847_v10 }
0x1b41   :  { %v11796_v38 = vmul.f32 %v11772_v20, %v11772_v20  ;;  %v11807_v35 = vmul.f32 %v11787_v14, %v11787_v14 }
0x1b42   :  { %v11775_v36 = vpop.permute.xlu1 %11774 }
0x1b43   :  { %v11777_v26 = vsub.f32 %v11719_v49, %v11775_v36  ;;  %v11788_v9 = vadd.f32 %v11775_v36, %v11719_v49  ;;  %13850 = vmatpush3.bf16.msra.mxu1 %v13849_v24  ;;  %v11891_v49 = vld [vmem:[%s19580_s25 + $0x20] sm:$0xff]  ;;  %v13843_v36 = vpack.c.bf16 %v11894_v59, %v11893_v15 }
0x1b44   :  { %v13840_v52 = vpack.c.bf16 %v11892_v32, %v11891_v49 }
0x1b45   :  { %v11778_v48 = vmul.f32 0.5, %v11777_v26  ;;  %v11789_v34 = vmul.f32 0.5, %v11788_v9 }
0x1b46   :  { %v11781_v22 = vpop.permute.xlu0 %11780  ;;  %13841 = vmatpush3.bf16.msra.mxu0 %v13840_v52 }
0x1b47   :  { %v11797_v18 = vmul.f32 %v11778_v48, %v11778_v48  ;;  %v11808_v4 = vmul.f32 %v11789_v34, %v11789_v34  ;;  %v11783_v23 = vsub.f32 %v11741_v47, %v11781_v22  ;;  %v11791_v63 = vadd.f32 %v11781_v22, %v11741_v47  ;;  %13842 = vmatprep.subr.bf16.mxu0 %v19847_v10 }
0x1b49   :  { %v11784_v56 = vmul.f32 0.5, %v11783_v23  ;;  %v11792_v46 = vmul.f32 0.5, %v11791_v63  ;;  %v11798_v39 = vadd.f32 %v11797_v18, %v11796_v38  ;;  %v11809_v13 = vadd.f32 %v11808_v4, %v11807_v35 }
0x1b4a   :  { %13844 = vmatpush3.bf16.msra.mxu0 %v13843_v36 }
0x1b4b   :  { %v11799_v8 = vmul.f32 %v11784_v56, %v11784_v56  ;;  %v11810_v57 = vmul.f32 %v11792_v46, %v11792_v46  ;;  %13851 = vmatprep.subr.bf16.mxu0 %v19847_v10  ;;  %v11895_v56 = vld [vmem:[%s19580_s25 + $0x40] sm:$0xff]  ;;  %v11896_v46 = vld [vmem:[%s19580_s25 + $0x48] sm:$0xff] }
0x1b4d   :  { %v11800_v27 = vadd.f32 %v11799_v8, %v11798_v39  ;;  %v11811_v31 = vadd.f32 %v11810_v57, %v11809_v13  ;;  %v13852_v13 = vpack.c.bf16 %v11896_v46, %v11895_v56  ;;  %v11897_v57 = vld [vmem:[%s19580_s25 + $0x50] sm:$0xff] }
0x1b4f   :  { %v11801_v29 = vmul.f32 2.0, %v11800_v27  ;;  %v11812_v12 = vmul.f32 2.0, %v11811_v31  ;;  %v11898_v27 = vld [vmem:[%s19580_s25 + $0x58] sm:$0xff] }
0x1b51   :  { %11814 = vrot.lane.b32.xlu1 %v11812_v12, %s14202_s30  ;;  %11822 = vrot.lane.b32.xlu0 %v11801_v29, %s14202_s30 }
0x1b75   :  { %11819 = vadd.xlane.f32.xlu1 %v11818_v7 }
0x1bc3   :  { %v11815_v40 = vpop.permute.xlu1 %11814  ;;  %v11823_v43 = vpop.permute.xlu0 %11822 }
0x1bc4   :  { %v11817_v37 = vadd.f32 %v11815_v40, %v19461_v41  ;;  %v11825_v25 = vsel %vm1969_vm1, %v11823_v43, 0.0 }
0x1bc5   :  { %11826 = vadd.xlane.f32.xlu0 %v11825_v25 }
0x1bc6   :  { %v11829_v45 = vsel %vm1969_vm1, %v11817_v37, 0.0 }
0x1bc9   :  { %11830 = vadd.xlane.f32.xlu0 %v11829_v45 }
0x1c02   :  { %v11820_v51 = vpop.xlane.xlu1 %11819 }
0x1c52   :  { %v11827_v54 = vpop.xlane.xlu0 %11826 }
0x1c53   :  { %v11828_v60 = vadd.f32 %v11827_v54, %v11820_v51  ;;  %v12316_v54 = vld [vmem:[%s19581_s26] ss:$0 sm:$0xff] }
0x1c56   :  { %v11831_v17 = vpop.xlane.xlu0 %11830 }
0x1c57   :  { %v11832_v42 = vadd.f32 %v11831_v17, %v11828_v60 }
0x1c59   :  { %v11833_v53 = vmul.f32 0.010416667, %v11832_v42 }
0x1c5b   :  { %v11834_v21 = vsub.f32 %v11795_v16, %v11833_v53  ;;  %v11835_v55 = vsub.f32 %v11801_v29, %v11833_v53  ;;  %v11836_v30 = vsub.f32 %v11817_v37, %v11833_v53  ;;  %v13855_v29 = vpack.c.bf16 %v11898_v27, %v11897_v57 }
0x1c5d   :  { %v11841_v2 = vmul.f32 %v11835_v55, %v11835_v55  ;;  %v11837_v1 = vmul.f32 %v11834_v21, %v11834_v21  ;;  %v11850_v58 = vmul.f32 %v11836_v30, %v11836_v30 }
0x1c5f   :  { %11843 = vrot.lane.b32.xlu1 %v11841_v2, %s14202_s30  ;;  %v11838_v41 = vsel %vm1969_vm1, %v11837_v1, 0.0  ;;  %v11851_v44 = vsel %vm1969_vm1, %v11850_v58, 0.0 }
0x1c60   :  { %11839 = vadd.xlane.f32.xlu0 %v11838_v41 }
0x1c63   :  { %11879 = vrot.lane.b32.xlu1 %v12311_v3, %s14203_s1 }
0x1c67   :  { %11883 = vrot.lane.b32.xlu1 %v12312_v28, %s14203_s1 }
0x1cd1   :  { %v11844_v19 = vpop.permute.xlu1 %11843 }
0x1cd2   :  { %v11846_v11 = vsel %vm1969_vm1, %v11844_v19, 0.0 }
0x1cd3   :  { %11847 = vadd.xlane.f32.xlu0 %v11846_v11 }
0x1cd5   :  { %v11880_v39 = vpop.permute.xlu1 %11879 }
0x1cd7   :  { %11852 = vadd.xlane.f32.xlu0 %v11851_v44 }
0x1cd9   :  { %v11884_v50 = vpop.permute.xlu1 %11883 }
0x1ced   :  { %v11840_v26 = vpop.xlane.xlu0 %11839 }
0x1d60   :  { %v11848_v9 = vpop.xlane.xlu0 %11847 }
0x1d61   :  { %v11849_v47 = vadd.f32 %v11848_v9, %v11840_v26 }
0x1d64   :  { %v11853_v20 = vpop.xlane.xlu0 %11852 }
0x1d65   :  { %v11854_v14 = vadd.f32 %v11853_v20, %v11849_v47 }
0x1d67   :  { %v11855_v48 = vmul.f32 0.010416667, %v11854_v14 }
0x1d69   :  { %v11856_v34 = vadd.f32 1e-05, %v11855_v48 }
0x1d6b   :  { %14156 = vrsqrt.f32 %v11856_v34 }
0x1d75   :  { %v14157_v22 = vpop.eup %14156 }
0x1d76   :  { %v11875_v18 = vmul.f32 %v14157_v22, %v11835_v55  ;;  %v11860_v4 = vmul.f32 %v14157_v22, %v11834_v21  ;;  %v11878_v8 = vmul.f32 %v14157_v22, %v11836_v30 }
0x1d78   :  { %v11876_v23 = vmul.f32 %v12311_v3, %v11875_v18  ;;  %v11867_v63 = vmul.f32 %v12311_v3, %v11860_v4  ;;  %v11882_v12 = vmul.f32 %v11880_v39, %v11878_v8 }
0x1d7a   :  { %v11877_v38 = vadd.f32 %v12312_v28, %v11876_v23  ;;  %v11874_v35 = vadd.f32 %v12312_v28, %v11867_v63  ;;  %v11886_v16 = vadd.f32 %v11884_v50, %v11882_v12 }
0x1d7c   :  { %11900 = vrot.lane.b32.xlu0 %v11877_v38, %s14202_s30  ;;  %13442 = vmatmul.mubr.msk.f32.vlgmr.msra.gmra.mrb[80].mxu1 %vm1969_vm1, %v11874_v35 }
0x1dee   :  { %v11901_v31 = vpop.permute.xlu0 %11900 }
0x1def   :  { %13431 = vmatmul.mubr.msk.f32.vlgmr.msra.gmra.mrb[82].mxu0 %vm1969_vm1, %v11901_v31 }
0x1df0   :  { %13853 = vmatpush3.bf16.msra.mxu0 %v13852_v13  ;;  %13452 = vmatprep.mubr.msk.f32.mxu0 %vm14186_vm0, %v19848_v5 }
0x1df1   :  { %13854 = vmatprep.subr.bf16.mxu0 %v19847_v10 }
0x1df4   :  { %13856 = vmatpush3.bf16.msra.mxu0 %v13855_v29 }
0x1df7   :  { %13453 = vmatmul.mubr.msk.f32.vlgmr.msra.gmra.mrb[84].mxu0 %vm1969_vm1, %v11886_v16 }
0x1e4f   :  { %v12043_v7 = vpop.f32.mrb[80].mxu1 }
0x1e50   :  { %v13443_v40 = vpop.f32.mrb[81].mxu1 }
0x1ec2   :  { %v11970_v43 = vpop.f32.mrb[82].mxu0 }
0x1ec3   :  { %v12044_v37 = vadd.f32 %v12043_v7, %v11970_v43  ;;  %v13432_v25 = vpop.f32.mrb[83].mxu0 }
0x1eca   :  { %v12116_v45 = vpop.f32.mrb[84].mxu0 }
0x1ecb   :  { %v12120_v51 = vadd.f32 %v12116_v45, %v12044_v37  ;;  %v13454_v5 = vpop.f32.mrb[85].mxu0 }
0x1ecd   :  { %v12128_v60 = vadd.f32 %v12316_v54, %v12120_v51 }
0x1ecf   :  { %v12129_v17 = vmul.f32 0.5, %v12128_v60 }
0x1ed1   :  { %14158 = vtanh.f32 %v12129_v17 }
0x1edb   :  { %v14159_v10 = vpop.eup %14158 }
0x1edc   :  { %v12131_v42 = vmul.f32 0.5, %v14159_v10 }
0x1ede   :  { %v12132_v53 = vadd.f32 0.5, %v12131_v42 }
0x1ee0   :  { %v12133_v21 = vmul.f32 %v12132_v53, %v12128_v60 }
0x1ee2   :  { %12134 = vst.msk [vmem:[#allocation2] sm:$0xff] %vm1969_vm1, %v12133_v21 }
0x1ee3   :  { %14171 = shalt.err (!%p14168_p4)
}
0x1ee4   :  { %s14172_s5 = scalar_lea.hbm %s19582_s27, 128 }
0x1ee5   :  { %p14173_p5 = scmp.ne.s32.totalorder %s19582_s27, %s14172_s5  ;;  %p14176_p6 = scmp.lt.u32.totalorder %s14172_s5, %s19582_s27 }
0x1ee7   :  { %p14178_p7 = pnand %p14176_p6, %p14173_p5 }
0x1ee9   :  { %14181 = shalt.err (!%p14178_p7)
}
0x1eea   :  { %12144 = dma.vmem_to_hbm [thread:$0]  %s12142_s4, 128, %s19582_s27, [#allocation3]  }
0x1eeb   :  { %14182 = dma.done.wait [#allocation3], 128  }
0x1eec   :  { %14183 = vsyncadd [#allocation3], 4294967168 }
0x1eed   :  { %12148 = vsyncpa [#allocation3], 1 }

</bundles_post_ra>
